<compile_context>
chip_gen: v7x
topology: tpu7x:2x2x1
jax: 0.10.0
libtpu: 0.0.40
codegen_flags: <defaults>
</compile_context>

<pallas_src>
import jax
import jax.numpy as jnp
from jax.experimental import pallas as pl
from jax.experimental.pallas import tpu as pltpu

_LANE = 128
_ROW_PAD = 512                        # round N up to this; bounds padded work
_BLOCK_REQ = 1024                     # requested row / reduction tile size
_X_RESIDENT_BYTES = 6 * 1024 * 1024   # keep whole feature matrix in VMEM below this
_VMEM_LIMIT = 48 * 1024 * 1024        # explicit scoped-VMEM raise (v5e default 16 MiB)


def _round_up(x, m):
    return ((x + m - 1) // m) * m


def _pick_block(total, requested):
    """Largest power-of-two-halving of `requested` that divides `total`."""
    b = min(requested, total)
    while total % b:
        b //= 2
    return b


# ---------------------------------------------------------------------------
# Kernels
# ---------------------------------------------------------------------------
def _make_layer1_kernel(fpad, hpad, opad, block_k, x_resident):
    """acc = sum_k A[i,k] @ Xc[k]; finalize: z = acc_half @ W1, s = z @ W2."""

    def kernel(a_ref, x_ref, w1_ref, w2_ref, z_ref, s_ref, acc_ref):
        k = pl.program_id(1)

        @pl.when(k == 0)
        def _init():
            acc_ref[...] = jnp.zeros_like(acc_ref)

        if x_resident:
            start = pl.multiple_of(k * block_k, block_k)
            x_blk = x_ref[pl.ds(start, block_k), :]
        else:
            x_blk = x_ref[...]

        acc_ref[...] += jnp.dot(a_ref[...], x_blk,
                                preferred_element_type=jnp.float32)

        @pl.when(k == pl.num_programs(1) - 1)
        def _finalize():
            acc = acc_ref[...].astype(w1_ref.dtype)
            # Two dots against the single padded W1 (no block-diag zeros).
            z_o = jnp.dot(acc[:, :fpad], w1_ref[...],
                          preferred_element_type=jnp.float32)
            z_a = jnp.dot(acc[:, fpad:], w1_ref[...],
                          preferred_element_type=jnp.float32)
            z_ref[:, :hpad] = z_o.astype(z_ref.dtype)
            z_ref[:, hpad:] = z_a.astype(z_ref.dtype)
            # Fused layer-2 pre-projection s = z @ W2 (acc already resident).
            s_o = jnp.dot(z_o.astype(w2_ref.dtype), w2_ref[...],
                          preferred_element_type=jnp.float32)
            s_a = jnp.dot(z_a.astype(w2_ref.dtype), w2_ref[...],
                          preferred_element_type=jnp.float32)
            s_ref[:, :opad] = s_o.astype(s_ref.dtype)
            s_ref[:, opad:] = s_a.astype(s_ref.dtype)

    return kernel


def _make_propagate_kernel(block_k, x_resident):
    """out[i] = sum_k A[i,k] @ X[k], accumulated directly into the output."""

    def kernel(a_ref, x_ref, out_ref):
        k = pl.program_id(1)

        @pl.when(k == 0)
        def _init():
            out_ref[...] = jnp.zeros_like(out_ref)

        if x_resident:
            start = pl.multiple_of(k * block_k, block_k)
            x_blk = x_ref[pl.ds(start, block_k), :]
        else:
            x_blk = x_ref[...]

        out_ref[...] += jnp.dot(a_ref[...], x_blk,
                                preferred_element_type=jnp.float32)

    return kernel


# ---------------------------------------------------------------------------
# pallas_call wrappers
# ---------------------------------------------------------------------------
def _layer1(adj, x_cat, w1, w2, *, fpad, hpad, opad, block_m, block_k,
            compute_dtype):
    npad = adj.shape[0]
    xc = x_cat.shape[1]  # 2 * fpad
    grid = (npad // block_m, npad // block_k)
    x_resident = x_cat.size * x_cat.dtype.itemsize <= _X_RESIDENT_BYTES

    if x_resident:
        x_spec = pl.BlockSpec((npad, xc), lambda i, k: (0, 0))
    else:
        x_spec = pl.BlockSpec((block_k, xc), lambda i, k: (k, 0))

    kernel = _make_layer1_kernel(fpad, hpad, opad, block_k, x_resident)

    x_streams = 1 if x_resident else grid[0]
    flops = (2 * npad * npad * xc                 # propagation
             + 2 * 2 * npad * fpad * hpad         # z projection (both views)
             + 2 * 2 * npad * hpad * opad)        # fused s projection
    bytes_accessed = (adj.size * adj.dtype.itemsize
                      + x_cat.size * x_cat.dtype.itemsize * x_streams
                      + w1.size * w1.dtype.itemsize
                      + w2.size * w2.dtype.itemsize
                      + npad * 2 * hpad * 4
                      + npad * 2 * opad * jnp.dtype(compute_dtype).itemsize)

    return pl.pallas_call(
        kernel,
        grid=grid,
        in_specs=[pl.BlockSpec((block_m, block_k), lambda i, k: (i, k)),  # A
                  x_spec,                                                 # Xc
                  pl.BlockSpec((fpad, hpad), lambda i, k: (0, 0)),        # W1
                  pl.BlockSpec((hpad, opad), lambda i, k: (0, 0))],       # W2
        out_specs=[pl.BlockSpec((block_m, 2 * hpad), lambda i, k: (i, 0)),
                   pl.BlockSpec((block_m, 2 * opad), lambda i, k: (i, 0))],
        out_shape=[jax.ShapeDtypeStruct((npad, 2 * hpad), jnp.float32),
                   jax.ShapeDtypeStruct((npad, 2 * opad), compute_dtype)],
        scratch_shapes=[pltpu.VMEM((block_m, xc), jnp.float32)],
        compiler_params=pltpu.CompilerParams(
            dimension_semantics=("parallel", "arbitrary"),
            vmem_limit_bytes=_VMEM_LIMIT),
        cost_estimate=pl.CostEstimate(flops=flops, transcendentals=0,
                                      bytes_accessed=bytes_accessed),
    )(adj, x_cat, w1, w2)


def _layer2(adj, s_cat, *, block_m, block_k):
    npad = adj.shape[0]
    sc = s_cat.shape[1]
    grid = (npad // block_m, npad // block_k)
    s_resident = s_cat.size * s_cat.dtype.itemsize <= _X_RESIDENT_BYTES

    if s_resident:
        s_spec = pl.BlockSpec((npad, sc), lambda i, k: (0, 0))
    else:
        s_spec = pl.BlockSpec((block_k, sc), lambda i, k: (k, 0))

    kernel = _make_propagate_kernel(block_k, s_resident)

    s_streams = 1 if s_resident else grid[0]
    flops = 2 * npad * npad * sc
    bytes_accessed = (adj.size * adj.dtype.itemsize
                      + s_cat.size * s_cat.dtype.itemsize * s_streams
                      + npad * sc * 4)

    return pl.pallas_call(
        kernel,
        grid=grid,
        in_specs=[pl.BlockSpec((block_m, block_k), lambda i, k: (i, k)),
                  s_spec],
        out_specs=pl.BlockSpec((block_m, sc), lambda i, k: (i, 0)),
        out_shape=jax.ShapeDtypeStruct((npad, sc), jnp.float32),
        compiler_params=pltpu.CompilerParams(
            dimension_semantics=("parallel", "arbitrary"),
            vmem_limit_bytes=_VMEM_LIMIT),
        cost_estimate=pl.CostEstimate(flops=flops, transcendentals=0,
                                      bytes_accessed=bytes_accessed),
    )(adj, s_cat)


# ---------------------------------------------------------------------------
# CGAE forward
# ---------------------------------------------------------------------------
def cgae_forward(feat, feat_a, fadj, w_z, w_xhat, *,
                 compute_dtype=jnp.bfloat16,
                 block_m=_BLOCK_REQ, block_k=_BLOCK_REQ):
    """CGAE.forward: z layer then x_hat (decoder) layer on both views."""
    n, nfeat = feat.shape
    nhid = w_z.shape[1]
    nout = w_xhat.shape[1]
    cdt = compute_dtype

    fpad = _round_up(nfeat, _LANE)
    hpad = _round_up(nhid, _LANE)
    opad = _round_up(nout, _LANE)
    npad = _round_up(n, _ROW_PAD)
    bm = _pick_block(npad, block_m)
    bk = _pick_block(npad, block_k)

    # Cast BEFORE padding so the one-time N^2 pad pass materializes bf16.
    adj_c = jnp.pad(fadj.astype(cdt), ((0, npad - n), (0, npad - n)))
    x_cat = jnp.concatenate(
        [jnp.pad(feat.astype(cdt), ((0, npad - n), (0, fpad - nfeat))),
         jnp.pad(feat_a.astype(cdt), ((0, npad - n), (0, fpad - nfeat)))],
        axis=1)
    w1 = jnp.pad(w_z.astype(cdt), ((0, fpad - nfeat), (0, hpad - nhid)))
    w2 = jnp.pad(w_xhat.astype(cdt), ((0, hpad - nhid), (0, opad - nout)))

    # Layer 1 (fused with the layer-2 pre-projection s = z @ W2).
    z_cat, s_cat = _layer1(adj_c, x_cat, w1, w2,
                           fpad=fpad, hpad=hpad, opad=opad,
                           block_m=bm, block_k=bk, compute_dtype=cdt)
    # Layer 2: pure propagation xhat = A @ s.
    xh_cat = _layer2(adj_c, s_cat, block_m=bm, block_k=bk)

    z_ori = z_cat[:n, :nhid]
    z_aug = z_cat[:n, hpad:hpad + nhid]
    xh_ori = xh_cat[:n, :nout]
    xh_aug = xh_cat[:n, opad:opad + nout]
    return z_ori, z_aug, xh_ori, xh_aug


# ---------------------------------------------------------------------------
# Test harness
# ---------------------------------------------------------------------------
def _glorot(key, fan_in, fan_out):
    limit = jnp.sqrt(6.0 / (fan_in + fan_out))
    return jax.random.uniform(key, (fan_in, fan_out),
                              minval=-limit, maxval=limit, dtype=jnp.float32)


def _reference(feat, feat_a, fadj, w_z, w_xhat, cdt):
    """Pure-JAX reference mirroring the kernel's casts and associations."""
    a_c = fadj.astype(cdt)
    w1 = w_z.astype(cdt)
    w2 = w_xhat.astype(cdt)

    def layer1(x):
        t = jnp.dot(a_c, x.astype(cdt), preferred_element_type=jnp.float32)
        z = jnp.dot(t.astype(cdt), w1, preferred_element_type=jnp.float32)
        s = jnp.dot(z.astype(cdt), w2,
                    preferred_element_type=jnp.float32).astype(cdt)
        return z, s

    z_o, s_o = layer1(feat)
    z_a, s_a = layer1(feat_a)
    xh_o = jnp.dot(a_c, s_o, preferred_element_type=jnp.float32)
    xh_a = jnp.dot(a_c, s_a, preferred_element_type=jnp.float32)
    return z_o, z_a, xh_o, xh_a


if __name__ == "__main__":
    # Small synthetic graph: N=600 nodes (pads to 1024), nfeat=20 (pads 128),
    # nhid=160 (pads 256), out=24 (pads 128).
    N, NFEAT, NHID, NOUT = 600, 20, 160, 24

    key = jax.random.PRNGKey(0)
    k_feat, k_feat_a, k_adj, k_w1, k_w2 = jax.random.split(key, 5)

    feat = jax.random.normal(k_feat, (N, NFEAT), dtype=jnp.float32)
    feat_a = jax.random.normal(k_feat_a, (N, NFEAT), dtype=jnp.float32)

    # Deterministic symmetric normalized adjacency with self-loops.
    a = (jax.random.uniform(k_adj, (N, N)) > 0.5).astype(jnp.float32)
    a = ((a + a.T) > 0).astype(jnp.float32) + jnp.eye(N, dtype=jnp.float32)
    deg = jnp.sum(a, axis=1)
    d_inv_sqrt = 1.0 / jnp.sqrt(deg)
    fadj = a * d_inv_sqrt[:, None] * d_inv_sqrt[None, :]

    # Deterministic Glorot-uniform weights (shapes from __init__).
    w_z = _glorot(k_w1, NFEAT, NHID)      # z_layer:     nfeat -> nhid
    w_xhat = _glorot(k_w2, NHID, NOUT)    # x_hat_layer: nhid  -> out

    outs = cgae_forward(feat, feat_a, fadj, w_z, w_xhat)
    outs = jax.block_until_ready(outs)

    refs = _reference(feat, feat_a, fadj, w_z, w_xhat, jnp.bfloat16)
    for name, got, ref in zip(("z_ori", "z_aug", "xhat_ori", "xhat_aug"),
                              outs, refs):
        assert got.shape == ref.shape, name
        assert jnp.allclose(got, ref, atol=1e-2, rtol=1e-2), name

    print("KERNEL_OK")
</pallas_src>

<mosaic_0001>
module attributes {stable_mosaic.version = 11 : i64} {
  func.func @kernel(%arg0: i32, %arg1: i32, %arg2: memref<1024x1024xbf16, #tpu.memory_space<vmem>>, %arg3: memref<1024x256xbf16, #tpu.memory_space<vmem>>, %arg4: memref<128x256xbf16, #tpu.memory_space<vmem>>, %arg5: memref<256x128xbf16, #tpu.memory_space<vmem>>, %arg6: memref<1024x512xf32, #tpu.memory_space<vmem>>, %arg7: memref<1024x256xbf16, #tpu.memory_space<vmem>>, %arg8: memref<1024x256xf32, #tpu.memory_space<vmem>>) attributes {dimension_semantics = [#tpu.dimension_semantics<parallel>, #tpu.dimension_semantics<arbitrary>], iteration_bounds = array<i64: 1, 1>, scalar_prefetch = 0 : i64, scratch_operands = 1 : i64, tpu.core_type = #tpu.core_type<tc>, window_params = [{transform_indices = @transform_0, window_bounds = array<i64: 1024, 1024>}, {pipeline_mode = #tpu.pipeline_mode<synchronous>, transform_indices = @transform_1, window_bounds = array<i64: 1024, 256>}, {pipeline_mode = #tpu.pipeline_mode<synchronous>, transform_indices = @transform_2, window_bounds = array<i64: 128, 256>}, {pipeline_mode = #tpu.pipeline_mode<synchronous>, transform_indices = @transform_3, window_bounds = array<i64: 256, 128>}, {transform_indices = @transform_4, window_bounds = array<i64: 1024, 512>}, {transform_indices = @transform_5, window_bounds = array<i64: 1024, 256>}]} {
    %c0_i32 = arith.constant 0 : i32
    %0 = arith.cmpi eq, %arg1, %c0_i32 : i32
    %1 = arith.extui %0 : i1 to i32
    %c0_i32_0 = arith.constant 0 : i32
    %2 = arith.cmpi ne, %1, %c0_i32_0 : i32
    scf.if %2 {
      %cst_9 = arith.constant 0.000000e+00 : f32
      %15 = vector.broadcast %cst_9 : f32 to vector<1024x256xf32>
      %c0_10 = arith.constant 0 : index
      %c0_11 = arith.constant 0 : index
      %16 = vector.load %arg8[%c0_10, %c0_11] : memref<1024x256xf32, #tpu.memory_space<vmem>>, vector<1024x256xf32>
      tpu.vector_store %arg8[%c0_10, %c0_11], %15 {strides = array<i32>} : memref<1024x256xf32, #tpu.memory_space<vmem>>, vector<1024x256xf32>,
    } else {
    }
    %c1024_i32 = arith.constant 1024 : i32
    %3 = arith.muli %arg1, %c1024_i32 : i32
    %4 = tpu.assume_multiple %3, 1024 : i32
    %5 = arith.index_cast %4 : i32 to index
    %c0 = arith.constant 0 : index
    %6 = vector.load %arg3[%5, %c0] : memref<1024x256xbf16, #tpu.memory_space<vmem>>, vector<1024x256xbf16>
    %c0_1 = arith.constant 0 : index
    %c0_2 = arith.constant 0 : index
    %7 = vector.load %arg8[%c0_1, %c0_2] : memref<1024x256xf32, #tpu.memory_space<vmem>>, vector<1024x256xf32>
    %c0_3 = arith.constant 0 : index
    %c0_4 = arith.constant 0 : index
    %8 = vector.load %arg2[%c0_3, %c0_4] : memref<1024x1024xbf16, #tpu.memory_space<vmem>>, vector<1024x1024xbf16>
    %cst = arith.constant dense<0.000000e+00> : vector<1024x256xf32>
    %9 = tpu.matmul %8, %6, %cst {dimension_numbers = #tpu.dot_dimension_numbers<[1], [0], [0], [1], [0, 0, 1, 1], [], []>} : vector<1024x1024xbf16>, vector<1024x256xbf16>, vector<1024x256xf32> -> vector<1024x256xf32>
    %10 = arith.addf %7, %9 : vector<1024x256xf32>
    %c0_5 = arith.constant 0 : index
    %c0_6 = arith.constant 0 : index
    %11 = vector.load %arg8[%c0_5, %c0_6] : memref<1024x256xf32, #tpu.memory_space<vmem>>, vector<1024x256xf32>
    tpu.vector_store %arg8[%c0_5, %c0_6], %10 {strides = array<i32>} : memref<1024x256xf32, #tpu.memory_space<vmem>>, vector<1024x256xf32>,
    %c0_i32_7 = arith.constant 0 : i32
    %12 = arith.cmpi eq, %arg1, %c0_i32_7 : i32
    %13 = arith.extui %12 : i1 to i32
    %c0_i32_8 = arith.constant 0 : i32
    %14 = arith.cmpi ne, %13, %c0_i32_8 : i32
    scf.if %14 {
      %c0_9 = arith.constant 0 : index
      %c0_10 = arith.constant 0 : index
      %15 = vector.load %arg8[%c0_9, %c0_10] : memref<1024x256xf32, #tpu.memory_space<vmem>>, vector<1024x256xf32>
      %16 = arith.truncf %15 : vector<1024x256xf32> to vector<1024x256xbf16>
      %17 = vector.extract_strided_slice %16 {offsets = [0, 0], sizes = [1024, 128], strides = [1, 1]} : vector<1024x256xbf16> to vector<1024x128xbf16>
      %c0_11 = arith.constant 0 : index
      %c0_12 = arith.constant 0 : index
      %18 = vector.load %arg4[%c0_11, %c0_12] : memref<128x256xbf16, #tpu.memory_space<vmem>>, vector<128x256xbf16>
      %cst_13 = arith.constant dense<0.000000e+00> : vector<1024x256xf32>
      %19 = tpu.matmul %17, %18, %cst_13 {dimension_numbers = #tpu.dot_dimension_numbers<[1], [0], [0], [1], [0, 0, 1, 1], [], []>} : vector<1024x128xbf16>, vector<128x256xbf16>, vector<1024x256xf32> -> vector<1024x256xf32>
      %20 = vector.extract_strided_slice %16 {offsets = [0, 128], sizes = [1024, 128], strides = [1, 1]} : vector<1024x256xbf16> to vector<1024x128xbf16>
      %c0_14 = arith.constant 0 : index
      %c0_15 = arith.constant 0 : index
      %21 = vector.load %arg4[%c0_14, %c0_15] : memref<128x256xbf16, #tpu.memory_space<vmem>>, vector<128x256xbf16>
      %cst_16 = arith.constant dense<0.000000e+00> : vector<1024x256xf32>
      %22 = tpu.matmul %20, %21, %cst_16 {dimension_numbers = #tpu.dot_dimension_numbers<[1], [0], [0], [1], [0, 0, 1, 1], [], []>} : vector<1024x128xbf16>, vector<128x256xbf16>, vector<1024x256xf32> -> vector<1024x256xf32>
      %c0_17 = arith.constant 0 : index
      %c0_18 = arith.constant 0 : index
      %23 = vector.load %arg6[%c0_17, %c0_18] : memref<1024x512xf32, #tpu.memory_space<vmem>>, vector<1024x256xf32>
      tpu.vector_store %arg6[%c0_17, %c0_18], %19 {strides = array<i32>} : memref<1024x512xf32, #tpu.memory_space<vmem>>, vector<1024x256xf32>,
      %c0_19 = arith.constant 0 : index
      %c256 = arith.constant 256 : index
      %24 = vector.load %arg6[%c0_19, %c256] : memref<1024x512xf32, #tpu.memory_space<vmem>>, vector<1024x256xf32>
      tpu.vector_store %arg6[%c0_19, %c256], %22 {strides = array<i32>} : memref<1024x512xf32, #tpu.memory_space<vmem>>, vector<1024x256xf32>,
      %25 = arith.truncf %19 : vector<1024x256xf32> to vector<1024x256xbf16>
      %c0_20 = arith.constant 0 : index
      %c0_21 = arith.constant 0 : index
      %26 = vector.load %arg5[%c0_20, %c0_21] : memref<256x128xbf16, #tpu.memory_space<vmem>>, vector<256x128xbf16>
      %cst_22 = arith.constant dense<0.000000e+00> : vector<1024x128xf32>
      %27 = tpu.matmul %25, %26, %cst_22 {dimension_numbers = #tpu.dot_dimension_numbers<[1], [0], [0], [1], [0, 0, 1, 1], [], []>} : vector<1024x256xbf16>, vector<256x128xbf16>, vector<1024x128xf32> -> vector<1024x128xf32>
      %28 = arith.truncf %22 : vector<1024x256xf32> to vector<1024x256xbf16>
      %c0_23 = arith.constant 0 : index
      %c0_24 = arith.constant 0 : index
      %29 = vector.load %arg5[%c0_23, %c0_24] : memref<256x128xbf16, #tpu.memory_space<vmem>>, vector<256x128xbf16>
      %cst_25 = arith.constant dense<0.000000e+00> : vector<1024x128xf32>
      %30 = tpu.matmul %28, %29, %cst_25 {dimension_numbers = #tpu.dot_dimension_numbers<[1], [0], [0], [1], [0, 0, 1, 1], [], []>} : vector<1024x256xbf16>, vector<256x128xbf16>, vector<1024x128xf32> -> vector<1024x128xf32>
      %31 = arith.truncf %27 : vector<1024x128xf32> to vector<1024x128xbf16>
      %c0_26 = arith.constant 0 : index
      %c0_27 = arith.constant 0 : index
      %32 = vector.load %arg7[%c0_26, %c0_27] : memref<1024x256xbf16, #tpu.memory_space<vmem>>, vector<1024x128xbf16>
      tpu.vector_store %arg7[%c0_26, %c0_27], %31 {strides = array<i32>} : memref<1024x256xbf16, #tpu.memory_space<vmem>>, vector<1024x128xbf16>,
      %33 = arith.truncf %30 : vector<1024x128xf32> to vector<1024x128xbf16>
      %c0_28 = arith.constant 0 : index
      %c128 = arith.constant 128 : index
      %34 = vector.load %arg7[%c0_28, %c128] : memref<1024x256xbf16, #tpu.memory_space<vmem>>, vector<1024x128xbf16>
      tpu.vector_store %arg7[%c0_28, %c128], %33 {strides = array<i32>} : memref<1024x256xbf16, #tpu.memory_space<vmem>>, vector<1024x128xbf16>,
    } else {
    }
    return
  }
  func.func @transform_0(%arg0: i32, %arg1: i32) -> (i32, i32) {
    %c0_i32 = arith.constant 0 : i32
    return %arg0, %arg1 : i32, i32
  }
  func.func @transform_1(%arg0: i32, %arg1: i32) -> (i32, i32) {
    %c0_i32 = arith.constant 0 : i32
    %c0_i32_0 = arith.constant 0 : i32
    %c0_i32_1 = arith.constant 0 : i32
    return %c0_i32, %c0_i32_0 : i32, i32
  }
  func.func @transform_2(%arg0: i32, %arg1: i32) -> (i32, i32) {
    %c0_i32 = arith.constant 0 : i32
    %c0_i32_0 = arith.constant 0 : i32
    %c0_i32_1 = arith.constant 0 : i32
    return %c0_i32, %c0_i32_0 : i32, i32
  }
  func.func @transform_3(%arg0: i32, %arg1: i32) -> (i32, i32) {
    %c0_i32 = arith.constant 0 : i32
    %c0_i32_0 = arith.constant 0 : i32
    %c0_i32_1 = arith.constant 0 : i32
    return %c0_i32, %c0_i32_0 : i32, i32
  }
  func.func @transform_4(%arg0: i32, %arg1: i32) -> (i32, i32) {
    %c0_i32 = arith.constant 0 : i32
    %c0_i32_0 = arith.constant 0 : i32
    return %arg0, %c0_i32 : i32, i32
  }
  func.func @transform_5(%arg0: i32, %arg1: i32) -> (i32, i32) {
    %c0_i32 = arith.constant 0 : i32
    %c0_i32_0 = arith.constant 0 : i32
    return %arg0, %c0_i32 : i32, i32
  }
}

</mosaic_0001>

<bundles_post_ra>
// kernel: tpu_custom_call.1
= control target key start
LH: loop header
LB: loop body
LE: loop exit
PB: predicated region body
PF: predicated region fallthrough
CT: control target
= control target key end

     0   :  { %11 = vsyncpa [#allocation4], 0  ;;  %s18891_s0 = inlined_call_operand.hbm [shape: bf16[1024,1024], index: 0, kind: input, shape index: {}]   ;;  %s18892_s1 = inlined_call_operand.hbm [shape: bf16[1024,256], index: 1, kind: input, shape index: {}]   ;;  %s18893_s2 = inlined_call_operand.hbm [shape: bf16[128,256], index: 2, kind: input, shape index: {}]   ;;  %s18894_s3 = inlined_call_operand.hbm [shape: bf16[256,128], index: 3, kind: input, shape index: {}]   ;;  %s18895_s4 = inlined_call_operand.hbm [shape: f32[1024,512], index: 4, kind: output, shape index: {0}]   ;;  %s18896_s5 = inlined_call_operand.hbm [shape: bf16[1024,256], index: 5, kind: output, shape index: {1}]  }
   0x1   :  { %12 = vsyncpa [#allocation7], 0 }
   0x2   :  { %13 = vsyncpa [#allocation10], 0 }
   0x3   :  { %14 = vsyncpa [#allocation5], 0 }
   0x4   :  { %15 = vsyncpa [#allocation13], 0  ;;  %s15126_s18 = smov [#allocation6]   ;;  %s14984_s22 = scalar_lea.hbm %s18892_s1, 16384 }
   0x5   :  { %s33_s19 = sshll.u32 %s15126_s18, 4  ;;  %p14985_p0 = scmp.ne.s32.totalorder %s18892_s1, %s14984_s22  ;;  %s34_s19 = int_to_ptr.vmem [resolvable:$true] %s33_s19 }
   0x6   :  { %p14988_p1 = scmp.lt.u32.totalorder %s14984_s22, %s18892_s1 }
   0x8   :  { %p14990_p2 = pnand %p14988_p1, %p14985_p0 }
   0xa   :  { %14993 = shalt.err (!%p14990_p2)
}
   0xb   :  { %s14994_s27 = scalar_lea.vmem %s34_s19, 16384  ;;  %p14999_p4 = scmp.lt.s32.totalorder %s34_s19, %s34_s19 }
   0xc   :  { %p14995_p3 = scmp.ne.s32.totalorder %s34_s19, %s14994_s27  ;;  %p15000_p5 = scmp.lt.s32.totalorder %s14994_s27, %s14994_s27 }
   0xe   :  { %p15001_p6 = por %p15000_p5, %p14999_p4 }
  0x10   :  { %p15002_p7 = pnand %p15001_p6, %p14995_p3 }
  0x12   :  { %15005 = shalt.err (!%p15002_p7)
}
  0x13   :  { %s15127_s28 = smov 128   ;;  %s15128_s29 = smov 8  }
  0x14   :  { %39 = dma.hbm_to_vmem [thread:$0]  %s18892_s1, 16384, %s34_s19, [#allocation7], %s15127_s28, %s15127_s28, %s15128_s29  }
  0x15   :  { %s15129_s7 = smov [#allocation3]   ;;  %s15006_s11 = scalar_lea.hbm %s18891_s0, 65536 }
  0x16   :  { %s21_s8 = sshll.u32 %s15129_s7, 4  ;;  %p15007_p8 = scmp.ne.s32.totalorder %s18891_s0, %s15006_s11  ;;  %s22_s8 = int_to_ptr.vmem [resolvable:$true] %s21_s8 }
  0x17   :  { %p15010_p9 = scmp.lt.u32.totalorder %s15006_s11, %s18891_s0 }
  0x19   :  { %p15012_p10 = pnand %p15010_p9, %p15007_p8 }
  0x1b   :  { %15015 = shalt.err (!%p15012_p10)
}
  0x1c   :  { %s15016_s16 = scalar_lea.vmem %s22_s8, 65536  ;;  %p15021_p12 = scmp.lt.s32.totalorder %s22_s8, %s22_s8 }
  0x1d   :  { %p15017_p11 = scmp.ne.s32.totalorder %s22_s8, %s15016_s16  ;;  %p15022_p13 = scmp.lt.s32.totalorder %s15016_s16, %s15016_s16 }
  0x1f   :  { %p15023_p0 = por %p15022_p13, %p15021_p12 }
  0x21   :  { %p15024_p1 = pnand %p15023_p0, %p15017_p11 }
  0x23   :  { %15027 = shalt.err (!%p15024_p1)
}
  0x24   :  { %s15130_s1 = smov 512   ;;  %s15131_s17 = smov 32  }
  0x25   :  { %27 = dma.hbm_to_vmem [thread:$0]  %s18891_s0, 65536, %s22_s8, [#allocation4], %s15130_s1, %s15130_s1, %s15131_s17  }
  0x26   :  { %s15132_s20 = smov [#allocation8]   ;;  %s15133_s22 = smov [#allocation9]  }
  0x27   :  { %s45_s21 = sshll.u32 %s15132_s20, 4  ;;  %s57_s23 = sshll.u32 %s15133_s22, 4  ;;  %s46_s21 = int_to_ptr.vmem [resolvable:$true] %s45_s21  ;;  %s15199_s23 = int_to_ptr.vmem [resolvable:$true] %s57_s23 }
  0x28   :  { %s15028_s26 = scalar_lea.hbm %s18893_s2, 2048 }
  0x29   :  { %p15029_p2 = scmp.ne.s32.totalorder %s18893_s2, %s15028_s26  ;;  %p15032_p3 = scmp.lt.u32.totalorder %s15028_s26, %s18893_s2 }
  0x2b   :  { %p15034_p4 = pnand %p15032_p3, %p15029_p2 }
  0x2d   :  { %15037 = shalt.err (!%p15034_p4)
}
  0x2e   :  { %s15038_s0 = scalar_lea.vmem %s46_s21, 2048  ;;  %p15043_p6 = scmp.lt.s32.totalorder %s46_s21, %s46_s21 }
  0x2f   :  { %p15039_p5 = scmp.ne.s32.totalorder %s46_s21, %s15038_s0  ;;  %p15044_p7 = scmp.lt.s32.totalorder %s15038_s0, %s15038_s0 }
  0x31   :  { %p15045_p8 = por %p15044_p7, %p15043_p6 }
  0x33   :  { %p15046_p9 = pnand %p15045_p8, %p15039_p5 }
  0x35   :  { %15049 = shalt.err (!%p15046_p9)
}
  0x36   :  { %51 = dma.hbm_to_vmem [thread:$0]  %s18893_s2, 2048, %s46_s21, [#allocation7], %s15127_s28, %s15127_s28, %s15128_s29  }
  0x37   :  { %s15050_s12 = scalar_lea.hbm %s18894_s3, 2048 }
  0x38   :  { %p15051_p10 = scmp.ne.s32.totalorder %s18894_s3, %s15050_s12  ;;  %p15054_p11 = scmp.lt.u32.totalorder %s15050_s12, %s18894_s3 }
  0x3a   :  { %p15056_p12 = pnand %p15054_p11, %p15051_p10 }
  0x3c   :  { %15059 = shalt.err (!%p15056_p12)
}
  0x3d   :  { %s15060_s18 = scalar_lea.vmem %s15199_s23, 2048  ;;  %p15065_p0 = scmp.lt.s32.totalorder %s15199_s23, %s15199_s23 }
  0x3e   :  { %p15061_p13 = scmp.ne.s32.totalorder %s15199_s23, %s15060_s18  ;;  %p15066_p1 = scmp.lt.s32.totalorder %s15060_s18, %s15060_s18 }
  0x40   :  { %p15067_p2 = por %p15066_p1, %p15065_p0 }
  0x42   :  { %p15068_p3 = pnand %p15067_p2, %p15061_p13 }
  0x44   :  { %15071 = shalt.err (!%p15068_p3)
}
  0x45   :  { %s15134_s2 = smov 64   ;;  %s15135_s19 = smov 4  }
  0x46   :  { %63 = dma.hbm_to_vmem [thread:$0]  %s18894_s3, 2048, %s15199_s23, [#allocation10], %s15134_s2, %s15134_s2, %s15135_s19  }
  0x47   :  { %15116 = dma.done.wait [#allocation4], 65536  }
  0x48   :  { %15117 = vsyncadd [#allocation4], 4294901760 }
  0x49   :  { %15118 = dma.done.wait [#allocation7], 18432  }
  0x4a   :  { %15119 = vsyncadd [#allocation7], 4294948864 }
  0x4b   :  { %15120 = dma.done.wait [#allocation10], 2048  }
  0x4c   :  { %15121 = vsyncadd [#allocation10], 4294965248  ;;  %v14740_v0 = vld [vmem:[#allocation6 + $0x4] ss:$8 sps:$4 sm:$0xff]   ;;  %v14742_v1 = vld [vmem:[#allocation6] ss:$8 sps:$4 sm:$0xff]  }
  0x4d   :  { %4439 = vmatprep.subr.bf16.mxu0 %v14740_v0  ;;  %v14743_v2 = vld [vmem:[#allocation6 + $0x14] ss:$8 sps:$4 sm:$0xff]   ;;  %v14745_v3 = vld [vmem:[#allocation6 + $0x10] ss:$8 sps:$4 sm:$0xff]   ;;  %v14746_v4 = vld [vmem:[#allocation6 + $0x24] ss:$8 sps:$4 sm:$0xff]  }
  0x4e   :  { %4440 = vmatpush1.bf16.msra.mxu0 %v14742_v1  ;;  %v14748_v5 = vld [vmem:[#allocation6 + $0x20] ss:$8 sps:$4 sm:$0xff]   ;;  %v14749_v6 = vld [vmem:[#allocation6 + $0x34] ss:$8 sps:$4 sm:$0xff]   ;;  %v14751_v7 = vld [vmem:[#allocation6 + $0x30] ss:$8 sps:$4 sm:$0xff]  }
  0x4f   :  { %4441 = vmatprep.subr.bf16.mxu0 %v14743_v2  ;;  %v14752_v8 = vld [vmem:[#allocation6 + $0x44] ss:$8 sps:$4 sm:$0xff]   ;;  %v14754_v9 = vld [vmem:[#allocation6 + $0x40] ss:$8 sps:$4 sm:$0xff]   ;;  %v14755_v10 = vld [vmem:[#allocation6 + $0x54] ss:$8 sps:$4 sm:$0xff]  }
  0x50   :  { %v14757_v11 = vld [vmem:[#allocation6 + $0x50] ss:$8 sps:$4 sm:$0xff]   ;;  %v14758_v12 = vld [vmem:[#allocation6 + $0x64] ss:$8 sps:$4 sm:$0xff]   ;;  %v14760_v16 = vld [vmem:[#allocation6 + $0x60] ss:$8 sps:$4 sm:$0xff]  }
  0x51   :  { %v727_v13 = vld [vmem:[#allocation3] sm:$0xff]  ;;  %v14761_v17 = vld [vmem:[#allocation6 + $0x74] ss:$8 sps:$4 sm:$0xff]   ;;  %v14763_v18 = vld [vmem:[#allocation6 + $0x70] ss:$8 sps:$4 sm:$0xff]   ;;  %s15137_s3 = smov [#allocation11]  }
  0x52   :  { %4442 = vmatpush1.bf16.msra.mxu0 %v14745_v3  ;;  %v731_v14 = vld [vmem:[#allocation3 + $0x20] sm:$0xff]  ;;  %v14767_v21 = vld [vmem:[#allocation6 + $0x94] ss:$8 sps:$4 sm:$0xff]   ;;  %v14769_v22 = vld [vmem:[#allocation6 + $0x90] ss:$8 sps:$4 sm:$0xff]   ;;  %s12743_s22 = sshll.u32 %s15137_s3, 4  ;;  %s12744_s22 = int_to_ptr.vmem [resolvable:$true] %s12743_s22 }
  0x53   :  { %4443 = vmatprep.subr.bf16.mxu0 %v14746_v4  ;;  %v12776_v15 = vcombine.high %v727_v13, %v731_v14  ;;  %v14764_v19 = vld [vmem:[#allocation6 + $0x84] ss:$8 sps:$4 sm:$0xff]   ;;  %v14766_v20 = vld [vmem:[#allocation6 + $0x80] ss:$8 sps:$4 sm:$0xff]   ;;  %v14773_v25 = vld [vmem:[#allocation6 + $0xb4] ss:$8 sps:$4 sm:$0xff]   ;;  %v12775_v39 = vcombine.low %v727_v13, %v731_v14  ;;  %p15077_p5 = scmp.lt.s32.totalorder %s12744_s22, %s12744_s22 }
  0x54   :  { %v14770_v23 = vld [vmem:[#allocation6 + $0xa4] ss:$8 sps:$4 sm:$0xff]   ;;  %v14772_v24 = vld [vmem:[#allocation6 + $0xa0] ss:$8 sps:$4 sm:$0xff]   ;;  %v14775_v26 = vld [vmem:[#allocation6 + $0xb0] ss:$8 sps:$4 sm:$0xff]  }
  0x55   :  { %4471 = vmatprep.mubr.bf16.mxu0 %v12776_v15  ;;  %v14776_v27 = vld [vmem:[#allocation6 + $0xc4] ss:$8 sps:$4 sm:$0xff]   ;;  %v14778_v28 = vld [vmem:[#allocation6 + $0xc0] ss:$8 sps:$4 sm:$0xff]   ;;  %v14779_v29 = vld [vmem:[#allocation6 + $0xd4] ss:$8 sps:$4 sm:$0xff]  }
  0x56   :  { %4444 = vmatpush1.bf16.msra.mxu0 %v14748_v5  ;;  %v14781_v30 = vld [vmem:[#allocation6 + $0xd0] ss:$8 sps:$4 sm:$0xff]   ;;  %v14782_v31 = vld [vmem:[#allocation6 + $0xe4] ss:$8 sps:$4 sm:$0xff]   ;;  %v14784_v32 = vld [vmem:[#allocation6 + $0xe0] ss:$8 sps:$4 sm:$0xff]  }
  0x57   :  { %4445 = vmatprep.subr.bf16.mxu0 %v14749_v6  ;;  %v14785_v33 = vld [vmem:[#allocation6 + $0xf4] ss:$8 sps:$4 sm:$0xff]   ;;  %v14787_v34 = vld [vmem:[#allocation6 + $0xf0] ss:$8 sps:$4 sm:$0xff]   ;;  %v14790_v35 = vld [vmem:[#allocation6 + $0x104] ss:$8 sps:$4 sm:$0xff]  }
  0x58   :  { %v735_v36 = vld [vmem:[#allocation3 + $0x40] sm:$0xff]  ;;  %v14793_v40 = vld [vmem:[#allocation6 + $0x114] ss:$8 sps:$4 sm:$0xff]   ;;  %v14791_v44 = vld [vmem:[#allocation6 + $0x110] ss:$8 sps:$4 sm:$0xff]   ;;  %s15072_s23 = scalar_lea.vmem %s12744_s22, 65536 }
  0x59   :  { %v739_v37 = vld [vmem:[#allocation3 + $0x60] sm:$0xff]  ;;  %v14799_v48 = vld [vmem:[#allocation6 + $0x134] ss:$8 sps:$4 sm:$0xff]   ;;  %v14797_v52 = vld [vmem:[#allocation6 + $0x130] ss:$8 sps:$4 sm:$0xff]   ;;  %p15073_p4 = scmp.ne.s32.totalorder %s12744_s22, %s15072_s23  ;;  %p15078_p6 = scmp.lt.s32.totalorder %s15072_s23, %s15072_s23 }
  0x5a   :  { %4446 = vmatpush1.bf16.msra.mxu0 %v14751_v7  ;;  %v14788_v38 = vld [vmem:[#allocation6 + $0x100] ss:$8 sps:$4 sm:$0xff]   ;;  %v12784_v41 = vcombine.high %v735_v36, %v739_v37  ;;  %v14796_v45 = vld [vmem:[#allocation6 + $0x124] ss:$8 sps:$4 sm:$0xff]   ;;  %v12783_v47 = vcombine.low %v735_v36, %v739_v37  ;;  %v14803_v1 = vld [vmem:[#allocation6 + $0x150] ss:$8 sps:$4 sm:$0xff]  }
  0x5b   :  { %4447 = vmatprep.subr.bf16.mxu0 %v14752_v8  ;;  %v743_v42 = vld [vmem:[#allocation3 + $0x80] sm:$0xff]  ;;  %v14805_v2 = vld [vmem:[#allocation6 + $0x154] ss:$8 sps:$4 sm:$0xff]   ;;  %v14809_v37 = vld [vmem:[#allocation6 + $0x170] ss:$8 sps:$4 sm:$0xff]   ;;  %p15079_p7 = por %p15078_p6, %p15077_p5 }
  0x5c   :  { %v747_v43 = vld [vmem:[#allocation3 + $0xa0] sm:$0xff] }
  0x5d   :  { %v14794_v46 = vld [vmem:[#allocation6 + $0x120] ss:$8 sps:$4 sm:$0xff]   ;;  %v12792_v49 = vcombine.high %v743_v42, %v747_v43  ;;  %v14802_v53 = vld [vmem:[#allocation6 + $0x144] ss:$8 sps:$4 sm:$0xff]   ;;  %v12791_v55 = vcombine.low %v743_v42, %v747_v43  ;;  %p15080_p8 = pnand %p15079_p7, %p15073_p4 }
  0x5e   :  { %4448 = vmatpush1.bf16.msra.mxu0 %v14754_v9  ;;  %v751_v50 = vld [vmem:[#allocation3 + $0xc0] sm:$0xff] }
  0x5f   :  { %4449 = vmatprep.subr.bf16.mxu0 %v14755_v10  ;;  %v755_v51 = vld [vmem:[#allocation3 + $0xe0] sm:$0xff] }
  0x60   :  { %v14800_v54 = vld [vmem:[#allocation6 + $0x140] ss:$8 sps:$4 sm:$0xff]   ;;  %v12800_v56 = vcombine.high %v751_v50, %v755_v51  ;;  %v12799_v59 = vcombine.low %v751_v50, %v755_v51 }
  0x61   :  { %v759_v57 = vld [vmem:[#allocation3 + $0x100] sm:$0xff] }
  0x62   :  { %4450 = vmatpush1.bf16.msra.mxu0 %v14757_v11  ;;  %v763_v58 = vld [vmem:[#allocation3 + $0x120] sm:$0xff] }
  0x63   :  { %4451 = vmatprep.subr.bf16.mxu0 %v14758_v12  ;;  %v12808_v60 = vcombine.high %v759_v57, %v763_v58  ;;  %v767_v61 = vld [vmem:[#allocation3 + $0x140] sm:$0xff]  ;;  %v12807_v63 = vcombine.low %v759_v57, %v763_v58 }
  0x64   :  { %v771_v62 = vld [vmem:[#allocation3 + $0x160] sm:$0xff] }
  0x65   :  { %v12816_v0 = vcombine.high %v767_v61, %v771_v62  ;;  %v775_v3 = vld [vmem:[#allocation3 + $0x180] sm:$0xff]  ;;  %v12815_v5 = vcombine.low %v767_v61, %v771_v62 }
  0x66   :  { %4452 = vmatpush1.bf16.msra.mxu0 %v14760_v16  ;;  %v779_v4 = vld [vmem:[#allocation3 + $0x1a0] sm:$0xff] }
  0x67   :  { %4453 = vmatprep.subr.bf16.mxu0 %v14761_v17  ;;  %v12824_v6 = vcombine.high %v775_v3, %v779_v4  ;;  %v783_v7 = vld [vmem:[#allocation3 + $0x1c0] sm:$0xff]  ;;  %v12823_v9 = vcombine.low %v775_v3, %v779_v4 }
  0x68   :  { %v787_v8 = vld [vmem:[#allocation3 + $0x1e0] sm:$0xff] }
  0x69   :  { %v12832_v10 = vcombine.high %v783_v7, %v787_v8  ;;  %v791_v11 = vld [vmem:[#allocation3 + $0x200] sm:$0xff]  ;;  %v12831_v13 = vcombine.low %v783_v7, %v787_v8 }
  0x6a   :  { %4454 = vmatpush1.bf16.msra.mxu0 %v14763_v18  ;;  %v795_v12 = vld [vmem:[#allocation3 + $0x220] sm:$0xff] }
  0x6b   :  { %4455 = vmatprep.subr.bf16.mxu0 %v14764_v19  ;;  %v12840_v14 = vcombine.high %v791_v11, %v795_v12  ;;  %v799_v15 = vld [vmem:[#allocation3 + $0x240] sm:$0xff]  ;;  %v12839_v17 = vcombine.low %v791_v11, %v795_v12 }
  0x6c   :  { %v803_v16 = vld [vmem:[#allocation3 + $0x260] sm:$0xff] }
  0x6d   :  { %v12848_v18 = vcombine.high %v799_v15, %v803_v16  ;;  %v14806_v19 = vld [vmem:[#allocation6 + $0x160] ss:$8 sps:$4 sm:$0xff]  }
  0x6e   :  { %4456 = vmatpush1.bf16.msra.mxu0 %v14766_v20  ;;  %v14808_v20 = vld [vmem:[#allocation6 + $0x164] ss:$8 sps:$4 sm:$0xff]  }
  0x6f   :  { %4457 = vmatprep.subr.bf16.mxu0 %v14767_v21  ;;  %v807_v21 = vld [vmem:[#allocation3 + $0x280] sm:$0xff] }
  0x70   :  { %v847_v43 = vld [vmem:[#allocation3 + $0x3c0] sm:$0xff] }
  0x71   :  { %v863_v51 = vld [vmem:[#allocation3 + $0x440] sm:$0xff] }
  0x72   :  { %4458 = vmatpush1.bf16.msra.mxu0 %v14769_v22  ;;  %v811_v22 = vld [vmem:[#allocation3 + $0x2a0] sm:$0xff] }
  0x73   :  { %4459 = vmatprep.subr.bf16.mxu0 %v14770_v23  ;;  %v12847_v23 = vcombine.low %v799_v15, %v803_v16  ;;  %v871_v57 = vld [vmem:[#allocation3 + $0x480] sm:$0xff] }
  0x74   :  { %v875_v58 = vld [vmem:[#allocation3 + $0x4a0] sm:$0xff] }
  0x75   :  { %v879_v61 = vld [vmem:[#allocation3 + $0x4c0] sm:$0xff] }
  0x76   :  { %4460 = vmatpush1.bf16.msra.mxu0 %v14772_v24  ;;  %v12856_v24 = vcombine.high %v807_v21, %v811_v22  ;;  %v883_v62 = vld [vmem:[#allocation3 + $0x4e0] sm:$0xff] }
  0x77   :  { %4461 = vmatprep.subr.bf16.mxu0 %v14773_v25  ;;  %v815_v25 = vld [vmem:[#allocation3 + $0x2c0] sm:$0xff]  ;;  %v12927_v3 = vcombine.low %v879_v61, %v883_v62 }
  0x78   :  { %v903_v11 = vld [vmem:[#allocation3 + $0x580] sm:$0xff] }
  0x79   :  { %v907_v12 = vld [vmem:[#allocation3 + $0x5a0] sm:$0xff] }
  0x7a   :  { %4462 = vmatpush1.bf16.msra.mxu0 %v14775_v26  ;;  %v819_v26 = vld [vmem:[#allocation3 + $0x2e0] sm:$0xff] }
  0x7b   :  { %4463 = vmatprep.subr.bf16.mxu0 %v14776_v27  ;;  %v12855_v27 = vcombine.low %v807_v21, %v811_v22  ;;  %v911_v15 = vld [vmem:[#allocation3 + $0x5c0] sm:$0xff] }
  0x7c   :  { %v915_v16 = vld [vmem:[#allocation3 + $0x5e0] sm:$0xff] }
  0x7d   :  { %v12959_v21 = vcombine.low %v911_v15, %v915_v16 }
  0x7e   :  { %4464 = vmatpush1.bf16.msra.mxu0 %v14778_v28  ;;  %v12864_v28 = vcombine.high %v815_v25, %v819_v26 }
  0x7f   :  { %4465 = vmatprep.subr.bf16.mxu0 %v14779_v29  ;;  %v823_v29 = vld [vmem:[#allocation3 + $0x300] sm:$0xff] }
  0x82   :  { %4466 = vmatpush1.bf16.msra.mxu0 %v14781_v30  ;;  %v827_v30 = vld [vmem:[#allocation3 + $0x320] sm:$0xff] }
  0x83   :  { %4467 = vmatprep.subr.bf16.mxu0 %v14782_v31  ;;  %v12863_v31 = vcombine.low %v815_v25, %v819_v26 }
  0x86   :  { %4468 = vmatpush1.bf16.msra.mxu0 %v14784_v32  ;;  %v12872_v32 = vcombine.high %v823_v29, %v827_v30 }
  0x87   :  { %4469 = vmatprep.subr.bf16.mxu0 %v14785_v33  ;;  %v831_v33 = vld [vmem:[#allocation3 + $0x340] sm:$0xff] }
  0x8a   :  { %4470 = vmatpush1.bf16.msra.mxu0 %v14787_v34  ;;  %v835_v34 = vld [vmem:[#allocation3 + $0x360] sm:$0xff] }
  0x8b   :  { %5112 = vmatprep.subr.bf16.mxu0 %v14790_v35  ;;  %v12871_v35 = vcombine.low %v823_v29, %v827_v30  ;;  %v12880_v36 = vcombine.high %v831_v33, %v835_v34  ;;  %v935_v29 = vld [vmem:[#allocation3 + $0x680] sm:$0xff] }
  0x8c   :  { %v939_v30 = vld [vmem:[#allocation3 + $0x6a0] sm:$0xff] }
  0x8d   :  { %4472 = vmatmul.mubr.bf16.vlgmr.msra.gmra.mrb[0].mxu0 %v12775_v39  ;;  %v839_v39 = vld [vmem:[#allocation3 + $0x380] sm:$0xff] }
  0x8e   :  { %5113 = vmatpush1.bf16.msra.mxu0 %v14788_v38  ;;  %4481 = vmatprep.mubr.bf16.mxu0 %v12784_v41  ;;  %v14811_v38 = vld [vmem:[#allocation6 + $0x174] ss:$8 sps:$4 sm:$0xff]   ;;  %v12879_v41 = vcombine.low %v831_v33, %v835_v34  ;;  %v943_v33 = vld [vmem:[#allocation3 + $0x6c0] sm:$0xff] }
  0x8f   :  { %5114 = vmatprep.subr.bf16.mxu0 %v14793_v40  ;;  %v843_v40 = vld [vmem:[#allocation3 + $0x3a0] sm:$0xff] }
  0x90   :  { %v12888_v42 = vcombine.high %v839_v39, %v843_v40  ;;  %v947_v34 = vld [vmem:[#allocation3 + $0x6e0] sm:$0xff] }
  0x92   :  { %5115 = vmatpush1.bf16.msra.mxu0 %v14791_v44  ;;  %v851_v44 = vld [vmem:[#allocation3 + $0x3e0] sm:$0xff] }
  0x93   :  { %5116 = vmatprep.subr.bf16.mxu0 %v14796_v45  ;;  %v12887_v45 = vcombine.low %v839_v39, %v843_v40  ;;  %v12991_v39 = vcombine.low %v943_v33, %v947_v34 }
  0x95   :  { %4482 = vmatmul.mubr.bf16.gmra.mrb[4].mxu0 %v12783_v47  ;;  %v855_v47 = vld [vmem:[#allocation3 + $0x400] sm:$0xff] }
  0x96   :  { %4491 = vmatprep.mubr.bf16.mxu0 %v12792_v49  ;;  %5117 = vmatpush1.bf16.msra.mxu0 %v14794_v46  ;;  %v12896_v46 = vcombine.high %v847_v43, %v851_v44  ;;  %v12895_v49 = vcombine.low %v847_v43, %v851_v44 }
  0x97   :  { %5118 = vmatprep.subr.bf16.mxu0 %v14799_v48  ;;  %v859_v48 = vld [vmem:[#allocation3 + $0x420] sm:$0xff] }
  0x98   :  { %v12904_v50 = vcombine.high %v855_v47, %v859_v48 }
  0x9a   :  { %5119 = vmatpush1.bf16.msra.mxu0 %v14797_v52  ;;  %v867_v52 = vld [vmem:[#allocation3 + $0x460] sm:$0xff] }
  0x9b   :  { %5120 = vmatprep.subr.bf16.mxu0 %v14802_v53  ;;  %v12903_v53 = vcombine.low %v855_v47, %v859_v48  ;;  %v967_v47 = vld [vmem:[#allocation3 + $0x780] sm:$0xff] }
  0x9c   :  { %v971_v48 = vld [vmem:[#allocation3 + $0x7a0] sm:$0xff] }
  0x9d   :  { %4492 = vmatmul.mubr.bf16.gmra.mrb[8].mxu0 %v12791_v55  ;;  %v14812_v55 = vld [vmem:[#allocation6 + $0x180] ss:$8 sps:$4 sm:$0xff]  }
  0x9e   :  { %4501 = vmatprep.mubr.bf16.mxu0 %v12800_v56  ;;  %5121 = vmatpush1.bf16.msra.mxu0 %v14800_v54  ;;  %v12912_v54 = vcombine.high %v863_v51, %v867_v52  ;;  %v14814_v56 = vld [vmem:[#allocation6 + $0x184] ss:$8 sps:$4 sm:$0xff]  }
  0x9f   :  { %5122 = vmatprep.subr.bf16.mxu0 %v14805_v2  ;;  %v891_v2 = vld [vmem:[#allocation3 + $0x520] sm:$0xff] }
  0xa2   :  { %5123 = vmatpush1.bf16.msra.mxu0 %v14803_v1  ;;  %v887_v1 = vld [vmem:[#allocation3 + $0x500] sm:$0xff] }
  0xa3   :  { %5124 = vmatprep.subr.bf16.mxu0 %v14808_v20  ;;  %v12936_v4 = vcombine.high %v887_v1, %v891_v2  ;;  %v12935_v7 = vcombine.low %v887_v1, %v891_v2  ;;  %v923_v20 = vld [vmem:[#allocation3 + $0x620] sm:$0xff] }
  0xa4   :  { %v999_v1 = vld [vmem:[#allocation3 + $0x880] sm:$0xff] }
  0xa5   :  { %4502 = vmatmul.mubr.bf16.gmra.mrb[12].mxu0 %v12799_v59  ;;  %v12911_v59 = vcombine.low %v863_v51, %v867_v52  ;;  %v975_v51 = vld [vmem:[#allocation3 + $0x7c0] sm:$0xff] }
  0xa6   :  { %4511 = vmatprep.mubr.bf16.mxu0 %v12808_v60  ;;  %5125 = vmatpush1.bf16.msra.mxu0 %v14806_v19  ;;  %v12920_v60 = vcombine.high %v871_v57, %v875_v58  ;;  %v919_v19 = vld [vmem:[#allocation3 + $0x600] sm:$0xff] }
  0xa7   :  { %5126 = vmatprep.subr.bf16.mxu0 %v14811_v38  ;;  %v12968_v22 = vcombine.high %v919_v19, %v923_v20  ;;  %v12967_v25 = vcombine.low %v919_v19, %v923_v20  ;;  %v955_v38 = vld [vmem:[#allocation3 + $0x720] sm:$0xff] }
  0xa8   :  { %v979_v52 = vld [vmem:[#allocation3 + $0x7e0] sm:$0xff] }
  0xa9   :  { %v1003_v2 = vld [vmem:[#allocation3 + $0x8a0] sm:$0xff] }
  0xaa   :  { %5127 = vmatpush1.bf16.msra.mxu0 %v14809_v37  ;;  %v951_v37 = vld [vmem:[#allocation3 + $0x700] sm:$0xff] }
  0xab   :  { %5128 = vmatprep.subr.bf16.mxu0 %v14814_v56  ;;  %v13000_v40 = vcombine.high %v951_v37, %v955_v38  ;;  %v12999_v43 = vcombine.low %v951_v37, %v955_v38  ;;  %v987_v56 = vld [vmem:[#allocation3 + $0x820] sm:$0xff] }
  0xac   :  { %v1031_v19 = vld [vmem:[#allocation3 + $0x980] sm:$0xff] }
  0xad   :  { %4512 = vmatmul.mubr.bf16.gmra.mrb[16].mxu0 %v12807_v63  ;;  %v12919_v63 = vcombine.low %v871_v57, %v875_v58  ;;  %v13023_v57 = vcombine.low %v975_v51, %v979_v52  ;;  %v1035_v20 = vld [vmem:[#allocation3 + $0x9a0] sm:$0xff] }
  0xae   :  { %4521 = vmatprep.mubr.bf16.mxu0 %v12816_v0  ;;  %5129 = vmatpush1.bf16.msra.mxu0 %v14812_v55  ;;  %v12928_v0 = vcombine.high %v879_v61, %v883_v62  ;;  %v983_v55 = vld [vmem:[#allocation3 + $0x800] sm:$0xff] }
  0xaf   :  { %v13032_v58 = vcombine.high %v983_v55, %v987_v56  ;;  %v13031_v61 = vcombine.low %v983_v55, %v987_v56  ;;  %v1063_v37 = vld [vmem:[#allocation3 + $0xa80] sm:$0xff] }
  0xb0   :  { %v1067_v38 = vld [vmem:[#allocation3 + $0xaa0] sm:$0xff] }
  0xb1   :  { %v1095_v55 = vld [vmem:[#allocation3 + $0xb80] sm:$0xff] }
  0xb2   :  { %v1099_v56 = vld [vmem:[#allocation3 + $0xba0] sm:$0xff] }
  0xb5   :  { %4522 = vmatmul.mubr.bf16.gmra.mrb[20].mxu0 %v12815_v5  ;;  %v895_v5 = vld [vmem:[#allocation3 + $0x540] sm:$0xff] }
  0xb6   :  { %4531 = vmatprep.mubr.bf16.mxu0 %v12824_v6  ;;  %v899_v6 = vld [vmem:[#allocation3 + $0x560] sm:$0xff] }
  0xb7   :  { %v12944_v8 = vcombine.high %v895_v5, %v899_v6 }
  0xbd   :  { %4532 = vmatmul.mubr.bf16.gmra.mrb[24].mxu0 %v12823_v9  ;;  %v14815_v9 = vld [vmem:[#allocation6 + $0x190] ss:$8 sps:$4 sm:$0xff]  }
  0xbe   :  { %4541 = vmatprep.mubr.bf16.mxu0 %v12832_v10  ;;  %v14817_v10 = vld [vmem:[#allocation6 + $0x194] ss:$8 sps:$4 sm:$0xff]  }
  0xbf   :  { %5130 = vmatprep.subr.bf16.mxu0 %v14817_v10  ;;  %v1019_v10 = vld [vmem:[#allocation3 + $0x920] sm:$0xff] }
  0xc0   :  { %5131 = vmatpush1.bf16.msra.mxu0 %v14815_v9  ;;  %v1015_v9 = vld [vmem:[#allocation3 + $0x900] sm:$0xff] }
  0xc5   :  { %4542 = vmatmul.mubr.bf16.gmra.mrb[28].mxu0 %v12831_v13  ;;  %v12943_v13 = vcombine.low %v895_v5, %v899_v6  ;;  %v1007_v5 = vld [vmem:[#allocation3 + $0x8c0] sm:$0xff] }
  0xc6   :  { %4551 = vmatprep.mubr.bf16.mxu0 %v12840_v14  ;;  %v12952_v14 = vcombine.high %v903_v11, %v907_v12  ;;  %v1011_v6 = vld [vmem:[#allocation3 + $0x8e0] sm:$0xff] }
  0xcd   :  { %4552 = vmatmul.mubr.bf16.gmra.mrb[32].mxu0 %v12839_v17  ;;  %v12951_v17 = vcombine.low %v903_v11, %v907_v12  ;;  %v13055_v11 = vcombine.low %v1007_v5, %v1011_v6  ;;  %v13064_v12 = vcombine.high %v1015_v9, %v1019_v10 }
  0xce   :  { %4561 = vmatprep.mubr.bf16.mxu0 %v12848_v18  ;;  %v12960_v18 = vcombine.high %v911_v15, %v915_v16  ;;  %v13063_v15 = vcombine.low %v1015_v9, %v1019_v10  ;;  %v1131_v9 = vld [vmem:[#allocation3 + $0xca0] sm:$0xff] }
  0xd5   :  { %4562 = vmatmul.mubr.bf16.gmra.mrb[36].mxu0 %v12847_v23  ;;  %v927_v23 = vld [vmem:[#allocation3 + $0x640] sm:$0xff] }
  0xd6   :  { %4571 = vmatprep.mubr.bf16.mxu0 %v12856_v24  ;;  %v931_v24 = vld [vmem:[#allocation3 + $0x660] sm:$0xff] }
  0xd7   :  { %v12976_v26 = vcombine.high %v927_v23, %v931_v24 }
  0xdd   :  { %4572 = vmatmul.mubr.bf16.gmra.mrb[40].mxu0 %v12855_v27  ;;  %v14818_v27 = vld [vmem:[#allocation6 + $0x1a0] ss:$8 sps:$4 sm:$0xff]  }
  0xde   :  { %4581 = vmatprep.mubr.bf16.mxu0 %v12864_v28  ;;  %v14820_v28 = vld [vmem:[#allocation6 + $0x1a4] ss:$8 sps:$4 sm:$0xff]  }
  0xdf   :  { %5132 = vmatprep.subr.bf16.mxu0 %v14820_v28  ;;  %v1051_v28 = vld [vmem:[#allocation3 + $0xa20] sm:$0xff] }
  0xe0   :  { %5133 = vmatpush1.bf16.msra.mxu0 %v14818_v27  ;;  %v1047_v27 = vld [vmem:[#allocation3 + $0xa00] sm:$0xff] }
  0xe5   :  { %4582 = vmatmul.mubr.bf16.gmra.mrb[44].mxu0 %v12863_v31  ;;  %v12975_v31 = vcombine.low %v927_v23, %v931_v24  ;;  %v1039_v23 = vld [vmem:[#allocation3 + $0x9c0] sm:$0xff] }
  0xe6   :  { %4591 = vmatprep.mubr.bf16.mxu0 %v12872_v32  ;;  %v12984_v32 = vcombine.high %v935_v29, %v939_v30  ;;  %v1043_v24 = vld [vmem:[#allocation3 + $0x9e0] sm:$0xff] }
  0xed   :  { %4592 = vmatmul.mubr.bf16.gmra.mrb[48].mxu0 %v12871_v35  ;;  %v12983_v35 = vcombine.low %v935_v29, %v939_v30  ;;  %v13087_v29 = vcombine.low %v1039_v23, %v1043_v24  ;;  %v13096_v30 = vcombine.high %v1047_v27, %v1051_v28 }
  0xee   :  { %4601 = vmatprep.mubr.bf16.mxu0 %v12880_v36  ;;  %v12992_v36 = vcombine.high %v943_v33, %v947_v34  ;;  %v13095_v33 = vcombine.low %v1047_v27, %v1051_v28  ;;  %v1167_v28 = vld [vmem:[#allocation3 + $0xdc0] sm:$0xff] }
  0xf5   :  { %4602 = vmatmul.mubr.bf16.gmra.mrb[52].mxu0 %v12879_v41  ;;  %v959_v41 = vld [vmem:[#allocation3 + $0x740] sm:$0xff] }
  0xf6   :  { %4611 = vmatprep.mubr.bf16.mxu0 %v12888_v42  ;;  %v963_v42 = vld [vmem:[#allocation3 + $0x760] sm:$0xff] }
  0xf7   :  { %v13008_v44 = vcombine.high %v959_v41, %v963_v42 }
  0xfd   :  { %4612 = vmatmul.mubr.bf16.gmra.mrb[56].mxu0 %v12887_v45  ;;  %v14821_v45 = vld [vmem:[#allocation6 + $0x1b0] ss:$8 sps:$4 sm:$0xff]  }
  0xfe   :  { %4621 = vmatprep.mubr.bf16.mxu0 %v12896_v46  ;;  %v14823_v46 = vld [vmem:[#allocation6 + $0x1b4] ss:$8 sps:$4 sm:$0xff]  }
  0xff   :  { %5134 = vmatprep.subr.bf16.mxu0 %v14823_v46  ;;  %v1083_v46 = vld [vmem:[#allocation3 + $0xb20] sm:$0xff] }
 0x100   :  { %5135 = vmatpush1.bf16.msra.mxu0 %v14821_v45  ;;  %v1079_v45 = vld [vmem:[#allocation3 + $0xb00] sm:$0xff] }
 0x105   :  { %4622 = vmatmul.mubr.bf16.gmra.mrb[60].mxu0 %v12895_v49  ;;  %v13007_v49 = vcombine.low %v959_v41, %v963_v42  ;;  %v1071_v41 = vld [vmem:[#allocation3 + $0xac0] sm:$0xff] }
 0x106   :  { %4631 = vmatprep.mubr.bf16.mxu0 %v12904_v50  ;;  %v13016_v50 = vcombine.high %v967_v47, %v971_v48  ;;  %v1075_v42 = vld [vmem:[#allocation3 + $0xae0] sm:$0xff] }
 0x10d   :  { %4632 = vmatmul.mubr.bf16.gmra.mrb[64].mxu0 %v12903_v53  ;;  %v13015_v53 = vcombine.low %v967_v47, %v971_v48  ;;  %v13119_v47 = vcombine.low %v1071_v41, %v1075_v42  ;;  %v13128_v48 = vcombine.high %v1079_v45, %v1083_v46 }
 0x10e   :  { %4641 = vmatprep.mubr.bf16.mxu0 %v12912_v54  ;;  %v13024_v54 = vcombine.high %v975_v51, %v979_v52  ;;  %v13127_v51 = vcombine.low %v1079_v45, %v1083_v46  ;;  %v1203_v45 = vld [vmem:[#allocation3 + $0xee0] sm:$0xff] }
 0x115   :  { %4642 = vmatmul.mubr.bf16.gmra.mrb[68].mxu0 %v12911_v59  ;;  %v991_v59 = vld [vmem:[#allocation3 + $0x840] sm:$0xff] }
 0x116   :  { %4651 = vmatprep.mubr.bf16.mxu0 %v12920_v60  ;;  %v995_v60 = vld [vmem:[#allocation3 + $0x860] sm:$0xff] }
 0x117   :  { %v13040_v62 = vcombine.high %v991_v59, %v995_v60 }
 0x11d   :  { %4652 = vmatmul.mubr.bf16.gmra.mrb[72].mxu0 %v12919_v63  ;;  %v14824_v63 = vld [vmem:[#allocation6 + $0x1c0] ss:$8 sps:$4 sm:$0xff]  }
 0x11e   :  { %4661 = vmatprep.mubr.bf16.mxu0 %v12928_v0  ;;  %v14826_v0 = vld [vmem:[#allocation6 + $0x1c4] ss:$8 sps:$4 sm:$0xff]  }
 0x11f   :  { %5136 = vmatprep.subr.bf16.mxu0 %v14826_v0  ;;  %v1115_v0 = vld [vmem:[#allocation3 + $0xc20] sm:$0xff] }
 0x120   :  { %5137 = vmatpush1.bf16.msra.mxu0 %v14824_v63  ;;  %v1111_v63 = vld [vmem:[#allocation3 + $0xc00] sm:$0xff] }
 0x125   :  { %4662 = vmatmul.mubr.bf16.gmra.mrb[76].mxu0 %v12927_v3  ;;  %v13039_v3 = vcombine.low %v991_v59, %v995_v60  ;;  %v1103_v59 = vld [vmem:[#allocation3 + $0xbc0] sm:$0xff] }
 0x126   :  { %4671 = vmatprep.mubr.bf16.mxu0 %v12936_v4  ;;  %v13048_v4 = vcombine.high %v999_v1, %v1003_v2  ;;  %v1107_v60 = vld [vmem:[#allocation3 + $0xbe0] sm:$0xff] }
 0x12d   :  { %4672 = vmatmul.mubr.bf16.gmra.mrb[80].mxu0 %v12935_v7  ;;  %v13047_v7 = vcombine.low %v999_v1, %v1003_v2  ;;  %v13151_v1 = vcombine.low %v1103_v59, %v1107_v60  ;;  %v13160_v2 = vcombine.high %v1111_v63, %v1115_v0 }
 0x12e   :  { %4681 = vmatprep.mubr.bf16.mxu0 %v12944_v8  ;;  %v13056_v8 = vcombine.high %v1007_v5, %v1011_v6  ;;  %v13159_v5 = vcombine.low %v1111_v63, %v1115_v0  ;;  %v728_v0 = vld [vmem:[#allocation3 + $0x8] sm:$0xff] }
 0x135   :  { %4682 = vmatmul.mubr.bf16.gmra.mrb[84].mxu0 %v12943_v13  ;;  %v1023_v13 = vld [vmem:[#allocation3 + $0x940] sm:$0xff] }
 0x136   :  { %4691 = vmatprep.mubr.bf16.mxu0 %v12952_v14  ;;  %v1027_v14 = vld [vmem:[#allocation3 + $0x960] sm:$0xff] }
 0x137   :  { %v13072_v16 = vcombine.high %v1023_v13, %v1027_v14 }
 0x13d   :  { %4692 = vmatmul.mubr.bf16.gmra.mrb[88].mxu0 %v12951_v17  ;;  %v14827_v17 = vld [vmem:[#allocation6 + $0x1d0] ss:$8 sps:$4 sm:$0xff]  }
 0x13e   :  { %4701 = vmatprep.mubr.bf16.mxu0 %v12960_v18  ;;  %v14829_v18 = vld [vmem:[#allocation6 + $0x1d4] ss:$8 sps:$4 sm:$0xff]  }
 0x13f   :  { %5138 = vmatprep.subr.bf16.mxu0 %v14829_v18 }
 0x140   :  { %5139 = vmatpush1.bf16.msra.mxu0 %v14827_v17  ;;  %v1147_v17 = vld [vmem:[#allocation3 + $0xd20] sm:$0xff] }
 0x145   :  { %4702 = vmatmul.mubr.bf16.gmra.mrb[92].mxu0 %v12959_v21  ;;  %v13071_v21 = vcombine.low %v1023_v13, %v1027_v14  ;;  %v1139_v13 = vld [vmem:[#allocation3 + $0xce0] sm:$0xff] }
 0x146   :  { %4711 = vmatprep.mubr.bf16.mxu0 %v12968_v22  ;;  %v13080_v22 = vcombine.high %v1031_v19, %v1035_v20 }
 0x14d   :  { %4712 = vmatmul.mubr.bf16.gmra.mrb[96].mxu0 %v12967_v25  ;;  %v13079_v25 = vcombine.low %v1031_v19, %v1035_v20  ;;  %v1151_v20 = vld [vmem:[#allocation3 + $0xd40] sm:$0xff] }
 0x14e   :  { %4721 = vmatprep.mubr.bf16.mxu0 %v12976_v26  ;;  %v13088_v26 = vcombine.high %v1039_v23, %v1043_v24  ;;  %v1159_v24 = vld [vmem:[#allocation3 + $0xd80] sm:$0xff] }
 0x155   :  { %4722 = vmatmul.mubr.bf16.gmra.mrb[100].mxu0 %v12975_v31  ;;  %v1055_v31 = vld [vmem:[#allocation3 + $0xa40] sm:$0xff] }
 0x156   :  { %4731 = vmatprep.mubr.bf16.mxu0 %v12984_v32  ;;  %v1059_v32 = vld [vmem:[#allocation3 + $0xa60] sm:$0xff] }
 0x157   :  { %v13104_v34 = vcombine.high %v1055_v31, %v1059_v32 }
 0x15d   :  { %4732 = vmatmul.mubr.bf16.gmra.mrb[104].mxu0 %v12983_v35  ;;  %v14830_v35 = vld [vmem:[#allocation6 + $0x1e0] ss:$8 sps:$4 sm:$0xff]  }
 0x15e   :  { %4741 = vmatprep.mubr.bf16.mxu0 %v12992_v36  ;;  %v14832_v36 = vld [vmem:[#allocation6 + $0x1e4] ss:$8 sps:$4 sm:$0xff]  }
 0x15f   :  { %5140 = vmatprep.subr.bf16.mxu0 %v14832_v36  ;;  %v1183_v36 = vld [vmem:[#allocation3 + $0xe40] sm:$0xff] }
 0x160   :  { %5141 = vmatpush1.bf16.msra.mxu0 %v14830_v35 }
 0x165   :  { %4742 = vmatmul.mubr.bf16.gmra.mrb[108].mxu0 %v12991_v39  ;;  %v13103_v39 = vcombine.low %v1055_v31, %v1059_v32  ;;  %v1175_v32 = vld [vmem:[#allocation3 + $0xe00] sm:$0xff] }
 0x166   :  { %4751 = vmatprep.mubr.bf16.mxu0 %v13000_v40  ;;  %v13112_v40 = vcombine.high %v1063_v37, %v1067_v38 }
 0x16d   :  { %4752 = vmatmul.mubr.bf16.gmra.mrb[112].mxu0 %v12999_v43  ;;  %v13111_v43 = vcombine.low %v1063_v37, %v1067_v38  ;;  %v1187_v37 = vld [vmem:[#allocation3 + $0xe60] sm:$0xff] }
 0x16e   :  { %4761 = vmatprep.mubr.bf16.mxu0 %v13008_v44  ;;  %v13120_v44 = vcombine.high %v1071_v41, %v1075_v42  ;;  %v1195_v41 = vld [vmem:[#allocation3 + $0xea0] sm:$0xff]  ;;  %v13231_v42 = vcombine.low %v1183_v36, %v1187_v37 }
 0x175   :  { %4762 = vmatmul.mubr.bf16.gmra.mrb[116].mxu0 %v13007_v49  ;;  %v1087_v49 = vld [vmem:[#allocation3 + $0xb40] sm:$0xff] }
 0x176   :  { %4771 = vmatprep.mubr.bf16.mxu0 %v13016_v50  ;;  %v1091_v50 = vld [vmem:[#allocation3 + $0xb60] sm:$0xff] }
 0x177   :  { %v13136_v52 = vcombine.high %v1087_v49, %v1091_v50 }
 0x17d   :  { %4772 = vmatmul.mubr.bf16.gmra.mrb[120].mxu0 %v13015_v53  ;;  %v14833_v53 = vld [vmem:[#allocation6 + $0x1f0] ss:$8 sps:$4 sm:$0xff]  }
 0x17e   :  { %4781 = vmatprep.mubr.bf16.mxu0 %v13024_v54  ;;  %v14835_v54 = vld [vmem:[#allocation6 + $0x1f4] ss:$8 sps:$4 sm:$0xff]  }
 0x17f   :  { %5142 = vmatprep.subr.bf16.mxu0 %v14835_v54 }
 0x180   :  { %5143 = vmatpush1.bf16.msra.mxu0 %v14833_v53  ;;  %v1219_v53 = vld [vmem:[#allocation3 + $0xf60] sm:$0xff] }
 0x185   :  { %4782 = vmatmul.mubr.bf16.gmra.mrb[124].mxu0 %v13023_v57  ;;  %v13135_v57 = vcombine.low %v1087_v49, %v1091_v50  ;;  %v1211_v49 = vld [vmem:[#allocation3 + $0xf20] sm:$0xff] }
 0x186   :  { %4791 = vmatprep.mubr.bf16.mxu0 %v13032_v58  ;;  %v13144_v58 = vcombine.high %v1095_v55, %v1099_v56 }
 0x18d   :  { %4792 = vmatmul.mubr.bf16.gmra.mrb[128].mxu0 %v13031_v61  ;;  %v13143_v61 = vcombine.low %v1095_v55, %v1099_v56  ;;  %v1223_v56 = vld [vmem:[#allocation3 + $0xf80] sm:$0xff] }
 0x18e   :  { %4801 = vmatprep.mubr.bf16.mxu0 %v13040_v62  ;;  %v13152_v62 = vcombine.high %v1103_v59, %v1107_v60  ;;  %v1231_v60 = vld [vmem:[#allocation3 + $0xfc0] sm:$0xff] }
 0x195   :  { %4802 = vmatmul.mubr.bf16.gmra.mrb[132].mxu0 %v13039_v3  ;;  %v1119_v3 = vld [vmem:[#allocation3 + $0xc40] sm:$0xff] }
 0x196   :  { %4811 = vmatprep.mubr.bf16.mxu0 %v13048_v4  ;;  %v1123_v4 = vld [vmem:[#allocation3 + $0xc60] sm:$0xff] }
 0x197   :  { %v13168_v6 = vcombine.high %v1119_v3, %v1123_v4  ;;  %v13167_v10 = vcombine.low %v1119_v3, %v1123_v4  ;;  %v736_v4 = vld [vmem:[#allocation3 + $0x48] sm:$0xff] }
 0x19d   :  { %4812 = vmatmul.mubr.bf16.gmra.mrb[136].mxu0 %v13047_v7  ;;  %v14838_v7 = vld [vmem:[#allocation6 + $0x204] ss:$8 sps:$4 sm:$0xff]  }
 0x19e   :  { %4821 = vmatprep.mubr.bf16.mxu0 %v13056_v8  ;;  %v1127_v8 = vld [vmem:[#allocation3 + $0xc80] sm:$0xff]  ;;  %5785 = vmatprep.subr.bf16.mxu0 %v14838_v7 }
 0x19f   :  { %v13175_v14 = vcombine.low %v1127_v8, %v1131_v9  ;;  %v14836_v7 = vld [vmem:[#allocation6 + $0x200] ss:$8 sps:$4 sm:$0xff]  }
 0x1a5   :  { %4822 = vmatmul.mubr.bf16.gmra.mrb[140].mxu0 %v13055_v11  ;;  %v13176_v11 = vcombine.high %v1127_v8, %v1131_v9  ;;  %v14841_v9 = vld [vmem:[#allocation6 + $0x214] ss:$8 sps:$4 sm:$0xff]  }
 0x1a6   :  { %4831 = vmatprep.mubr.bf16.mxu0 %v13064_v12  ;;  %v1135_v12 = vld [vmem:[#allocation3 + $0xcc0] sm:$0xff] }
 0x1a7   :  { %v13183_v18 = vcombine.low %v1135_v12, %v1139_v13 }
 0x1ad   :  { %4832 = vmatmul.mubr.bf16.gmra.mrb[144].mxu0 %v13063_v15  ;;  %v13184_v15 = vcombine.high %v1135_v12, %v1139_v13  ;;  %v748_v12 = vld [vmem:[#allocation3 + $0xa8] sm:$0xff] }
 0x1ae   :  { %4841 = vmatprep.mubr.bf16.mxu0 %v13072_v16  ;;  %v1143_v16 = vld [vmem:[#allocation3 + $0xd00] sm:$0xff] }
 0x1af   :  { %v13192_v19 = vcombine.high %v1143_v16, %v1147_v17  ;;  %v14844_v13 = vld [vmem:[#allocation6 + $0x224] ss:$8 sps:$4 sm:$0xff]  }
 0x1b5   :  { %4842 = vmatmul.mubr.bf16.gmra.mrb[148].mxu0 %v13071_v21  ;;  %v1155_v21 = vld [vmem:[#allocation3 + $0xd60] sm:$0xff] }
 0x1b6   :  { %4851 = vmatprep.mubr.bf16.mxu0 %v13080_v22  ;;  %v13191_v22 = vcombine.low %v1143_v16, %v1147_v17  ;;  %v13200_v23 = vcombine.high %v1151_v20, %v1155_v21  ;;  %v14842_v16 = vld [vmem:[#allocation6 + $0x220] ss:$8 sps:$4 sm:$0xff]   ;;  %v14847_v17 = vld [vmem:[#allocation6 + $0x234] ss:$8 sps:$4 sm:$0xff]  }
 0x1bd   :  { %4852 = vmatmul.mubr.bf16.gmra.mrb[152].mxu0 %v13079_v25  ;;  %v1163_v25 = vld [vmem:[#allocation3 + $0xda0] sm:$0xff] }
 0x1be   :  { %4861 = vmatprep.mubr.bf16.mxu0 %v13088_v26  ;;  %v13199_v26 = vcombine.low %v1151_v20, %v1155_v21  ;;  %v13208_v27 = vcombine.high %v1159_v24, %v1163_v25  ;;  %v756_v20 = vld [vmem:[#allocation3 + $0xe8] sm:$0xff] }
 0x1bf   :  { %v14850_v21 = vld [vmem:[#allocation6 + $0x244] ss:$8 sps:$4 sm:$0xff]  }
 0x1c5   :  { %4862 = vmatmul.mubr.bf16.gmra.mrb[156].mxu0 %v13087_v29  ;;  %v1171_v29 = vld [vmem:[#allocation3 + $0xde0] sm:$0xff] }
 0x1c6   :  { %4871 = vmatprep.mubr.bf16.mxu0 %v13096_v30  ;;  %v13207_v30 = vcombine.low %v1159_v24, %v1163_v25  ;;  %v13216_v31 = vcombine.high %v1167_v28, %v1171_v29  ;;  %v14848_v24 = vld [vmem:[#allocation6 + $0x240] ss:$8 sps:$4 sm:$0xff]  }
 0x1c7   :  { %v760_v25 = vld [vmem:[#allocation3 + $0x108] sm:$0xff] }
 0x1cd   :  { %4872 = vmatmul.mubr.bf16.gmra.mrb[160].mxu0 %v13095_v33  ;;  %v1179_v33 = vld [vmem:[#allocation3 + $0xe20] sm:$0xff] }
 0x1ce   :  { %4881 = vmatprep.mubr.bf16.mxu0 %v13104_v34  ;;  %v13215_v34 = vcombine.low %v1167_v28, %v1171_v29  ;;  %v13224_v35 = vcombine.high %v1175_v32, %v1179_v33  ;;  %v13223_v38 = vcombine.low %v1175_v32, %v1179_v33  ;;  %v768_v29 = vld [vmem:[#allocation3 + $0x148] sm:$0xff]  ;;  %v14851_v33 = vld [vmem:[#allocation6 + $0x250] ss:$8 sps:$4 sm:$0xff]  }
 0x1d5   :  { %4882 = vmatmul.mubr.bf16.gmra.mrb[164].mxu0 %v13103_v39  ;;  %v13232_v39 = vcombine.high %v1183_v36, %v1187_v37  ;;  %v780_v36 = vld [vmem:[#allocation3 + $0x1a8] sm:$0xff] }
 0x1d6   :  { %4891 = vmatprep.mubr.bf16.mxu0 %v13112_v40  ;;  %v1191_v40 = vld [vmem:[#allocation3 + $0xe80] sm:$0xff] }
 0x1d7   :  { %v13239_v46 = vcombine.low %v1191_v40, %v1195_v41 }
 0x1dd   :  { %4892 = vmatmul.mubr.bf16.gmra.mrb[168].mxu0 %v13111_v43  ;;  %v13240_v43 = vcombine.high %v1191_v40, %v1195_v41  ;;  %v788_v40 = vld [vmem:[#allocation3 + $0x1e8] sm:$0xff] }
 0x1de   :  { %4901 = vmatprep.mubr.bf16.mxu0 %v13120_v44  ;;  %v1199_v44 = vld [vmem:[#allocation3 + $0xec0] sm:$0xff] }
 0x1df   :  { %v13247_v50 = vcombine.low %v1199_v44, %v1203_v45 }
 0x1e5   :  { %4902 = vmatmul.mubr.bf16.gmra.mrb[172].mxu0 %v13119_v47  ;;  %v13248_v47 = vcombine.high %v1199_v44, %v1203_v45  ;;  %v796_v44 = vld [vmem:[#allocation3 + $0x228] sm:$0xff] }
 0x1e6   :  { %4911 = vmatprep.mubr.bf16.mxu0 %v13128_v48  ;;  %v1207_v48 = vld [vmem:[#allocation3 + $0xf00] sm:$0xff] }
 0x1e7   :  { %v13255_v54 = vcombine.low %v1207_v48, %v1211_v49 }
 0x1ed   :  { %4912 = vmatmul.mubr.bf16.gmra.mrb[176].mxu0 %v13127_v51  ;;  %v13256_v51 = vcombine.high %v1207_v48, %v1211_v49  ;;  %v804_v48 = vld [vmem:[#allocation3 + $0x268] sm:$0xff] }
 0x1ee   :  { %4921 = vmatprep.mubr.bf16.mxu0 %v13136_v52  ;;  %v1215_v52 = vld [vmem:[#allocation3 + $0xf40] sm:$0xff] }
 0x1ef   :  { %v13264_v55 = vcombine.high %v1215_v52, %v1219_v53 }
 0x1f5   :  { %4922 = vmatmul.mubr.bf16.gmra.mrb[180].mxu0 %v13135_v57  ;;  %v1227_v57 = vld [vmem:[#allocation3 + $0xfa0] sm:$0xff] }
 0x1f6   :  { %4931 = vmatprep.mubr.bf16.mxu0 %v13144_v58  ;;  %v13263_v58 = vcombine.low %v1215_v52, %v1219_v53  ;;  %v13272_v59 = vcombine.high %v1223_v56, %v1227_v57  ;;  %v14856_v52 = vld [vmem:[#allocation6 + $0x264] ss:$8 sps:$4 sm:$0xff]  }
 0x1f7   :  { %v808_v53 = vld [vmem:[#allocation3 + $0x288] sm:$0xff] }
 0x1fd   :  { %4932 = vmatmul.mubr.bf16.gmra.mrb[184].mxu0 %v13143_v61  ;;  %v1235_v61 = vld [vmem:[#allocation3 + $0xfe0] sm:$0xff] }
 0x1fe   :  { %4941 = vmatprep.mubr.bf16.mxu0 %v13152_v62  ;;  %v13271_v62 = vcombine.low %v1223_v56, %v1227_v57  ;;  %v13280_v63 = vcombine.high %v1231_v60, %v1235_v61  ;;  %v816_v57 = vld [vmem:[#allocation3 + $0x2c8] sm:$0xff] }
 0x205   :  { %4942 = vmatmul.mubr.bf16.gmra.mrb[188].mxu0 %v13151_v1  ;;  %v732_v1 = vld [vmem:[#allocation3 + $0x28] sm:$0xff] }
 0x206   :  { %4951 = vmatprep.mubr.bf16.mxu0 %v13160_v2  ;;  %v13279_v2 = vcombine.low %v1231_v60, %v1235_v61  ;;  %v12778_v3 = vcombine.high %v728_v0, %v732_v1  ;;  %v824_v61 = vld [vmem:[#allocation3 + $0x308] sm:$0xff] }
 0x20d   :  { %4952 = vmatmul.mubr.bf16.gmra.mrb[192].mxu0 %v13159_v5  ;;  %v740_v5 = vld [vmem:[#allocation3 + $0x68] sm:$0xff] }
 0x20e   :  { %4961 = vmatprep.mubr.bf16.mxu0 %v13168_v6  ;;  %v12777_v6 = vcombine.low %v728_v0, %v732_v1  ;;  %v12786_v8 = vcombine.high %v736_v4, %v740_v5  ;;  %v832_v1 = vld [vmem:[#allocation3 + $0x348] sm:$0xff] }
 0x215   :  { %4962 = vmatmul.mubr.bf16.gmra.mrb[196].mxu0 %v13167_v10  ;;  %v14839_v10 = vld [vmem:[#allocation6 + $0x210] ss:$8 sps:$4 sm:$0xff]  }
 0x216   :  { %4971 = vmatprep.mubr.bf16.mxu0 %v13176_v11  ;;  %v744_v11 = vld [vmem:[#allocation3 + $0x88] sm:$0xff] }
 0x21d   :  { %4972 = vmatmul.mubr.bf16.gmra.mrb[200].mxu0 %v13175_v14  ;;  %v12785_v14 = vcombine.low %v736_v4, %v740_v5  ;;  %v14857_v5 = vld [vmem:[#allocation6 + $0x270] ss:$8 sps:$4 sm:$0xff]  }
 0x21e   :  { %4981 = vmatprep.mubr.bf16.mxu0 %v13184_v15  ;;  %v12794_v15 = vcombine.high %v744_v11, %v748_v12 }
 0x225   :  { %4982 = vmatmul.mubr.bf16.gmra.mrb[204].mxu0 %v13183_v18  ;;  %v14845_v18 = vld [vmem:[#allocation6 + $0x230] ss:$8 sps:$4 sm:$0xff]  }
 0x226   :  { %4991 = vmatprep.mubr.bf16.mxu0 %v13192_v19  ;;  %v752_v19 = vld [vmem:[#allocation3 + $0xc8] sm:$0xff] }
 0x22d   :  { %4992 = vmatmul.mubr.bf16.gmra.mrb[208].mxu0 %v13191_v22  ;;  %v12793_v22 = vcombine.low %v744_v11, %v748_v12  ;;  %v848_v11 = vld [vmem:[#allocation3 + $0x3c8] sm:$0xff] }
 0x22e   :  { %5001 = vmatprep.mubr.bf16.mxu0 %v13200_v23  ;;  %v12802_v23 = vcombine.high %v752_v19, %v756_v20  ;;  %v852_v12 = vld [vmem:[#allocation3 + $0x3e8] sm:$0xff] }
 0x235   :  { %5002 = vmatmul.mubr.bf16.gmra.mrb[212].mxu0 %v13199_v26  ;;  %v764_v26 = vld [vmem:[#allocation3 + $0x128] sm:$0xff] }
 0x236   :  { %5011 = vmatprep.mubr.bf16.mxu0 %v13208_v27  ;;  %v12801_v27 = vcombine.low %v752_v19, %v756_v20  ;;  %v12810_v28 = vcombine.high %v760_v25, %v764_v26  ;;  %v864_v19 = vld [vmem:[#allocation3 + $0x448] sm:$0xff] }
 0x237   :  { %v868_v20 = vld [vmem:[#allocation3 + $0x468] sm:$0xff] }
 0x23d   :  { %5012 = vmatmul.mubr.bf16.gmra.mrb[216].mxu0 %v13207_v30  ;;  %v772_v30 = vld [vmem:[#allocation3 + $0x168] sm:$0xff] }
 0x23e   :  { %5021 = vmatprep.mubr.bf16.mxu0 %v13216_v31  ;;  %v12809_v31 = vcombine.low %v760_v25, %v764_v26  ;;  %v12818_v32 = vcombine.high %v768_v29, %v772_v30  ;;  %v12817_v37 = vcombine.low %v768_v29, %v772_v30  ;;  %v872_v25 = vld [vmem:[#allocation3 + $0x488] sm:$0xff] }
 0x23f   :  { %v876_v26 = vld [vmem:[#allocation3 + $0x4a8] sm:$0xff] }
 0x240   :  { %v880_v29 = vld [vmem:[#allocation3 + $0x4c8] sm:$0xff] }
 0x241   :  { %v884_v30 = vld [vmem:[#allocation3 + $0x4e8] sm:$0xff] }
 0x245   :  { %5022 = vmatmul.mubr.bf16.gmra.mrb[220].mxu0 %v13215_v34  ;;  %v14853_v34 = vld [vmem:[#allocation6 + $0x254] ss:$8 sps:$4 sm:$0xff]  }
 0x246   :  { %5031 = vmatprep.mubr.bf16.mxu0 %v13224_v35  ;;  %v776_v35 = vld [vmem:[#allocation3 + $0x188] sm:$0xff] }
 0x247   :  { %v12825_v41 = vcombine.low %v776_v35, %v780_v36 }
 0x24d   :  { %5032 = vmatmul.mubr.bf16.gmra.mrb[224].mxu0 %v13223_v38  ;;  %v12826_v38 = vcombine.high %v776_v35, %v780_v36  ;;  %v12929_v35 = vcombine.low %v880_v29, %v884_v30 }
 0x24e   :  { %5041 = vmatprep.mubr.bf16.mxu0 %v13232_v39  ;;  %v784_v39 = vld [vmem:[#allocation3 + $0x1c8] sm:$0xff] }
 0x24f   :  { %v12833_v45 = vcombine.low %v784_v39, %v788_v40 }
 0x255   :  { %5042 = vmatmul.mubr.bf16.gmra.mrb[228].mxu0 %v13231_v42  ;;  %v12834_v42 = vcombine.high %v784_v39, %v788_v40 }
 0x256   :  { %5051 = vmatprep.mubr.bf16.mxu0 %v13240_v43  ;;  %v792_v43 = vld [vmem:[#allocation3 + $0x208] sm:$0xff] }
 0x257   :  { %v12841_v49 = vcombine.low %v792_v43, %v796_v44 }
 0x25d   :  { %5052 = vmatmul.mubr.bf16.gmra.mrb[232].mxu0 %v13239_v46  ;;  %v12842_v46 = vcombine.high %v792_v43, %v796_v44  ;;  %v904_v43 = vld [vmem:[#allocation3 + $0x588] sm:$0xff] }
 0x25e   :  { %5061 = vmatprep.mubr.bf16.mxu0 %v13248_v47  ;;  %v800_v47 = vld [vmem:[#allocation3 + $0x248] sm:$0xff] }
 0x25f   :  { %v908_v44 = vld [vmem:[#allocation3 + $0x5a8] sm:$0xff] }
 0x265   :  { %5062 = vmatmul.mubr.bf16.gmra.mrb[236].mxu0 %v13247_v50  ;;  %v12850_v50 = vcombine.high %v800_v47, %v804_v48 }
 0x266   :  { %5071 = vmatprep.mubr.bf16.mxu0 %v13256_v51  ;;  %v14854_v51 = vld [vmem:[#allocation6 + $0x260] ss:$8 sps:$4 sm:$0xff]  }
 0x26d   :  { %5072 = vmatmul.mubr.bf16.gmra.mrb[240].mxu0 %v13255_v54  ;;  %v812_v54 = vld [vmem:[#allocation3 + $0x2a8] sm:$0xff] }
 0x26e   :  { %5081 = vmatprep.mubr.bf16.mxu0 %v13264_v55  ;;  %v12849_v55 = vcombine.low %v800_v47, %v804_v48  ;;  %v12858_v56 = vcombine.high %v808_v53, %v812_v54  ;;  %v912_v47 = vld [vmem:[#allocation3 + $0x5c8] sm:$0xff] }
 0x26f   :  { %v916_v48 = vld [vmem:[#allocation3 + $0x5e8] sm:$0xff] }
 0x275   :  { %5082 = vmatmul.mubr.bf16.gmra.mrb[244].mxu0 %v13263_v58  ;;  %v820_v58 = vld [vmem:[#allocation3 + $0x2e8] sm:$0xff] }
 0x276   :  { %5091 = vmatprep.mubr.bf16.mxu0 %v13272_v59  ;;  %v12857_v59 = vcombine.low %v808_v53, %v812_v54  ;;  %v12866_v60 = vcombine.high %v816_v57, %v820_v58  ;;  %v12961_v53 = vcombine.low %v912_v47, %v916_v48 }
 0x27d   :  { %5092 = vmatmul.mubr.bf16.gmra.mrb[248].mxu0 %v13271_v62  ;;  %v828_v62 = vld [vmem:[#allocation3 + $0x328] sm:$0xff] }
 0x27e   :  { %5101 = vmatprep.mubr.bf16.mxu0 %v13280_v63  ;;  %v12865_v63 = vcombine.low %v816_v57, %v820_v58  ;;  %v12874_v0 = vcombine.high %v824_v61, %v828_v62 }
 0x285   :  { %5102 = vmatmul.mubr.bf16.gmra.mrb[252].mxu0 %v13279_v2  ;;  %v836_v2 = vld [vmem:[#allocation3 + $0x368] sm:$0xff] }
 0x286   :  { %5144 = vmatprep.mubr.bf16.mxu0 %v12778_v3  ;;  %v12873_v3 = vcombine.low %v824_v61, %v828_v62  ;;  %v12882_v4 = vcombine.high %v832_v1, %v836_v2  ;;  %v936_v61 = vld [vmem:[#allocation3 + $0x688] sm:$0xff] }
 0x287   :  { %v940_v62 = vld [vmem:[#allocation3 + $0x6a8] sm:$0xff] }
 0x28d   :  { %5145 = vmatmul.mubr.bf16.vlgmr.msra.gmra.mrb[0].mxu0 %v12777_v6  ;;  %v14859_v6 = vld [vmem:[#allocation6 + $0x274] ss:$8 sps:$4 sm:$0xff]  }
 0x28e   :  { %5786 = vmatpush1.bf16.msra.mxu0 %v14836_v7  ;;  %5154 = vmatprep.mubr.bf16.mxu0 %v12786_v8  ;;  %v840_v7 = vld [vmem:[#allocation3 + $0x388] sm:$0xff] }
 0x28f   :  { %5787 = vmatprep.subr.bf16.mxu0 %v14841_v9  ;;  %v844_v8 = vld [vmem:[#allocation3 + $0x3a8] sm:$0xff]  ;;  %v12881_v9 = vcombine.low %v832_v1, %v836_v2 }
 0x290   :  { %v944_v1 = vld [vmem:[#allocation3 + $0x6c8] sm:$0xff] }
 0x291   :  { %v948_v2 = vld [vmem:[#allocation3 + $0x6e8] sm:$0xff] }
 0x292   :  { %5788 = vmatpush1.bf16.msra.mxu0 %v14839_v10  ;;  %v12890_v10 = vcombine.high %v840_v7, %v844_v8 }
 0x293   :  { %5789 = vmatprep.subr.bf16.mxu0 %v14844_v13  ;;  %v12889_v13 = vcombine.low %v840_v7, %v844_v8  ;;  %v12993_v7 = vcombine.low %v944_v1, %v948_v2 }
 0x295   :  { %5155 = vmatmul.mubr.bf16.gmra.mrb[4].mxu0 %v12785_v14  ;;  %v12898_v14 = vcombine.high %v848_v11, %v852_v12 }
 0x296   :  { %5164 = vmatprep.mubr.bf16.mxu0 %v12794_v15  ;;  %5790 = vmatpush1.bf16.msra.mxu0 %v14842_v16  ;;  %v856_v15 = vld [vmem:[#allocation3 + $0x408] sm:$0xff] }
 0x297   :  { %5791 = vmatprep.subr.bf16.mxu0 %v14847_v17  ;;  %v860_v16 = vld [vmem:[#allocation3 + $0x428] sm:$0xff]  ;;  %v12897_v17 = vcombine.low %v848_v11, %v852_v12 }
 0x29a   :  { %5792 = vmatpush1.bf16.msra.mxu0 %v14845_v18  ;;  %v12906_v18 = vcombine.high %v856_v15, %v860_v16 }
 0x29b   :  { %5793 = vmatprep.subr.bf16.mxu0 %v14850_v21  ;;  %v12905_v21 = vcombine.low %v856_v15, %v860_v16  ;;  %v968_v15 = vld [vmem:[#allocation3 + $0x788] sm:$0xff] }
 0x29c   :  { %v972_v16 = vld [vmem:[#allocation3 + $0x7a8] sm:$0xff] }
 0x29d   :  { %5165 = vmatmul.mubr.bf16.gmra.mrb[8].mxu0 %v12793_v22  ;;  %v12914_v22 = vcombine.high %v864_v19, %v868_v20 }
 0x29e   :  { %5174 = vmatprep.mubr.bf16.mxu0 %v12802_v23  ;;  %5794 = vmatpush1.bf16.msra.mxu0 %v14848_v24  ;;  %v14860_v23 = vld [vmem:[#allocation6 + $0x280] ss:$8 sps:$4 sm:$0xff]   ;;  %v14862_v24 = vld [vmem:[#allocation6 + $0x284] ss:$8 sps:$4 sm:$0xff]  }
 0x29f   :  { %5795 = vmatprep.subr.bf16.mxu0 %v14853_v34  ;;  %v892_v34 = vld [vmem:[#allocation3 + $0x528] sm:$0xff] }
 0x2a2   :  { %5796 = vmatpush1.bf16.msra.mxu0 %v14851_v33  ;;  %v888_v33 = vld [vmem:[#allocation3 + $0x508] sm:$0xff] }
 0x2a3   :  { %5797 = vmatprep.subr.bf16.mxu0 %v14856_v52  ;;  %v12938_v36 = vcombine.high %v888_v33, %v892_v34  ;;  %v12937_v39 = vcombine.low %v888_v33, %v892_v34  ;;  %v924_v52 = vld [vmem:[#allocation3 + $0x628] sm:$0xff] }
 0x2a4   :  { %v1000_v33 = vld [vmem:[#allocation3 + $0x888] sm:$0xff] }
 0x2a5   :  { %5175 = vmatmul.mubr.bf16.gmra.mrb[12].mxu0 %v12801_v27  ;;  %v12913_v27 = vcombine.low %v864_v19, %v868_v20  ;;  %v976_v19 = vld [vmem:[#allocation3 + $0x7c8] sm:$0xff] }
 0x2a6   :  { %5184 = vmatprep.mubr.bf16.mxu0 %v12810_v28  ;;  %5798 = vmatpush1.bf16.msra.mxu0 %v14854_v51  ;;  %v12922_v28 = vcombine.high %v872_v25, %v876_v26  ;;  %v920_v51 = vld [vmem:[#allocation3 + $0x608] sm:$0xff] }
 0x2a7   :  { %5799 = vmatprep.subr.bf16.mxu0 %v14859_v6  ;;  %v12970_v54 = vcombine.high %v920_v51, %v924_v52  ;;  %v12969_v57 = vcombine.low %v920_v51, %v924_v52  ;;  %v956_v6 = vld [vmem:[#allocation3 + $0x728] sm:$0xff] }
 0x2a8   :  { %v980_v20 = vld [vmem:[#allocation3 + $0x7e8] sm:$0xff] }
 0x2a9   :  { %v1004_v34 = vld [vmem:[#allocation3 + $0x8a8] sm:$0xff] }
 0x2aa   :  { %5800 = vmatpush1.bf16.msra.mxu0 %v14857_v5  ;;  %v952_v5 = vld [vmem:[#allocation3 + $0x708] sm:$0xff] }
 0x2ab   :  { %5801 = vmatprep.subr.bf16.mxu0 %v14862_v24  ;;  %v13002_v8 = vcombine.high %v952_v5, %v956_v6  ;;  %v13001_v11 = vcombine.low %v952_v5, %v956_v6  ;;  %v988_v24 = vld [vmem:[#allocation3 + $0x828] sm:$0xff] }
 0x2ac   :  { %v1032_v51 = vld [vmem:[#allocation3 + $0x988] sm:$0xff] }
 0x2ad   :  { %5185 = vmatmul.mubr.bf16.gmra.mrb[16].mxu0 %v12809_v31  ;;  %v12921_v31 = vcombine.low %v872_v25, %v876_v26  ;;  %v13025_v25 = vcombine.low %v976_v19, %v980_v20  ;;  %v1036_v52 = vld [vmem:[#allocation3 + $0x9a8] sm:$0xff] }
 0x2ae   :  { %5194 = vmatprep.mubr.bf16.mxu0 %v12818_v32  ;;  %5802 = vmatpush1.bf16.msra.mxu0 %v14860_v23  ;;  %v12930_v32 = vcombine.high %v880_v29, %v884_v30  ;;  %v984_v23 = vld [vmem:[#allocation3 + $0x808] sm:$0xff] }
 0x2af   :  { %v13034_v26 = vcombine.high %v984_v23, %v988_v24  ;;  %v13033_v29 = vcombine.low %v984_v23, %v988_v24  ;;  %v1064_v5 = vld [vmem:[#allocation3 + $0xa88] sm:$0xff] }
 0x2b0   :  { %v1068_v6 = vld [vmem:[#allocation3 + $0xaa8] sm:$0xff] }
 0x2b1   :  { %v1096_v23 = vld [vmem:[#allocation3 + $0xb88] sm:$0xff] }
 0x2b2   :  { %v1100_v24 = vld [vmem:[#allocation3 + $0xba8] sm:$0xff] }
 0x2b5   :  { %5195 = vmatmul.mubr.bf16.gmra.mrb[20].mxu0 %v12817_v37  ;;  %v896_v37 = vld [vmem:[#allocation3 + $0x548] sm:$0xff] }
 0x2b6   :  { %5204 = vmatprep.mubr.bf16.mxu0 %v12826_v38  ;;  %v900_v38 = vld [vmem:[#allocation3 + $0x568] sm:$0xff] }
 0x2b7   :  { %v12946_v40 = vcombine.high %v896_v37, %v900_v38 }
 0x2bd   :  { %5205 = vmatmul.mubr.bf16.gmra.mrb[24].mxu0 %v12825_v41  ;;  %v14863_v41 = vld [vmem:[#allocation6 + $0x290] ss:$8 sps:$4 sm:$0xff]  }
 0x2be   :  { %5214 = vmatprep.mubr.bf16.mxu0 %v12834_v42  ;;  %v14865_v42 = vld [vmem:[#allocation6 + $0x294] ss:$8 sps:$4 sm:$0xff]  }
 0x2bf   :  { %5803 = vmatprep.subr.bf16.mxu0 %v14865_v42  ;;  %v1020_v42 = vld [vmem:[#allocation3 + $0x928] sm:$0xff] }
 0x2c0   :  { %5804 = vmatpush1.bf16.msra.mxu0 %v14863_v41  ;;  %v1016_v41 = vld [vmem:[#allocation3 + $0x908] sm:$0xff] }
 0x2c5   :  { %5215 = vmatmul.mubr.bf16.gmra.mrb[28].mxu0 %v12833_v45  ;;  %v12945_v45 = vcombine.low %v896_v37, %v900_v38  ;;  %v1008_v37 = vld [vmem:[#allocation3 + $0x8c8] sm:$0xff] }
 0x2c6   :  { %5224 = vmatprep.mubr.bf16.mxu0 %v12842_v46  ;;  %v12954_v46 = vcombine.high %v904_v43, %v908_v44  ;;  %v1012_v38 = vld [vmem:[#allocation3 + $0x8e8] sm:$0xff] }
 0x2cd   :  { %5225 = vmatmul.mubr.bf16.gmra.mrb[32].mxu0 %v12841_v49  ;;  %v12953_v49 = vcombine.low %v904_v43, %v908_v44  ;;  %v13057_v43 = vcombine.low %v1008_v37, %v1012_v38  ;;  %v13066_v44 = vcombine.high %v1016_v41, %v1020_v42 }
 0x2ce   :  { %5234 = vmatprep.mubr.bf16.mxu0 %v12850_v50  ;;  %v12962_v50 = vcombine.high %v912_v47, %v916_v48  ;;  %v13065_v47 = vcombine.low %v1016_v41, %v1020_v42  ;;  %v1132_v41 = vld [vmem:[#allocation3 + $0xca8] sm:$0xff] }
 0x2d5   :  { %5235 = vmatmul.mubr.bf16.gmra.mrb[36].mxu0 %v12849_v55  ;;  %v928_v55 = vld [vmem:[#allocation3 + $0x648] sm:$0xff] }
 0x2d6   :  { %5244 = vmatprep.mubr.bf16.mxu0 %v12858_v56  ;;  %v932_v56 = vld [vmem:[#allocation3 + $0x668] sm:$0xff] }
 0x2d7   :  { %v12978_v58 = vcombine.high %v928_v55, %v932_v56 }
 0x2dd   :  { %5245 = vmatmul.mubr.bf16.gmra.mrb[40].mxu0 %v12857_v59  ;;  %v14866_v59 = vld [vmem:[#allocation6 + $0x2a0] ss:$8 sps:$4 sm:$0xff]  }
 0x2de   :  { %5254 = vmatprep.mubr.bf16.mxu0 %v12866_v60  ;;  %v14868_v60 = vld [vmem:[#allocation6 + $0x2a4] ss:$8 sps:$4 sm:$0xff]  }
 0x2df   :  { %5805 = vmatprep.subr.bf16.mxu0 %v14868_v60  ;;  %v1052_v60 = vld [vmem:[#allocation3 + $0xa28] sm:$0xff] }
 0x2e0   :  { %5806 = vmatpush1.bf16.msra.mxu0 %v14866_v59  ;;  %v1048_v59 = vld [vmem:[#allocation3 + $0xa08] sm:$0xff] }
 0x2e5   :  { %5255 = vmatmul.mubr.bf16.gmra.mrb[44].mxu0 %v12865_v63  ;;  %v12977_v63 = vcombine.low %v928_v55, %v932_v56  ;;  %v1040_v55 = vld [vmem:[#allocation3 + $0x9c8] sm:$0xff] }
 0x2e6   :  { %5264 = vmatprep.mubr.bf16.mxu0 %v12874_v0  ;;  %v12986_v0 = vcombine.high %v936_v61, %v940_v62  ;;  %v1044_v56 = vld [vmem:[#allocation3 + $0x9e8] sm:$0xff] }
 0x2ed   :  { %5265 = vmatmul.mubr.bf16.gmra.mrb[48].mxu0 %v12873_v3  ;;  %v12985_v3 = vcombine.low %v936_v61, %v940_v62  ;;  %v13089_v61 = vcombine.low %v1040_v55, %v1044_v56  ;;  %v13098_v62 = vcombine.high %v1048_v59, %v1052_v60 }
 0x2ee   :  { %5274 = vmatprep.mubr.bf16.mxu0 %v12882_v4  ;;  %v12994_v4 = vcombine.high %v944_v1, %v948_v2  ;;  %v13097_v1 = vcombine.low %v1048_v59, %v1052_v60  ;;  %v1168_v60 = vld [vmem:[#allocation3 + $0xdc8] sm:$0xff] }
 0x2f5   :  { %5275 = vmatmul.mubr.bf16.gmra.mrb[52].mxu0 %v12881_v9  ;;  %v960_v9 = vld [vmem:[#allocation3 + $0x748] sm:$0xff] }
 0x2f6   :  { %5284 = vmatprep.mubr.bf16.mxu0 %v12890_v10  ;;  %v964_v10 = vld [vmem:[#allocation3 + $0x768] sm:$0xff] }
 0x2f7   :  { %v13010_v12 = vcombine.high %v960_v9, %v964_v10 }
 0x2fd   :  { %5285 = vmatmul.mubr.bf16.gmra.mrb[56].mxu0 %v12889_v13  ;;  %v14869_v13 = vld [vmem:[#allocation6 + $0x2b0] ss:$8 sps:$4 sm:$0xff]  }
 0x2fe   :  { %5294 = vmatprep.mubr.bf16.mxu0 %v12898_v14  ;;  %v14871_v14 = vld [vmem:[#allocation6 + $0x2b4] ss:$8 sps:$4 sm:$0xff]  }
 0x2ff   :  { %5807 = vmatprep.subr.bf16.mxu0 %v14871_v14  ;;  %v1084_v14 = vld [vmem:[#allocation3 + $0xb28] sm:$0xff] }
 0x300   :  { %5808 = vmatpush1.bf16.msra.mxu0 %v14869_v13  ;;  %v1080_v13 = vld [vmem:[#allocation3 + $0xb08] sm:$0xff] }
 0x305   :  { %5295 = vmatmul.mubr.bf16.gmra.mrb[60].mxu0 %v12897_v17  ;;  %v13009_v17 = vcombine.low %v960_v9, %v964_v10  ;;  %v1072_v9 = vld [vmem:[#allocation3 + $0xac8] sm:$0xff] }
 0x306   :  { %5304 = vmatprep.mubr.bf16.mxu0 %v12906_v18  ;;  %v13018_v18 = vcombine.high %v968_v15, %v972_v16  ;;  %v1076_v10 = vld [vmem:[#allocation3 + $0xae8] sm:$0xff] }
 0x30d   :  { %5305 = vmatmul.mubr.bf16.gmra.mrb[64].mxu0 %v12905_v21  ;;  %v13017_v21 = vcombine.low %v968_v15, %v972_v16  ;;  %v13121_v15 = vcombine.low %v1072_v9, %v1076_v10  ;;  %v13130_v16 = vcombine.high %v1080_v13, %v1084_v14 }
 0x30e   :  { %5314 = vmatprep.mubr.bf16.mxu0 %v12914_v22  ;;  %v13026_v22 = vcombine.high %v976_v19, %v980_v20  ;;  %v13129_v19 = vcombine.low %v1080_v13, %v1084_v14  ;;  %v1204_v13 = vld [vmem:[#allocation3 + $0xee8] sm:$0xff] }
 0x315   :  { %5315 = vmatmul.mubr.bf16.gmra.mrb[68].mxu0 %v12913_v27  ;;  %v992_v27 = vld [vmem:[#allocation3 + $0x848] sm:$0xff] }
 0x316   :  { %5324 = vmatprep.mubr.bf16.mxu0 %v12922_v28  ;;  %v996_v28 = vld [vmem:[#allocation3 + $0x868] sm:$0xff] }
 0x317   :  { %v13042_v30 = vcombine.high %v992_v27, %v996_v28 }
 0x31d   :  { %5325 = vmatmul.mubr.bf16.gmra.mrb[72].mxu0 %v12921_v31  ;;  %v14872_v31 = vld [vmem:[#allocation6 + $0x2c0] ss:$8 sps:$4 sm:$0xff]  }
 0x31e   :  { %5334 = vmatprep.mubr.bf16.mxu0 %v12930_v32  ;;  %v14874_v32 = vld [vmem:[#allocation6 + $0x2c4] ss:$8 sps:$4 sm:$0xff]  }
 0x31f   :  { %5809 = vmatprep.subr.bf16.mxu0 %v14874_v32  ;;  %v1116_v32 = vld [vmem:[#allocation3 + $0xc28] sm:$0xff] }
 0x320   :  { %5810 = vmatpush1.bf16.msra.mxu0 %v14872_v31  ;;  %v1112_v31 = vld [vmem:[#allocation3 + $0xc08] sm:$0xff] }
 0x325   :  { %5335 = vmatmul.mubr.bf16.gmra.mrb[76].mxu0 %v12929_v35  ;;  %v13041_v35 = vcombine.low %v992_v27, %v996_v28  ;;  %v1104_v27 = vld [vmem:[#allocation3 + $0xbc8] sm:$0xff] }
 0x326   :  { %5344 = vmatprep.mubr.bf16.mxu0 %v12938_v36  ;;  %v13050_v36 = vcombine.high %v1000_v33, %v1004_v34  ;;  %v1108_v28 = vld [vmem:[#allocation3 + $0xbe8] sm:$0xff] }
 0x32d   :  { %5345 = vmatmul.mubr.bf16.gmra.mrb[80].mxu0 %v12937_v39  ;;  %v13049_v39 = vcombine.low %v1000_v33, %v1004_v34  ;;  %v13153_v33 = vcombine.low %v1104_v27, %v1108_v28  ;;  %v13162_v34 = vcombine.high %v1112_v31, %v1116_v32 }
 0x32e   :  { %5354 = vmatprep.mubr.bf16.mxu0 %v12946_v40  ;;  %v13058_v40 = vcombine.high %v1008_v37, %v1012_v38  ;;  %v13161_v37 = vcombine.low %v1112_v31, %v1116_v32  ;;  %v729_v32 = vld [vmem:[#allocation3 + $0x10] sm:$0xff] }
 0x335   :  { %5355 = vmatmul.mubr.bf16.gmra.mrb[84].mxu0 %v12945_v45  ;;  %v1024_v45 = vld [vmem:[#allocation3 + $0x948] sm:$0xff] }
 0x336   :  { %5364 = vmatprep.mubr.bf16.mxu0 %v12954_v46  ;;  %v1028_v46 = vld [vmem:[#allocation3 + $0x968] sm:$0xff] }
 0x337   :  { %v13074_v48 = vcombine.high %v1024_v45, %v1028_v46 }
 0x33d   :  { %5365 = vmatmul.mubr.bf16.gmra.mrb[88].mxu0 %v12953_v49  ;;  %v14875_v49 = vld [vmem:[#allocation6 + $0x2d0] ss:$8 sps:$4 sm:$0xff]  }
 0x33e   :  { %5374 = vmatprep.mubr.bf16.mxu0 %v12962_v50  ;;  %v14877_v50 = vld [vmem:[#allocation6 + $0x2d4] ss:$8 sps:$4 sm:$0xff]  }
 0x33f   :  { %5811 = vmatprep.subr.bf16.mxu0 %v14877_v50 }
 0x340   :  { %5812 = vmatpush1.bf16.msra.mxu0 %v14875_v49  ;;  %v1148_v49 = vld [vmem:[#allocation3 + $0xd28] sm:$0xff] }
 0x345   :  { %5375 = vmatmul.mubr.bf16.gmra.mrb[92].mxu0 %v12961_v53  ;;  %v13073_v53 = vcombine.low %v1024_v45, %v1028_v46  ;;  %v1140_v45 = vld [vmem:[#allocation3 + $0xce8] sm:$0xff] }
 0x346   :  { %5384 = vmatprep.mubr.bf16.mxu0 %v12970_v54  ;;  %v13082_v54 = vcombine.high %v1032_v51, %v1036_v52 }
 0x34d   :  { %5385 = vmatmul.mubr.bf16.gmra.mrb[96].mxu0 %v12969_v57  ;;  %v13081_v57 = vcombine.low %v1032_v51, %v1036_v52  ;;  %v1152_v52 = vld [vmem:[#allocation3 + $0xd48] sm:$0xff] }
 0x34e   :  { %5394 = vmatprep.mubr.bf16.mxu0 %v12978_v58  ;;  %v13090_v58 = vcombine.high %v1040_v55, %v1044_v56  ;;  %v1160_v56 = vld [vmem:[#allocation3 + $0xd88] sm:$0xff] }
 0x355   :  { %5395 = vmatmul.mubr.bf16.gmra.mrb[100].mxu0 %v12977_v63  ;;  %v1056_v63 = vld [vmem:[#allocation3 + $0xa48] sm:$0xff] }
 0x356   :  { %5404 = vmatprep.mubr.bf16.mxu0 %v12986_v0  ;;  %v1060_v0 = vld [vmem:[#allocation3 + $0xa68] sm:$0xff] }
 0x357   :  { %v13106_v2 = vcombine.high %v1056_v63, %v1060_v0 }
 0x35d   :  { %5405 = vmatmul.mubr.bf16.gmra.mrb[104].mxu0 %v12985_v3  ;;  %v14878_v3 = vld [vmem:[#allocation6 + $0x2e0] ss:$8 sps:$4 sm:$0xff]  }
 0x35e   :  { %5414 = vmatprep.mubr.bf16.mxu0 %v12994_v4  ;;  %v14880_v4 = vld [vmem:[#allocation6 + $0x2e4] ss:$8 sps:$4 sm:$0xff]  }
 0x35f   :  { %5813 = vmatprep.subr.bf16.mxu0 %v14880_v4  ;;  %v1184_v4 = vld [vmem:[#allocation3 + $0xe48] sm:$0xff] }
 0x360   :  { %5814 = vmatpush1.bf16.msra.mxu0 %v14878_v3 }
 0x365   :  { %5415 = vmatmul.mubr.bf16.gmra.mrb[108].mxu0 %v12993_v7  ;;  %v13105_v7 = vcombine.low %v1056_v63, %v1060_v0  ;;  %v1176_v0 = vld [vmem:[#allocation3 + $0xe08] sm:$0xff] }
 0x366   :  { %5424 = vmatprep.mubr.bf16.mxu0 %v13002_v8  ;;  %v13114_v8 = vcombine.high %v1064_v5, %v1068_v6 }
 0x36d   :  { %5425 = vmatmul.mubr.bf16.gmra.mrb[112].mxu0 %v13001_v11  ;;  %v13113_v11 = vcombine.low %v1064_v5, %v1068_v6  ;;  %v1188_v5 = vld [vmem:[#allocation3 + $0xe68] sm:$0xff] }
 0x36e   :  { %5434 = vmatprep.mubr.bf16.mxu0 %v13010_v12  ;;  %v13122_v12 = vcombine.high %v1072_v9, %v1076_v10  ;;  %v1196_v9 = vld [vmem:[#allocation3 + $0xea8] sm:$0xff]  ;;  %v13233_v10 = vcombine.low %v1184_v4, %v1188_v5 }
 0x375   :  { %5435 = vmatmul.mubr.bf16.gmra.mrb[116].mxu0 %v13009_v17  ;;  %v1088_v17 = vld [vmem:[#allocation3 + $0xb48] sm:$0xff] }
 0x376   :  { %5444 = vmatprep.mubr.bf16.mxu0 %v13018_v18  ;;  %v1092_v18 = vld [vmem:[#allocation3 + $0xb68] sm:$0xff] }
 0x377   :  { %v13138_v20 = vcombine.high %v1088_v17, %v1092_v18 }
 0x37d   :  { %5445 = vmatmul.mubr.bf16.gmra.mrb[120].mxu0 %v13017_v21  ;;  %v14881_v21 = vld [vmem:[#allocation6 + $0x2f0] ss:$8 sps:$4 sm:$0xff]  }
 0x37e   :  { %5454 = vmatprep.mubr.bf16.mxu0 %v13026_v22  ;;  %v14883_v22 = vld [vmem:[#allocation6 + $0x2f4] ss:$8 sps:$4 sm:$0xff]  }
 0x37f   :  { %5815 = vmatprep.subr.bf16.mxu0 %v14883_v22 }
 0x380   :  { %5816 = vmatpush1.bf16.msra.mxu0 %v14881_v21  ;;  %v1220_v21 = vld [vmem:[#allocation3 + $0xf68] sm:$0xff] }
 0x385   :  { %5455 = vmatmul.mubr.bf16.gmra.mrb[124].mxu0 %v13025_v25  ;;  %v13137_v25 = vcombine.low %v1088_v17, %v1092_v18  ;;  %v1212_v17 = vld [vmem:[#allocation3 + $0xf28] sm:$0xff] }
 0x386   :  { %5464 = vmatprep.mubr.bf16.mxu0 %v13034_v26  ;;  %v13146_v26 = vcombine.high %v1096_v23, %v1100_v24 }
 0x38d   :  { %5465 = vmatmul.mubr.bf16.gmra.mrb[128].mxu0 %v13033_v29  ;;  %v13145_v29 = vcombine.low %v1096_v23, %v1100_v24  ;;  %v1224_v24 = vld [vmem:[#allocation3 + $0xf88] sm:$0xff] }
 0x38e   :  { %5474 = vmatprep.mubr.bf16.mxu0 %v13042_v30  ;;  %v13154_v30 = vcombine.high %v1104_v27, %v1108_v28  ;;  %v1232_v28 = vld [vmem:[#allocation3 + $0xfc8] sm:$0xff] }
 0x395   :  { %5475 = vmatmul.mubr.bf16.gmra.mrb[132].mxu0 %v13041_v35  ;;  %v1120_v35 = vld [vmem:[#allocation3 + $0xc48] sm:$0xff] }
 0x396   :  { %5484 = vmatprep.mubr.bf16.mxu0 %v13050_v36  ;;  %v1124_v36 = vld [vmem:[#allocation3 + $0xc68] sm:$0xff] }
 0x397   :  { %v13170_v38 = vcombine.high %v1120_v35, %v1124_v36  ;;  %v13169_v42 = vcombine.low %v1120_v35, %v1124_v36  ;;  %v737_v36 = vld [vmem:[#allocation3 + $0x50] sm:$0xff] }
 0x39d   :  { %5485 = vmatmul.mubr.bf16.gmra.mrb[136].mxu0 %v13049_v39  ;;  %v14886_v39 = vld [vmem:[#allocation6 + $0x304] ss:$8 sps:$4 sm:$0xff]  }
 0x39e   :  { %5494 = vmatprep.mubr.bf16.mxu0 %v13058_v40  ;;  %v1128_v40 = vld [vmem:[#allocation3 + $0xc88] sm:$0xff]  ;;  %6458 = vmatprep.subr.bf16.mxu0 %v14886_v39 }
 0x39f   :  { %v13177_v46 = vcombine.low %v1128_v40, %v1132_v41  ;;  %v14884_v39 = vld [vmem:[#allocation6 + $0x300] ss:$8 sps:$4 sm:$0xff]  }
 0x3a5   :  { %5495 = vmatmul.mubr.bf16.gmra.mrb[140].mxu0 %v13057_v43  ;;  %v13178_v43 = vcombine.high %v1128_v40, %v1132_v41  ;;  %v14889_v41 = vld [vmem:[#allocation6 + $0x314] ss:$8 sps:$4 sm:$0xff]  }
 0x3a6   :  { %5504 = vmatprep.mubr.bf16.mxu0 %v13066_v44  ;;  %v1136_v44 = vld [vmem:[#allocation3 + $0xcc8] sm:$0xff] }
 0x3a7   :  { %v13185_v50 = vcombine.low %v1136_v44, %v1140_v45 }
 0x3ad   :  { %5505 = vmatmul.mubr.bf16.gmra.mrb[144].mxu0 %v13065_v47  ;;  %v13186_v47 = vcombine.high %v1136_v44, %v1140_v45  ;;  %v749_v44 = vld [vmem:[#allocation3 + $0xb0] sm:$0xff]  ;;  %v14892_v45 = vld [vmem:[#allocation6 + $0x324] ss:$8 sps:$4 sm:$0xff]  }
 0x3ae   :  { %5514 = vmatprep.mubr.bf16.mxu0 %v13074_v48  ;;  %v1144_v48 = vld [vmem:[#allocation3 + $0xd08] sm:$0xff] }
 0x3af   :  { %v13194_v51 = vcombine.high %v1144_v48, %v1148_v49 }
 0x3b5   :  { %5515 = vmatmul.mubr.bf16.gmra.mrb[148].mxu0 %v13073_v53  ;;  %v1156_v53 = vld [vmem:[#allocation3 + $0xd68] sm:$0xff] }
 0x3b6   :  { %5524 = vmatprep.mubr.bf16.mxu0 %v13082_v54  ;;  %v13193_v54 = vcombine.low %v1144_v48, %v1148_v49  ;;  %v13202_v55 = vcombine.high %v1152_v52, %v1156_v53  ;;  %v14890_v48 = vld [vmem:[#allocation6 + $0x320] ss:$8 sps:$4 sm:$0xff]   ;;  %v14895_v49 = vld [vmem:[#allocation6 + $0x334] ss:$8 sps:$4 sm:$0xff]  }
 0x3bd   :  { %5525 = vmatmul.mubr.bf16.gmra.mrb[152].mxu0 %v13081_v57  ;;  %v1164_v57 = vld [vmem:[#allocation3 + $0xda8] sm:$0xff] }
 0x3be   :  { %5534 = vmatprep.mubr.bf16.mxu0 %v13090_v58  ;;  %v13201_v58 = vcombine.low %v1152_v52, %v1156_v53  ;;  %v13210_v59 = vcombine.high %v1160_v56, %v1164_v57  ;;  %v757_v52 = vld [vmem:[#allocation3 + $0xf0] sm:$0xff]  ;;  %v14898_v53 = vld [vmem:[#allocation6 + $0x344] ss:$8 sps:$4 sm:$0xff]  }
 0x3c5   :  { %5535 = vmatmul.mubr.bf16.gmra.mrb[156].mxu0 %v13089_v61  ;;  %v1172_v61 = vld [vmem:[#allocation3 + $0xde8] sm:$0xff] }
 0x3c6   :  { %5544 = vmatprep.mubr.bf16.mxu0 %v13098_v62  ;;  %v13209_v62 = vcombine.low %v1160_v56, %v1164_v57  ;;  %v13218_v63 = vcombine.high %v1168_v60, %v1172_v61  ;;  %v14896_v56 = vld [vmem:[#allocation6 + $0x340] ss:$8 sps:$4 sm:$0xff]   ;;  %v761_v57 = vld [vmem:[#allocation3 + $0x110] sm:$0xff] }
 0x3cd   :  { %5545 = vmatmul.mubr.bf16.gmra.mrb[160].mxu0 %v13097_v1  ;;  %v1180_v1 = vld [vmem:[#allocation3 + $0xe28] sm:$0xff] }
 0x3ce   :  { %5554 = vmatprep.mubr.bf16.mxu0 %v13106_v2  ;;  %v13217_v2 = vcombine.low %v1168_v60, %v1172_v61  ;;  %v13226_v3 = vcombine.high %v1176_v0, %v1180_v1  ;;  %v13225_v6 = vcombine.low %v1176_v0, %v1180_v1  ;;  %v769_v61 = vld [vmem:[#allocation3 + $0x150] sm:$0xff] }
 0x3cf   :  { %v14899_v1 = vld [vmem:[#allocation6 + $0x350] ss:$8 sps:$4 sm:$0xff]  }
 0x3d5   :  { %5555 = vmatmul.mubr.bf16.gmra.mrb[164].mxu0 %v13105_v7  ;;  %v13234_v7 = vcombine.high %v1184_v4, %v1188_v5  ;;  %v781_v4 = vld [vmem:[#allocation3 + $0x1b0] sm:$0xff] }
 0x3d6   :  { %5564 = vmatprep.mubr.bf16.mxu0 %v13114_v8  ;;  %v1192_v8 = vld [vmem:[#allocation3 + $0xe88] sm:$0xff] }
 0x3d7   :  { %v13241_v14 = vcombine.low %v1192_v8, %v1196_v9 }
 0x3dd   :  { %5565 = vmatmul.mubr.bf16.gmra.mrb[168].mxu0 %v13113_v11  ;;  %v13242_v11 = vcombine.high %v1192_v8, %v1196_v9  ;;  %v789_v8 = vld [vmem:[#allocation3 + $0x1f0] sm:$0xff] }
 0x3de   :  { %5574 = vmatprep.mubr.bf16.mxu0 %v13122_v12  ;;  %v1200_v12 = vld [vmem:[#allocation3 + $0xec8] sm:$0xff] }
 0x3df   :  { %v13249_v18 = vcombine.low %v1200_v12, %v1204_v13 }
 0x3e5   :  { %5575 = vmatmul.mubr.bf16.gmra.mrb[172].mxu0 %v13121_v15  ;;  %v13250_v15 = vcombine.high %v1200_v12, %v1204_v13  ;;  %v797_v12 = vld [vmem:[#allocation3 + $0x230] sm:$0xff] }
 0x3e6   :  { %5584 = vmatprep.mubr.bf16.mxu0 %v13130_v16  ;;  %v1208_v16 = vld [vmem:[#allocation3 + $0xf08] sm:$0xff] }
 0x3e7   :  { %v13257_v22 = vcombine.low %v1208_v16, %v1212_v17 }
 0x3ed   :  { %5585 = vmatmul.mubr.bf16.gmra.mrb[176].mxu0 %v13129_v19  ;;  %v13258_v19 = vcombine.high %v1208_v16, %v1212_v17  ;;  %v805_v16 = vld [vmem:[#allocation3 + $0x270] sm:$0xff] }
 0x3ee   :  { %5594 = vmatprep.mubr.bf16.mxu0 %v13138_v20  ;;  %v1216_v20 = vld [vmem:[#allocation3 + $0xf48] sm:$0xff] }
 0x3ef   :  { %v13266_v23 = vcombine.high %v1216_v20, %v1220_v21 }
 0x3f5   :  { %5595 = vmatmul.mubr.bf16.gmra.mrb[180].mxu0 %v13137_v25  ;;  %v1228_v25 = vld [vmem:[#allocation3 + $0xfa8] sm:$0xff] }
 0x3f6   :  { %5604 = vmatprep.mubr.bf16.mxu0 %v13146_v26  ;;  %v13265_v26 = vcombine.low %v1216_v20, %v1220_v21  ;;  %v13274_v27 = vcombine.high %v1224_v24, %v1228_v25  ;;  %v14904_v20 = vld [vmem:[#allocation6 + $0x364] ss:$8 sps:$4 sm:$0xff]   ;;  %v809_v21 = vld [vmem:[#allocation3 + $0x290] sm:$0xff] }
 0x3fd   :  { %5605 = vmatmul.mubr.bf16.gmra.mrb[184].mxu0 %v13145_v29  ;;  %v1236_v29 = vld [vmem:[#allocation3 + $0xfe8] sm:$0xff] }
 0x3fe   :  { %5614 = vmatprep.mubr.bf16.mxu0 %v13154_v30  ;;  %v13273_v30 = vcombine.low %v1224_v24, %v1228_v25  ;;  %v13282_v31 = vcombine.high %v1232_v28, %v1236_v29  ;;  %v817_v25 = vld [vmem:[#allocation3 + $0x2d0] sm:$0xff] }
 0x405   :  { %5615 = vmatmul.mubr.bf16.gmra.mrb[188].mxu0 %v13153_v33  ;;  %v733_v33 = vld [vmem:[#allocation3 + $0x30] sm:$0xff] }
 0x406   :  { %5624 = vmatprep.mubr.bf16.mxu0 %v13162_v34  ;;  %v13281_v34 = vcombine.low %v1232_v28, %v1236_v29  ;;  %v12780_v35 = vcombine.high %v729_v32, %v733_v33  ;;  %v825_v29 = vld [vmem:[#allocation3 + $0x310] sm:$0xff] }
 0x40d   :  { %5625 = vmatmul.mubr.bf16.gmra.mrb[192].mxu0 %v13161_v37  ;;  %v741_v37 = vld [vmem:[#allocation3 + $0x70] sm:$0xff] }
 0x40e   :  { %5634 = vmatprep.mubr.bf16.mxu0 %v13170_v38  ;;  %v12779_v38 = vcombine.low %v729_v32, %v733_v33  ;;  %v12788_v40 = vcombine.high %v737_v36, %v741_v37  ;;  %v833_v33 = vld [vmem:[#allocation3 + $0x350] sm:$0xff] }
 0x415   :  { %5635 = vmatmul.mubr.bf16.gmra.mrb[196].mxu0 %v13169_v42  ;;  %v14887_v42 = vld [vmem:[#allocation6 + $0x310] ss:$8 sps:$4 sm:$0xff]  }
 0x416   :  { %5644 = vmatprep.mubr.bf16.mxu0 %v13178_v43  ;;  %v745_v43 = vld [vmem:[#allocation3 + $0x90] sm:$0xff] }
 0x41d   :  { %5645 = vmatmul.mubr.bf16.gmra.mrb[200].mxu0 %v13177_v46  ;;  %v12787_v46 = vcombine.low %v737_v36, %v741_v37  ;;  %v14905_v37 = vld [vmem:[#allocation6 + $0x370] ss:$8 sps:$4 sm:$0xff]  }
 0x41e   :  { %5654 = vmatprep.mubr.bf16.mxu0 %v13186_v47  ;;  %v12796_v47 = vcombine.high %v745_v43, %v749_v44 }
 0x425   :  { %5655 = vmatmul.mubr.bf16.gmra.mrb[204].mxu0 %v13185_v50  ;;  %v14893_v50 = vld [vmem:[#allocation6 + $0x330] ss:$8 sps:$4 sm:$0xff]  }
 0x426   :  { %5664 = vmatprep.mubr.bf16.mxu0 %v13194_v51  ;;  %v753_v51 = vld [vmem:[#allocation3 + $0xd0] sm:$0xff] }
 0x42d   :  { %5665 = vmatmul.mubr.bf16.gmra.mrb[208].mxu0 %v13193_v54  ;;  %v12795_v54 = vcombine.low %v745_v43, %v749_v44  ;;  %v849_v43 = vld [vmem:[#allocation3 + $0x3d0] sm:$0xff] }
 0x42e   :  { %5674 = vmatprep.mubr.bf16.mxu0 %v13202_v55  ;;  %v12804_v55 = vcombine.high %v753_v51, %v757_v52  ;;  %v853_v44 = vld [vmem:[#allocation3 + $0x3f0] sm:$0xff] }
 0x435   :  { %5675 = vmatmul.mubr.bf16.gmra.mrb[212].mxu0 %v13201_v58  ;;  %v765_v58 = vld [vmem:[#allocation3 + $0x130] sm:$0xff] }
 0x436   :  { %5684 = vmatprep.mubr.bf16.mxu0 %v13210_v59  ;;  %v12803_v59 = vcombine.low %v753_v51, %v757_v52  ;;  %v12812_v60 = vcombine.high %v761_v57, %v765_v58  ;;  %v865_v51 = vld [vmem:[#allocation3 + $0x450] sm:$0xff] }
 0x437   :  { %v869_v52 = vld [vmem:[#allocation3 + $0x470] sm:$0xff] }
 0x43d   :  { %5685 = vmatmul.mubr.bf16.gmra.mrb[216].mxu0 %v13209_v62  ;;  %v773_v62 = vld [vmem:[#allocation3 + $0x170] sm:$0xff] }
 0x43e   :  { %5694 = vmatprep.mubr.bf16.mxu0 %v13218_v63  ;;  %v12811_v63 = vcombine.low %v761_v57, %v765_v58  ;;  %v12820_v0 = vcombine.high %v769_v61, %v773_v62  ;;  %v12819_v5 = vcombine.low %v769_v61, %v773_v62  ;;  %v873_v57 = vld [vmem:[#allocation3 + $0x490] sm:$0xff] }
 0x43f   :  { %v877_v58 = vld [vmem:[#allocation3 + $0x4b0] sm:$0xff] }
 0x440   :  { %v881_v61 = vld [vmem:[#allocation3 + $0x4d0] sm:$0xff] }
 0x441   :  { %v885_v62 = vld [vmem:[#allocation3 + $0x4f0] sm:$0xff] }
 0x445   :  { %5695 = vmatmul.mubr.bf16.gmra.mrb[220].mxu0 %v13217_v2  ;;  %v14901_v2 = vld [vmem:[#allocation6 + $0x354] ss:$8 sps:$4 sm:$0xff]  }
 0x446   :  { %5704 = vmatprep.mubr.bf16.mxu0 %v13226_v3  ;;  %v777_v3 = vld [vmem:[#allocation3 + $0x190] sm:$0xff] }
 0x447   :  { %v12827_v9 = vcombine.low %v777_v3, %v781_v4 }
 0x44d   :  { %5705 = vmatmul.mubr.bf16.gmra.mrb[224].mxu0 %v13225_v6  ;;  %v12828_v6 = vcombine.high %v777_v3, %v781_v4  ;;  %v12931_v3 = vcombine.low %v881_v61, %v885_v62 }
 0x44e   :  { %5714 = vmatprep.mubr.bf16.mxu0 %v13234_v7  ;;  %v785_v7 = vld [vmem:[#allocation3 + $0x1d0] sm:$0xff] }
 0x44f   :  { %v12835_v13 = vcombine.low %v785_v7, %v789_v8 }
 0x455   :  { %5715 = vmatmul.mubr.bf16.gmra.mrb[228].mxu0 %v13233_v10  ;;  %v12836_v10 = vcombine.high %v785_v7, %v789_v8 }
 0x456   :  { %5724 = vmatprep.mubr.bf16.mxu0 %v13242_v11  ;;  %v793_v11 = vld [vmem:[#allocation3 + $0x210] sm:$0xff] }
 0x457   :  { %v12843_v17 = vcombine.low %v793_v11, %v797_v12 }
 0x45d   :  { %5725 = vmatmul.mubr.bf16.gmra.mrb[232].mxu0 %v13241_v14  ;;  %v12844_v14 = vcombine.high %v793_v11, %v797_v12  ;;  %v905_v11 = vld [vmem:[#allocation3 + $0x590] sm:$0xff] }
 0x45e   :  { %5734 = vmatprep.mubr.bf16.mxu0 %v13250_v15  ;;  %v801_v15 = vld [vmem:[#allocation3 + $0x250] sm:$0xff] }
 0x45f   :  { %v909_v12 = vld [vmem:[#allocation3 + $0x5b0] sm:$0xff] }
 0x465   :  { %5735 = vmatmul.mubr.bf16.gmra.mrb[236].mxu0 %v13249_v18  ;;  %v12852_v18 = vcombine.high %v801_v15, %v805_v16 }
 0x466   :  { %5744 = vmatprep.mubr.bf16.mxu0 %v13258_v19  ;;  %v14902_v19 = vld [vmem:[#allocation6 + $0x360] ss:$8 sps:$4 sm:$0xff]  }
 0x46d   :  { %5745 = vmatmul.mubr.bf16.gmra.mrb[240].mxu0 %v13257_v22  ;;  %v813_v22 = vld [vmem:[#allocation3 + $0x2b0] sm:$0xff] }
 0x46e   :  { %5754 = vmatprep.mubr.bf16.mxu0 %v13266_v23  ;;  %v12851_v23 = vcombine.low %v801_v15, %v805_v16  ;;  %v12860_v24 = vcombine.high %v809_v21, %v813_v22  ;;  %v913_v15 = vld [vmem:[#allocation3 + $0x5d0] sm:$0xff] }
 0x46f   :  { %v917_v16 = vld [vmem:[#allocation3 + $0x5f0] sm:$0xff] }
 0x475   :  { %5755 = vmatmul.mubr.bf16.gmra.mrb[244].mxu0 %v13265_v26  ;;  %v821_v26 = vld [vmem:[#allocation3 + $0x2f0] sm:$0xff] }
 0x476   :  { %5764 = vmatprep.mubr.bf16.mxu0 %v13274_v27  ;;  %v12859_v27 = vcombine.low %v809_v21, %v813_v22  ;;  %v12868_v28 = vcombine.high %v817_v25, %v821_v26  ;;  %v12963_v21 = vcombine.low %v913_v15, %v917_v16 }
 0x47d   :  { %5765 = vmatmul.mubr.bf16.gmra.mrb[248].mxu0 %v13273_v30  ;;  %v829_v30 = vld [vmem:[#allocation3 + $0x330] sm:$0xff] }
 0x47e   :  { %5774 = vmatprep.mubr.bf16.mxu0 %v13282_v31  ;;  %v12867_v31 = vcombine.low %v817_v25, %v821_v26  ;;  %v12876_v32 = vcombine.high %v825_v29, %v829_v30 }
 0x485   :  { %5775 = vmatmul.mubr.bf16.gmra.mrb[252].mxu0 %v13281_v34  ;;  %v837_v34 = vld [vmem:[#allocation3 + $0x370] sm:$0xff] }
 0x486   :  { %5817 = vmatprep.mubr.bf16.mxu0 %v12780_v35  ;;  %v12875_v35 = vcombine.low %v825_v29, %v829_v30  ;;  %v12884_v36 = vcombine.high %v833_v33, %v837_v34  ;;  %v937_v29 = vld [vmem:[#allocation3 + $0x690] sm:$0xff] }
 0x487   :  { %v941_v30 = vld [vmem:[#allocation3 + $0x6b0] sm:$0xff] }
 0x48d   :  { %5818 = vmatmul.mubr.bf16.vlgmr.msra.gmra.mrb[0].mxu0 %v12779_v38  ;;  %v14907_v38 = vld [vmem:[#allocation6 + $0x374] ss:$8 sps:$4 sm:$0xff]  }
 0x48e   :  { %6459 = vmatpush1.bf16.msra.mxu0 %v14884_v39  ;;  %5827 = vmatprep.mubr.bf16.mxu0 %v12788_v40  ;;  %v841_v39 = vld [vmem:[#allocation3 + $0x390] sm:$0xff] }
 0x48f   :  { %6460 = vmatprep.subr.bf16.mxu0 %v14889_v41  ;;  %v845_v40 = vld [vmem:[#allocation3 + $0x3b0] sm:$0xff]  ;;  %v12883_v41 = vcombine.low %v833_v33, %v837_v34 }
 0x490   :  { %v945_v33 = vld [vmem:[#allocation3 + $0x6d0] sm:$0xff] }
 0x491   :  { %v949_v34 = vld [vmem:[#allocation3 + $0x6f0] sm:$0xff] }
 0x492   :  { %6461 = vmatpush1.bf16.msra.mxu0 %v14887_v42  ;;  %v12892_v42 = vcombine.high %v841_v39, %v845_v40 }
 0x493   :  { %6462 = vmatprep.subr.bf16.mxu0 %v14892_v45  ;;  %v12891_v45 = vcombine.low %v841_v39, %v845_v40  ;;  %v12995_v39 = vcombine.low %v945_v33, %v949_v34 }
 0x495   :  { %5828 = vmatmul.mubr.bf16.gmra.mrb[4].mxu0 %v12787_v46  ;;  %v12900_v46 = vcombine.high %v849_v43, %v853_v44 }
 0x496   :  { %5837 = vmatprep.mubr.bf16.mxu0 %v12796_v47  ;;  %6463 = vmatpush1.bf16.msra.mxu0 %v14890_v48  ;;  %v857_v47 = vld [vmem:[#allocation3 + $0x410] sm:$0xff] }
 0x497   :  { %6464 = vmatprep.subr.bf16.mxu0 %v14895_v49  ;;  %v861_v48 = vld [vmem:[#allocation3 + $0x430] sm:$0xff]  ;;  %v12899_v49 = vcombine.low %v849_v43, %v853_v44 }
 0x49a   :  { %6465 = vmatpush1.bf16.msra.mxu0 %v14893_v50  ;;  %v12908_v50 = vcombine.high %v857_v47, %v861_v48 }
 0x49b   :  { %6466 = vmatprep.subr.bf16.mxu0 %v14898_v53  ;;  %v12907_v53 = vcombine.low %v857_v47, %v861_v48  ;;  %v969_v47 = vld [vmem:[#allocation3 + $0x790] sm:$0xff] }
 0x49c   :  { %v973_v48 = vld [vmem:[#allocation3 + $0x7b0] sm:$0xff] }
 0x49d   :  { %5838 = vmatmul.mubr.bf16.gmra.mrb[8].mxu0 %v12795_v54  ;;  %v12916_v54 = vcombine.high %v865_v51, %v869_v52 }
 0x49e   :  { %5847 = vmatprep.mubr.bf16.mxu0 %v12804_v55  ;;  %6467 = vmatpush1.bf16.msra.mxu0 %v14896_v56  ;;  %v14908_v55 = vld [vmem:[#allocation6 + $0x380] ss:$8 sps:$4 sm:$0xff]   ;;  %v14910_v56 = vld [vmem:[#allocation6 + $0x384] ss:$8 sps:$4 sm:$0xff]  }
 0x49f   :  { %6468 = vmatprep.subr.bf16.mxu0 %v14901_v2  ;;  %v893_v2 = vld [vmem:[#allocation3 + $0x530] sm:$0xff] }
 0x4a2   :  { %6469 = vmatpush1.bf16.msra.mxu0 %v14899_v1  ;;  %v889_v1 = vld [vmem:[#allocation3 + $0x510] sm:$0xff] }
 0x4a3   :  { %6470 = vmatprep.subr.bf16.mxu0 %v14904_v20  ;;  %v12940_v4 = vcombine.high %v889_v1, %v893_v2  ;;  %v12939_v7 = vcombine.low %v889_v1, %v893_v2  ;;  %v925_v20 = vld [vmem:[#allocation3 + $0x630] sm:$0xff] }
 0x4a4   :  { %v1001_v1 = vld [vmem:[#allocation3 + $0x890] sm:$0xff] }
 0x4a5   :  { %5848 = vmatmul.mubr.bf16.gmra.mrb[12].mxu0 %v12803_v59  ;;  %v12915_v59 = vcombine.low %v865_v51, %v869_v52  ;;  %v977_v51 = vld [vmem:[#allocation3 + $0x7d0] sm:$0xff] }
 0x4a6   :  { %5857 = vmatprep.mubr.bf16.mxu0 %v12812_v60  ;;  %6471 = vmatpush1.bf16.msra.mxu0 %v14902_v19  ;;  %v12924_v60 = vcombine.high %v873_v57, %v877_v58  ;;  %v921_v19 = vld [vmem:[#allocation3 + $0x610] sm:$0xff] }
 0x4a7   :  { %6472 = vmatprep.subr.bf16.mxu0 %v14907_v38  ;;  %v12972_v22 = vcombine.high %v921_v19, %v925_v20  ;;  %v12971_v25 = vcombine.low %v921_v19, %v925_v20  ;;  %v957_v38 = vld [vmem:[#allocation3 + $0x730] sm:$0xff] }
 0x4a8   :  { %v981_v52 = vld [vmem:[#allocation3 + $0x7f0] sm:$0xff] }
 0x4a9   :  { %v1005_v2 = vld [vmem:[#allocation3 + $0x8b0] sm:$0xff] }
 0x4aa   :  { %6473 = vmatpush1.bf16.msra.mxu0 %v14905_v37  ;;  %v953_v37 = vld [vmem:[#allocation3 + $0x710] sm:$0xff] }
 0x4ab   :  { %6474 = vmatprep.subr.bf16.mxu0 %v14910_v56  ;;  %v13004_v40 = vcombine.high %v953_v37, %v957_v38  ;;  %v13003_v43 = vcombine.low %v953_v37, %v957_v38  ;;  %v989_v56 = vld [vmem:[#allocation3 + $0x830] sm:$0xff] }
 0x4ac   :  { %v1033_v19 = vld [vmem:[#allocation3 + $0x990] sm:$0xff] }
 0x4ad   :  { %5858 = vmatmul.mubr.bf16.gmra.mrb[16].mxu0 %v12811_v63  ;;  %v12923_v63 = vcombine.low %v873_v57, %v877_v58  ;;  %v13027_v57 = vcombine.low %v977_v51, %v981_v52  ;;  %v1037_v20 = vld [vmem:[#allocation3 + $0x9b0] sm:$0xff] }
 0x4ae   :  { %5867 = vmatprep.mubr.bf16.mxu0 %v12820_v0  ;;  %6475 = vmatpush1.bf16.msra.mxu0 %v14908_v55  ;;  %v12932_v0 = vcombine.high %v881_v61, %v885_v62  ;;  %v985_v55 = vld [vmem:[#allocation3 + $0x810] sm:$0xff] }
 0x4af   :  { %v13036_v58 = vcombine.high %v985_v55, %v989_v56  ;;  %v13035_v61 = vcombine.low %v985_v55, %v989_v56  ;;  %v1065_v37 = vld [vmem:[#allocation3 + $0xa90] sm:$0xff] }
 0x4b0   :  { %v1069_v38 = vld [vmem:[#allocation3 + $0xab0] sm:$0xff] }
 0x4b1   :  { %v1097_v55 = vld [vmem:[#allocation3 + $0xb90] sm:$0xff] }
 0x4b2   :  { %v1101_v56 = vld [vmem:[#allocation3 + $0xbb0] sm:$0xff] }
 0x4b5   :  { %5868 = vmatmul.mubr.bf16.gmra.mrb[20].mxu0 %v12819_v5  ;;  %v897_v5 = vld [vmem:[#allocation3 + $0x550] sm:$0xff] }
 0x4b6   :  { %5877 = vmatprep.mubr.bf16.mxu0 %v12828_v6  ;;  %v901_v6 = vld [vmem:[#allocation3 + $0x570] sm:$0xff] }
 0x4b7   :  { %v12948_v8 = vcombine.high %v897_v5, %v901_v6 }
 0x4bd   :  { %5878 = vmatmul.mubr.bf16.gmra.mrb[24].mxu0 %v12827_v9  ;;  %v14911_v9 = vld [vmem:[#allocation6 + $0x390] ss:$8 sps:$4 sm:$0xff]  }
 0x4be   :  { %5887 = vmatprep.mubr.bf16.mxu0 %v12836_v10  ;;  %v14913_v10 = vld [vmem:[#allocation6 + $0x394] ss:$8 sps:$4 sm:$0xff]  }
 0x4bf   :  { %6476 = vmatprep.subr.bf16.mxu0 %v14913_v10  ;;  %v1021_v10 = vld [vmem:[#allocation3 + $0x930] sm:$0xff] }
 0x4c0   :  { %6477 = vmatpush1.bf16.msra.mxu0 %v14911_v9  ;;  %v1017_v9 = vld [vmem:[#allocation3 + $0x910] sm:$0xff] }
 0x4c5   :  { %5888 = vmatmul.mubr.bf16.gmra.mrb[28].mxu0 %v12835_v13  ;;  %v12947_v13 = vcombine.low %v897_v5, %v901_v6  ;;  %v1009_v5 = vld [vmem:[#allocation3 + $0x8d0] sm:$0xff] }
 0x4c6   :  { %5897 = vmatprep.mubr.bf16.mxu0 %v12844_v14  ;;  %v12956_v14 = vcombine.high %v905_v11, %v909_v12  ;;  %v1013_v6 = vld [vmem:[#allocation3 + $0x8f0] sm:$0xff] }
 0x4cd   :  { %5898 = vmatmul.mubr.bf16.gmra.mrb[32].mxu0 %v12843_v17  ;;  %v12955_v17 = vcombine.low %v905_v11, %v909_v12  ;;  %v13059_v11 = vcombine.low %v1009_v5, %v1013_v6  ;;  %v13068_v12 = vcombine.high %v1017_v9, %v1021_v10 }
 0x4ce   :  { %5907 = vmatprep.mubr.bf16.mxu0 %v12852_v18  ;;  %v12964_v18 = vcombine.high %v913_v15, %v917_v16  ;;  %v13067_v15 = vcombine.low %v1017_v9, %v1021_v10 }
 0x4d5   :  { %5908 = vmatmul.mubr.bf16.gmra.mrb[36].mxu0 %v12851_v23  ;;  %v929_v23 = vld [vmem:[#allocation3 + $0x650] sm:$0xff] }
 0x4d6   :  { %5917 = vmatprep.mubr.bf16.mxu0 %v12860_v24  ;;  %v933_v24 = vld [vmem:[#allocation3 + $0x670] sm:$0xff] }
 0x4d7   :  { %v12980_v26 = vcombine.high %v929_v23, %v933_v24 }
 0x4dd   :  { %5918 = vmatmul.mubr.bf16.gmra.mrb[40].mxu0 %v12859_v27  ;;  %v14914_v27 = vld [vmem:[#allocation6 + $0x3a0] ss:$8 sps:$4 sm:$0xff]  }
 0x4de   :  { %5927 = vmatprep.mubr.bf16.mxu0 %v12868_v28  ;;  %v14916_v28 = vld [vmem:[#allocation6 + $0x3a4] ss:$8 sps:$4 sm:$0xff]  }
 0x4df   :  { %6478 = vmatprep.subr.bf16.mxu0 %v14916_v28  ;;  %v1053_v28 = vld [vmem:[#allocation3 + $0xa30] sm:$0xff] }
 0x4e0   :  { %6479 = vmatpush1.bf16.msra.mxu0 %v14914_v27  ;;  %v1049_v27 = vld [vmem:[#allocation3 + $0xa10] sm:$0xff] }
 0x4e5   :  { %5928 = vmatmul.mubr.bf16.gmra.mrb[44].mxu0 %v12867_v31  ;;  %v12979_v31 = vcombine.low %v929_v23, %v933_v24  ;;  %v1041_v23 = vld [vmem:[#allocation3 + $0x9d0] sm:$0xff] }
 0x4e6   :  { %5937 = vmatprep.mubr.bf16.mxu0 %v12876_v32  ;;  %v12988_v32 = vcombine.high %v937_v29, %v941_v30  ;;  %v1045_v24 = vld [vmem:[#allocation3 + $0x9f0] sm:$0xff] }
 0x4ed   :  { %5938 = vmatmul.mubr.bf16.gmra.mrb[48].mxu0 %v12875_v35  ;;  %v12987_v35 = vcombine.low %v937_v29, %v941_v30  ;;  %v13091_v29 = vcombine.low %v1041_v23, %v1045_v24  ;;  %v13100_v30 = vcombine.high %v1049_v27, %v1053_v28 }
 0x4ee   :  { %5947 = vmatprep.mubr.bf16.mxu0 %v12884_v36  ;;  %v12996_v36 = vcombine.high %v945_v33, %v949_v34  ;;  %v13099_v33 = vcombine.low %v1049_v27, %v1053_v28  ;;  %v1169_v27 = vld [vmem:[#allocation3 + $0xdd0] sm:$0xff] }
 0x4ef   :  { %v1173_v28 = vld [vmem:[#allocation3 + $0xdf0] sm:$0xff] }
 0x4f5   :  { %5948 = vmatmul.mubr.bf16.gmra.mrb[52].mxu0 %v12883_v41  ;;  %v961_v41 = vld [vmem:[#allocation3 + $0x750] sm:$0xff] }
 0x4f6   :  { %5957 = vmatprep.mubr.bf16.mxu0 %v12892_v42  ;;  %v965_v42 = vld [vmem:[#allocation3 + $0x770] sm:$0xff] }
 0x4f7   :  { %v13012_v44 = vcombine.high %v961_v41, %v965_v42 }
 0x4fd   :  { %5958 = vmatmul.mubr.bf16.gmra.mrb[56].mxu0 %v12891_v45  ;;  %v14917_v45 = vld [vmem:[#allocation6 + $0x3b0] ss:$8 sps:$4 sm:$0xff]  }
 0x4fe   :  { %5967 = vmatprep.mubr.bf16.mxu0 %v12900_v46  ;;  %v14919_v46 = vld [vmem:[#allocation6 + $0x3b4] ss:$8 sps:$4 sm:$0xff]  }
 0x4ff   :  { %6480 = vmatprep.subr.bf16.mxu0 %v14919_v46  ;;  %v1085_v46 = vld [vmem:[#allocation3 + $0xb30] sm:$0xff] }
 0x500   :  { %6481 = vmatpush1.bf16.msra.mxu0 %v14917_v45  ;;  %v1081_v45 = vld [vmem:[#allocation3 + $0xb10] sm:$0xff] }
 0x505   :  { %5968 = vmatmul.mubr.bf16.gmra.mrb[60].mxu0 %v12899_v49  ;;  %v13011_v49 = vcombine.low %v961_v41, %v965_v42  ;;  %v1073_v41 = vld [vmem:[#allocation3 + $0xad0] sm:$0xff] }
 0x506   :  { %5977 = vmatprep.mubr.bf16.mxu0 %v12908_v50  ;;  %v13020_v50 = vcombine.high %v969_v47, %v973_v48  ;;  %v1077_v42 = vld [vmem:[#allocation3 + $0xaf0] sm:$0xff] }
 0x50d   :  { %5978 = vmatmul.mubr.bf16.gmra.mrb[64].mxu0 %v12907_v53  ;;  %v13019_v53 = vcombine.low %v969_v47, %v973_v48  ;;  %v13123_v47 = vcombine.low %v1073_v41, %v1077_v42  ;;  %v13132_v48 = vcombine.high %v1081_v45, %v1085_v46 }
 0x50e   :  { %5987 = vmatprep.mubr.bf16.mxu0 %v12916_v54  ;;  %v13028_v54 = vcombine.high %v977_v51, %v981_v52  ;;  %v13131_v51 = vcombine.low %v1081_v45, %v1085_v46 }
 0x515   :  { %5988 = vmatmul.mubr.bf16.gmra.mrb[68].mxu0 %v12915_v59  ;;  %v993_v59 = vld [vmem:[#allocation3 + $0x850] sm:$0xff] }
 0x516   :  { %5997 = vmatprep.mubr.bf16.mxu0 %v12924_v60  ;;  %v997_v60 = vld [vmem:[#allocation3 + $0x870] sm:$0xff] }
 0x517   :  { %v13044_v62 = vcombine.high %v993_v59, %v997_v60 }
 0x51d   :  { %5998 = vmatmul.mubr.bf16.gmra.mrb[72].mxu0 %v12923_v63  ;;  %v14920_v63 = vld [vmem:[#allocation6 + $0x3c0] ss:$8 sps:$4 sm:$0xff]  }
 0x51e   :  { %6007 = vmatprep.mubr.bf16.mxu0 %v12932_v0  ;;  %v14922_v0 = vld [vmem:[#allocation6 + $0x3c4] ss:$8 sps:$4 sm:$0xff]  }
 0x51f   :  { %6482 = vmatprep.subr.bf16.mxu0 %v14922_v0  ;;  %v1117_v0 = vld [vmem:[#allocation3 + $0xc30] sm:$0xff] }
 0x520   :  { %6483 = vmatpush1.bf16.msra.mxu0 %v14920_v63  ;;  %v1113_v63 = vld [vmem:[#allocation3 + $0xc10] sm:$0xff] }
 0x525   :  { %6008 = vmatmul.mubr.bf16.gmra.mrb[76].mxu0 %v12931_v3  ;;  %v13043_v3 = vcombine.low %v993_v59, %v997_v60  ;;  %v1105_v59 = vld [vmem:[#allocation3 + $0xbd0] sm:$0xff] }
 0x526   :  { %6017 = vmatprep.mubr.bf16.mxu0 %v12940_v4  ;;  %v13052_v4 = vcombine.high %v1001_v1, %v1005_v2  ;;  %v1109_v60 = vld [vmem:[#allocation3 + $0xbf0] sm:$0xff] }
 0x52d   :  { %6018 = vmatmul.mubr.bf16.gmra.mrb[80].mxu0 %v12939_v7  ;;  %v13051_v7 = vcombine.low %v1001_v1, %v1005_v2  ;;  %v13155_v1 = vcombine.low %v1105_v59, %v1109_v60  ;;  %v13164_v2 = vcombine.high %v1113_v63, %v1117_v0 }
 0x52e   :  { %6027 = vmatprep.mubr.bf16.mxu0 %v12948_v8  ;;  %v13060_v8 = vcombine.high %v1009_v5, %v1013_v6  ;;  %v13163_v5 = vcombine.low %v1113_v63, %v1117_v0  ;;  %v730_v63 = vld [vmem:[#allocation3 + $0x18] sm:$0xff] }
 0x52f   :  { %v734_v0 = vld [vmem:[#allocation3 + $0x38] sm:$0xff] }
 0x535   :  { %6028 = vmatmul.mubr.bf16.gmra.mrb[84].mxu0 %v12947_v13  ;;  %v1025_v13 = vld [vmem:[#allocation3 + $0x950] sm:$0xff] }
 0x536   :  { %6037 = vmatprep.mubr.bf16.mxu0 %v12956_v14  ;;  %v1029_v14 = vld [vmem:[#allocation3 + $0x970] sm:$0xff] }
 0x537   :  { %v13076_v16 = vcombine.high %v1025_v13, %v1029_v14 }
 0x53d   :  { %6038 = vmatmul.mubr.bf16.gmra.mrb[88].mxu0 %v12955_v17  ;;  %v14923_v17 = vld [vmem:[#allocation6 + $0x3d0] ss:$8 sps:$4 sm:$0xff]  }
 0x53e   :  { %6047 = vmatprep.mubr.bf16.mxu0 %v12964_v18  ;;  %v14925_v18 = vld [vmem:[#allocation6 + $0x3d4] ss:$8 sps:$4 sm:$0xff]  }
 0x53f   :  { %6484 = vmatprep.subr.bf16.mxu0 %v14925_v18 }
 0x540   :  { %6485 = vmatpush1.bf16.msra.mxu0 %v14923_v17 }
 0x545   :  { %6048 = vmatmul.mubr.bf16.gmra.mrb[92].mxu0 %v12963_v21  ;;  %v13075_v21 = vcombine.low %v1025_v13, %v1029_v14 }
 0x546   :  { %6057 = vmatprep.mubr.bf16.mxu0 %v12972_v22  ;;  %v13084_v22 = vcombine.high %v1033_v19, %v1037_v20 }
 0x54d   :  { %6058 = vmatmul.mubr.bf16.gmra.mrb[96].mxu0 %v12971_v25  ;;  %v13083_v25 = vcombine.low %v1033_v19, %v1037_v20  ;;  %v1153_v19 = vld [vmem:[#allocation3 + $0xd50] sm:$0xff] }
 0x54e   :  { %6067 = vmatprep.mubr.bf16.mxu0 %v12980_v26  ;;  %v13092_v26 = vcombine.high %v1041_v23, %v1045_v24  ;;  %v1157_v20 = vld [vmem:[#allocation3 + $0xd70] sm:$0xff] }
 0x54f   :  { %v1161_v23 = vld [vmem:[#allocation3 + $0xd90] sm:$0xff] }
 0x550   :  { %v1165_v24 = vld [vmem:[#allocation3 + $0xdb0] sm:$0xff] }
 0x555   :  { %6068 = vmatmul.mubr.bf16.gmra.mrb[100].mxu0 %v12979_v31  ;;  %v1057_v31 = vld [vmem:[#allocation3 + $0xa50] sm:$0xff] }
 0x556   :  { %6077 = vmatprep.mubr.bf16.mxu0 %v12988_v32  ;;  %v1061_v32 = vld [vmem:[#allocation3 + $0xa70] sm:$0xff] }
 0x557   :  { %v13108_v34 = vcombine.high %v1057_v31, %v1061_v32 }
 0x55d   :  { %6078 = vmatmul.mubr.bf16.gmra.mrb[104].mxu0 %v12987_v35  ;;  %v14926_v35 = vld [vmem:[#allocation6 + $0x3e0] ss:$8 sps:$4 sm:$0xff]  }
 0x55e   :  { %6087 = vmatprep.mubr.bf16.mxu0 %v12996_v36  ;;  %v14928_v36 = vld [vmem:[#allocation6 + $0x3e4] ss:$8 sps:$4 sm:$0xff]  }
 0x55f   :  { %6486 = vmatprep.subr.bf16.mxu0 %v14928_v36  ;;  %v1189_v36 = vld [vmem:[#allocation3 + $0xe70] sm:$0xff] }
 0x560   :  { %6487 = vmatpush1.bf16.msra.mxu0 %v14926_v35  ;;  %v1185_v35 = vld [vmem:[#allocation3 + $0xe50] sm:$0xff] }
 0x565   :  { %6088 = vmatmul.mubr.bf16.gmra.mrb[108].mxu0 %v12995_v39  ;;  %v13107_v39 = vcombine.low %v1057_v31, %v1061_v32  ;;  %v1177_v31 = vld [vmem:[#allocation3 + $0xe10] sm:$0xff] }
 0x566   :  { %6097 = vmatprep.mubr.bf16.mxu0 %v13004_v40  ;;  %v13116_v40 = vcombine.high %v1065_v37, %v1069_v38  ;;  %v1181_v32 = vld [vmem:[#allocation3 + $0xe30] sm:$0xff] }
 0x56d   :  { %6098 = vmatmul.mubr.bf16.gmra.mrb[112].mxu0 %v13003_v43  ;;  %v13115_v43 = vcombine.low %v1065_v37, %v1069_v38  ;;  %v13227_v37 = vcombine.low %v1177_v31, %v1181_v32  ;;  %v13236_v38 = vcombine.high %v1185_v35, %v1189_v36 }
 0x56e   :  { %6107 = vmatprep.mubr.bf16.mxu0 %v13012_v44  ;;  %v13124_v44 = vcombine.high %v1073_v41, %v1077_v42  ;;  %v13235_v41 = vcombine.low %v1185_v35, %v1189_v36  ;;  %v14932_v35 = vld [vmem:[#allocation8 + $0x4] ss:$8 sps:$4 sm:$0xff]   ;;  %v15233_v36 = vld [vmem:[#allocation8] ss:$8 sps:$4 sm:$0xff]  }
 0x56f   :  { %8126 = vmatprep.subr.bf16.mxu1 %v14932_v35 }
 0x570   :  { %8127 = vmatpush1.bf16.msra.mxu1 %v15233_v36 }
 0x575   :  { %6108 = vmatmul.mubr.bf16.gmra.mrb[116].mxu0 %v13011_v49  ;;  %v1089_v49 = vld [vmem:[#allocation3 + $0xb50] sm:$0xff] }
 0x576   :  { %6117 = vmatprep.mubr.bf16.mxu0 %v13020_v50  ;;  %v1093_v50 = vld [vmem:[#allocation3 + $0xb70] sm:$0xff] }
 0x577   :  { %v13140_v52 = vcombine.high %v1089_v49, %v1093_v50 }
 0x57d   :  { %6118 = vmatmul.mubr.bf16.gmra.mrb[120].mxu0 %v13019_v53  ;;  %v14929_v53 = vld [vmem:[#allocation6 + $0x3f0] ss:$8 sps:$4 sm:$0xff]  }
 0x57e   :  { %6127 = vmatprep.mubr.bf16.mxu0 %v13028_v54  ;;  %v14931_v54 = vld [vmem:[#allocation6 + $0x3f4] ss:$8 sps:$4 sm:$0xff]  }
 0x57f   :  { %6488 = vmatprep.subr.bf16.mxu0 %v14931_v54 }
 0x580   :  { %6489 = vmatpush1.bf16.msra.mxu0 %v14929_v53 }
 0x585   :  { %6128 = vmatmul.mubr.bf16.gmra.mrb[124].mxu0 %v13027_v57  ;;  %v13139_v57 = vcombine.low %v1089_v49, %v1093_v50 }
 0x586   :  { %6137 = vmatprep.mubr.bf16.mxu0 %v13036_v58  ;;  %v13148_v58 = vcombine.high %v1097_v55, %v1101_v56 }
 0x58d   :  { %6138 = vmatmul.mubr.bf16.gmra.mrb[128].mxu0 %v13035_v61  ;;  %v13147_v61 = vcombine.low %v1097_v55, %v1101_v56  ;;  %v1225_v55 = vld [vmem:[#allocation3 + $0xf90] sm:$0xff] }
 0x58e   :  { %6147 = vmatprep.mubr.bf16.mxu0 %v13044_v62  ;;  %v13156_v62 = vcombine.high %v1105_v59, %v1109_v60  ;;  %v1229_v56 = vld [vmem:[#allocation3 + $0xfb0] sm:$0xff] }
 0x58f   :  { %v1233_v59 = vld [vmem:[#allocation3 + $0xfd0] sm:$0xff] }
 0x590   :  { %v1237_v60 = vld [vmem:[#allocation3 + $0xff0] sm:$0xff] }
 0x595   :  { %6148 = vmatmul.mubr.bf16.gmra.mrb[132].mxu0 %v13043_v3  ;;  %v1121_v3 = vld [vmem:[#allocation3 + $0xc50] sm:$0xff] }
 0x596   :  { %6157 = vmatprep.mubr.bf16.mxu0 %v13052_v4  ;;  %v1125_v4 = vld [vmem:[#allocation3 + $0xc70] sm:$0xff] }
 0x597   :  { %v13172_v6 = vcombine.high %v1121_v3, %v1125_v4  ;;  %v13171_v9 = vcombine.low %v1121_v3, %v1125_v4  ;;  %v738_v3 = vld [vmem:[#allocation3 + $0x58] sm:$0xff] }
 0x598   :  { %v742_v4 = vld [vmem:[#allocation3 + $0x78] sm:$0xff] }
 0x59d   :  { %6158 = vmatmul.mubr.bf16.gmra.mrb[136].mxu0 %v13051_v7  ;;  %v1129_v7 = vld [vmem:[#allocation3 + $0xc90] sm:$0xff] }
 0x59e   :  { %6167 = vmatprep.mubr.bf16.mxu0 %v13060_v8  ;;  %v1133_v8 = vld [vmem:[#allocation3 + $0xcb0] sm:$0xff] }
 0x59f   :  { %v13180_v10 = vcombine.high %v1129_v7, %v1133_v8  ;;  %v13179_v13 = vcombine.low %v1129_v7, %v1133_v8  ;;  %v746_v7 = vld [vmem:[#allocation3 + $0x98] sm:$0xff] }
 0x5a0   :  { %v750_v8 = vld [vmem:[#allocation3 + $0xb8] sm:$0xff] }
 0x5a5   :  { %6168 = vmatmul.mubr.bf16.gmra.mrb[140].mxu0 %v13059_v11  ;;  %v1137_v11 = vld [vmem:[#allocation3 + $0xcd0] sm:$0xff] }
 0x5a6   :  { %6177 = vmatprep.mubr.bf16.mxu0 %v13068_v12  ;;  %v1141_v12 = vld [vmem:[#allocation3 + $0xcf0] sm:$0xff] }
 0x5a7   :  { %v13188_v14 = vcombine.high %v1137_v11, %v1141_v12  ;;  %v13187_v17 = vcombine.low %v1137_v11, %v1141_v12  ;;  %v754_v11 = vld [vmem:[#allocation3 + $0xd8] sm:$0xff] }
 0x5a8   :  { %v758_v12 = vld [vmem:[#allocation3 + $0xf8] sm:$0xff] }
 0x5ad   :  { %6178 = vmatmul.mubr.bf16.gmra.mrb[144].mxu0 %v13067_v15  ;;  %v1145_v15 = vld [vmem:[#allocation3 + $0xd10] sm:$0xff] }
 0x5ae   :  { %6187 = vmatprep.mubr.bf16.mxu0 %v13076_v16  ;;  %v1149_v16 = vld [vmem:[#allocation3 + $0xd30] sm:$0xff] }
 0x5af   :  { %v13196_v18 = vcombine.high %v1145_v15, %v1149_v16 }
 0x5b5   :  { %6188 = vmatmul.mubr.bf16.gmra.mrb[148].mxu0 %v13075_v21  ;;  %v13195_v21 = vcombine.low %v1145_v15, %v1149_v16  ;;  %v762_v15 = vld [vmem:[#allocation3 + $0x118] sm:$0xff] }
 0x5b6   :  { %6197 = vmatprep.mubr.bf16.mxu0 %v13084_v22  ;;  %v13204_v22 = vcombine.high %v1153_v19, %v1157_v20  ;;  %v766_v16 = vld [vmem:[#allocation3 + $0x138] sm:$0xff] }
 0x5bd   :  { %6198 = vmatmul.mubr.bf16.gmra.mrb[152].mxu0 %v13083_v25  ;;  %v13203_v25 = vcombine.low %v1153_v19, %v1157_v20  ;;  %v770_v19 = vld [vmem:[#allocation3 + $0x158] sm:$0xff] }
 0x5be   :  { %6207 = vmatprep.mubr.bf16.mxu0 %v13092_v26  ;;  %v13212_v26 = vcombine.high %v1161_v23, %v1165_v24  ;;  %v774_v20 = vld [vmem:[#allocation3 + $0x178] sm:$0xff] }
 0x5c5   :  { %6208 = vmatmul.mubr.bf16.gmra.mrb[156].mxu0 %v13091_v29  ;;  %v13211_v29 = vcombine.low %v1161_v23, %v1165_v24  ;;  %v778_v23 = vld [vmem:[#allocation3 + $0x198] sm:$0xff] }
 0x5c6   :  { %6217 = vmatprep.mubr.bf16.mxu0 %v13100_v30  ;;  %v13220_v30 = vcombine.high %v1169_v27, %v1173_v28  ;;  %v782_v24 = vld [vmem:[#allocation3 + $0x1b8] sm:$0xff] }
 0x5cd   :  { %6218 = vmatmul.mubr.bf16.gmra.mrb[160].mxu0 %v13099_v33  ;;  %v13219_v33 = vcombine.low %v1169_v27, %v1173_v28  ;;  %v786_v27 = vld [vmem:[#allocation3 + $0x1d8] sm:$0xff] }
 0x5ce   :  { %6227 = vmatprep.mubr.bf16.mxu0 %v13108_v34  ;;  %v13228_v34 = vcombine.high %v1177_v31, %v1181_v32  ;;  %v790_v28 = vld [vmem:[#allocation3 + $0x1f8] sm:$0xff] }
 0x5cf   :  { %v794_v31 = vld [vmem:[#allocation3 + $0x218] sm:$0xff] }
 0x5d0   :  { %v798_v32 = vld [vmem:[#allocation3 + $0x238] sm:$0xff] }
 0x5d5   :  { %6228 = vmatmul.mubr.bf16.gmra.mrb[164].mxu0 %v13107_v39  ;;  %v1193_v39 = vld [vmem:[#allocation3 + $0xe90] sm:$0xff] }
 0x5d6   :  { %6237 = vmatprep.mubr.bf16.mxu0 %v13116_v40  ;;  %v1197_v40 = vld [vmem:[#allocation3 + $0xeb0] sm:$0xff] }
 0x5d7   :  { %v13244_v42 = vcombine.high %v1193_v39, %v1197_v40  ;;  %v13243_v45 = vcombine.low %v1193_v39, %v1197_v40  ;;  %v802_v39 = vld [vmem:[#allocation3 + $0x258] sm:$0xff] }
 0x5d8   :  { %v806_v40 = vld [vmem:[#allocation3 + $0x278] sm:$0xff] }
 0x5dd   :  { %6238 = vmatmul.mubr.bf16.gmra.mrb[168].mxu0 %v13115_v43  ;;  %v1201_v43 = vld [vmem:[#allocation3 + $0xed0] sm:$0xff] }
 0x5de   :  { %6247 = vmatprep.mubr.bf16.mxu0 %v13124_v44  ;;  %v1205_v44 = vld [vmem:[#allocation3 + $0xef0] sm:$0xff] }
 0x5df   :  { %v13252_v46 = vcombine.high %v1201_v43, %v1205_v44  ;;  %v13251_v49 = vcombine.low %v1201_v43, %v1205_v44  ;;  %v15242_v43 = vld [vmem:[#allocation8 + $0x24] ss:$8 sps:$4 sm:$0xff]   ;;  %v15244_v44 = vld [vmem:[#allocation8 + $0x20] ss:$8 sps:$4 sm:$0xff]  }
 0x5e5   :  { %6248 = vmatmul.mubr.bf16.gmra.mrb[172].mxu0 %v13123_v47  ;;  %v1209_v47 = vld [vmem:[#allocation3 + $0xf10] sm:$0xff] }
 0x5e6   :  { %6257 = vmatprep.mubr.bf16.mxu0 %v13132_v48  ;;  %v1213_v48 = vld [vmem:[#allocation3 + $0xf30] sm:$0xff] }
 0x5e7   :  { %v13260_v50 = vcombine.high %v1209_v47, %v1213_v48  ;;  %v13259_v53 = vcombine.low %v1209_v47, %v1213_v48  ;;  %v810_v47 = vld [vmem:[#allocation3 + $0x298] sm:$0xff] }
 0x5e8   :  { %v814_v48 = vld [vmem:[#allocation3 + $0x2b8] sm:$0xff] }
 0x5ed   :  { %6258 = vmatmul.mubr.bf16.gmra.mrb[176].mxu0 %v13131_v51  ;;  %v1217_v51 = vld [vmem:[#allocation3 + $0xf50] sm:$0xff] }
 0x5ee   :  { %6267 = vmatprep.mubr.bf16.mxu0 %v13140_v52  ;;  %v1221_v52 = vld [vmem:[#allocation3 + $0xf70] sm:$0xff] }
 0x5ef   :  { %v13268_v54 = vcombine.high %v1217_v51, %v1221_v52 }
 0x5f5   :  { %6268 = vmatmul.mubr.bf16.gmra.mrb[180].mxu0 %v13139_v57  ;;  %v13267_v57 = vcombine.low %v1217_v51, %v1221_v52  ;;  %v15254_v51 = vld [vmem:[#allocation8 + $0x44] ss:$8 sps:$4 sm:$0xff]   ;;  %v15256_v52 = vld [vmem:[#allocation8 + $0x40] ss:$8 sps:$4 sm:$0xff]  }
 0x5f6   :  { %6277 = vmatprep.mubr.bf16.mxu0 %v13148_v58  ;;  %v13276_v58 = vcombine.high %v1225_v55, %v1229_v56 }
 0x5fd   :  { %6278 = vmatmul.mubr.bf16.gmra.mrb[184].mxu0 %v13147_v61  ;;  %v13275_v61 = vcombine.low %v1225_v55, %v1229_v56  ;;  %v818_v55 = vld [vmem:[#allocation3 + $0x2d8] sm:$0xff] }
 0x5fe   :  { %6287 = vmatprep.mubr.bf16.mxu0 %v13156_v62  ;;  %v13284_v62 = vcombine.high %v1233_v59, %v1237_v60  ;;  %v822_v56 = vld [vmem:[#allocation3 + $0x2f8] sm:$0xff] }
 0x605   :  { %6288 = vmatmul.mubr.bf16.gmra.mrb[188].mxu0 %v13155_v1  ;;  %v13283_v1 = vcombine.low %v1233_v59, %v1237_v60  ;;  %v15266_v59 = vld [vmem:[#allocation8 + $0x64] ss:$8 sps:$4 sm:$0xff]   ;;  %v15268_v60 = vld [vmem:[#allocation8 + $0x60] ss:$8 sps:$4 sm:$0xff]  }
 0x606   :  { %6297 = vmatprep.mubr.bf16.mxu0 %v13164_v2  ;;  %v12782_v2 = vcombine.high %v730_v63, %v734_v0 }
 0x60d   :  { %6298 = vmatmul.mubr.bf16.gmra.mrb[192].mxu0 %v13163_v5  ;;  %v12781_v5 = vcombine.low %v730_v63, %v734_v0  ;;  %v15272_v63 = vld [vmem:[#allocation8 + $0x74] ss:$8 sps:$4 sm:$0xff]   ;;  %v15274_v0 = vld [vmem:[#allocation8 + $0x70] ss:$8 sps:$4 sm:$0xff]  }
 0x60e   :  { %6307 = vmatprep.mubr.bf16.mxu0 %v13172_v6  ;;  %v12790_v6 = vcombine.high %v738_v3, %v742_v4 }
 0x615   :  { %6308 = vmatmul.mubr.bf16.gmra.mrb[196].mxu0 %v13171_v9  ;;  %v12789_v9 = vcombine.low %v738_v3, %v742_v4  ;;  %v18902_v3 = vmov 0   ;;  %v834_v4 = vld [vmem:[#allocation3 + $0x358] sm:$0xff] }
 0x616   :  { %6317 = vmatprep.mubr.bf16.mxu0 %v13180_v10  ;;  %v12798_v10 = vcombine.high %v746_v7, %v750_v8  ;;  %8158 = vmatprep.mubr.bf16.mxu1 %v18902_v3 }
 0x61d   :  { %6318 = vmatmul.mubr.bf16.gmra.mrb[200].mxu0 %v13179_v13  ;;  %v12797_v13 = vcombine.low %v746_v7, %v750_v8  ;;  %v842_v8 = vld [vmem:[#allocation3 + $0x398] sm:$0xff] }
 0x61e   :  { %6327 = vmatprep.mubr.bf16.mxu0 %v13188_v14  ;;  %v12806_v14 = vcombine.high %v754_v11, %v758_v12 }
 0x625   :  { %6328 = vmatmul.mubr.bf16.gmra.mrb[204].mxu0 %v13187_v17  ;;  %v12805_v17 = vcombine.low %v754_v11, %v758_v12  ;;  %v850_v12 = vld [vmem:[#allocation3 + $0x3d8] sm:$0xff] }
 0x626   :  { %6337 = vmatprep.mubr.bf16.mxu0 %v13196_v18  ;;  %v12814_v18 = vcombine.high %v762_v15, %v766_v16 }
 0x62d   :  { %6338 = vmatmul.mubr.bf16.gmra.mrb[208].mxu0 %v13195_v21  ;;  %v12813_v21 = vcombine.low %v762_v15, %v766_v16  ;;  %v858_v16 = vld [vmem:[#allocation3 + $0x418] sm:$0xff] }
 0x62e   :  { %6347 = vmatprep.mubr.bf16.mxu0 %v13204_v22  ;;  %v12822_v22 = vcombine.high %v770_v19, %v774_v20 }
 0x635   :  { %6348 = vmatmul.mubr.bf16.gmra.mrb[212].mxu0 %v13203_v25  ;;  %v12821_v25 = vcombine.low %v770_v19, %v774_v20  ;;  %v866_v20 = vld [vmem:[#allocation3 + $0x458] sm:$0xff] }
 0x636   :  { %6357 = vmatprep.mubr.bf16.mxu0 %v13212_v26  ;;  %v12830_v26 = vcombine.high %v778_v23, %v782_v24 }
 0x63d   :  { %6358 = vmatmul.mubr.bf16.gmra.mrb[216].mxu0 %v13211_v29  ;;  %v12829_v29 = vcombine.low %v778_v23, %v782_v24  ;;  %v874_v24 = vld [vmem:[#allocation3 + $0x498] sm:$0xff] }
 0x63e   :  { %6367 = vmatprep.mubr.bf16.mxu0 %v13220_v30  ;;  %v12838_v30 = vcombine.high %v786_v27, %v790_v28 }
 0x645   :  { %6368 = vmatmul.mubr.bf16.gmra.mrb[220].mxu0 %v13219_v33  ;;  %v12837_v33 = vcombine.low %v786_v27, %v790_v28  ;;  %v882_v28 = vld [vmem:[#allocation3 + $0x4d8] sm:$0xff] }
 0x646   :  { %6377 = vmatprep.mubr.bf16.mxu0 %v13228_v34  ;;  %v12846_v34 = vcombine.high %v794_v31, %v798_v32 }
 0x64d   :  { %6378 = vmatmul.mubr.bf16.gmra.mrb[224].mxu0 %v13227_v37  ;;  %v15235_v37 = vld [vmem:[#allocation8 + $0x14] ss:$8 sps:$4 sm:$0xff]  }
 0x64e   :  { %6387 = vmatprep.mubr.bf16.mxu0 %v13236_v38  ;;  %v15238_v38 = vld [vmem:[#allocation8 + $0x10] ss:$8 sps:$4 sm:$0xff]   ;;  %8128 = vmatprep.subr.bf16.mxu1 %v15235_v37 }
 0x64f   :  { %8129 = vmatpush1.bf16.msra.mxu1 %v15238_v38 }
 0x650   :  { %8130 = vmatprep.subr.bf16.mxu1 %v15242_v43 }
 0x653   :  { %8131 = vmatpush1.bf16.msra.mxu1 %v15244_v44 }
 0x655   :  { %6388 = vmatmul.mubr.bf16.gmra.mrb[228].mxu0 %v13235_v41  ;;  %v12845_v41 = vcombine.low %v794_v31, %v798_v32  ;;  %v890_v32 = vld [vmem:[#allocation3 + $0x518] sm:$0xff] }
 0x656   :  { %6397 = vmatprep.mubr.bf16.mxu0 %v13244_v42  ;;  %v12854_v42 = vcombine.high %v802_v39, %v806_v40 }
 0x65d   :  { %6398 = vmatmul.mubr.bf16.gmra.mrb[232].mxu0 %v13243_v45  ;;  %v15247_v45 = vld [vmem:[#allocation8 + $0x34] ss:$8 sps:$4 sm:$0xff]  }
 0x65e   :  { %6407 = vmatprep.mubr.bf16.mxu0 %v13252_v46  ;;  %v15250_v46 = vld [vmem:[#allocation8 + $0x30] ss:$8 sps:$4 sm:$0xff]   ;;  %8132 = vmatprep.subr.bf16.mxu1 %v15247_v45 }
 0x65f   :  { %8133 = vmatpush1.bf16.msra.mxu1 %v15250_v46 }
 0x660   :  { %8134 = vmatprep.subr.bf16.mxu1 %v15254_v51 }
 0x663   :  { %8135 = vmatpush1.bf16.msra.mxu1 %v15256_v52 }
 0x665   :  { %6408 = vmatmul.mubr.bf16.gmra.mrb[236].mxu0 %v13251_v49  ;;  %v12853_v49 = vcombine.low %v802_v39, %v806_v40  ;;  %v898_v39 = vld [vmem:[#allocation3 + $0x558] sm:$0xff] }
 0x666   :  { %6417 = vmatprep.mubr.bf16.mxu0 %v13260_v50  ;;  %v12862_v50 = vcombine.high %v810_v47, %v814_v48  ;;  %v902_v40 = vld [vmem:[#allocation3 + $0x578] sm:$0xff] }
 0x66d   :  { %6418 = vmatmul.mubr.bf16.gmra.mrb[240].mxu0 %v13259_v53  ;;  %v15259_v53 = vld [vmem:[#allocation8 + $0x54] ss:$8 sps:$4 sm:$0xff]  }
 0x66e   :  { %6427 = vmatprep.mubr.bf16.mxu0 %v13268_v54  ;;  %v15262_v54 = vld [vmem:[#allocation8 + $0x50] ss:$8 sps:$4 sm:$0xff]   ;;  %8136 = vmatprep.subr.bf16.mxu1 %v15259_v53 }
 0x66f   :  { %8137 = vmatpush1.bf16.msra.mxu1 %v15262_v54 }
 0x670   :  { %8138 = vmatprep.subr.bf16.mxu1 %v15266_v59 }
 0x673   :  { %8139 = vmatpush1.bf16.msra.mxu1 %v15268_v60 }
 0x674   :  { %8140 = vmatprep.subr.bf16.mxu1 %v15272_v63 }
 0x675   :  { %6428 = vmatmul.mubr.bf16.gmra.mrb[244].mxu0 %v13267_v57  ;;  %v12861_v57 = vcombine.low %v810_v47, %v814_v48  ;;  %v906_v47 = vld [vmem:[#allocation3 + $0x598] sm:$0xff] }
 0x676   :  { %6437 = vmatprep.mubr.bf16.mxu0 %v13276_v58  ;;  %v12870_v58 = vcombine.high %v818_v55, %v822_v56  ;;  %v910_v48 = vld [vmem:[#allocation3 + $0x5b8] sm:$0xff] }
 0x677   :  { %8141 = vmatpush1.bf16.msra.mxu1 %v15274_v0 }
 0x678   :  { %8799 = vmatprep.subr.bf16.mxu1 %v14932_v35 }
 0x67d   :  { %6438 = vmatmul.mubr.bf16.gmra.mrb[248].mxu0 %v13275_v61  ;;  %v826_v61 = vld [vmem:[#allocation3 + $0x318] sm:$0xff] }
 0x67e   :  { %6447 = vmatprep.mubr.bf16.mxu0 %v13284_v62  ;;  %v830_v62 = vld [vmem:[#allocation3 + $0x338] sm:$0xff] }
 0x685   :  { %6448 = vmatmul.mubr.bf16.gmra.mrb[252].mxu0 %v13283_v1  ;;  %v12869_v1 = vcombine.low %v818_v55, %v822_v56  ;;  %v914_v55 = vld [vmem:[#allocation3 + $0x5d8] sm:$0xff] }
 0x686   :  { %6490 = vmatprep.mubr.bf16.mxu0 %v12782_v2  ;;  %v12878_v2 = vcombine.high %v826_v61, %v830_v62  ;;  %v918_v56 = vld [vmem:[#allocation3 + $0x5f8] sm:$0xff] }
 0x68d   :  { %6491 = vmatmul.mubr.bf16.vlgmr.msra.gmra.mrb[0].mxu0 %v12781_v5  ;;  %v838_v5 = vld [vmem:[#allocation3 + $0x378] sm:$0xff] }
 0x68e   :  { %6500 = vmatprep.mubr.bf16.mxu0 %v12790_v6  ;;  %v12877_v6 = vcombine.low %v826_v61, %v830_v62  ;;  %v12886_v7 = vcombine.high %v834_v4, %v838_v5  ;;  %v922_v61 = vld [vmem:[#allocation3 + $0x618] sm:$0xff] }
 0x68f   :  { %v926_v62 = vld [vmem:[#allocation3 + $0x638] sm:$0xff] }
 0x695   :  { %6501 = vmatmul.mubr.bf16.gmra.mrb[4].mxu0 %v12789_v9  ;;  %v846_v9 = vld [vmem:[#allocation3 + $0x3b8] sm:$0xff] }
 0x696   :  { %6510 = vmatprep.mubr.bf16.mxu0 %v12798_v10  ;;  %v12885_v10 = vcombine.low %v834_v4, %v838_v5  ;;  %v12894_v11 = vcombine.high %v842_v8, %v846_v9  ;;  %v930_v4 = vld [vmem:[#allocation3 + $0x658] sm:$0xff] }
 0x697   :  { %v934_v5 = vld [vmem:[#allocation3 + $0x678] sm:$0xff] }
 0x69d   :  { %6511 = vmatmul.mubr.bf16.gmra.mrb[8].mxu0 %v12797_v13  ;;  %v854_v13 = vld [vmem:[#allocation3 + $0x3f8] sm:$0xff] }
 0x69e   :  { %6520 = vmatprep.mubr.bf16.mxu0 %v12806_v14  ;;  %v12893_v14 = vcombine.low %v842_v8, %v846_v9  ;;  %v12902_v15 = vcombine.high %v850_v12, %v854_v13  ;;  %v938_v8 = vld [vmem:[#allocation3 + $0x698] sm:$0xff] }
 0x69f   :  { %v942_v9 = vld [vmem:[#allocation3 + $0x6b8] sm:$0xff] }
 0x6a5   :  { %6521 = vmatmul.mubr.bf16.gmra.mrb[12].mxu0 %v12805_v17  ;;  %v862_v17 = vld [vmem:[#allocation3 + $0x438] sm:$0xff] }
 0x6a6   :  { %6530 = vmatprep.mubr.bf16.mxu0 %v12814_v18  ;;  %v12901_v18 = vcombine.low %v850_v12, %v854_v13  ;;  %v12910_v19 = vcombine.high %v858_v16, %v862_v17  ;;  %v946_v12 = vld [vmem:[#allocation3 + $0x6d8] sm:$0xff] }
 0x6a7   :  { %v950_v13 = vld [vmem:[#allocation3 + $0x6f8] sm:$0xff] }
 0x6ad   :  { %6531 = vmatmul.mubr.bf16.gmra.mrb[16].mxu0 %v12813_v21  ;;  %v870_v21 = vld [vmem:[#allocation3 + $0x478] sm:$0xff] }
 0x6ae   :  { %6540 = vmatprep.mubr.bf16.mxu0 %v12822_v22  ;;  %v12909_v22 = vcombine.low %v858_v16, %v862_v17  ;;  %v12918_v23 = vcombine.high %v866_v20, %v870_v21  ;;  %v954_v16 = vld [vmem:[#allocation3 + $0x718] sm:$0xff] }
 0x6af   :  { %v958_v17 = vld [vmem:[#allocation3 + $0x738] sm:$0xff] }
 0x6b5   :  { %6541 = vmatmul.mubr.bf16.gmra.mrb[20].mxu0 %v12821_v25  ;;  %v878_v25 = vld [vmem:[#allocation3 + $0x4b8] sm:$0xff] }
 0x6b6   :  { %6550 = vmatprep.mubr.bf16.mxu0 %v12830_v26  ;;  %v12917_v26 = vcombine.low %v866_v20, %v870_v21  ;;  %v12926_v27 = vcombine.high %v874_v24, %v878_v25  ;;  %v12997_v20 = vcombine.low %v946_v12, %v950_v13 }
 0x6bd   :  { %6551 = vmatmul.mubr.bf16.gmra.mrb[24].mxu0 %v12829_v29  ;;  %v886_v29 = vld [vmem:[#allocation3 + $0x4f8] sm:$0xff] }
 0x6be   :  { %6560 = vmatprep.mubr.bf16.mxu0 %v12838_v30  ;;  %v12925_v30 = vcombine.low %v874_v24, %v878_v25  ;;  %v12934_v31 = vcombine.high %v882_v28, %v886_v29 }
 0x6c5   :  { %6561 = vmatmul.mubr.bf16.gmra.mrb[28].mxu0 %v12837_v33  ;;  %v894_v33 = vld [vmem:[#allocation3 + $0x538] sm:$0xff] }
 0x6c6   :  { %6570 = vmatprep.mubr.bf16.mxu0 %v12846_v34  ;;  %v12933_v34 = vcombine.low %v882_v28, %v886_v29  ;;  %v12942_v35 = vcombine.high %v890_v32, %v894_v33 }
 0x6cd   :  { %6571 = vmatmul.mubr.bf16.gmra.mrb[32].mxu0 %v12845_v41  ;;  %v12941_v41 = vcombine.low %v890_v32, %v894_v33 }
 0x6ce   :  { %6580 = vmatprep.mubr.bf16.mxu0 %v12854_v42  ;;  %v12950_v42 = vcombine.high %v898_v39, %v902_v40 }
 0x6d5   :  { %6581 = vmatmul.mubr.bf16.gmra.mrb[36].mxu0 %v12853_v49  ;;  %v12949_v49 = vcombine.low %v898_v39, %v902_v40 }
 0x6d6   :  { %6590 = vmatprep.mubr.bf16.mxu0 %v12862_v50  ;;  %v12958_v50 = vcombine.high %v906_v47, %v910_v48 }
 0x6dd   :  { %6591 = vmatmul.mubr.bf16.gmra.mrb[40].mxu0 %v12861_v57  ;;  %v12957_v57 = vcombine.low %v906_v47, %v910_v48 }
 0x6de   :  { %6600 = vmatprep.mubr.bf16.mxu0 %v12870_v58  ;;  %v12966_v58 = vcombine.high %v914_v55, %v918_v56 }
 0x6e5   :  { %6601 = vmatmul.mubr.bf16.gmra.mrb[44].mxu0 %v12869_v1  ;;  %v12965_v1 = vcombine.low %v914_v55, %v918_v56 }
 0x6e6   :  { %6610 = vmatprep.mubr.bf16.mxu0 %v12878_v2  ;;  %v12974_v2 = vcombine.high %v922_v61, %v926_v62 }
 0x6ed   :  { %6611 = vmatmul.mubr.bf16.gmra.mrb[48].mxu0 %v12877_v6  ;;  %v12973_v6 = vcombine.low %v922_v61, %v926_v62 }
 0x6ee   :  { %6620 = vmatprep.mubr.bf16.mxu0 %v12886_v7  ;;  %v12982_v7 = vcombine.high %v930_v4, %v934_v5 }
 0x6f5   :  { %6621 = vmatmul.mubr.bf16.gmra.mrb[52].mxu0 %v12885_v10  ;;  %v12981_v10 = vcombine.low %v930_v4, %v934_v5 }
 0x6f6   :  { %6630 = vmatprep.mubr.bf16.mxu0 %v12894_v11  ;;  %v12990_v11 = vcombine.high %v938_v8, %v942_v9 }
 0x6fd   :  { %6631 = vmatmul.mubr.bf16.gmra.mrb[56].mxu0 %v12893_v14  ;;  %v12989_v14 = vcombine.low %v938_v8, %v942_v9 }
 0x6fe   :  { %6640 = vmatprep.mubr.bf16.mxu0 %v12902_v15  ;;  %v12998_v15 = vcombine.high %v946_v12, %v950_v13  ;;  %v1002_v13 = vld [vmem:[#allocation3 + $0x898] sm:$0xff] }
 0x705   :  { %6641 = vmatmul.mubr.bf16.gmra.mrb[60].mxu0 %v12901_v18 }
 0x706   :  { %6650 = vmatprep.mubr.bf16.mxu0 %v12910_v19 }
 0x70d   :  { %6651 = vmatmul.mubr.bf16.gmra.mrb[64].mxu0 %v12909_v22  ;;  %v13006_v22 = vcombine.high %v954_v16, %v958_v17 }
 0x70e   :  { %6660 = vmatprep.mubr.bf16.mxu0 %v12918_v23 }
 0x715   :  { %6661 = vmatmul.mubr.bf16.gmra.mrb[68].mxu0 %v12917_v26  ;;  %v962_v26 = vld [vmem:[#allocation3 + $0x758] sm:$0xff] }
 0x716   :  { %6670 = vmatprep.mubr.bf16.mxu0 %v12926_v27  ;;  %v966_v27 = vld [vmem:[#allocation3 + $0x778] sm:$0xff] }
 0x717   :  { %v13014_v32 = vcombine.high %v962_v26, %v966_v27  ;;  %v13013_v40 = vcombine.low %v962_v26, %v966_v27  ;;  %v1010_v26 = vld [vmem:[#allocation3 + $0x8d8] sm:$0xff] }
 0x718   :  { %v1014_v27 = vld [vmem:[#allocation3 + $0x8f8] sm:$0xff] }
 0x71d   :  { %6671 = vmatmul.mubr.bf16.gmra.mrb[72].mxu0 %v12925_v30  ;;  %v13005_v30 = vcombine.low %v954_v16, %v958_v17 }
 0x71e   :  { %6680 = vmatprep.mubr.bf16.mxu0 %v12934_v31 }
 0x725   :  { %6681 = vmatmul.mubr.bf16.gmra.mrb[76].mxu0 %v12933_v34 }
 0x726   :  { %6690 = vmatprep.mubr.bf16.mxu0 %v12942_v35  ;;  %v974_v35 = vld [vmem:[#allocation3 + $0x7b8] sm:$0xff] }
 0x72d   :  { %6691 = vmatmul.mubr.bf16.gmra.mrb[80].mxu0 %v12941_v41 }
 0x72e   :  { %6700 = vmatprep.mubr.bf16.mxu0 %v12950_v42 }
 0x735   :  { %6701 = vmatmul.mubr.bf16.gmra.mrb[84].mxu0 %v12949_v49 }
 0x736   :  { %6710 = vmatprep.mubr.bf16.mxu0 %v12958_v50 }
 0x73d   :  { %6711 = vmatmul.mubr.bf16.gmra.mrb[88].mxu0 %v12957_v57 }
 0x73e   :  { %6720 = vmatprep.mubr.bf16.mxu0 %v12966_v58 }
 0x745   :  { %6721 = vmatmul.mubr.bf16.gmra.mrb[92].mxu0 %v12965_v1 }
 0x746   :  { %6730 = vmatprep.mubr.bf16.mxu0 %v12974_v2 }
 0x74d   :  { %6731 = vmatmul.mubr.bf16.gmra.mrb[96].mxu0 %v12973_v6 }
 0x74e   :  { %6740 = vmatprep.mubr.bf16.mxu0 %v12982_v7 }
 0x755   :  { %6741 = vmatmul.mubr.bf16.gmra.mrb[100].mxu0 %v12981_v10 }
 0x756   :  { %6750 = vmatprep.mubr.bf16.mxu0 %v12990_v11 }
 0x75d   :  { %6751 = vmatmul.mubr.bf16.gmra.mrb[104].mxu0 %v12989_v14  ;;  %v1006_v14 = vld [vmem:[#allocation3 + $0x8b8] sm:$0xff] }
 0x75e   :  { %6760 = vmatprep.mubr.bf16.mxu0 %v12998_v15 }
 0x760   :  { %v6492_v18 = vpop.f32.mrb[0].mxu0 }
 0x761   :  { %v15279_v19 = vpop.f32.mrb[1].mxu0 }
 0x762   :  { %v6496_v21 = vpop.f32.mrb[2].mxu0 }
 0x763   :  { %v7902_v23 = vpack.c.bf16 %v6496_v21, %v6492_v18  ;;  %v15281_v24 = vpop.f32.mrb[3].mxu0 }
 0x765   :  { %6761 = vmatmul.mubr.bf16.gmra.mrb[108].mxu0 %v12997_v20  ;;  %8159 = vmatmul.mubr.bf16.vlgmr.msra.gmra.mrb[0].mxu1 %v7902_v23  ;;  %v13054_v20 = vcombine.high %v1002_v13, %v1006_v14 }
 0x766   :  { %8800 = vmatpush1.bf16.msra.mxu1 %v15233_v36  ;;  %6770 = vmatprep.mubr.bf16.mxu0 %v13006_v22 }
 0x767   :  { %8168 = vmatprep.mubr.bf16.mxu1 %v18902_v3  ;;  %8801 = vmatprep.subr.bf16.mxu1 %v15235_v37  ;;  %v970_v37 = vld [vmem:[#allocation3 + $0x798] sm:$0xff] }
 0x768   :  { %v6502_v28 = vpop.f32.mrb[4].mxu0 }
 0x769   :  { %v15288_v29 = vpop.f32.mrb[5].mxu0 }
 0x76a   :  { %v6506_v31 = vpop.f32.mrb[6].mxu0  ;;  %8802 = vmatpush1.bf16.msra.mxu1 %v15238_v38 }
 0x76b   :  { %v7904_v33 = vpack.c.bf16 %v6506_v31, %v6502_v28  ;;  %v15291_v34 = vpop.f32.mrb[7].mxu0  ;;  %8803 = vmatprep.subr.bf16.mxu1 %v15242_v43  ;;  %v13022_v43 = vcombine.high %v970_v37, %v974_v35  ;;  %v13053_v31 = vcombine.low %v1002_v13, %v1006_v14 }
 0x76d   :  { %6771 = vmatmul.mubr.bf16.gmra.mrb[112].mxu0 %v13005_v30  ;;  %8169 = vmatmul.mubr.bf16.gmra.mrb[4].mxu1 %v7904_v33  ;;  %v13062_v33 = vcombine.high %v1010_v26, %v1014_v27 }
 0x76e   :  { %6780 = vmatprep.mubr.bf16.mxu0 %v13014_v32  ;;  %8178 = vmatprep.mubr.bf16.mxu1 %v18902_v3 }
 0x76f   :  { %8804 = vmatpush1.bf16.msra.mxu1 %v15244_v44  ;;  %v978_v44 = vld [vmem:[#allocation3 + $0x7d8] sm:$0xff] }
 0x770   :  { %v6512_v39 = vpop.f32.mrb[8].mxu0  ;;  %8805 = vmatprep.subr.bf16.mxu1 %v15247_v45  ;;  %v982_v45 = vld [vmem:[#allocation3 + $0x7f8] sm:$0xff] }
 0x771   :  { %v15299_v38 = vpop.f32.mrb[9].mxu0  ;;  %v13030_v56 = vcombine.high %v978_v44, %v982_v45 }
 0x772   :  { %v6516_v41 = vpop.f32.mrb[10].mxu0 }
 0x773   :  { %v7906_v42 = vpack.c.bf16 %v6516_v41, %v6512_v39  ;;  %v15301_v47 = vpop.f32.mrb[11].mxu0  ;;  %8806 = vmatpush1.bf16.msra.mxu1 %v15250_v46  ;;  %v13021_v46 = vcombine.low %v970_v37, %v974_v35  ;;  %v1022_v41 = vld [vmem:[#allocation3 + $0x938] sm:$0xff] }
 0x774   :  { %8807 = vmatprep.subr.bf16.mxu1 %v15254_v51 }
 0x775   :  { %6781 = vmatmul.mubr.bf16.gmra.mrb[116].mxu0 %v13013_v40  ;;  %8179 = vmatmul.mubr.bf16.gmra.mrb[8].mxu1 %v7906_v42  ;;  %v1018_v40 = vld [vmem:[#allocation3 + $0x918] sm:$0xff] }
 0x776   :  { %6790 = vmatprep.mubr.bf16.mxu0 %v13022_v43  ;;  %8188 = vmatprep.mubr.bf16.mxu1 %v18902_v3 }
 0x777   :  { %8808 = vmatpush1.bf16.msra.mxu1 %v15256_v52  ;;  %v986_v52 = vld [vmem:[#allocation3 + $0x818] sm:$0xff] }
 0x778   :  { %v6522_v49 = vpop.f32.mrb[12].mxu0  ;;  %8809 = vmatprep.subr.bf16.mxu1 %v15259_v53  ;;  %v990_v53 = vld [vmem:[#allocation3 + $0x838] sm:$0xff] }
 0x779   :  { %v15310_v50 = vpop.f32.mrb[13].mxu0  ;;  %v13038_v2 = vcombine.high %v986_v52, %v990_v53  ;;  %v13037_v8 = vcombine.low %v986_v52, %v990_v53  ;;  %v1030_v52 = vld [vmem:[#allocation3 + $0x978] sm:$0xff] }
 0x77a   :  { %v6526_v55 = vpop.f32.mrb[14].mxu0 }
 0x77b   :  { %v7908_v57 = vpack.c.bf16 %v6526_v55, %v6522_v49  ;;  %v15312_v58 = vpop.f32.mrb[15].mxu0  ;;  %8810 = vmatpush1.bf16.msra.mxu1 %v15262_v54  ;;  %v13029_v54 = vcombine.low %v978_v44, %v982_v45  ;;  %v13061_v44 = vcombine.low %v1010_v26, %v1014_v27  ;;  %v13070_v49 = vcombine.high %v1018_v40, %v1022_v41 }
 0x77c   :  { %8811 = vmatprep.subr.bf16.mxu1 %v15266_v59 }
 0x77d   :  { %6791 = vmatmul.mubr.bf16.gmra.mrb[120].mxu0 %v13021_v46  ;;  %8189 = vmatmul.mubr.bf16.gmra.mrb[12].mxu1 %v7908_v57  ;;  %v1026_v57 = vld [vmem:[#allocation3 + $0x958] sm:$0xff] }
 0x77e   :  { %6800 = vmatprep.mubr.bf16.mxu0 %v13030_v56  ;;  %8198 = vmatprep.mubr.bf16.mxu1 %v18902_v3 }
 0x77f   :  { %8812 = vmatpush1.bf16.msra.mxu1 %v15268_v60  ;;  %v994_v60 = vld [vmem:[#allocation3 + $0x858] sm:$0xff] }
 0x780   :  { %v6532_v61 = vpop.f32.mrb[16].mxu0  ;;  %8813 = vmatprep.subr.bf16.mxu1 %v15272_v63  ;;  %v998_v63 = vld [vmem:[#allocation3 + $0x878] sm:$0xff] }
 0x781   :  { %v15321_v62 = vpop.f32.mrb[17].mxu0  ;;  %v13046_v10 = vcombine.high %v994_v60, %v998_v63  ;;  %v13045_v17 = vcombine.low %v994_v60, %v998_v63 }
 0x782   :  { %v6536_v1 = vpop.f32.mrb[18].mxu0 }
 0x783   :  { %v7910_v4 = vpack.c.bf16 %v6536_v1, %v6532_v61  ;;  %v15323_v5 = vpop.f32.mrb[19].mxu0  ;;  %8814 = vmatpush1.bf16.msra.mxu1 %v15274_v0 }
 0x784   :  { %10240 = vmatprep.subr.bf16.mxu1 %v18902_v3 }
 0x785   :  { %6801 = vmatmul.mubr.bf16.gmra.mrb[124].mxu0 %v13029_v54  ;;  %8199 = vmatmul.mubr.bf16.gmra.mrb[16].mxu1 %v7910_v4  ;;  %v13069_v54 = vcombine.low %v1018_v40, %v1022_v41  ;;  %v1050_v41 = vld [vmem:[#allocation3 + $0xa18] sm:$0xff] }
 0x786   :  { %6810 = vmatprep.mubr.bf16.mxu0 %v13038_v2  ;;  %8208 = vmatprep.mubr.bf16.mxu1 %v18902_v3  ;;  %v13078_v2 = vcombine.high %v1026_v57, %v1030_v52 }
 0x788   :  { %v6542_v6 = vpop.f32.mrb[20].mxu0 }
 0x789   :  { %v15330_v7 = vpop.f32.mrb[21].mxu0 }
 0x78a   :  { %v6546_v9 = vpop.f32.mrb[22].mxu0 }
 0x78b   :  { %v7912_v11 = vpack.c.bf16 %v6546_v9, %v6542_v6  ;;  %v15332_v0 = vpop.f32.mrb[23].mxu0  ;;  %v1034_v6 = vld [vmem:[#allocation3 + $0x998] sm:$0xff] }
 0x78d   :  { %6811 = vmatmul.mubr.bf16.gmra.mrb[128].mxu0 %v13037_v8  ;;  %8209 = vmatmul.mubr.bf16.gmra.mrb[20].mxu1 %v7912_v11  ;;  %v1038_v8 = vld [vmem:[#allocation3 + $0x9b8] sm:$0xff]  ;;  %v13077_v11 = vcombine.low %v1026_v57, %v1030_v52 }
 0x78e   :  { %6820 = vmatprep.mubr.bf16.mxu0 %v13046_v10  ;;  %8218 = vmatprep.mubr.bf16.mxu1 %v18902_v3  ;;  %v13086_v14 = vcombine.high %v1034_v6, %v1038_v8 }
 0x790   :  { %v6552_v15 = vpop.f32.mrb[24].mxu0 }
 0x791   :  { %v15337_v16 = vpop.f32.mrb[25].mxu0 }
 0x792   :  { %v6556_v18 = vpop.f32.mrb[26].mxu0 }
 0x793   :  { %v7914_v21 = vpack.c.bf16 %v6556_v18, %v6552_v15  ;;  %v15339_v22 = vpop.f32.mrb[27].mxu0 }
 0x795   :  { %6821 = vmatmul.mubr.bf16.gmra.mrb[132].mxu0 %v13045_v17  ;;  %8219 = vmatmul.mubr.bf16.gmra.mrb[24].mxu1 %v7914_v21  ;;  %v1046_v21 = vld [vmem:[#allocation3 + $0x9f8] sm:$0xff] }
 0x796   :  { %6830 = vmatprep.mubr.bf16.mxu0 %v13054_v20  ;;  %8228 = vmatprep.mubr.bf16.mxu1 %v18902_v3  ;;  %v1042_v20 = vld [vmem:[#allocation3 + $0x9d8] sm:$0xff] }
 0x798   :  { %v6562_v28 = vpop.f32.mrb[28].mxu0 }
 0x799   :  { %v15344_v30 = vpop.f32.mrb[29].mxu0 }
 0x79a   :  { %v6566_v32 = vpop.f32.mrb[30].mxu0 }
 0x79b   :  { %v7916_v37 = vpack.c.bf16 %v6566_v32, %v6562_v28  ;;  %v15346_v35 = vpop.f32.mrb[31].mxu0  ;;  %v13085_v28 = vcombine.low %v1034_v6, %v1038_v8  ;;  %v13094_v32 = vcombine.high %v1042_v20, %v1046_v21 }
 0x79d   :  { %6831 = vmatmul.mubr.bf16.gmra.mrb[136].mxu0 %v13053_v31  ;;  %8229 = vmatmul.mubr.bf16.gmra.mrb[28].mxu1 %v7916_v37 }
 0x79e   :  { %6840 = vmatprep.mubr.bf16.mxu0 %v13062_v33  ;;  %8238 = vmatprep.mubr.bf16.mxu1 %v18902_v3 }
 0x7a0   :  { %v6572_v43 = vpop.f32.mrb[32].mxu0 }
 0x7a1   :  { %v15351_v42 = vpop.f32.mrb[33].mxu0 }
 0x7a2   :  { %v6576_v45 = vpop.f32.mrb[34].mxu0 }
 0x7a3   :  { %v7918_v46 = vpack.c.bf16 %v6576_v45, %v6572_v43  ;;  %v15353_v55 = vpop.f32.mrb[35].mxu0  ;;  %v1054_v43 = vld [vmem:[#allocation3 + $0xa38] sm:$0xff] }
 0x7a4   :  { %v13102_v57 = vcombine.high %v1050_v41, %v1054_v43  ;;  %v13101_v8 = vcombine.low %v1050_v41, %v1054_v43 }
 0x7a5   :  { %6841 = vmatmul.mubr.bf16.gmra.mrb[140].mxu0 %v13061_v44  ;;  %8239 = vmatmul.mubr.bf16.gmra.mrb[32].mxu1 %v7918_v46 }
 0x7a6   :  { %6850 = vmatprep.mubr.bf16.mxu0 %v13070_v49  ;;  %8248 = vmatprep.mubr.bf16.mxu1 %v18902_v3  ;;  %v13093_v49 = vcombine.low %v1042_v20, %v1046_v21  ;;  %v1066_v20 = vld [vmem:[#allocation3 + $0xa98] sm:$0xff] }
 0x7a7   :  { %v1070_v21 = vld [vmem:[#allocation3 + $0xab8] sm:$0xff] }
 0x7a8   :  { %v6582_v53 = vpop.f32.mrb[36].mxu0 }
 0x7a9   :  { %v15358_v61 = vpop.f32.mrb[37].mxu0 }
 0x7aa   :  { %v6586_v1 = vpop.f32.mrb[38].mxu0 }
 0x7ab   :  { %v7920_v4 = vpack.c.bf16 %v6586_v1, %v6582_v53  ;;  %v15360_v60 = vpop.f32.mrb[39].mxu0  ;;  %v1058_v1 = vld [vmem:[#allocation3 + $0xa58] sm:$0xff] }
 0x7ad   :  { %6851 = vmatmul.mubr.bf16.gmra.mrb[144].mxu0 %v13069_v54  ;;  %8249 = vmatmul.mubr.bf16.gmra.mrb[36].mxu1 %v7920_v4 }
 0x7ae   :  { %6860 = vmatprep.mubr.bf16.mxu0 %v13078_v2  ;;  %8258 = vmatprep.mubr.bf16.mxu1 %v18902_v3  ;;  %v1062_v2 = vld [vmem:[#allocation3 + $0xa78] sm:$0xff] }
 0x7b0   :  { %v6592_v9 = vpop.f32.mrb[40].mxu0 }
 0x7b1   :  { %v15365_v10 = vpop.f32.mrb[41].mxu0 }
 0x7b2   :  { %v6596_v13 = vpop.f32.mrb[42].mxu0 }
 0x7b3   :  { %v7922_v15 = vpack.c.bf16 %v6596_v13, %v6592_v9  ;;  %v15367_v17 = vpop.f32.mrb[43].mxu0 }
 0x7b5   :  { %6861 = vmatmul.mubr.bf16.gmra.mrb[148].mxu0 %v13077_v11  ;;  %8259 = vmatmul.mubr.bf16.gmra.mrb[40].mxu1 %v7922_v15  ;;  %v13110_v11 = vcombine.high %v1058_v1, %v1062_v2 }
 0x7b6   :  { %6870 = vmatprep.mubr.bf16.mxu0 %v13086_v14  ;;  %8268 = vmatprep.mubr.bf16.mxu1 %v18902_v3 }
 0x7b8   :  { %v6602_v26 = vpop.f32.mrb[44].mxu0 }
 0x7b9   :  { %v15372_v27 = vpop.f32.mrb[45].mxu0 }
 0x7ba   :  { %v6606_v31 = vpop.f32.mrb[46].mxu0 }
 0x7bb   :  { %v7924_v33 = vpack.c.bf16 %v6606_v31, %v6602_v26  ;;  %v15374_v37 = vpop.f32.mrb[47].mxu0  ;;  %v13109_v31 = vcombine.low %v1058_v1, %v1062_v2 }
 0x7bd   :  { %6871 = vmatmul.mubr.bf16.gmra.mrb[152].mxu0 %v13085_v28  ;;  %8269 = vmatmul.mubr.bf16.gmra.mrb[44].mxu1 %v7924_v33  ;;  %v13118_v33 = vcombine.high %v1066_v20, %v1070_v21 }
 0x7be   :  { %6880 = vmatprep.mubr.bf16.mxu0 %v13094_v32  ;;  %8278 = vmatprep.mubr.bf16.mxu1 %v18902_v3 }
 0x7c0   :  { %v6612_v44 = vpop.f32.mrb[48].mxu0 }
 0x7c1   :  { %v15379_v45 = vpop.f32.mrb[49].mxu0 }
 0x7c2   :  { %v6616_v46 = vpop.f32.mrb[50].mxu0 }
 0x7c3   :  { %v7926_v52 = vpack.c.bf16 %v6616_v46, %v6612_v44  ;;  %v15381_v53 = vpop.f32.mrb[51].mxu0  ;;  %v1078_v46 = vld [vmem:[#allocation3 + $0xaf8] sm:$0xff] }
 0x7c5   :  { %6881 = vmatmul.mubr.bf16.gmra.mrb[156].mxu0 %v13093_v49  ;;  %8279 = vmatmul.mubr.bf16.gmra.mrb[48].mxu1 %v7926_v52  ;;  %v1074_v49 = vld [vmem:[#allocation3 + $0xad8] sm:$0xff] }
 0x7c6   :  { %6890 = vmatprep.mubr.bf16.mxu0 %v13102_v57  ;;  %8288 = vmatprep.mubr.bf16.mxu1 %v18902_v3  ;;  %v13126_v2 = vcombine.high %v1074_v49, %v1078_v46 }
 0x7c8   :  { %v6622_v4 = vpop.f32.mrb[52].mxu0 }
 0x7c9   :  { %v15386_v6 = vpop.f32.mrb[53].mxu0 }
 0x7ca   :  { %v6626_v9 = vpop.f32.mrb[54].mxu0 }
 0x7cb   :  { %v7928_v13 = vpack.c.bf16 %v6626_v9, %v6622_v4  ;;  %v15388_v14 = vpop.f32.mrb[55].mxu0  ;;  %v13117_v4 = vcombine.low %v1066_v20, %v1070_v21 }
 0x7cd   :  { %6891 = vmatmul.mubr.bf16.gmra.mrb[160].mxu0 %v13101_v8  ;;  %8289 = vmatmul.mubr.bf16.gmra.mrb[52].mxu1 %v7928_v13  ;;  %v1082_v13 = vld [vmem:[#allocation3 + $0xb18] sm:$0xff] }
 0x7ce   :  { %6900 = vmatprep.mubr.bf16.mxu0 %v13110_v11  ;;  %8298 = vmatprep.mubr.bf16.mxu1 %v18902_v3 }
 0x7d0   :  { %v6632_v26 = vpop.f32.mrb[56].mxu0 }
 0x7d1   :  { %v15393_v28 = vpop.f32.mrb[57].mxu0 }
 0x7d2   :  { %v6636_v32 = vpop.f32.mrb[58].mxu0 }
 0x7d3   :  { %v7930_v41 = vpack.c.bf16 %v6636_v32, %v6632_v26  ;;  %v15395_v43 = vpop.f32.mrb[59].mxu0  ;;  %v1086_v26 = vld [vmem:[#allocation3 + $0xb38] sm:$0xff] }
 0x7d4   :  { %v13134_v21 = vcombine.high %v1082_v13, %v1086_v26  ;;  %v13133_v44 = vcombine.low %v1082_v13, %v1086_v26 }
 0x7d5   :  { %6901 = vmatmul.mubr.bf16.gmra.mrb[164].mxu0 %v13109_v31  ;;  %8299 = vmatmul.mubr.bf16.gmra.mrb[56].mxu1 %v7930_v41 }
 0x7d6   :  { %6910 = vmatprep.mubr.bf16.mxu0 %v13118_v33  ;;  %8308 = vmatprep.mubr.bf16.mxu1 %v18902_v3  ;;  %v13125_v33 = vcombine.low %v1074_v49, %v1078_v46 }
 0x7d8   :  { %v6642_v57 = vpop.f32.mrb[60].mxu0 }
 0x7d9   :  { %v15400_v52 = vpop.f32.mrb[61].mxu0 }
 0x7da   :  { %v6646_v1 = vpop.f32.mrb[62].mxu0 }
 0x7db   :  { %v7932_v8 = vpack.c.bf16 %v6646_v1, %v6642_v57  ;;  %v15402_v9 = vpop.f32.mrb[63].mxu0 }
 0x7dd   :  { %6911 = vmatmul.mubr.bf16.gmra.mrb[168].mxu0 %v13117_v4  ;;  %8309 = vmatmul.mubr.bf16.gmra.mrb[60].mxu1 %v7932_v8  ;;  %v1090_v4 = vld [vmem:[#allocation3 + $0xb58] sm:$0xff] }
 0x7de   :  { %6920 = vmatprep.mubr.bf16.mxu0 %v13126_v2  ;;  %8318 = vmatprep.mubr.bf16.mxu1 %v18902_v3  ;;  %v1094_v2 = vld [vmem:[#allocation3 + $0xb78] sm:$0xff] }
 0x7df   :  { %v13142_v46 = vcombine.high %v1090_v4, %v1094_v2  ;;  %v13141_v54 = vcombine.low %v1090_v4, %v1094_v2 }
 0x7e0   :  { %v6652_v31 = vpop.f32.mrb[64].mxu0 }
 0x7e1   :  { %v15407_v32 = vpop.f32.mrb[65].mxu0 }
 0x7e2   :  { %v6656_v20 = vpop.f32.mrb[66].mxu0 }
 0x7e3   :  { %v7934_v41 = vpack.c.bf16 %v6656_v20, %v6652_v31  ;;  %v15409_v57 = vpop.f32.mrb[67].mxu0 }
 0x7e5   :  { %6921 = vmatmul.mubr.bf16.gmra.mrb[172].mxu0 %v13125_v33  ;;  %8319 = vmatmul.mubr.bf16.gmra.mrb[64].mxu1 %v7934_v41  ;;  %v1098_v33 = vld [vmem:[#allocation3 + $0xb98] sm:$0xff] }
 0x7e6   :  { %6930 = vmatprep.mubr.bf16.mxu0 %v13134_v21  ;;  %8328 = vmatprep.mubr.bf16.mxu1 %v18902_v3  ;;  %v1102_v21 = vld [vmem:[#allocation3 + $0xbb8] sm:$0xff] }
 0x7e7   :  { %v13150_v26 = vcombine.high %v1098_v33, %v1102_v21  ;;  %v13149_v18 = vcombine.low %v1098_v33, %v1102_v21 }
 0x7e8   :  { %v6662_v8 = vpop.f32.mrb[68].mxu0 }
 0x7e9   :  { %v15414_v11 = vpop.f32.mrb[69].mxu0 }
 0x7ea   :  { %v6666_v49 = vpop.f32.mrb[70].mxu0 }
 0x7eb   :  { %v7936_v15 = vpack.c.bf16 %v6666_v49, %v6662_v8  ;;  %v15416_v31 = vpop.f32.mrb[71].mxu0 }
 0x7ed   :  { %6931 = vmatmul.mubr.bf16.gmra.mrb[176].mxu0 %v13133_v44  ;;  %8329 = vmatmul.mubr.bf16.gmra.mrb[68].mxu1 %v7936_v15  ;;  %v1106_v15 = vld [vmem:[#allocation3 + $0xbd8] sm:$0xff] }
 0x7ee   :  { %6940 = vmatprep.mubr.bf16.mxu0 %v13142_v46  ;;  %8338 = vmatprep.mubr.bf16.mxu1 %v18902_v3  ;;  %v1110_v44 = vld [vmem:[#allocation3 + $0xbf8] sm:$0xff] }
 0x7ef   :  { %v13158_v2 = vcombine.high %v1106_v15, %v1110_v44  ;;  %v13157_v56 = vcombine.low %v1106_v15, %v1110_v44 }
 0x7f0   :  { %v6672_v41 = vpop.f32.mrb[72].mxu0 }
 0x7f1   :  { %v15421_v1 = vpop.f32.mrb[73].mxu0 }
 0x7f2   :  { %v6676_v13 = vpop.f32.mrb[74].mxu0 }
 0x7f3   :  { %v7938_v40 = vpack.c.bf16 %v6676_v13, %v6672_v41  ;;  %v15423_v8 = vpop.f32.mrb[75].mxu0 }
 0x7f5   :  { %6941 = vmatmul.mubr.bf16.gmra.mrb[180].mxu0 %v13141_v54  ;;  %8339 = vmatmul.mubr.bf16.gmra.mrb[72].mxu1 %v7938_v40  ;;  %v1114_v40 = vld [vmem:[#allocation3 + $0xc18] sm:$0xff] }
 0x7f6   :  { %6950 = vmatprep.mubr.bf16.mxu0 %v13150_v26  ;;  %8348 = vmatprep.mubr.bf16.mxu1 %v18902_v3  ;;  %v1118_v54 = vld [vmem:[#allocation3 + $0xc38] sm:$0xff] }
 0x7f7   :  { %v13166_v21 = vcombine.high %v1114_v40, %v1118_v54  ;;  %v13165_v23 = vcombine.low %v1114_v40, %v1118_v54 }
 0x7f8   :  { %v6682_v46 = vpop.f32.mrb[76].mxu0 }
 0x7f9   :  { %v15428_v20 = vpop.f32.mrb[77].mxu0 }
 0x7fa   :  { %v6686_v4 = vpop.f32.mrb[78].mxu0 }
 0x7fb   :  { %v7940_v63 = vpack.c.bf16 %v6686_v4, %v6682_v46  ;;  %v15430_v41 = vpop.f32.mrb[79].mxu0 }
 0x7fd   :  { %6951 = vmatmul.mubr.bf16.gmra.mrb[184].mxu0 %v13149_v18  ;;  %8349 = vmatmul.mubr.bf16.gmra.mrb[76].mxu1 %v7940_v63  ;;  %v1122_v63 = vld [vmem:[#allocation3 + $0xc58] sm:$0xff] }
 0x7fe   :  { %6960 = vmatprep.mubr.bf16.mxu0 %v13158_v2  ;;  %8358 = vmatprep.mubr.bf16.mxu1 %v18902_v3  ;;  %v1126_v18 = vld [vmem:[#allocation3 + $0xc78] sm:$0xff] }
 0x7ff   :  { %v13174_v44 = vcombine.high %v1122_v63, %v1126_v18  ;;  %v13173_v59 = vcombine.low %v1122_v63, %v1126_v18 }
 0x800   :  { %v6692_v26 = vpop.f32.mrb[80].mxu0 }
 0x801   :  { %v15435_v49 = vpop.f32.mrb[81].mxu0 }
 0x802   :  { %v6696_v33 = vpop.f32.mrb[82].mxu0 }
 0x803   :  { %v7942_v39 = vpack.c.bf16 %v6696_v33, %v6692_v26  ;;  %v15437_v46 = vpop.f32.mrb[83].mxu0 }
 0x805   :  { %6961 = vmatmul.mubr.bf16.gmra.mrb[188].mxu0 %v13157_v56  ;;  %8359 = vmatmul.mubr.bf16.gmra.mrb[80].mxu1 %v7942_v39  ;;  %v1130_v39 = vld [vmem:[#allocation3 + $0xc98] sm:$0xff] }
 0x806   :  { %6970 = vmatprep.mubr.bf16.mxu0 %v13166_v21  ;;  %8368 = vmatprep.mubr.bf16.mxu1 %v18902_v3  ;;  %v1134_v56 = vld [vmem:[#allocation3 + $0xcb8] sm:$0xff] }
 0x807   :  { %v13182_v54 = vcombine.high %v1130_v39, %v1134_v56  ;;  %v13181_v48 = vcombine.low %v1130_v39, %v1134_v56 }
 0x808   :  { %v6702_v2 = vpop.f32.mrb[84].mxu0 }
 0x809   :  { %v15442_v13 = vpop.f32.mrb[85].mxu0 }
 0x80a   :  { %v6706_v15 = vpop.f32.mrb[86].mxu0 }
 0x80b   :  { %v7944_v12 = vpack.c.bf16 %v6706_v15, %v6702_v2  ;;  %v15444_v26 = vpop.f32.mrb[87].mxu0 }
 0x80d   :  { %6971 = vmatmul.mubr.bf16.gmra.mrb[192].mxu0 %v13165_v23  ;;  %8369 = vmatmul.mubr.bf16.gmra.mrb[84].mxu1 %v7944_v12  ;;  %v1138_v12 = vld [vmem:[#allocation3 + $0xcd8] sm:$0xff] }
 0x80e   :  { %6980 = vmatprep.mubr.bf16.mxu0 %v13174_v44  ;;  %8378 = vmatprep.mubr.bf16.mxu1 %v18902_v3  ;;  %v1142_v23 = vld [vmem:[#allocation3 + $0xcf8] sm:$0xff] }
 0x80f   :  { %v13190_v18 = vcombine.high %v1138_v12, %v1142_v23  ;;  %v13189_v25 = vcombine.low %v1138_v12, %v1142_v23 }
 0x810   :  { %v6712_v21 = vpop.f32.mrb[88].mxu0 }
 0x811   :  { %v15449_v4 = vpop.f32.mrb[89].mxu0 }
 0x812   :  { %19439 = vst [vmem:[#allocation19_spill] sm:$0xff] %v15449_v4  ;;  %v6716_v40 = vpop.f32.mrb[90].mxu0 }
 0x813   :  { %v7946_v51 = vpack.c.bf16 %v6716_v40, %v6712_v21  ;;  %v15451_v2 = vpop.f32.mrb[91].mxu0 }
 0x815   :  { %6981 = vmatmul.mubr.bf16.gmra.mrb[196].mxu0 %v13173_v59  ;;  %8379 = vmatmul.mubr.bf16.gmra.mrb[88].mxu1 %v7946_v51  ;;  %v1146_v51 = vld [vmem:[#allocation3 + $0xd18] sm:$0xff] }
 0x816   :  { %6990 = vmatprep.mubr.bf16.mxu0 %v13182_v54  ;;  %8388 = vmatprep.mubr.bf16.mxu1 %v18902_v3  ;;  %v1150_v59 = vld [vmem:[#allocation3 + $0xd38] sm:$0xff] }
 0x817   :  { %v13198_v56 = vcombine.high %v1146_v51, %v1150_v59 }
 0x818   :  { %v6722_v44 = vpop.f32.mrb[92].mxu0 }
 0x819   :  { %v15456_v33 = vpop.f32.mrb[93].mxu0 }
 0x81a   :  { %19440 = vst [vmem:[#allocation20_spill] sm:$0xff] %v15456_v33  ;;  %v6726_v63 = vpop.f32.mrb[94].mxu0  ;;  %v13197_v33 = vcombine.low %v1146_v51, %v1150_v59 }
 0x81b   :  { %v7948_v36 = vpack.c.bf16 %v6726_v63, %v6722_v44  ;;  %v15458_v21 = vpop.f32.mrb[95].mxu0 }
 0x81c   :  { %19441 = vst [vmem:[#allocation21_spill] sm:$0xff] %v15458_v21 }
 0x81d   :  { %6991 = vmatmul.mubr.bf16.gmra.mrb[200].mxu0 %v13181_v48  ;;  %8389 = vmatmul.mubr.bf16.gmra.mrb[92].mxu1 %v7948_v36  ;;  %v1154_v36 = vld [vmem:[#allocation3 + $0xd58] sm:$0xff] }
 0x81e   :  { %7000 = vmatprep.mubr.bf16.mxu0 %v13190_v18  ;;  %8398 = vmatprep.mubr.bf16.mxu1 %v18902_v3  ;;  %v1158_v48 = vld [vmem:[#allocation3 + $0xd78] sm:$0xff] }
 0x81f   :  { %v13206_v23 = vcombine.high %v1154_v36, %v1158_v48 }
 0x820   :  { %v6732_v54 = vpop.f32.mrb[96].mxu0 }
 0x821   :  { %v15463_v15 = vpop.f32.mrb[97].mxu0 }
 0x822   :  { %19442 = vst [vmem:[#allocation22_spill] sm:$0xff] %v15463_v15  ;;  %v6736_v39 = vpop.f32.mrb[98].mxu0  ;;  %v13205_v15 = vcombine.low %v1154_v36, %v1158_v48 }
 0x823   :  { %v7950_v4 = vpack.c.bf16 %v6736_v39, %v6732_v54  ;;  %v15465_v44 = vpop.f32.mrb[99].mxu0 }
 0x824   :  { %19443 = vst [vmem:[#allocation23_spill] sm:$0xff] %v15465_v44 }
 0x825   :  { %7001 = vmatmul.mubr.bf16.gmra.mrb[204].mxu0 %v13189_v25  ;;  %8399 = vmatmul.mubr.bf16.gmra.mrb[96].mxu1 %v7950_v4  ;;  %v1162_v25 = vld [vmem:[#allocation3 + $0xd98] sm:$0xff] }
 0x826   :  { %7010 = vmatprep.mubr.bf16.mxu0 %v13198_v56  ;;  %8408 = vmatprep.mubr.bf16.mxu1 %v18902_v3  ;;  %v1166_v4 = vld [vmem:[#allocation3 + $0xdb8] sm:$0xff] }
 0x827   :  { %v13214_v59 = vcombine.high %v1162_v25, %v1166_v4 }
 0x828   :  { %v6742_v18 = vpop.f32.mrb[100].mxu0 }
 0x829   :  { %v15470_v40 = vpop.f32.mrb[101].mxu0 }
 0x82a   :  { %19444 = vst [vmem:[#allocation24_spill] sm:$0xff] %v15470_v40  ;;  %v6746_v12 = vpop.f32.mrb[102].mxu0 }
 0x82b   :  { %v7952_v21 = vpack.c.bf16 %v6746_v12, %v6742_v18  ;;  %v15472_v54 = vpop.f32.mrb[103].mxu0 }
 0x82d   :  { %7011 = vmatmul.mubr.bf16.gmra.mrb[208].mxu0 %v13197_v33  ;;  %8409 = vmatmul.mubr.bf16.gmra.mrb[100].mxu1 %v7952_v21  ;;  %v1170_v33 = vld [vmem:[#allocation3 + $0xdd8] sm:$0xff] }
 0x82e   :  { %7020 = vmatprep.mubr.bf16.mxu0 %v13206_v23  ;;  %8418 = vmatprep.mubr.bf16.mxu1 %v18902_v3  ;;  %v1174_v21 = vld [vmem:[#allocation3 + $0xdf8] sm:$0xff] }
 0x830   :  { %v6752_v56 = vpop.f32.mrb[104].mxu0 }
 0x831   :  { %v15477_v63 = vpop.f32.mrb[105].mxu0 }
 0x832   :  { %19445 = vst [vmem:[#allocation25_spill] sm:$0xff] %v15477_v63  ;;  %v6756_v51 = vpop.f32.mrb[106].mxu0 }
 0x833   :  { %v7954_v44 = vpack.c.bf16 %v6756_v51, %v6752_v56  ;;  %v15479_v18 = vpop.f32.mrb[107].mxu0  ;;  %v13213_v56 = vcombine.low %v1162_v25, %v1166_v4  ;;  %v19453_v4 = vmov 0  }
 0x834   :  { %19446 = vst [vmem:[#allocation26_spill] sm:$0xff] %v15479_v18 }
 0x835   :  { %7021 = vmatmul.mubr.bf16.gmra.mrb[212].mxu0 %v13205_v15  ;;  %8419 = vmatmul.mubr.bf16.gmra.mrb[104].mxu1 %v7954_v44  ;;  %v13222_v44 = vcombine.high %v1170_v33, %v1174_v21 }
 0x836   :  { %7030 = vmatprep.mubr.bf16.mxu0 %v13214_v59  ;;  %8428 = vmatprep.mubr.bf16.mxu1 %v18902_v3 }
 0x838   :  { %v6762_v23 = vpop.f32.mrb[108].mxu0  ;;  %v15484_v39 = vpop.f32.mrb[0].mxu1 }
 0x839   :  { %19447 = vst [vmem:[#allocation27_spill] sm:$0xff] %v15484_v39  ;;  %9472 = vst [vmem:[#allocation11] sm:$0xff] %v15484_v39  ;;  %v15487_v36 = vpop.f32.mrb[109].mxu0  ;;  %v15489_v48 = vpop.f32.mrb[1].mxu1 }
 0x83a   :  { %19448 = vst [vmem:[#allocation28_spill] sm:$0xff] %v15487_v36  ;;  %19449 = vst [vmem:[#allocation29_spill] sm:$0xff] %v15489_v48  ;;  %v6766_v51 = vpop.f32.mrb[110].mxu0  ;;  %v15492_v15 = vpop.f32.mrb[2].mxu1  ;;  %v13221_v36 = vcombine.low %v1170_v33, %v1174_v21  ;;  %v1190_v21 = vld [vmem:[#allocation3 + $0xe78] sm:$0xff] }
 0x83b   :  { %9473 = vst [vmem:[#allocation11 + $0x8] sm:$0xff] %v15489_v48  ;;  %19450 = vst [vmem:[#allocation30_spill] sm:$0xff] %v15492_v15  ;;  %v7956_v59 = vpack.c.bf16 %v6766_v51, %v6762_v23  ;;  %v15497_v3 = vpop.f32.mrb[111].mxu0  ;;  %v15499_v63 = vpop.f32.mrb[3].mxu1  ;;  %v1178_v23 = vld [vmem:[#allocation3 + $0xe18] sm:$0xff] }
 0x83c   :  { %9474 = vst [vmem:[#allocation11 + $0x20] sm:$0xff] %v15492_v15  ;;  %19451 = vst [vmem:[#allocation31_spill] sm:$0xff] %v15497_v3  ;;  %v1182_v51 = vld [vmem:[#allocation3 + $0xe38] sm:$0xff] }
 0x83d   :  { %19452 = vst [vmem:[#allocation32_spill] sm:$0xff] %v15499_v63  ;;  %9475 = vst [vmem:[#allocation11 + $0x28] sm:$0xff] %v15499_v63  ;;  %7031 = vmatmul.mubr.bf16.gmra.mrb[216].mxu0 %v13213_v56  ;;  %8429 = vmatmul.mubr.bf16.gmra.mrb[108].mxu1 %v7956_v59 }
 0x83e   :  { %7040 = vmatprep.mubr.bf16.mxu0 %v13222_v44  ;;  %8438 = vmatprep.mubr.bf16.mxu1 %v19453_v4  ;;  %v13230_v44 = vcombine.high %v1178_v23, %v1182_v51 }
 0x840   :  { %v6772_v12 = vpop.f32.mrb[112].mxu0  ;;  %v15507_v39 = vpop.f32.mrb[4].mxu1 }
 0x841   :  { %19454 = vst [vmem:[#allocation33_spill] sm:$0xff] %v15507_v39  ;;  %9476 = vst [vmem:[#allocation11 + $0x40] sm:$0xff] %v15507_v39  ;;  %v15510_v15 = vpop.f32.mrb[113].mxu0  ;;  %v15512_v18 = vpop.f32.mrb[5].mxu1 }
 0x842   :  { %19455 = vst [vmem:[#allocation34_spill] sm:$0xff] %v15510_v15  ;;  %19456 = vst [vmem:[#allocation35_spill] sm:$0xff] %v15512_v18  ;;  %v6776_v25 = vpop.f32.mrb[114].mxu0  ;;  %v15515_v56 = vpop.f32.mrb[6].mxu1 }
 0x843   :  { %9477 = vst [vmem:[#allocation11 + $0x48] sm:$0xff] %v15512_v18  ;;  %19457 = vst [vmem:[#allocation36_spill] sm:$0xff] %v15515_v56  ;;  %v7958_v59 = vpack.c.bf16 %v6776_v25, %v6772_v12  ;;  %v15520_v63 = vpop.f32.mrb[115].mxu0  ;;  %v15522_v3 = vpop.f32.mrb[7].mxu1  ;;  %v1186_v12 = vld [vmem:[#allocation3 + $0xe58] sm:$0xff] }
 0x844   :  { %9478 = vst [vmem:[#allocation11 + $0x60] sm:$0xff] %v15515_v56  ;;  %19458 = vst [vmem:[#allocation37_spill] sm:$0xff] %v15520_v63  ;;  %v13229_v56 = vcombine.low %v1178_v23, %v1182_v51  ;;  %v1194_v51 = vld [vmem:[#allocation3 + $0xe98] sm:$0xff] }
 0x845   :  { %19459 = vst [vmem:[#allocation38_spill] sm:$0xff] %v15522_v3  ;;  %9479 = vst [vmem:[#allocation11 + $0x68] sm:$0xff] %v15522_v3  ;;  %7041 = vmatmul.mubr.bf16.gmra.mrb[220].mxu0 %v13221_v36  ;;  %8439 = vmatmul.mubr.bf16.gmra.mrb[112].mxu1 %v7958_v59 }
 0x846   :  { %7050 = vmatprep.mubr.bf16.mxu0 %v13230_v44  ;;  %8448 = vmatprep.mubr.bf16.mxu1 %v19453_v4  ;;  %v13238_v44 = vcombine.high %v1186_v12, %v1190_v21 }
 0x848   :  { %v6782_v25 = vpop.f32.mrb[116].mxu0  ;;  %v15530_v48 = vpop.f32.mrb[8].mxu1 }
 0x849   :  { %19460 = vst [vmem:[#allocation39_spill] sm:$0xff] %v15530_v48  ;;  %9480 = vst [vmem:[#allocation11 + $0x80] sm:$0xff] %v15530_v48  ;;  %v15533_v39 = vpop.f32.mrb[117].mxu0  ;;  %v15535_v40 = vpop.f32.mrb[9].mxu1 }
 0x84a   :  { %19461 = vst [vmem:[#allocation40_spill] sm:$0xff] %v15533_v39  ;;  %19462 = vst [vmem:[#allocation41_spill] sm:$0xff] %v15535_v40  ;;  %v6786_v33 = vpop.f32.mrb[118].mxu0  ;;  %v15538_v36 = vpop.f32.mrb[10].mxu1 }
 0x84b   :  { %9481 = vst [vmem:[#allocation11 + $0x88] sm:$0xff] %v15535_v40  ;;  %19463 = vst [vmem:[#allocation42_spill] sm:$0xff] %v15538_v36  ;;  %v7960_v59 = vpack.c.bf16 %v6786_v33, %v6782_v25  ;;  %v15543_v3 = vpop.f32.mrb[119].mxu0  ;;  %v15545_v15 = vpop.f32.mrb[11].mxu1  ;;  %v1198_v33 = vld [vmem:[#allocation3 + $0xeb8] sm:$0xff] }
 0x84c   :  { %9482 = vst [vmem:[#allocation11 + $0xa0] sm:$0xff] %v15538_v36  ;;  %19464 = vst [vmem:[#allocation43_spill] sm:$0xff] %v15543_v3  ;;  %v13237_v36 = vcombine.low %v1186_v12, %v1190_v21  ;;  %v1202_v21 = vld [vmem:[#allocation3 + $0xed8] sm:$0xff] }
 0x84d   :  { %19465 = vst [vmem:[#allocation44_spill] sm:$0xff] %v15545_v15  ;;  %9483 = vst [vmem:[#allocation11 + $0xa8] sm:$0xff] %v15545_v15  ;;  %7051 = vmatmul.mubr.bf16.gmra.mrb[224].mxu0 %v13229_v56  ;;  %8449 = vmatmul.mubr.bf16.gmra.mrb[116].mxu1 %v7960_v59 }
 0x84e   :  { %7060 = vmatprep.mubr.bf16.mxu0 %v13238_v44  ;;  %8458 = vmatprep.mubr.bf16.mxu1 %v19453_v4  ;;  %v13246_v44 = vcombine.high %v1194_v51, %v1198_v33 }
 0x850   :  { %v6792_v25 = vpop.f32.mrb[120].mxu0  ;;  %v15553_v18 = vpop.f32.mrb[12].mxu1 }
 0x851   :  { %19466 = vst [vmem:[#allocation45_spill] sm:$0xff] %v15553_v18  ;;  %9484 = vst [vmem:[#allocation11 + $0xc0] sm:$0xff] %v15553_v18  ;;  %v15556_v48 = vpop.f32.mrb[121].mxu0  ;;  %v15558_v63 = vpop.f32.mrb[13].mxu1 }
 0x852   :  { %19467 = vst [vmem:[#allocation46_spill] sm:$0xff] %v15556_v48  ;;  %19468 = vst [vmem:[#allocation47_spill] sm:$0xff] %v15558_v63  ;;  %v6796_v23 = vpop.f32.mrb[122].mxu0  ;;  %v15561_v56 = vpop.f32.mrb[14].mxu1 }
 0x853   :  { %9485 = vst [vmem:[#allocation11 + $0xc8] sm:$0xff] %v15558_v63  ;;  %19469 = vst [vmem:[#allocation48_spill] sm:$0xff] %v15561_v56  ;;  %v7962_v59 = vpack.c.bf16 %v6796_v23, %v6792_v25  ;;  %v15566_v15 = vpop.f32.mrb[123].mxu0  ;;  %v15568_v39 = vpop.f32.mrb[15].mxu1  ;;  %v1206_v23 = vld [vmem:[#allocation3 + $0xef8] sm:$0xff] }
 0x854   :  { %9486 = vst [vmem:[#allocation11 + $0xe0] sm:$0xff] %v15561_v56  ;;  %19470 = vst [vmem:[#allocation49_spill] sm:$0xff] %v15566_v15  ;;  %v13245_v56 = vcombine.low %v1194_v51, %v1198_v33  ;;  %v1210_v33 = vld [vmem:[#allocation3 + $0xf18] sm:$0xff] }
 0x855   :  { %19471 = vst [vmem:[#allocation50_spill] sm:$0xff] %v15568_v39  ;;  %9487 = vst [vmem:[#allocation11 + $0xe8] sm:$0xff] %v15568_v39  ;;  %7061 = vmatmul.mubr.bf16.gmra.mrb[228].mxu0 %v13237_v36  ;;  %8459 = vmatmul.mubr.bf16.gmra.mrb[120].mxu1 %v7962_v59 }
 0x856   :  { %7070 = vmatprep.mubr.bf16.mxu0 %v13246_v44  ;;  %8468 = vmatprep.mubr.bf16.mxu1 %v19453_v4  ;;  %v13254_v44 = vcombine.high %v1202_v21, %v1206_v23 }
 0x858   :  { %v6802_v25 = vpop.f32.mrb[124].mxu0  ;;  %v15576_v40 = vpop.f32.mrb[16].mxu1 }
 0x859   :  { %19472 = vst [vmem:[#allocation51_spill] sm:$0xff] %v15576_v40  ;;  %9488 = vst [vmem:[#allocation11 + $0x100] sm:$0xff] %v15576_v40  ;;  %v15579_v18 = vpop.f32.mrb[125].mxu0  ;;  %v15581_v3 = vpop.f32.mrb[17].mxu1 }
 0x85a   :  { %19473 = vst [vmem:[#allocation52_spill] sm:$0xff] %v15579_v18  ;;  %19474 = vst [vmem:[#allocation53_spill] sm:$0xff] %v15581_v3  ;;  %v6806_v12 = vpop.f32.mrb[126].mxu0  ;;  %v15584_v36 = vpop.f32.mrb[18].mxu1 }
 0x85b   :  { %9489 = vst [vmem:[#allocation11 + $0x108] sm:$0xff] %v15581_v3  ;;  %19475 = vst [vmem:[#allocation54_spill] sm:$0xff] %v15584_v36  ;;  %v7964_v59 = vpack.c.bf16 %v6806_v12, %v6802_v25  ;;  %v15589_v39 = vpop.f32.mrb[127].mxu0  ;;  %v15591_v48 = vpop.f32.mrb[19].mxu1  ;;  %v1214_v12 = vld [vmem:[#allocation3 + $0xf38] sm:$0xff] }
 0x85c   :  { %9490 = vst [vmem:[#allocation11 + $0x120] sm:$0xff] %v15584_v36  ;;  %19476 = vst [vmem:[#allocation55_spill] sm:$0xff] %v15589_v39  ;;  %v13253_v36 = vcombine.low %v1202_v21, %v1206_v23  ;;  %v1218_v23 = vld [vmem:[#allocation3 + $0xf58] sm:$0xff] }
 0x85d   :  { %19477 = vst [vmem:[#allocation56_spill] sm:$0xff] %v15591_v48  ;;  %9491 = vst [vmem:[#allocation11 + $0x128] sm:$0xff] %v15591_v48  ;;  %7071 = vmatmul.mubr.bf16.gmra.mrb[232].mxu0 %v13245_v56  ;;  %8469 = vmatmul.mubr.bf16.gmra.mrb[124].mxu1 %v7964_v59 }
 0x85e   :  { %7080 = vmatprep.mubr.bf16.mxu0 %v13254_v44  ;;  %8478 = vmatprep.mubr.bf16.mxu1 %v19453_v4  ;;  %v13262_v44 = vcombine.high %v1210_v33, %v1214_v12 }
 0x860   :  { %v6812_v25 = vpop.f32.mrb[128].mxu0  ;;  %v15599_v63 = vpop.f32.mrb[20].mxu1 }
 0x861   :  { %19478 = vst [vmem:[#allocation57_spill] sm:$0xff] %v15599_v63  ;;  %9492 = vst [vmem:[#allocation11 + $0x140] sm:$0xff] %v15599_v63  ;;  %v15602_v40 = vpop.f32.mrb[129].mxu0  ;;  %v15604_v15 = vpop.f32.mrb[21].mxu1 }
 0x862   :  { %19479 = vst [vmem:[#allocation58_spill] sm:$0xff] %v15602_v40  ;;  %19480 = vst [vmem:[#allocation59_spill] sm:$0xff] %v15604_v15  ;;  %v6816_v51 = vpop.f32.mrb[130].mxu0  ;;  %v15607_v56 = vpop.f32.mrb[22].mxu1 }
 0x863   :  { %9493 = vst [vmem:[#allocation11 + $0x148] sm:$0xff] %v15604_v15  ;;  %19481 = vst [vmem:[#allocation60_spill] sm:$0xff] %v15607_v56  ;;  %v7966_v59 = vpack.c.bf16 %v6816_v51, %v6812_v25  ;;  %v15612_v48 = vpop.f32.mrb[131].mxu0  ;;  %v15614_v18 = vpop.f32.mrb[23].mxu1  ;;  %v1222_v51 = vld [vmem:[#allocation3 + $0xf78] sm:$0xff] }
 0x864   :  { %9494 = vst [vmem:[#allocation11 + $0x160] sm:$0xff] %v15607_v56  ;;  %19482 = vst [vmem:[#allocation61_spill] sm:$0xff] %v15612_v48  ;;  %v13261_v56 = vcombine.low %v1210_v33, %v1214_v12  ;;  %v1226_v12 = vld [vmem:[#allocation3 + $0xf98] sm:$0xff] }
 0x865   :  { %19483 = vst [vmem:[#allocation62_spill] sm:$0xff] %v15614_v18  ;;  %9495 = vst [vmem:[#allocation11 + $0x168] sm:$0xff] %v15614_v18  ;;  %7081 = vmatmul.mubr.bf16.gmra.mrb[236].mxu0 %v13253_v36  ;;  %8479 = vmatmul.mubr.bf16.gmra.mrb[128].mxu1 %v7966_v59 }
 0x866   :  { %7090 = vmatprep.mubr.bf16.mxu0 %v13262_v44  ;;  %8488 = vmatprep.mubr.bf16.mxu1 %v19453_v4  ;;  %v13270_v44 = vcombine.high %v1218_v23, %v1222_v51 }
 0x868   :  { %v6822_v25 = vpop.f32.mrb[132].mxu0  ;;  %v15622_v3 = vpop.f32.mrb[24].mxu1 }
 0x869   :  { %19484 = vst [vmem:[#allocation63_spill] sm:$0xff] %v15622_v3  ;;  %9496 = vst [vmem:[#allocation11 + $0x180] sm:$0xff] %v15622_v3  ;;  %v15625_v63 = vpop.f32.mrb[133].mxu0  ;;  %v15627_v39 = vpop.f32.mrb[25].mxu1 }
 0x86a   :  { %19485 = vst [vmem:[#allocation64_spill] sm:$0xff] %v15625_v63  ;;  %19486 = vst [vmem:[#allocation65_spill] sm:$0xff] %v15627_v39  ;;  %v6826_v21 = vpop.f32.mrb[134].mxu0  ;;  %v15630_v36 = vpop.f32.mrb[26].mxu1 }
 0x86b   :  { %9497 = vst [vmem:[#allocation11 + $0x188] sm:$0xff] %v15627_v39  ;;  %19487 = vst [vmem:[#allocation66_spill] sm:$0xff] %v15630_v36  ;;  %v7968_v59 = vpack.c.bf16 %v6826_v21, %v6822_v25  ;;  %v15635_v18 = vpop.f32.mrb[135].mxu0  ;;  %v15637_v40 = vpop.f32.mrb[27].mxu1  ;;  %v1230_v21 = vld [vmem:[#allocation3 + $0xfb8] sm:$0xff] }
 0x86c   :  { %9498 = vst [vmem:[#allocation11 + $0x1a0] sm:$0xff] %v15630_v36  ;;  %19488 = vst [vmem:[#allocation67_spill] sm:$0xff] %v15635_v18  ;;  %v13269_v36 = vcombine.low %v1218_v23, %v1222_v51  ;;  %v1234_v51 = vld [vmem:[#allocation3 + $0xfd8] sm:$0xff] }
 0x86d   :  { %19489 = vst [vmem:[#allocation68_spill] sm:$0xff] %v15637_v40  ;;  %9499 = vst [vmem:[#allocation11 + $0x1a8] sm:$0xff] %v15637_v40  ;;  %7091 = vmatmul.mubr.bf16.gmra.mrb[240].mxu0 %v13261_v56  ;;  %8489 = vmatmul.mubr.bf16.gmra.mrb[132].mxu1 %v7968_v59 }
 0x86e   :  { %7100 = vmatprep.mubr.bf16.mxu0 %v13270_v44  ;;  %8498 = vmatprep.mubr.bf16.mxu1 %v19453_v4  ;;  %v13278_v44 = vcombine.high %v1226_v12, %v1230_v21 }
 0x870   :  { %v6832_v25 = vpop.f32.mrb[136].mxu0  ;;  %v15645_v15 = vpop.f32.mrb[28].mxu1 }
 0x871   :  { %19490 = vst [vmem:[#allocation69_spill] sm:$0xff] %v15645_v15  ;;  %9500 = vst [vmem:[#allocation11 + $0x1c0] sm:$0xff] %v15645_v15  ;;  %v15648_v3 = vpop.f32.mrb[137].mxu0  ;;  %v15650_v48 = vpop.f32.mrb[29].mxu1 }
 0x872   :  { %19491 = vst [vmem:[#allocation70_spill] sm:$0xff] %v15648_v3  ;;  %19492 = vst [vmem:[#allocation71_spill] sm:$0xff] %v15650_v48  ;;  %v6836_v33 = vpop.f32.mrb[138].mxu0  ;;  %v15653_v56 = vpop.f32.mrb[30].mxu1 }
 0x873   :  { %9501 = vst [vmem:[#allocation11 + $0x1c8] sm:$0xff] %v15650_v48  ;;  %19493 = vst [vmem:[#allocation72_spill] sm:$0xff] %v15653_v56  ;;  %v7970_v59 = vpack.c.bf16 %v6836_v33, %v6832_v25  ;;  %v15658_v40 = vpop.f32.mrb[139].mxu0  ;;  %v15660_v63 = vpop.f32.mrb[31].mxu1  ;;  %v1238_v33 = vld [vmem:[#allocation3 + $0xff8] sm:$0xff] }
 0x874   :  { %9502 = vst [vmem:[#allocation11 + $0x1e0] sm:$0xff] %v15653_v56  ;;  %19494 = vst [vmem:[#allocation73_spill] sm:$0xff] %v15658_v40  ;;  %v13277_v56 = vcombine.low %v1226_v12, %v1230_v21  ;;  %v13285_v40 = vcombine.low %v1234_v51, %v1238_v33 }
 0x875   :  { %19495 = vst [vmem:[#allocation74_spill] sm:$0xff] %v15660_v63  ;;  %9503 = vst [vmem:[#allocation11 + $0x1e8] sm:$0xff] %v15660_v63  ;;  %7101 = vmatmul.mubr.bf16.gmra.mrb[244].mxu0 %v13269_v36  ;;  %8499 = vmatmul.mubr.bf16.gmra.mrb[136].mxu1 %v7970_v59 }
 0x876   :  { %7110 = vmatprep.mubr.bf16.mxu0 %v13278_v44  ;;  %8508 = vmatprep.mubr.bf16.mxu1 %v19453_v4  ;;  %v13286_v44 = vcombine.high %v1234_v51, %v1238_v33 }
 0x878   :  { %v6842_v25 = vpop.f32.mrb[140].mxu0  ;;  %v15668_v39 = vpop.f32.mrb[32].mxu1 }
 0x879   :  { %19496 = vst [vmem:[#allocation75_spill] sm:$0xff] %v15668_v39  ;;  %9504 = vst [vmem:[#allocation11 + $0x200] sm:$0xff] %v15668_v39  ;;  %v15671_v15 = vpop.f32.mrb[141].mxu0  ;;  %v15673_v18 = vpop.f32.mrb[33].mxu1 }
 0x87a   :  { %19497 = vst [vmem:[#allocation76_spill] sm:$0xff] %v15673_v18  ;;  %9505 = vst [vmem:[#allocation11 + $0x208] sm:$0xff] %v15673_v18  ;;  %v6846_v23 = vpop.f32.mrb[142].mxu0  ;;  %v15676_v36 = vpop.f32.mrb[34].mxu1 }
 0x87b   :  { %19498 = vst [vmem:[#allocation77_spill] sm:$0xff] %v15676_v36  ;;  %v7972_v59 = vpack.c.bf16 %v6846_v23, %v6842_v25  ;;  %9506 = vst [vmem:[#allocation11 + $0x220] sm:$0xff] %v15676_v36  ;;  %v15681_v63 = vpop.f32.mrb[143].mxu0  ;;  %v15683_v3 = vpop.f32.mrb[35].mxu1 }
 0x87c   :  { %19499 = vst [vmem:[#allocation78_spill] sm:$0xff] %v15683_v3  ;;  %9507 = vst [vmem:[#allocation11 + $0x228] sm:$0xff] %v15683_v3 }
 0x87d   :  { %7111 = vmatmul.mubr.bf16.gmra.mrb[248].mxu0 %v13277_v56  ;;  %8509 = vmatmul.mubr.bf16.gmra.mrb[140].mxu1 %v7972_v59 }
 0x87e   :  { %7120 = vmatprep.mubr.bf16.mxu0 %v13286_v44  ;;  %8518 = vmatprep.mubr.bf16.mxu1 %v19453_v4 }
 0x880   :  { %v6852_v21 = vpop.f32.mrb[144].mxu0  ;;  %v15691_v23 = vpop.f32.mrb[36].mxu1 }
 0x881   :  { %19500 = vst [vmem:[#allocation79_spill] sm:$0xff] %v15691_v23  ;;  %9508 = vst [vmem:[#allocation11 + $0x240] sm:$0xff] %v15691_v23  ;;  %v15694_v25 = vpop.f32.mrb[145].mxu0  ;;  %v15696_v48 = vpop.f32.mrb[37].mxu1 }
 0x882   :  { %19501 = vst [vmem:[#allocation80_spill] sm:$0xff] %v15696_v48  ;;  %9509 = vst [vmem:[#allocation11 + $0x248] sm:$0xff] %v15696_v48  ;;  %v6856_v39 = vpop.f32.mrb[146].mxu0  ;;  %v15699_v36 = vpop.f32.mrb[38].mxu1 }
 0x883   :  { %19502 = vst [vmem:[#allocation81_spill] sm:$0xff] %v15699_v36  ;;  %v7974_v56 = vpack.c.bf16 %v6856_v39, %v6852_v21  ;;  %9510 = vst [vmem:[#allocation11 + $0x260] sm:$0xff] %v15699_v36  ;;  %v15704_v59 = vpop.f32.mrb[147].mxu0  ;;  %v15706_v12 = vpop.f32.mrb[39].mxu1 }
 0x884   :  { %19503 = vst [vmem:[#allocation82_spill] sm:$0xff] %v15706_v12  ;;  %9511 = vst [vmem:[#allocation11 + $0x268] sm:$0xff] %v15706_v12 }
 0x885   :  { %7121 = vmatmul.mubr.bf16.gmra.mrb[252].mxu0 %v13285_v40  ;;  %8519 = vmatmul.mubr.bf16.gmra.mrb[144].mxu1 %v7974_v56 }
 0x886   :  { %8528 = vmatprep.mubr.bf16.mxu1 %v19453_v4 }
 0x888   :  { %v6862_v39 = vpop.f32.mrb[148].mxu0  ;;  %v15714_v33 = vpop.f32.mrb[40].mxu1 }
 0x889   :  { %19504 = vst [vmem:[#allocation83_spill] sm:$0xff] %v15714_v33  ;;  %9512 = vst [vmem:[#allocation11 + $0x280] sm:$0xff] %v15714_v33  ;;  %v15717_v21 = vpop.f32.mrb[149].mxu0  ;;  %v15719_v44 = vpop.f32.mrb[41].mxu1 }
 0x88a   :  { %19505 = vst [vmem:[#allocation84_spill] sm:$0xff] %v15717_v21  ;;  %19506 = vst [vmem:[#allocation85_spill] sm:$0xff] %v15719_v44  ;;  %v6866_v18 = vpop.f32.mrb[150].mxu0  ;;  %v15722_v23 = vpop.f32.mrb[42].mxu1 }
 0x88b   :  { %9513 = vst [vmem:[#allocation11 + $0x288] sm:$0xff] %v15719_v44  ;;  %19507 = vst [vmem:[#allocation86_spill] sm:$0xff] %v15722_v23  ;;  %v7976_v36 = vpack.c.bf16 %v6866_v18, %v6862_v39  ;;  %v15727_v56 = vpop.f32.mrb[151].mxu0  ;;  %v15729_v51 = vpop.f32.mrb[43].mxu1 }
 0x88c   :  { %9514 = vst [vmem:[#allocation11 + $0x2a0] sm:$0xff] %v15722_v23  ;;  %19508 = vst [vmem:[#allocation87_spill] sm:$0xff] %v15729_v51 }
 0x88d   :  { %9515 = vst [vmem:[#allocation11 + $0x2a8] sm:$0xff] %v15729_v51  ;;  %8529 = vmatmul.mubr.bf16.gmra.mrb[148].mxu1 %v7976_v36 }
 0x88e   :  { %8538 = vmatprep.mubr.bf16.mxu1 %v19453_v4 }
 0x890   :  { %v6872_v18 = vpop.f32.mrb[152].mxu0  ;;  %v15737_v39 = vpop.f32.mrb[44].mxu1 }
 0x891   :  { %19509 = vst [vmem:[#allocation88_spill] sm:$0xff] %v15737_v39  ;;  %9516 = vst [vmem:[#allocation11 + $0x2c0] sm:$0xff] %v15737_v39  ;;  %v15740_v40 = vpop.f32.mrb[153].mxu0  ;;  %v15742_v33 = vpop.f32.mrb[45].mxu1 }
 0x892   :  { %19510 = vst [vmem:[#allocation89_spill] sm:$0xff] %v15740_v40  ;;  %19511 = vst [vmem:[#allocation90_spill] sm:$0xff] %v15742_v33  ;;  %v6876_v48 = vpop.f32.mrb[154].mxu0  ;;  %v15745_v23 = vpop.f32.mrb[46].mxu1 }
 0x893   :  { %9517 = vst [vmem:[#allocation11 + $0x2c8] sm:$0xff] %v15742_v33  ;;  %19512 = vst [vmem:[#allocation91_spill] sm:$0xff] %v15745_v23  ;;  %v7978_v3 = vpack.c.bf16 %v6876_v48, %v6872_v18  ;;  %v15750_v12 = vpop.f32.mrb[155].mxu0  ;;  %v15752_v44 = vpop.f32.mrb[47].mxu1 }
 0x894   :  { %9518 = vst [vmem:[#allocation11 + $0x2e0] sm:$0xff] %v15745_v23  ;;  %19513 = vst [vmem:[#allocation92_spill] sm:$0xff] %v15750_v12 }
 0x895   :  { %19514 = vst [vmem:[#allocation93_spill] sm:$0xff] %v15752_v44  ;;  %9519 = vst [vmem:[#allocation11 + $0x2e8] sm:$0xff] %v15752_v44  ;;  %8539 = vmatmul.mubr.bf16.gmra.mrb[152].mxu1 %v7978_v3 }
 0x896   :  { %8548 = vmatprep.mubr.bf16.mxu1 %v19453_v4 }
 0x898   :  { %v6882_v48 = vpop.f32.mrb[156].mxu0  ;;  %v15760_v18 = vpop.f32.mrb[48].mxu1 }
 0x899   :  { %19515 = vst [vmem:[#allocation94_spill] sm:$0xff] %v15760_v18  ;;  %9520 = vst [vmem:[#allocation11 + $0x300] sm:$0xff] %v15760_v18  ;;  %v15763_v36 = vpop.f32.mrb[157].mxu0  ;;  %v15765_v39 = vpop.f32.mrb[49].mxu1 }
 0x89a   :  { %19516 = vst [vmem:[#allocation95_spill] sm:$0xff] %v15763_v36  ;;  %19517 = vst [vmem:[#allocation96_spill] sm:$0xff] %v15765_v39  ;;  %v6886_v51 = vpop.f32.mrb[158].mxu0  ;;  %v15768_v23 = vpop.f32.mrb[50].mxu1 }
 0x89b   :  { %9521 = vst [vmem:[#allocation11 + $0x308] sm:$0xff] %v15765_v39  ;;  %19518 = vst [vmem:[#allocation97_spill] sm:$0xff] %v15768_v23  ;;  %v7980_v40 = vpack.c.bf16 %v6886_v51, %v6882_v48  ;;  %v15773_v21 = vpop.f32.mrb[159].mxu0  ;;  %v15775_v33 = vpop.f32.mrb[51].mxu1 }
 0x89c   :  { %9522 = vst [vmem:[#allocation11 + $0x320] sm:$0xff] %v15768_v23  ;;  %19519 = vst [vmem:[#allocation98_spill] sm:$0xff] %v15773_v21 }
 0x89d   :  { %19520 = vst [vmem:[#allocation99_spill] sm:$0xff] %v15775_v33  ;;  %9523 = vst [vmem:[#allocation11 + $0x328] sm:$0xff] %v15775_v33  ;;  %8549 = vmatmul.mubr.bf16.gmra.mrb[156].mxu1 %v7980_v40 }
 0x89e   :  { %8558 = vmatprep.mubr.bf16.mxu1 %v19453_v4 }
 0x8a0   :  { %v6892_v51 = vpop.f32.mrb[160].mxu0  ;;  %v15783_v48 = vpop.f32.mrb[52].mxu1 }
 0x8a1   :  { %19521 = vst [vmem:[#allocation100_spill] sm:$0xff] %v15783_v48  ;;  %9524 = vst [vmem:[#allocation11 + $0x340] sm:$0xff] %v15783_v48  ;;  %v15786_v3 = vpop.f32.mrb[161].mxu0  ;;  %v15788_v18 = vpop.f32.mrb[53].mxu1 }
 0x8a2   :  { %19522 = vst [vmem:[#allocation101_spill] sm:$0xff] %v15786_v3  ;;  %19523 = vst [vmem:[#allocation102_spill] sm:$0xff] %v15788_v18  ;;  %v6896_v44 = vpop.f32.mrb[162].mxu0  ;;  %v15791_v23 = vpop.f32.mrb[54].mxu1 }
 0x8a3   :  { %9525 = vst [vmem:[#allocation11 + $0x348] sm:$0xff] %v15788_v18  ;;  %19524 = vst [vmem:[#allocation103_spill] sm:$0xff] %v15791_v23  ;;  %v7982_v36 = vpack.c.bf16 %v6896_v44, %v6892_v51  ;;  %v15796_v12 = vpop.f32.mrb[163].mxu0  ;;  %v15798_v39 = vpop.f32.mrb[55].mxu1 }
 0x8a4   :  { %9526 = vst [vmem:[#allocation11 + $0x360] sm:$0xff] %v15791_v23  ;;  %19525 = vst [vmem:[#allocation104_spill] sm:$0xff] %v15796_v12 }
 0x8a5   :  { %19526 = vst [vmem:[#allocation105_spill] sm:$0xff] %v15798_v39  ;;  %9527 = vst [vmem:[#allocation11 + $0x368] sm:$0xff] %v15798_v39  ;;  %8559 = vmatmul.mubr.bf16.gmra.mrb[160].mxu1 %v7982_v36 }
 0x8a6   :  { %8568 = vmatprep.mubr.bf16.mxu1 %v19453_v4 }
 0x8a8   :  { %v6902_v44 = vpop.f32.mrb[164].mxu0  ;;  %v15806_v51 = vpop.f32.mrb[56].mxu1 }
 0x8a9   :  { %19527 = vst [vmem:[#allocation106_spill] sm:$0xff] %v15806_v51  ;;  %9528 = vst [vmem:[#allocation11 + $0x380] sm:$0xff] %v15806_v51  ;;  %v15809_v40 = vpop.f32.mrb[165].mxu0  ;;  %v15811_v48 = vpop.f32.mrb[57].mxu1 }
 0x8aa   :  { %19528 = vst [vmem:[#allocation107_spill] sm:$0xff] %v15809_v40  ;;  %19529 = vst [vmem:[#allocation108_spill] sm:$0xff] %v15811_v48  ;;  %v6906_v33 = vpop.f32.mrb[166].mxu0  ;;  %v15814_v23 = vpop.f32.mrb[58].mxu1 }
 0x8ab   :  { %9529 = vst [vmem:[#allocation11 + $0x388] sm:$0xff] %v15811_v48  ;;  %19530 = vst [vmem:[#allocation109_spill] sm:$0xff] %v15814_v23  ;;  %v7984_v3 = vpack.c.bf16 %v6906_v33, %v6902_v44  ;;  %v15819_v21 = vpop.f32.mrb[167].mxu0  ;;  %v15821_v18 = vpop.f32.mrb[59].mxu1 }
 0x8ac   :  { %9530 = vst [vmem:[#allocation11 + $0x3a0] sm:$0xff] %v15814_v23  ;;  %19531 = vst [vmem:[#allocation110_spill] sm:$0xff] %v15819_v21 }
 0x8ad   :  { %19532 = vst [vmem:[#allocation111_spill] sm:$0xff] %v15821_v18  ;;  %9531 = vst [vmem:[#allocation11 + $0x3a8] sm:$0xff] %v15821_v18  ;;  %8569 = vmatmul.mubr.bf16.gmra.mrb[164].mxu1 %v7984_v3 }
 0x8ae   :  { %8578 = vmatprep.mubr.bf16.mxu1 %v19453_v4 }
 0x8b0   :  { %v6912_v33 = vpop.f32.mrb[168].mxu0  ;;  %v15829_v44 = vpop.f32.mrb[60].mxu1 }
 0x8b1   :  { %19533 = vst [vmem:[#allocation112_spill] sm:$0xff] %v15829_v44  ;;  %9532 = vst [vmem:[#allocation11 + $0x3c0] sm:$0xff] %v15829_v44  ;;  %v15832_v36 = vpop.f32.mrb[169].mxu0  ;;  %v15834_v51 = vpop.f32.mrb[61].mxu1 }
 0x8b2   :  { %19534 = vst [vmem:[#allocation113_spill] sm:$0xff] %v15832_v36  ;;  %19535 = vst [vmem:[#allocation114_spill] sm:$0xff] %v15834_v51  ;;  %v6916_v39 = vpop.f32.mrb[170].mxu0  ;;  %v15837_v23 = vpop.f32.mrb[62].mxu1 }
 0x8b3   :  { %9533 = vst [vmem:[#allocation11 + $0x3c8] sm:$0xff] %v15834_v51  ;;  %19536 = vst [vmem:[#allocation115_spill] sm:$0xff] %v15837_v23  ;;  %v7986_v40 = vpack.c.bf16 %v6916_v39, %v6912_v33  ;;  %v15842_v12 = vpop.f32.mrb[171].mxu0  ;;  %v15844_v48 = vpop.f32.mrb[63].mxu1 }
 0x8b4   :  { %9534 = vst [vmem:[#allocation11 + $0x3e0] sm:$0xff] %v15837_v23  ;;  %19537 = vst [vmem:[#allocation116_spill] sm:$0xff] %v15842_v12 }
 0x8b5   :  { %19538 = vst [vmem:[#allocation117_spill] sm:$0xff] %v15844_v48  ;;  %9535 = vst [vmem:[#allocation11 + $0x3e8] sm:$0xff] %v15844_v48  ;;  %8579 = vmatmul.mubr.bf16.gmra.mrb[168].mxu1 %v7986_v40 }
 0x8b6   :  { %8588 = vmatprep.mubr.bf16.mxu1 %v19453_v4 }
 0x8b8   :  { %v6922_v39 = vpop.f32.mrb[172].mxu0  ;;  %v15852_v33 = vpop.f32.mrb[64].mxu1 }
 0x8b9   :  { %19539 = vst [vmem:[#allocation118_spill] sm:$0xff] %v15852_v33  ;;  %9536 = vst [vmem:[#allocation11 + $0x400] sm:$0xff] %v15852_v33  ;;  %v15855_v3 = vpop.f32.mrb[173].mxu0  ;;  %v15857_v44 = vpop.f32.mrb[65].mxu1 }
 0x8ba   :  { %19540 = vst [vmem:[#allocation119_spill] sm:$0xff] %v15855_v3  ;;  %19541 = vst [vmem:[#allocation120_spill] sm:$0xff] %v15857_v44  ;;  %v6926_v18 = vpop.f32.mrb[174].mxu0  ;;  %v15860_v23 = vpop.f32.mrb[66].mxu1 }
 0x8bb   :  { %9537 = vst [vmem:[#allocation11 + $0x408] sm:$0xff] %v15857_v44  ;;  %19542 = vst [vmem:[#allocation121_spill] sm:$0xff] %v15860_v23  ;;  %v7988_v36 = vpack.c.bf16 %v6926_v18, %v6922_v39  ;;  %v15865_v21 = vpop.f32.mrb[175].mxu0  ;;  %v15867_v51 = vpop.f32.mrb[67].mxu1 }
 0x8bc   :  { %9538 = vst [vmem:[#allocation11 + $0x420] sm:$0xff] %v15860_v23  ;;  %19543 = vst [vmem:[#allocation122_spill] sm:$0xff] %v15865_v21 }
 0x8bd   :  { %19544 = vst [vmem:[#allocation123_spill] sm:$0xff] %v15867_v51  ;;  %9539 = vst [vmem:[#allocation11 + $0x428] sm:$0xff] %v15867_v51  ;;  %8589 = vmatmul.mubr.bf16.gmra.mrb[172].mxu1 %v7988_v36 }
 0x8be   :  { %8598 = vmatprep.mubr.bf16.mxu1 %v19453_v4 }
 0x8c0   :  { %v6932_v18 = vpop.f32.mrb[176].mxu0  ;;  %v15875_v39 = vpop.f32.mrb[68].mxu1 }
 0x8c1   :  { %19545 = vst [vmem:[#allocation124_spill] sm:$0xff] %v15875_v39  ;;  %9540 = vst [vmem:[#allocation11 + $0x440] sm:$0xff] %v15875_v39  ;;  %v15878_v40 = vpop.f32.mrb[177].mxu0  ;;  %v15880_v33 = vpop.f32.mrb[69].mxu1 }
 0x8c2   :  { %19546 = vst [vmem:[#allocation125_spill] sm:$0xff] %v15878_v40  ;;  %19547 = vst [vmem:[#allocation126_spill] sm:$0xff] %v15880_v33  ;;  %v6936_v48 = vpop.f32.mrb[178].mxu0  ;;  %v15883_v23 = vpop.f32.mrb[70].mxu1 }
 0x8c3   :  { %9541 = vst [vmem:[#allocation11 + $0x448] sm:$0xff] %v15880_v33  ;;  %19548 = vst [vmem:[#allocation127_spill] sm:$0xff] %v15883_v23  ;;  %v7990_v3 = vpack.c.bf16 %v6936_v48, %v6932_v18  ;;  %v15888_v12 = vpop.f32.mrb[179].mxu0  ;;  %v15890_v44 = vpop.f32.mrb[71].mxu1 }
 0x8c4   :  { %9542 = vst [vmem:[#allocation11 + $0x460] sm:$0xff] %v15883_v23  ;;  %19549 = vst [vmem:[#allocation128_spill] sm:$0xff] %v15888_v12 }
 0x8c5   :  { %19550 = vst [vmem:[#allocation129_spill] sm:$0xff] %v15890_v44  ;;  %9543 = vst [vmem:[#allocation11 + $0x468] sm:$0xff] %v15890_v44  ;;  %8599 = vmatmul.mubr.bf16.gmra.mrb[176].mxu1 %v7990_v3 }
 0x8c6   :  { %8608 = vmatprep.mubr.bf16.mxu1 %v19453_v4 }
 0x8c8   :  { %v6942_v48 = vpop.f32.mrb[180].mxu0  ;;  %v15898_v18 = vpop.f32.mrb[72].mxu1 }
 0x8c9   :  { %19551 = vst [vmem:[#allocation130_spill] sm:$0xff] %v15898_v18  ;;  %9544 = vst [vmem:[#allocation11 + $0x480] sm:$0xff] %v15898_v18  ;;  %v15901_v36 = vpop.f32.mrb[181].mxu0  ;;  %v15903_v39 = vpop.f32.mrb[73].mxu1 }
 0x8ca   :  { %19552 = vst [vmem:[#allocation131_spill] sm:$0xff] %v15901_v36  ;;  %19553 = vst [vmem:[#allocation132_spill] sm:$0xff] %v15903_v39  ;;  %v6946_v51 = vpop.f32.mrb[182].mxu0  ;;  %v15906_v23 = vpop.f32.mrb[74].mxu1 }
 0x8cb   :  { %9545 = vst [vmem:[#allocation11 + $0x488] sm:$0xff] %v15903_v39  ;;  %19554 = vst [vmem:[#allocation133_spill] sm:$0xff] %v15906_v23  ;;  %v7992_v40 = vpack.c.bf16 %v6946_v51, %v6942_v48  ;;  %v15911_v21 = vpop.f32.mrb[183].mxu0  ;;  %v15913_v33 = vpop.f32.mrb[75].mxu1 }
 0x8cc   :  { %9546 = vst [vmem:[#allocation11 + $0x4a0] sm:$0xff] %v15906_v23  ;;  %19555 = vst [vmem:[#allocation134_spill] sm:$0xff] %v15911_v21 }
 0x8cd   :  { %19556 = vst [vmem:[#allocation135_spill] sm:$0xff] %v15913_v33  ;;  %9547 = vst [vmem:[#allocation11 + $0x4a8] sm:$0xff] %v15913_v33  ;;  %8609 = vmatmul.mubr.bf16.gmra.mrb[180].mxu1 %v7992_v40 }
 0x8ce   :  { %8618 = vmatprep.mubr.bf16.mxu1 %v19453_v4 }
 0x8d0   :  { %v6952_v51 = vpop.f32.mrb[184].mxu0  ;;  %v15921_v48 = vpop.f32.mrb[76].mxu1 }
 0x8d1   :  { %19557 = vst [vmem:[#allocation136_spill] sm:$0xff] %v15921_v48  ;;  %9548 = vst [vmem:[#allocation11 + $0x4c0] sm:$0xff] %v15921_v48  ;;  %v15924_v3 = vpop.f32.mrb[185].mxu0  ;;  %v15926_v18 = vpop.f32.mrb[77].mxu1 }
 0x8d2   :  { %19558 = vst [vmem:[#allocation137_spill] sm:$0xff] %v15924_v3  ;;  %19559 = vst [vmem:[#allocation138_spill] sm:$0xff] %v15926_v18  ;;  %v6956_v44 = vpop.f32.mrb[186].mxu0  ;;  %v15929_v23 = vpop.f32.mrb[78].mxu1 }
 0x8d3   :  { %9549 = vst [vmem:[#allocation11 + $0x4c8] sm:$0xff] %v15926_v18  ;;  %19560 = vst [vmem:[#allocation139_spill] sm:$0xff] %v15929_v23  ;;  %v7994_v36 = vpack.c.bf16 %v6956_v44, %v6952_v51  ;;  %v15934_v12 = vpop.f32.mrb[187].mxu0  ;;  %v15936_v39 = vpop.f32.mrb[79].mxu1 }
 0x8d4   :  { %9550 = vst [vmem:[#allocation11 + $0x4e0] sm:$0xff] %v15929_v23  ;;  %19561 = vst [vmem:[#allocation140_spill] sm:$0xff] %v15934_v12 }
 0x8d5   :  { %19562 = vst [vmem:[#allocation141_spill] sm:$0xff] %v15936_v39  ;;  %9551 = vst [vmem:[#allocation11 + $0x4e8] sm:$0xff] %v15936_v39  ;;  %8619 = vmatmul.mubr.bf16.gmra.mrb[184].mxu1 %v7994_v36 }
 0x8d6   :  { %8628 = vmatprep.mubr.bf16.mxu1 %v19453_v4 }
 0x8d8   :  { %v6962_v44 = vpop.f32.mrb[188].mxu0  ;;  %v15944_v51 = vpop.f32.mrb[80].mxu1 }
 0x8d9   :  { %19563 = vst [vmem:[#allocation142_spill] sm:$0xff] %v15944_v51  ;;  %9552 = vst [vmem:[#allocation11 + $0x500] sm:$0xff] %v15944_v51  ;;  %v15947_v40 = vpop.f32.mrb[189].mxu0  ;;  %v15949_v48 = vpop.f32.mrb[81].mxu1 }
 0x8da   :  { %19564 = vst [vmem:[#allocation143_spill] sm:$0xff] %v15947_v40  ;;  %19565 = vst [vmem:[#allocation144_spill] sm:$0xff] %v15949_v48  ;;  %v6966_v33 = vpop.f32.mrb[190].mxu0  ;;  %v15952_v23 = vpop.f32.mrb[82].mxu1 }
 0x8db   :  { %9553 = vst [vmem:[#allocation11 + $0x508] sm:$0xff] %v15949_v48  ;;  %19566 = vst [vmem:[#allocation145_spill] sm:$0xff] %v15952_v23  ;;  %v7996_v3 = vpack.c.bf16 %v6966_v33, %v6962_v44  ;;  %v15957_v21 = vpop.f32.mrb[191].mxu0  ;;  %v15959_v18 = vpop.f32.mrb[83].mxu1 }
 0x8dc   :  { %9554 = vst [vmem:[#allocation11 + $0x520] sm:$0xff] %v15952_v23  ;;  %19567 = vst [vmem:[#allocation146_spill] sm:$0xff] %v15957_v21 }
 0x8dd   :  { %19568 = vst [vmem:[#allocation147_spill] sm:$0xff] %v15959_v18  ;;  %9555 = vst [vmem:[#allocation11 + $0x528] sm:$0xff] %v15959_v18  ;;  %8629 = vmatmul.mubr.bf16.gmra.mrb[188].mxu1 %v7996_v3 }
 0x8de   :  { %8638 = vmatprep.mubr.bf16.mxu1 %v19453_v4 }
 0x8e0   :  { %v6972_v33 = vpop.f32.mrb[192].mxu0  ;;  %v15967_v44 = vpop.f32.mrb[84].mxu1 }
 0x8e1   :  { %19569 = vst [vmem:[#allocation148_spill] sm:$0xff] %v15967_v44  ;;  %9556 = vst [vmem:[#allocation11 + $0x540] sm:$0xff] %v15967_v44  ;;  %v15970_v36 = vpop.f32.mrb[193].mxu0  ;;  %v15972_v51 = vpop.f32.mrb[85].mxu1 }
 0x8e2   :  { %19570 = vst [vmem:[#allocation149_spill] sm:$0xff] %v15970_v36  ;;  %19571 = vst [vmem:[#allocation150_spill] sm:$0xff] %v15972_v51  ;;  %v6976_v39 = vpop.f32.mrb[194].mxu0  ;;  %v15975_v23 = vpop.f32.mrb[86].mxu1 }
 0x8e3   :  { %9557 = vst [vmem:[#allocation11 + $0x548] sm:$0xff] %v15972_v51  ;;  %19572 = vst [vmem:[#allocation151_spill] sm:$0xff] %v15975_v23  ;;  %v7998_v40 = vpack.c.bf16 %v6976_v39, %v6972_v33  ;;  %v15980_v12 = vpop.f32.mrb[195].mxu0  ;;  %v15982_v48 = vpop.f32.mrb[87].mxu1 }
 0x8e4   :  { %9558 = vst [vmem:[#allocation11 + $0x560] sm:$0xff] %v15975_v23  ;;  %19573 = vst [vmem:[#allocation152_spill] sm:$0xff] %v15980_v12 }
 0x8e5   :  { %19574 = vst [vmem:[#allocation153_spill] sm:$0xff] %v15982_v48  ;;  %9559 = vst [vmem:[#allocation11 + $0x568] sm:$0xff] %v15982_v48  ;;  %8639 = vmatmul.mubr.bf16.gmra.mrb[192].mxu1 %v7998_v40 }
 0x8e6   :  { %8648 = vmatprep.mubr.bf16.mxu1 %v19453_v4 }
 0x8e8   :  { %v6982_v39 = vpop.f32.mrb[196].mxu0  ;;  %v15990_v33 = vpop.f32.mrb[88].mxu1 }
 0x8e9   :  { %19575 = vst [vmem:[#allocation154_spill] sm:$0xff] %v15990_v33  ;;  %9560 = vst [vmem:[#allocation11 + $0x580] sm:$0xff] %v15990_v33  ;;  %v15993_v3 = vpop.f32.mrb[197].mxu0  ;;  %v15995_v44 = vpop.f32.mrb[89].mxu1 }
 0x8ea   :  { %19576 = vst [vmem:[#allocation155_spill] sm:$0xff] %v15993_v3  ;;  %19577 = vst [vmem:[#allocation156_spill] sm:$0xff] %v15995_v44  ;;  %v6986_v18 = vpop.f32.mrb[198].mxu0  ;;  %v15998_v23 = vpop.f32.mrb[90].mxu1 }
 0x8eb   :  { %9561 = vst [vmem:[#allocation11 + $0x588] sm:$0xff] %v15995_v44  ;;  %19578 = vst [vmem:[#allocation157_spill] sm:$0xff] %v15998_v23  ;;  %v8000_v36 = vpack.c.bf16 %v6986_v18, %v6982_v39  ;;  %v16003_v21 = vpop.f32.mrb[199].mxu0  ;;  %v16005_v51 = vpop.f32.mrb[91].mxu1 }
 0x8ec   :  { %9562 = vst [vmem:[#allocation11 + $0x5a0] sm:$0xff] %v15998_v23  ;;  %19579 = vst [vmem:[#allocation158_spill] sm:$0xff] %v16003_v21 }
 0x8ed   :  { %19580 = vst [vmem:[#allocation159_spill] sm:$0xff] %v16005_v51  ;;  %9563 = vst [vmem:[#allocation11 + $0x5a8] sm:$0xff] %v16005_v51  ;;  %8649 = vmatmul.mubr.bf16.gmra.mrb[196].mxu1 %v8000_v36 }
 0x8ee   :  { %8658 = vmatprep.mubr.bf16.mxu1 %v19453_v4 }
 0x8f0   :  { %v6992_v18 = vpop.f32.mrb[200].mxu0  ;;  %v16013_v39 = vpop.f32.mrb[92].mxu1 }
 0x8f1   :  { %19581 = vst [vmem:[#allocation160_spill] sm:$0xff] %v16013_v39  ;;  %9564 = vst [vmem:[#allocation11 + $0x5c0] sm:$0xff] %v16013_v39  ;;  %v16016_v40 = vpop.f32.mrb[201].mxu0  ;;  %v16018_v33 = vpop.f32.mrb[93].mxu1 }
 0x8f2   :  { %19582 = vst [vmem:[#allocation161_spill] sm:$0xff] %v16016_v40  ;;  %19583 = vst [vmem:[#allocation162_spill] sm:$0xff] %v16018_v33  ;;  %v6996_v48 = vpop.f32.mrb[202].mxu0  ;;  %v16021_v23 = vpop.f32.mrb[94].mxu1 }
 0x8f3   :  { %9565 = vst [vmem:[#allocation11 + $0x5c8] sm:$0xff] %v16018_v33  ;;  %19584 = vst [vmem:[#allocation163_spill] sm:$0xff] %v16021_v23  ;;  %v8002_v3 = vpack.c.bf16 %v6996_v48, %v6992_v18  ;;  %v16026_v12 = vpop.f32.mrb[203].mxu0  ;;  %v16028_v44 = vpop.f32.mrb[95].mxu1 }
 0x8f4   :  { %9566 = vst [vmem:[#allocation11 + $0x5e0] sm:$0xff] %v16021_v23  ;;  %19585 = vst [vmem:[#allocation164_spill] sm:$0xff] %v16026_v12 }
 0x8f5   :  { %19586 = vst [vmem:[#allocation165_spill] sm:$0xff] %v16028_v44  ;;  %9567 = vst [vmem:[#allocation11 + $0x5e8] sm:$0xff] %v16028_v44  ;;  %8659 = vmatmul.mubr.bf16.gmra.mrb[200].mxu1 %v8002_v3 }
 0x8f6   :  { %8668 = vmatprep.mubr.bf16.mxu1 %v19453_v4 }
 0x8f8   :  { %v7002_v48 = vpop.f32.mrb[204].mxu0  ;;  %v16036_v18 = vpop.f32.mrb[96].mxu1 }
 0x8f9   :  { %19587 = vst [vmem:[#allocation166_spill] sm:$0xff] %v16036_v18  ;;  %9568 = vst [vmem:[#allocation11 + $0x600] sm:$0xff] %v16036_v18  ;;  %v16039_v36 = vpop.f32.mrb[205].mxu0  ;;  %v16041_v39 = vpop.f32.mrb[97].mxu1 }
 0x8fa   :  { %19588 = vst [vmem:[#allocation167_spill] sm:$0xff] %v16039_v36  ;;  %19589 = vst [vmem:[#allocation168_spill] sm:$0xff] %v16041_v39  ;;  %v7006_v51 = vpop.f32.mrb[206].mxu0  ;;  %v16044_v23 = vpop.f32.mrb[98].mxu1 }
 0x8fb   :  { %9569 = vst [vmem:[#allocation11 + $0x608] sm:$0xff] %v16041_v39  ;;  %19590 = vst [vmem:[#allocation169_spill] sm:$0xff] %v16044_v23  ;;  %v8004_v40 = vpack.c.bf16 %v7006_v51, %v7002_v48  ;;  %v16049_v21 = vpop.f32.mrb[207].mxu0  ;;  %v16051_v33 = vpop.f32.mrb[99].mxu1 }
 0x8fc   :  { %9570 = vst [vmem:[#allocation11 + $0x620] sm:$0xff] %v16044_v23  ;;  %19591 = vst [vmem:[#allocation170_spill] sm:$0xff] %v16049_v21 }
 0x8fd   :  { %19592 = vst [vmem:[#allocation171_spill] sm:$0xff] %v16051_v33  ;;  %9571 = vst [vmem:[#allocation11 + $0x628] sm:$0xff] %v16051_v33  ;;  %8669 = vmatmul.mubr.bf16.gmra.mrb[204].mxu1 %v8004_v40 }
 0x8fe   :  { %8678 = vmatprep.mubr.bf16.mxu1 %v19453_v4 }
 0x900   :  { %v7012_v51 = vpop.f32.mrb[208].mxu0  ;;  %v16059_v48 = vpop.f32.mrb[100].mxu1 }
 0x901   :  { %19593 = vst [vmem:[#allocation172_spill] sm:$0xff] %v16059_v48  ;;  %9572 = vst [vmem:[#allocation11 + $0x640] sm:$0xff] %v16059_v48  ;;  %v16062_v3 = vpop.f32.mrb[209].mxu0  ;;  %v16064_v18 = vpop.f32.mrb[101].mxu1 }
 0x902   :  { %19594 = vst [vmem:[#allocation173_spill] sm:$0xff] %v16062_v3  ;;  %19595 = vst [vmem:[#allocation174_spill] sm:$0xff] %v16064_v18  ;;  %v7016_v44 = vpop.f32.mrb[210].mxu0  ;;  %v16067_v23 = vpop.f32.mrb[102].mxu1 }
 0x903   :  { %9573 = vst [vmem:[#allocation11 + $0x648] sm:$0xff] %v16064_v18  ;;  %19596 = vst [vmem:[#allocation175_spill] sm:$0xff] %v16067_v23  ;;  %v8006_v36 = vpack.c.bf16 %v7016_v44, %v7012_v51  ;;  %v16072_v12 = vpop.f32.mrb[211].mxu0  ;;  %v16074_v39 = vpop.f32.mrb[103].mxu1 }
 0x904   :  { %9574 = vst [vmem:[#allocation11 + $0x660] sm:$0xff] %v16067_v23  ;;  %19597 = vst [vmem:[#allocation176_spill] sm:$0xff] %v16072_v12 }
 0x905   :  { %19598 = vst [vmem:[#allocation177_spill] sm:$0xff] %v16074_v39  ;;  %9575 = vst [vmem:[#allocation11 + $0x668] sm:$0xff] %v16074_v39  ;;  %8679 = vmatmul.mubr.bf16.gmra.mrb[208].mxu1 %v8006_v36 }
 0x906   :  { %8688 = vmatprep.mubr.bf16.mxu1 %v19453_v4 }
 0x908   :  { %v7022_v44 = vpop.f32.mrb[212].mxu0  ;;  %v16082_v51 = vpop.f32.mrb[104].mxu1 }
 0x909   :  { %19599 = vst [vmem:[#allocation178_spill] sm:$0xff] %v16082_v51  ;;  %9576 = vst [vmem:[#allocation11 + $0x680] sm:$0xff] %v16082_v51  ;;  %v16085_v40 = vpop.f32.mrb[213].mxu0  ;;  %v16087_v48 = vpop.f32.mrb[105].mxu1 }
 0x90a   :  { %19600 = vst [vmem:[#allocation179_spill] sm:$0xff] %v16085_v40  ;;  %19601 = vst [vmem:[#allocation180_spill] sm:$0xff] %v16087_v48  ;;  %v7026_v33 = vpop.f32.mrb[214].mxu0  ;;  %v16090_v23 = vpop.f32.mrb[106].mxu1 }
 0x90b   :  { %9577 = vst [vmem:[#allocation11 + $0x688] sm:$0xff] %v16087_v48  ;;  %19602 = vst [vmem:[#allocation181_spill] sm:$0xff] %v16090_v23  ;;  %v8008_v3 = vpack.c.bf16 %v7026_v33, %v7022_v44  ;;  %v16095_v21 = vpop.f32.mrb[215].mxu0  ;;  %v16097_v18 = vpop.f32.mrb[107].mxu1 }
 0x90c   :  { %9578 = vst [vmem:[#allocation11 + $0x6a0] sm:$0xff] %v16090_v23  ;;  %19603 = vst [vmem:[#allocation182_spill] sm:$0xff] %v16095_v21 }
 0x90d   :  { %19604 = vst [vmem:[#allocation183_spill] sm:$0xff] %v16097_v18  ;;  %9579 = vst [vmem:[#allocation11 + $0x6a8] sm:$0xff] %v16097_v18  ;;  %8689 = vmatmul.mubr.bf16.gmra.mrb[212].mxu1 %v8008_v3 }
 0x90e   :  { %8698 = vmatprep.mubr.bf16.mxu1 %v19453_v4 }
 0x910   :  { %v7032_v33 = vpop.f32.mrb[216].mxu0  ;;  %v16105_v44 = vpop.f32.mrb[108].mxu1 }
 0x911   :  { %19605 = vst [vmem:[#allocation184_spill] sm:$0xff] %v16105_v44  ;;  %9580 = vst [vmem:[#allocation11 + $0x6c0] sm:$0xff] %v16105_v44  ;;  %v16108_v36 = vpop.f32.mrb[217].mxu0  ;;  %v16110_v51 = vpop.f32.mrb[109].mxu1 }
 0x912   :  { %19606 = vst [vmem:[#allocation185_spill] sm:$0xff] %v16108_v36  ;;  %19607 = vst [vmem:[#allocation186_spill] sm:$0xff] %v16110_v51  ;;  %v7036_v39 = vpop.f32.mrb[218].mxu0  ;;  %v16113_v23 = vpop.f32.mrb[110].mxu1 }
 0x913   :  { %9581 = vst [vmem:[#allocation11 + $0x6c8] sm:$0xff] %v16110_v51  ;;  %19608 = vst [vmem:[#allocation187_spill] sm:$0xff] %v16113_v23  ;;  %v8010_v40 = vpack.c.bf16 %v7036_v39, %v7032_v33  ;;  %v16118_v12 = vpop.f32.mrb[219].mxu0  ;;  %v16120_v48 = vpop.f32.mrb[111].mxu1 }
 0x914   :  { %9582 = vst [vmem:[#allocation11 + $0x6e0] sm:$0xff] %v16113_v23  ;;  %19609 = vst [vmem:[#allocation188_spill] sm:$0xff] %v16118_v12 }
 0x915   :  { %19610 = vst [vmem:[#allocation189_spill] sm:$0xff] %v16120_v48  ;;  %9583 = vst [vmem:[#allocation11 + $0x6e8] sm:$0xff] %v16120_v48  ;;  %8699 = vmatmul.mubr.bf16.gmra.mrb[216].mxu1 %v8010_v40 }
 0x916   :  { %8708 = vmatprep.mubr.bf16.mxu1 %v19453_v4 }
 0x918   :  { %v7042_v39 = vpop.f32.mrb[220].mxu0  ;;  %v16128_v33 = vpop.f32.mrb[112].mxu1 }
 0x919   :  { %19611 = vst [vmem:[#allocation190_spill] sm:$0xff] %v16128_v33  ;;  %9584 = vst [vmem:[#allocation11 + $0x700] sm:$0xff] %v16128_v33  ;;  %v16131_v3 = vpop.f32.mrb[221].mxu0  ;;  %v16133_v44 = vpop.f32.mrb[113].mxu1 }
 0x91a   :  { %19612 = vst [vmem:[#allocation191_spill] sm:$0xff] %v16131_v3  ;;  %19613 = vst [vmem:[#allocation192_spill] sm:$0xff] %v16133_v44  ;;  %v7046_v18 = vpop.f32.mrb[222].mxu0  ;;  %v16136_v23 = vpop.f32.mrb[114].mxu1 }
 0x91b   :  { %9585 = vst [vmem:[#allocation11 + $0x708] sm:$0xff] %v16133_v44  ;;  %19614 = vst [vmem:[#allocation193_spill] sm:$0xff] %v16136_v23  ;;  %v8012_v36 = vpack.c.bf16 %v7046_v18, %v7042_v39  ;;  %v16141_v21 = vpop.f32.mrb[223].mxu0  ;;  %v16143_v51 = vpop.f32.mrb[115].mxu1 }
 0x91c   :  { %9586 = vst [vmem:[#allocation11 + $0x720] sm:$0xff] %v16136_v23  ;;  %19615 = vst [vmem:[#allocation194_spill] sm:$0xff] %v16141_v21 }
 0x91d   :  { %19616 = vst [vmem:[#allocation195_spill] sm:$0xff] %v16143_v51  ;;  %9587 = vst [vmem:[#allocation11 + $0x728] sm:$0xff] %v16143_v51  ;;  %8709 = vmatmul.mubr.bf16.gmra.mrb[220].mxu1 %v8012_v36 }
 0x91e   :  { %8718 = vmatprep.mubr.bf16.mxu1 %v19453_v4 }
 0x920   :  { %v7052_v18 = vpop.f32.mrb[224].mxu0  ;;  %v16151_v39 = vpop.f32.mrb[116].mxu1 }
 0x921   :  { %19617 = vst [vmem:[#allocation196_spill] sm:$0xff] %v16151_v39  ;;  %9588 = vst [vmem:[#allocation11 + $0x740] sm:$0xff] %v16151_v39  ;;  %v16154_v40 = vpop.f32.mrb[225].mxu0  ;;  %v16156_v33 = vpop.f32.mrb[117].mxu1 }
 0x922   :  { %19618 = vst [vmem:[#allocation197_spill] sm:$0xff] %v16154_v40  ;;  %19619 = vst [vmem:[#allocation198_spill] sm:$0xff] %v16156_v33  ;;  %v7056_v48 = vpop.f32.mrb[226].mxu0  ;;  %v16159_v23 = vpop.f32.mrb[118].mxu1 }
 0x923   :  { %9589 = vst [vmem:[#allocation11 + $0x748] sm:$0xff] %v16156_v33  ;;  %19620 = vst [vmem:[#allocation199_spill] sm:$0xff] %v16159_v23  ;;  %v8014_v3 = vpack.c.bf16 %v7056_v48, %v7052_v18  ;;  %v16164_v12 = vpop.f32.mrb[227].mxu0  ;;  %v16166_v44 = vpop.f32.mrb[119].mxu1 }
 0x924   :  { %9590 = vst [vmem:[#allocation11 + $0x760] sm:$0xff] %v16159_v23  ;;  %19621 = vst [vmem:[#allocation200_spill] sm:$0xff] %v16164_v12 }
 0x925   :  { %19622 = vst [vmem:[#allocation201_spill] sm:$0xff] %v16166_v44  ;;  %9591 = vst [vmem:[#allocation11 + $0x768] sm:$0xff] %v16166_v44  ;;  %8719 = vmatmul.mubr.bf16.gmra.mrb[224].mxu1 %v8014_v3 }
 0x926   :  { %8728 = vmatprep.mubr.bf16.mxu1 %v19453_v4 }
 0x928   :  { %v7062_v48 = vpop.f32.mrb[228].mxu0  ;;  %v16174_v18 = vpop.f32.mrb[120].mxu1 }
 0x929   :  { %19623 = vst [vmem:[#allocation202_spill] sm:$0xff] %v16174_v18  ;;  %9592 = vst [vmem:[#allocation11 + $0x780] sm:$0xff] %v16174_v18  ;;  %v16177_v36 = vpop.f32.mrb[229].mxu0  ;;  %v16179_v39 = vpop.f32.mrb[121].mxu1 }
 0x92a   :  { %19624 = vst [vmem:[#allocation203_spill] sm:$0xff] %v16177_v36  ;;  %19625 = vst [vmem:[#allocation204_spill] sm:$0xff] %v16179_v39  ;;  %v7066_v51 = vpop.f32.mrb[230].mxu0  ;;  %v16182_v23 = vpop.f32.mrb[122].mxu1 }
 0x92b   :  { %9593 = vst [vmem:[#allocation11 + $0x788] sm:$0xff] %v16179_v39  ;;  %19626 = vst [vmem:[#allocation205_spill] sm:$0xff] %v16182_v23  ;;  %v8016_v40 = vpack.c.bf16 %v7066_v51, %v7062_v48  ;;  %v16187_v21 = vpop.f32.mrb[231].mxu0  ;;  %v16189_v33 = vpop.f32.mrb[123].mxu1 }
 0x92c   :  { %9594 = vst [vmem:[#allocation11 + $0x7a0] sm:$0xff] %v16182_v23  ;;  %19627 = vst [vmem:[#allocation206_spill] sm:$0xff] %v16187_v21 }
 0x92d   :  { %19628 = vst [vmem:[#allocation207_spill] sm:$0xff] %v16189_v33  ;;  %9595 = vst [vmem:[#allocation11 + $0x7a8] sm:$0xff] %v16189_v33  ;;  %8729 = vmatmul.mubr.bf16.gmra.mrb[228].mxu1 %v8016_v40 }
 0x92e   :  { %8738 = vmatprep.mubr.bf16.mxu1 %v19453_v4 }
 0x930   :  { %v7072_v51 = vpop.f32.mrb[232].mxu0  ;;  %v16197_v48 = vpop.f32.mrb[124].mxu1 }
 0x931   :  { %19629 = vst [vmem:[#allocation208_spill] sm:$0xff] %v16197_v48  ;;  %9596 = vst [vmem:[#allocation11 + $0x7c0] sm:$0xff] %v16197_v48  ;;  %v16200_v3 = vpop.f32.mrb[233].mxu0  ;;  %v16202_v18 = vpop.f32.mrb[125].mxu1 }
 0x932   :  { %19630 = vst [vmem:[#allocation209_spill] sm:$0xff] %v16200_v3  ;;  %19631 = vst [vmem:[#allocation210_spill] sm:$0xff] %v16202_v18  ;;  %v7076_v44 = vpop.f32.mrb[234].mxu0  ;;  %v16205_v23 = vpop.f32.mrb[126].mxu1 }
 0x933   :  { %9597 = vst [vmem:[#allocation11 + $0x7c8] sm:$0xff] %v16202_v18  ;;  %19632 = vst [vmem:[#allocation211_spill] sm:$0xff] %v16205_v23  ;;  %v8018_v36 = vpack.c.bf16 %v7076_v44, %v7072_v51  ;;  %v16210_v12 = vpop.f32.mrb[235].mxu0  ;;  %v16212_v39 = vpop.f32.mrb[127].mxu1 }
 0x934   :  { %9598 = vst [vmem:[#allocation11 + $0x7e0] sm:$0xff] %v16205_v23  ;;  %19633 = vst [vmem:[#allocation212_spill] sm:$0xff] %v16210_v12 }
 0x935   :  { %19634 = vst [vmem:[#allocation213_spill] sm:$0xff] %v16212_v39  ;;  %9599 = vst [vmem:[#allocation11 + $0x7e8] sm:$0xff] %v16212_v39  ;;  %8739 = vmatmul.mubr.bf16.gmra.mrb[232].mxu1 %v8018_v36 }
 0x936   :  { %8748 = vmatprep.mubr.bf16.mxu1 %v19453_v4 }
 0x938   :  { %v7082_v44 = vpop.f32.mrb[236].mxu0  ;;  %v16220_v51 = vpop.f32.mrb[128].mxu1 }
 0x939   :  { %19635 = vst [vmem:[#allocation214_spill] sm:$0xff] %v16220_v51  ;;  %9600 = vst [vmem:[#allocation11 + $0x800] sm:$0xff] %v16220_v51  ;;  %v16223_v40 = vpop.f32.mrb[237].mxu0  ;;  %v16225_v48 = vpop.f32.mrb[129].mxu1 }
 0x93a   :  { %19636 = vst [vmem:[#allocation215_spill] sm:$0xff] %v16223_v40  ;;  %19637 = vst [vmem:[#allocation216_spill] sm:$0xff] %v16225_v48  ;;  %v7086_v33 = vpop.f32.mrb[238].mxu0  ;;  %v16228_v23 = vpop.f32.mrb[130].mxu1 }
 0x93b   :  { %9601 = vst [vmem:[#allocation11 + $0x808] sm:$0xff] %v16225_v48  ;;  %19638 = vst [vmem:[#allocation217_spill] sm:$0xff] %v16228_v23  ;;  %v8020_v3 = vpack.c.bf16 %v7086_v33, %v7082_v44  ;;  %v16233_v21 = vpop.f32.mrb[239].mxu0  ;;  %v16235_v18 = vpop.f32.mrb[131].mxu1 }
 0x93c   :  { %9602 = vst [vmem:[#allocation11 + $0x820] sm:$0xff] %v16228_v23  ;;  %19639 = vst [vmem:[#allocation218_spill] sm:$0xff] %v16233_v21 }
 0x93d   :  { %19640 = vst [vmem:[#allocation219_spill] sm:$0xff] %v16235_v18  ;;  %9603 = vst [vmem:[#allocation11 + $0x828] sm:$0xff] %v16235_v18  ;;  %8749 = vmatmul.mubr.bf16.gmra.mrb[236].mxu1 %v8020_v3 }
 0x93e   :  { %8758 = vmatprep.mubr.bf16.mxu1 %v19453_v4 }
 0x940   :  { %v7092_v33 = vpop.f32.mrb[240].mxu0  ;;  %v16243_v44 = vpop.f32.mrb[132].mxu1 }
 0x941   :  { %19641 = vst [vmem:[#allocation220_spill] sm:$0xff] %v16243_v44  ;;  %9604 = vst [vmem:[#allocation11 + $0x840] sm:$0xff] %v16243_v44  ;;  %v16246_v36 = vpop.f32.mrb[241].mxu0  ;;  %v16248_v51 = vpop.f32.mrb[133].mxu1 }
 0x942   :  { %19642 = vst [vmem:[#allocation221_spill] sm:$0xff] %v16246_v36  ;;  %19643 = vst [vmem:[#allocation222_spill] sm:$0xff] %v16248_v51  ;;  %v7096_v39 = vpop.f32.mrb[242].mxu0  ;;  %v16251_v23 = vpop.f32.mrb[134].mxu1 }
 0x943   :  { %9605 = vst [vmem:[#allocation11 + $0x848] sm:$0xff] %v16248_v51  ;;  %19644 = vst [vmem:[#allocation223_spill] sm:$0xff] %v16251_v23  ;;  %v8022_v40 = vpack.c.bf16 %v7096_v39, %v7092_v33  ;;  %v16256_v12 = vpop.f32.mrb[243].mxu0  ;;  %v16258_v48 = vpop.f32.mrb[135].mxu1 }
 0x944   :  { %9606 = vst [vmem:[#allocation11 + $0x860] sm:$0xff] %v16251_v23  ;;  %19645 = vst [vmem:[#allocation224_spill] sm:$0xff] %v16256_v12 }
 0x945   :  { %19646 = vst [vmem:[#allocation225_spill] sm:$0xff] %v16258_v48  ;;  %9607 = vst [vmem:[#allocation11 + $0x868] sm:$0xff] %v16258_v48  ;;  %8759 = vmatmul.mubr.bf16.gmra.mrb[240].mxu1 %v8022_v40 }
 0x946   :  { %8768 = vmatprep.mubr.bf16.mxu1 %v19453_v4 }
 0x948   :  { %v7102_v39 = vpop.f32.mrb[244].mxu0  ;;  %v16266_v33 = vpop.f32.mrb[136].mxu1 }
 0x949   :  { %19647 = vst [vmem:[#allocation226_spill] sm:$0xff] %v16266_v33  ;;  %9608 = vst [vmem:[#allocation11 + $0x880] sm:$0xff] %v16266_v33  ;;  %v16269_v3 = vpop.f32.mrb[245].mxu0  ;;  %v16271_v44 = vpop.f32.mrb[137].mxu1 }
 0x94a   :  { %19648 = vst [vmem:[#allocation227_spill] sm:$0xff] %v16269_v3  ;;  %19649 = vst [vmem:[#allocation228_spill] sm:$0xff] %v16271_v44  ;;  %v7106_v18 = vpop.f32.mrb[246].mxu0  ;;  %v16274_v23 = vpop.f32.mrb[138].mxu1 }
 0x94b   :  { %9609 = vst [vmem:[#allocation11 + $0x888] sm:$0xff] %v16271_v44  ;;  %19650 = vst [vmem:[#allocation229_spill] sm:$0xff] %v16274_v23  ;;  %v8024_v36 = vpack.c.bf16 %v7106_v18, %v7102_v39  ;;  %v16279_v21 = vpop.f32.mrb[247].mxu0  ;;  %v16281_v51 = vpop.f32.mrb[139].mxu1 }
 0x94c   :  { %9610 = vst [vmem:[#allocation11 + $0x8a0] sm:$0xff] %v16274_v23  ;;  %19651 = vst [vmem:[#allocation230_spill] sm:$0xff] %v16279_v21 }
 0x94d   :  { %19652 = vst [vmem:[#allocation231_spill] sm:$0xff] %v16281_v51  ;;  %9611 = vst [vmem:[#allocation11 + $0x8a8] sm:$0xff] %v16281_v51  ;;  %8769 = vmatmul.mubr.bf16.gmra.mrb[244].mxu1 %v8024_v36 }
 0x94e   :  { %8778 = vmatprep.mubr.bf16.mxu1 %v19453_v4 }
 0x950   :  { %v7112_v18 = vpop.f32.mrb[248].mxu0  ;;  %v16289_v39 = vpop.f32.mrb[140].mxu1 }
 0x951   :  { %19653 = vst [vmem:[#allocation232_spill] sm:$0xff] %v16289_v39  ;;  %9612 = vst [vmem:[#allocation11 + $0x8c0] sm:$0xff] %v16289_v39  ;;  %v16292_v40 = vpop.f32.mrb[249].mxu0  ;;  %v16294_v33 = vpop.f32.mrb[141].mxu1 }
 0x952   :  { %19654 = vst [vmem:[#allocation233_spill] sm:$0xff] %v16292_v40  ;;  %19655 = vst [vmem:[#allocation234_spill] sm:$0xff] %v16294_v33  ;;  %v7116_v48 = vpop.f32.mrb[250].mxu0  ;;  %v16297_v23 = vpop.f32.mrb[142].mxu1 }
 0x953   :  { %9613 = vst [vmem:[#allocation11 + $0x8c8] sm:$0xff] %v16294_v33  ;;  %19656 = vst [vmem:[#allocation235_spill] sm:$0xff] %v16297_v23  ;;  %v8026_v3 = vpack.c.bf16 %v7116_v48, %v7112_v18  ;;  %v16302_v12 = vpop.f32.mrb[251].mxu0  ;;  %v16304_v44 = vpop.f32.mrb[143].mxu1 }
 0x954   :  { %9614 = vst [vmem:[#allocation11 + $0x8e0] sm:$0xff] %v16297_v23  ;;  %19657 = vst [vmem:[#allocation236_spill] sm:$0xff] %v16302_v12 }
 0x955   :  { %19658 = vst [vmem:[#allocation237_spill] sm:$0xff] %v16304_v44  ;;  %9615 = vst [vmem:[#allocation11 + $0x8e8] sm:$0xff] %v16304_v44  ;;  %8779 = vmatmul.mubr.bf16.gmra.mrb[248].mxu1 %v8026_v3 }
 0x956   :  { %8788 = vmatprep.mubr.bf16.mxu1 %v19453_v4 }
 0x958   :  { %v7122_v48 = vpop.f32.mrb[252].mxu0  ;;  %v16312_v18 = vpop.f32.mrb[144].mxu1 }
 0x959   :  { %19659 = vst [vmem:[#allocation238_spill] sm:$0xff] %v16312_v18  ;;  %9616 = vst [vmem:[#allocation11 + $0x900] sm:$0xff] %v16312_v18  ;;  %v16315_v36 = vpop.f32.mrb[253].mxu0  ;;  %v16317_v39 = vpop.f32.mrb[145].mxu1  ;;  %v14956_v18 = vld [vmem:[#allocation9] sm:$0xff]  }
 0x95a   :  { %19660 = vst [vmem:[#allocation239_spill] sm:$0xff] %v16317_v39  ;;  %9617 = vst [vmem:[#allocation11 + $0x908] sm:$0xff] %v16317_v39  ;;  %v7126_v51 = vpop.f32.mrb[254].mxu0  ;;  %v16320_v23 = vpop.f32.mrb[146].mxu1  ;;  %v14957_v39 = vld [vmem:[#allocation9 + $0x8] sm:$0xff]  }
 0x95b   :  { %19661 = vst [vmem:[#allocation240_spill] sm:$0xff] %v16320_v23  ;;  %v8028_v40 = vpack.c.bf16 %v7126_v51, %v7122_v48  ;;  %9618 = vst [vmem:[#allocation11 + $0x920] sm:$0xff] %v16320_v23  ;;  %v16325_v21 = vpop.f32.mrb[255].mxu0  ;;  %v16327_v33 = vpop.f32.mrb[147].mxu1  ;;  %v19664_v23 = vpack.c.bf16 %v15281_v24, %v15279_v19 }
 0x95c   :  { %19662 = vst [vmem:[#allocation241_spill] sm:$0xff] %v16327_v33  ;;  %9619 = vst [vmem:[#allocation11 + $0x928] sm:$0xff] %v16327_v33 }
 0x95d   :  { %8789 = vmatmul.mubr.bf16.gmra.mrb[252].mxu1 %v8028_v40  ;;  %v14958_v40 = vld [vmem:[#allocation9 + $0x10] sm:$0xff]  }
 0x95e   :  { %8831 = vmatprep.mubr.bf16.mxu1 %v19453_v4 }
 0x960   :  { %v16335_v51 = vpop.f32.mrb[148].mxu1 }
 0x961   :  { %19663 = vst [vmem:[#allocation242_spill] sm:$0xff] %v16335_v51  ;;  %9620 = vst [vmem:[#allocation11 + $0x940] sm:$0xff] %v16335_v51  ;;  %v16338_v48 = vpop.f32.mrb[149].mxu1 }
 0x962   :  { %9621 = vst [vmem:[#allocation11 + $0x948] sm:$0xff] %v16338_v48  ;;  %v16341_v3 = vpop.f32.mrb[150].mxu1 }
 0x963   :  { %9622 = vst [vmem:[#allocation11 + $0x960] sm:$0xff] %v16341_v3  ;;  %v16346_v12 = vpop.f32.mrb[151].mxu1 }
 0x964   :  { %9623 = vst [vmem:[#allocation11 + $0x968] sm:$0xff] %v16346_v12 }
 0x965   :  { %8832 = vmatmul.mubr.bf16.vlgmr.msra.gmra.mrb[0].mxu1 %v19664_v23  ;;  %v14960_v23 = vld [vmem:[#allocation9 + $0x20] sm:$0xff]  }
 0x966   :  { %10241 = vmatpush1.bf16.msra.mxu1 %v14956_v18  ;;  %8841 = vmatprep.mubr.bf16.mxu1 %v19453_v4  ;;  %v19667_v18 = vpack.c.bf16 %v15291_v34, %v15288_v29 }
 0x967   :  { %10242 = vmatprep.subr.bf16.mxu1 %v19453_v4 }
 0x968   :  { %v16356_v33 = vpop.f32.mrb[152].mxu1 }
 0x969   :  { %19665 = vst [vmem:[#allocation243_spill] sm:$0xff] %v16356_v33  ;;  %9624 = vst [vmem:[#allocation11 + $0x980] sm:$0xff] %v16356_v33  ;;  %v16359_v44 = vpop.f32.mrb[153].mxu1 }
 0x96a   :  { %9625 = vst [vmem:[#allocation11 + $0x988] sm:$0xff] %v16359_v44  ;;  %v16362_v51 = vpop.f32.mrb[154].mxu1  ;;  %10243 = vmatpush1.bf16.msra.mxu1 %v14957_v39  ;;  %v14959_v39 = vld [vmem:[#allocation9 + $0x18] sm:$0xff]  }
 0x96b   :  { %19666 = vst [vmem:[#allocation244_spill] sm:$0xff] %v16362_v51  ;;  %9626 = vst [vmem:[#allocation11 + $0x9a0] sm:$0xff] %v16362_v51  ;;  %v16367_v24 = vpop.f32.mrb[155].mxu1  ;;  %10244 = vmatprep.subr.bf16.mxu1 %v19453_v4 }
 0x96c   :  { %9627 = vst [vmem:[#allocation11 + $0x9a8] sm:$0xff] %v16367_v24 }
 0x96d   :  { %8842 = vmatmul.mubr.bf16.gmra.mrb[4].mxu1 %v19667_v18  ;;  %v19670_v18 = vpack.c.bf16 %v15301_v47, %v15299_v38 }
 0x96e   :  { %8851 = vmatprep.mubr.bf16.mxu1 %v19453_v4  ;;  %10245 = vmatpush1.bf16.msra.mxu1 %v14958_v40 }
 0x96f   :  { %10246 = vmatprep.subr.bf16.mxu1 %v19453_v4 }
 0x970   :  { %v16378_v19 = vpop.f32.mrb[156].mxu1 }
 0x971   :  { %19668 = vst [vmem:[#allocation245_spill] sm:$0xff] %v16378_v19  ;;  %9628 = vst [vmem:[#allocation11 + $0x9c0] sm:$0xff] %v16378_v19  ;;  %v16381_v33 = vpop.f32.mrb[157].mxu1 }
 0x972   :  { %9629 = vst [vmem:[#allocation11 + $0x9c8] sm:$0xff] %v16381_v33  ;;  %v16384_v51 = vpop.f32.mrb[158].mxu1  ;;  %10247 = vmatpush1.bf16.msra.mxu1 %v14959_v39 }
 0x973   :  { %19669 = vst [vmem:[#allocation246_spill] sm:$0xff] %v16384_v51  ;;  %9630 = vst [vmem:[#allocation11 + $0x9e0] sm:$0xff] %v16384_v51  ;;  %v16389_v34 = vpop.f32.mrb[159].mxu1  ;;  %10248 = vmatprep.subr.bf16.mxu1 %v19453_v4 }
 0x974   :  { %9631 = vst [vmem:[#allocation11 + $0x9e8] sm:$0xff] %v16389_v34 }
 0x975   :  { %8852 = vmatmul.mubr.bf16.gmra.mrb[8].mxu1 %v19670_v18  ;;  %v19673_v18 = vpack.c.bf16 %v15312_v58, %v15310_v50  ;;  %v19676_v58 = vpack.c.bf16 %v15323_v5, %v15321_v62 }
 0x976   :  { %8861 = vmatprep.mubr.bf16.mxu1 %v19453_v4  ;;  %10249 = vmatpush1.bf16.msra.mxu1 %v14960_v23 }
 0x977   :  { %10250 = vmatprep.subr.bf16.mxu1 %v19453_v4 }
 0x978   :  { %v16400_v39 = vpop.f32.mrb[160].mxu1 }
 0x979   :  { %19671 = vst [vmem:[#allocation247_spill] sm:$0xff] %v16400_v39  ;;  %9632 = vst [vmem:[#allocation11 + $0xa00] sm:$0xff] %v16400_v39  ;;  %v16403_v29 = vpop.f32.mrb[161].mxu1 }
 0x97a   :  { %9633 = vst [vmem:[#allocation11 + $0xa08] sm:$0xff] %v16403_v29  ;;  %v16406_v19 = vpop.f32.mrb[162].mxu1 }
 0x97b   :  { %19672 = vst [vmem:[#allocation248_spill] sm:$0xff] %v16406_v19  ;;  %9634 = vst [vmem:[#allocation11 + $0xa20] sm:$0xff] %v16406_v19  ;;  %v16411_v47 = vpop.f32.mrb[163].mxu1 }
 0x97c   :  { %9635 = vst [vmem:[#allocation11 + $0xa28] sm:$0xff] %v16411_v47 }
 0x97d   :  { %8862 = vmatmul.mubr.bf16.gmra.mrb[12].mxu1 %v19673_v18  ;;  %v14961_v18 = vld [vmem:[#allocation9 + $0x28] sm:$0xff]  }
 0x97e   :  { %8871 = vmatprep.mubr.bf16.mxu1 %v19453_v4  ;;  %10251 = vmatpush1.bf16.msra.mxu1 %v14961_v18  ;;  %v19679_v18 = vpack.c.bf16 %v15332_v0, %v15330_v7  ;;  %v19682_v0 = vpack.c.bf16 %v15339_v22, %v15337_v16  ;;  %v19685_v22 = vpack.c.bf16 %v15346_v35, %v15344_v30 }
 0x97f   :  { %10252 = vmatprep.subr.bf16.mxu1 %v19453_v4  ;;  %v19688_v35 = vpack.c.bf16 %v15353_v55, %v15351_v42 }
 0x980   :  { %v16420_v40 = vpop.f32.mrb[164].mxu1 }
 0x981   :  { %19674 = vst [vmem:[#allocation249_spill] sm:$0xff] %v16420_v40  ;;  %9636 = vst [vmem:[#allocation11 + $0xa40] sm:$0xff] %v16420_v40  ;;  %v16423_v51 = vpop.f32.mrb[165].mxu1 }
 0x982   :  { %9637 = vst [vmem:[#allocation11 + $0xa48] sm:$0xff] %v16423_v51  ;;  %v16426_v38 = vpop.f32.mrb[166].mxu1 }
 0x983   :  { %19675 = vst [vmem:[#allocation250_spill] sm:$0xff] %v16426_v38  ;;  %9638 = vst [vmem:[#allocation11 + $0xa60] sm:$0xff] %v16426_v38  ;;  %v16431_v39 = vpop.f32.mrb[167].mxu1 }
 0x984   :  { %9639 = vst [vmem:[#allocation11 + $0xa68] sm:$0xff] %v16431_v39 }
 0x985   :  { %8872 = vmatmul.mubr.bf16.gmra.mrb[16].mxu1 %v19676_v58 }
 0x986   :  { %8881 = vmatprep.mubr.bf16.mxu1 %v19453_v4 }
 0x988   :  { %v16440_v19 = vpop.f32.mrb[168].mxu1 }
 0x989   :  { %19677 = vst [vmem:[#allocation251_spill] sm:$0xff] %v16440_v19  ;;  %9640 = vst [vmem:[#allocation11 + $0xa80] sm:$0xff] %v16440_v19  ;;  %v16444_v23 = vpop.f32.mrb[169].mxu1 }
 0x98a   :  { %9641 = vst [vmem:[#allocation11 + $0xa88] sm:$0xff] %v16444_v23  ;;  %v16447_v40 = vpop.f32.mrb[170].mxu1 }
 0x98b   :  { %19678 = vst [vmem:[#allocation252_spill] sm:$0xff] %v16447_v40  ;;  %9642 = vst [vmem:[#allocation11 + $0xaa0] sm:$0xff] %v16447_v40  ;;  %v16452_v5 = vpop.f32.mrb[171].mxu1 }
 0x98c   :  { %9643 = vst [vmem:[#allocation11 + $0xaa8] sm:$0xff] %v16452_v5 }
 0x98d   :  { %8882 = vmatmul.mubr.bf16.gmra.mrb[20].mxu1 %v19679_v18 }
 0x98e   :  { %8891 = vmatprep.mubr.bf16.mxu1 %v19453_v4 }
 0x990   :  { %v16461_v50 = vpop.f32.mrb[172].mxu1 }
 0x991   :  { %19680 = vst [vmem:[#allocation253_spill] sm:$0xff] %v16461_v50  ;;  %9644 = vst [vmem:[#allocation11 + $0xac0] sm:$0xff] %v16461_v50  ;;  %v16464_v38 = vpop.f32.mrb[173].mxu1 }
 0x992   :  { %9645 = vst [vmem:[#allocation11 + $0xac8] sm:$0xff] %v16464_v38  ;;  %v16467_v62 = vpop.f32.mrb[174].mxu1 }
 0x993   :  { %19681 = vst [vmem:[#allocation254_spill] sm:$0xff] %v16467_v62  ;;  %9646 = vst [vmem:[#allocation11 + $0xae0] sm:$0xff] %v16467_v62  ;;  %v16472_v19 = vpop.f32.mrb[175].mxu1 }
 0x994   :  { %9647 = vst [vmem:[#allocation11 + $0xae8] sm:$0xff] %v16472_v19 }
 0x995   :  { %8892 = vmatmul.mubr.bf16.gmra.mrb[24].mxu1 %v19682_v0 }
 0x996   :  { %8901 = vmatprep.mubr.bf16.mxu1 %v19453_v4 }
 0x998   :  { %v16481_v18 = vpop.f32.mrb[176].mxu1 }
 0x999   :  { %19683 = vst [vmem:[#allocation255_spill] sm:$0xff] %v16481_v18  ;;  %9648 = vst [vmem:[#allocation11 + $0xb00] sm:$0xff] %v16481_v18  ;;  %v16484_v40 = vpop.f32.mrb[177].mxu1 }
 0x99a   :  { %9649 = vst [vmem:[#allocation11 + $0xb08] sm:$0xff] %v16484_v40  ;;  %v16487_v58 = vpop.f32.mrb[178].mxu1 }
 0x99b   :  { %19684 = vst [vmem:[#allocation256_spill] sm:$0xff] %v16487_v58  ;;  %9650 = vst [vmem:[#allocation11 + $0xb20] sm:$0xff] %v16487_v58  ;;  %v16492_v50 = vpop.f32.mrb[179].mxu1 }
 0x99c   :  { %9651 = vst [vmem:[#allocation11 + $0xb28] sm:$0xff] %v16492_v50 }
 0x99d   :  { %8902 = vmatmul.mubr.bf16.gmra.mrb[28].mxu1 %v19685_v22  ;;  %v14962_v22 = vld [vmem:[#allocation9 + $0x30] sm:$0xff]  }
 0x99e   :  { %8911 = vmatprep.mubr.bf16.mxu1 %v19453_v4  ;;  %10253 = vmatpush1.bf16.msra.mxu1 %v14962_v22  ;;  %v19691_v22 = vpack.c.bf16 %v15360_v60, %v15358_v61  ;;  %v19694_v60 = vpack.c.bf16 %v15367_v17, %v15365_v10  ;;  %v19697_v17 = vpack.c.bf16 %v15374_v37, %v15372_v27 }
 0x99f   :  { %10254 = vmatprep.subr.bf16.mxu1 %v19453_v4  ;;  %v19700_v37 = vpack.c.bf16 %v15381_v53, %v15379_v45 }
 0x9a0   :  { %v16501_v0 = vpop.f32.mrb[180].mxu1 }
 0x9a1   :  { %19686 = vst [vmem:[#allocation257_spill] sm:$0xff] %v16501_v0  ;;  %9652 = vst [vmem:[#allocation11 + $0xb40] sm:$0xff] %v16501_v0  ;;  %v16504_v62 = vpop.f32.mrb[181].mxu1 }
 0x9a2   :  { %9653 = vst [vmem:[#allocation11 + $0xb48] sm:$0xff] %v16504_v62  ;;  %v16507_v7 = vpop.f32.mrb[182].mxu1 }
 0x9a3   :  { %19687 = vst [vmem:[#allocation258_spill] sm:$0xff] %v16507_v7  ;;  %9654 = vst [vmem:[#allocation11 + $0xb60] sm:$0xff] %v16507_v7  ;;  %v16512_v18 = vpop.f32.mrb[183].mxu1 }
 0x9a4   :  { %9655 = vst [vmem:[#allocation11 + $0xb68] sm:$0xff] %v16512_v18 }
 0x9a5   :  { %8912 = vmatmul.mubr.bf16.gmra.mrb[32].mxu1 %v19688_v35 }
 0x9a6   :  { %8921 = vmatprep.mubr.bf16.mxu1 %v19453_v4 }
 0x9a8   :  { %v16521_v58 = vpop.f32.mrb[184].mxu1 }
 0x9a9   :  { %19689 = vst [vmem:[#allocation259_spill] sm:$0xff] %v16521_v58  ;;  %9656 = vst [vmem:[#allocation11 + $0xb80] sm:$0xff] %v16521_v58  ;;  %v16525_v16 = vpop.f32.mrb[185].mxu1 }
 0x9aa   :  { %9657 = vst [vmem:[#allocation11 + $0xb88] sm:$0xff] %v16525_v16  ;;  %v16528_v0 = vpop.f32.mrb[186].mxu1 }
 0x9ab   :  { %19690 = vst [vmem:[#allocation260_spill] sm:$0xff] %v16528_v0  ;;  %9658 = vst [vmem:[#allocation11 + $0xba0] sm:$0xff] %v16528_v0  ;;  %v16533_v55 = vpop.f32.mrb[187].mxu1 }
 0x9ac   :  { %9659 = vst [vmem:[#allocation11 + $0xba8] sm:$0xff] %v16533_v55 }
 0x9ad   :  { %8922 = vmatmul.mubr.bf16.gmra.mrb[36].mxu1 %v19691_v22 }
 0x9ae   :  { %8931 = vmatprep.mubr.bf16.mxu1 %v19453_v4 }
 0x9b0   :  { %v16542_v30 = vpop.f32.mrb[188].mxu1 }
 0x9b1   :  { %19692 = vst [vmem:[#allocation261_spill] sm:$0xff] %v16542_v30  ;;  %9660 = vst [vmem:[#allocation11 + $0xbc0] sm:$0xff] %v16542_v30  ;;  %v16545_v7 = vpop.f32.mrb[189].mxu1 }
 0x9b2   :  { %9661 = vst [vmem:[#allocation11 + $0xbc8] sm:$0xff] %v16545_v7  ;;  %v16548_v42 = vpop.f32.mrb[190].mxu1 }
 0x9b3   :  { %19693 = vst [vmem:[#allocation262_spill] sm:$0xff] %v16548_v42  ;;  %9662 = vst [vmem:[#allocation11 + $0xbe0] sm:$0xff] %v16548_v42  ;;  %v16553_v58 = vpop.f32.mrb[191].mxu1 }
 0x9b4   :  { %9663 = vst [vmem:[#allocation11 + $0xbe8] sm:$0xff] %v16553_v58 }
 0x9b5   :  { %8932 = vmatmul.mubr.bf16.gmra.mrb[40].mxu1 %v19694_v60 }
 0x9b6   :  { %8941 = vmatprep.mubr.bf16.mxu1 %v19453_v4 }
 0x9b8   :  { %v16562_v22 = vpop.f32.mrb[192].mxu1 }
 0x9b9   :  { %19695 = vst [vmem:[#allocation263_spill] sm:$0xff] %v16562_v22  ;;  %9664 = vst [vmem:[#allocation11 + $0xc00] sm:$0xff] %v16562_v22  ;;  %v16565_v0 = vpop.f32.mrb[193].mxu1 }
 0x9ba   :  { %9665 = vst [vmem:[#allocation11 + $0xc08] sm:$0xff] %v16565_v0  ;;  %v16568_v35 = vpop.f32.mrb[194].mxu1 }
 0x9bb   :  { %19696 = vst [vmem:[#allocation264_spill] sm:$0xff] %v16568_v35  ;;  %9666 = vst [vmem:[#allocation11 + $0xc20] sm:$0xff] %v16568_v35  ;;  %v16573_v30 = vpop.f32.mrb[195].mxu1 }
 0x9bc   :  { %9667 = vst [vmem:[#allocation11 + $0xc28] sm:$0xff] %v16573_v30 }
 0x9bd   :  { %8942 = vmatmul.mubr.bf16.gmra.mrb[44].mxu1 %v19697_v17  ;;  %v14963_v17 = vld [vmem:[#allocation9 + $0x38] sm:$0xff]  }
 0x9be   :  { %8951 = vmatprep.mubr.bf16.mxu1 %v19453_v4  ;;  %10255 = vmatpush1.bf16.msra.mxu1 %v14963_v17  ;;  %v19703_v17 = vpack.c.bf16 %v15388_v14, %v15386_v6  ;;  %v19706_v14 = vpack.c.bf16 %v15395_v43, %v15393_v28  ;;  %v19709_v43 = vpack.c.bf16 %v15402_v9, %v15400_v52 }
 0x9bf   :  { %10256 = vmatprep.subr.bf16.mxu1 %v19453_v4  ;;  %v19712_v9 = vpack.c.bf16 %v15409_v57, %v15407_v32 }
 0x9c0   :  { %v16582_v60 = vpop.f32.mrb[196].mxu1 }
 0x9c1   :  { %19698 = vst [vmem:[#allocation265_spill] sm:$0xff] %v16582_v60  ;;  %9668 = vst [vmem:[#allocation11 + $0xc40] sm:$0xff] %v16582_v60  ;;  %v16585_v42 = vpop.f32.mrb[197].mxu1 }
 0x9c2   :  { %9669 = vst [vmem:[#allocation11 + $0xc48] sm:$0xff] %v16585_v42  ;;  %v16588_v61 = vpop.f32.mrb[198].mxu1 }
 0x9c3   :  { %19699 = vst [vmem:[#allocation266_spill] sm:$0xff] %v16588_v61  ;;  %9670 = vst [vmem:[#allocation11 + $0xc60] sm:$0xff] %v16588_v61  ;;  %v16593_v22 = vpop.f32.mrb[199].mxu1 }
 0x9c4   :  { %9671 = vst [vmem:[#allocation11 + $0xc68] sm:$0xff] %v16593_v22 }
 0x9c5   :  { %8952 = vmatmul.mubr.bf16.gmra.mrb[48].mxu1 %v19700_v37 }
 0x9c6   :  { %8961 = vmatprep.mubr.bf16.mxu1 %v19453_v4 }
 0x9c8   :  { %v16602_v35 = vpop.f32.mrb[200].mxu1 }
 0x9c9   :  { %19701 = vst [vmem:[#allocation267_spill] sm:$0xff] %v16602_v35  ;;  %9672 = vst [vmem:[#allocation11 + $0xc80] sm:$0xff] %v16602_v35  ;;  %v16606_v10 = vpop.f32.mrb[201].mxu1 }
 0x9ca   :  { %9673 = vst [vmem:[#allocation11 + $0xc88] sm:$0xff] %v16606_v10  ;;  %v16609_v60 = vpop.f32.mrb[202].mxu1 }
 0x9cb   :  { %19702 = vst [vmem:[#allocation268_spill] sm:$0xff] %v16609_v60  ;;  %9674 = vst [vmem:[#allocation11 + $0xca0] sm:$0xff] %v16609_v60  ;;  %v16614_v53 = vpop.f32.mrb[203].mxu1 }
 0x9cc   :  { %9675 = vst [vmem:[#allocation11 + $0xca8] sm:$0xff] %v16614_v53 }
 0x9cd   :  { %8962 = vmatmul.mubr.bf16.gmra.mrb[52].mxu1 %v19703_v17 }
 0x9ce   :  { %8971 = vmatprep.mubr.bf16.mxu1 %v19453_v4 }
 0x9d0   :  { %v16623_v27 = vpop.f32.mrb[204].mxu1 }
 0x9d1   :  { %19704 = vst [vmem:[#allocation269_spill] sm:$0xff] %v16623_v27  ;;  %9676 = vst [vmem:[#allocation11 + $0xcc0] sm:$0xff] %v16623_v27  ;;  %v16626_v61 = vpop.f32.mrb[205].mxu1 }
 0x9d2   :  { %9677 = vst [vmem:[#allocation11 + $0xcc8] sm:$0xff] %v16626_v61  ;;  %v16629_v45 = vpop.f32.mrb[206].mxu1 }
 0x9d3   :  { %19705 = vst [vmem:[#allocation270_spill] sm:$0xff] %v16629_v45  ;;  %9678 = vst [vmem:[#allocation11 + $0xce0] sm:$0xff] %v16629_v45  ;;  %v16634_v35 = vpop.f32.mrb[207].mxu1 }
 0x9d4   :  { %9679 = vst [vmem:[#allocation11 + $0xce8] sm:$0xff] %v16634_v35 }
 0x9d5   :  { %8972 = vmatmul.mubr.bf16.gmra.mrb[56].mxu1 %v19706_v14 }
 0x9d6   :  { %8981 = vmatprep.mubr.bf16.mxu1 %v19453_v4 }
 0x9d8   :  { %v16643_v17 = vpop.f32.mrb[208].mxu1 }
 0x9d9   :  { %19707 = vst [vmem:[#allocation271_spill] sm:$0xff] %v16643_v17  ;;  %9680 = vst [vmem:[#allocation11 + $0xd00] sm:$0xff] %v16643_v17  ;;  %v16646_v60 = vpop.f32.mrb[209].mxu1 }
 0x9da   :  { %9681 = vst [vmem:[#allocation11 + $0xd08] sm:$0xff] %v16646_v60  ;;  %v16649_v37 = vpop.f32.mrb[210].mxu1 }
 0x9db   :  { %19708 = vst [vmem:[#allocation272_spill] sm:$0xff] %v16649_v37  ;;  %9682 = vst [vmem:[#allocation11 + $0xd20] sm:$0xff] %v16649_v37  ;;  %v16654_v27 = vpop.f32.mrb[211].mxu1 }
 0x9dc   :  { %9683 = vst [vmem:[#allocation11 + $0xd28] sm:$0xff] %v16654_v27 }
 0x9dd   :  { %8982 = vmatmul.mubr.bf16.gmra.mrb[60].mxu1 %v19709_v43  ;;  %v14964_v43 = vld [vmem:[#allocation9 + $0x40] sm:$0xff]  }
 0x9de   :  { %8991 = vmatprep.mubr.bf16.mxu1 %v19453_v4  ;;  %10257 = vmatpush1.bf16.msra.mxu1 %v14964_v43  ;;  %v19715_v43 = vpack.c.bf16 %v15416_v31, %v15414_v11  ;;  %v19718_v31 = vpack.c.bf16 %v15423_v8, %v15421_v1  ;;  %v19721_v8 = vpack.c.bf16 %v15430_v41, %v15428_v20 }
 0x9df   :  { %10258 = vmatprep.subr.bf16.mxu1 %v19453_v4  ;;  %v19724_v41 = vpack.c.bf16 %v15437_v46, %v15435_v49 }
 0x9e0   :  { %v16663_v14 = vpop.f32.mrb[212].mxu1 }
 0x9e1   :  { %19710 = vst [vmem:[#allocation273_spill] sm:$0xff] %v16663_v14  ;;  %9684 = vst [vmem:[#allocation11 + $0xd40] sm:$0xff] %v16663_v14  ;;  %v16666_v45 = vpop.f32.mrb[213].mxu1 }
 0x9e2   :  { %9685 = vst [vmem:[#allocation11 + $0xd48] sm:$0xff] %v16666_v45  ;;  %v16669_v6 = vpop.f32.mrb[214].mxu1 }
 0x9e3   :  { %19711 = vst [vmem:[#allocation274_spill] sm:$0xff] %v16669_v6  ;;  %9686 = vst [vmem:[#allocation11 + $0xd60] sm:$0xff] %v16669_v6  ;;  %v16674_v17 = vpop.f32.mrb[215].mxu1 }
 0x9e4   :  { %9687 = vst [vmem:[#allocation11 + $0xd68] sm:$0xff] %v16674_v17 }
 0x9e5   :  { %8992 = vmatmul.mubr.bf16.gmra.mrb[64].mxu1 %v19712_v9 }
 0x9e6   :  { %9001 = vmatprep.mubr.bf16.mxu1 %v19453_v4 }
 0x9e8   :  { %v16683_v37 = vpop.f32.mrb[216].mxu1 }
 0x9e9   :  { %19713 = vst [vmem:[#allocation275_spill] sm:$0xff] %v16683_v37  ;;  %9688 = vst [vmem:[#allocation11 + $0xd80] sm:$0xff] %v16683_v37  ;;  %v16687_v28 = vpop.f32.mrb[217].mxu1 }
 0x9ea   :  { %9689 = vst [vmem:[#allocation11 + $0xd88] sm:$0xff] %v16687_v28  ;;  %v16690_v14 = vpop.f32.mrb[218].mxu1 }
 0x9eb   :  { %19714 = vst [vmem:[#allocation276_spill] sm:$0xff] %v16690_v14  ;;  %9690 = vst [vmem:[#allocation11 + $0xda0] sm:$0xff] %v16690_v14  ;;  %v16695_v57 = vpop.f32.mrb[219].mxu1 }
 0x9ec   :  { %9691 = vst [vmem:[#allocation11 + $0xda8] sm:$0xff] %v16695_v57 }
 0x9ed   :  { %9002 = vmatmul.mubr.bf16.gmra.mrb[68].mxu1 %v19715_v43 }
 0x9ee   :  { %9011 = vmatprep.mubr.bf16.mxu1 %v19453_v4 }
 0x9f0   :  { %v16704_v52 = vpop.f32.mrb[220].mxu1 }
 0x9f1   :  { %19716 = vst [vmem:[#allocation277_spill] sm:$0xff] %v16704_v52  ;;  %9692 = vst [vmem:[#allocation11 + $0xdc0] sm:$0xff] %v16704_v52  ;;  %v16707_v6 = vpop.f32.mrb[221].mxu1 }
 0x9f2   :  { %9693 = vst [vmem:[#allocation11 + $0xdc8] sm:$0xff] %v16707_v6  ;;  %v16710_v32 = vpop.f32.mrb[222].mxu1 }
 0x9f3   :  { %19717 = vst [vmem:[#allocation278_spill] sm:$0xff] %v16710_v32  ;;  %9694 = vst [vmem:[#allocation11 + $0xde0] sm:$0xff] %v16710_v32  ;;  %v16715_v37 = vpop.f32.mrb[223].mxu1 }
 0x9f4   :  { %9695 = vst [vmem:[#allocation11 + $0xde8] sm:$0xff] %v16715_v37 }
 0x9f5   :  { %9012 = vmatmul.mubr.bf16.gmra.mrb[72].mxu1 %v19718_v31 }
 0x9f6   :  { %9021 = vmatprep.mubr.bf16.mxu1 %v19453_v4 }
 0x9f8   :  { %v16724_v43 = vpop.f32.mrb[224].mxu1 }
 0x9f9   :  { %19719 = vst [vmem:[#allocation279_spill] sm:$0xff] %v16724_v43  ;;  %9696 = vst [vmem:[#allocation11 + $0xe00] sm:$0xff] %v16724_v43  ;;  %v16727_v14 = vpop.f32.mrb[225].mxu1 }
 0x9fa   :  { %9697 = vst [vmem:[#allocation11 + $0xe08] sm:$0xff] %v16727_v14  ;;  %v16730_v9 = vpop.f32.mrb[226].mxu1 }
 0x9fb   :  { %19720 = vst [vmem:[#allocation280_spill] sm:$0xff] %v16730_v9  ;;  %9698 = vst [vmem:[#allocation11 + $0xe20] sm:$0xff] %v16730_v9  ;;  %v16735_v52 = vpop.f32.mrb[227].mxu1 }
 0x9fc   :  { %9699 = vst [vmem:[#allocation11 + $0xe28] sm:$0xff] %v16735_v52 }
 0x9fd   :  { %9022 = vmatmul.mubr.bf16.gmra.mrb[76].mxu1 %v19721_v8  ;;  %v14965_v8 = vld [vmem:[#allocation9 + $0x48] sm:$0xff]  }
 0x9fe   :  { %9031 = vmatprep.mubr.bf16.mxu1 %v19453_v4  ;;  %10259 = vmatpush1.bf16.msra.mxu1 %v14965_v8  ;;  %v19728_v8 = vpack.c.bf16 %v15444_v26, %v15442_v13  ;;  %v19733_v26 = vld [vmem:[#allocation19_spill] sm:$0xff] }
 0x9ff   :  { %10260 = vmatprep.subr.bf16.mxu1 %v19453_v4 }
 0xa00   :  { %v16744_v31 = vpop.f32.mrb[228].mxu1 }
 0xa01   :  { %19722 = vst [vmem:[#allocation281_spill] sm:$0xff] %v16744_v31  ;;  %9700 = vst [vmem:[#allocation11 + $0xe40] sm:$0xff] %v16744_v31  ;;  %v16747_v32 = vpop.f32.mrb[229].mxu1 }
 0xa02   :  { %9701 = vst [vmem:[#allocation11 + $0xe48] sm:$0xff] %v16747_v32  ;;  %v16750_v11 = vpop.f32.mrb[230].mxu1 }
 0xa03   :  { %19723 = vst [vmem:[#allocation282_spill] sm:$0xff] %v16750_v11  ;;  %9702 = vst [vmem:[#allocation11 + $0xe60] sm:$0xff] %v16750_v11  ;;  %v16755_v43 = vpop.f32.mrb[231].mxu1 }
 0xa04   :  { %9703 = vst [vmem:[#allocation11 + $0xe68] sm:$0xff] %v16755_v43 }
 0xa05   :  { %9032 = vmatmul.mubr.bf16.gmra.mrb[80].mxu1 %v19724_v41 }
 0xa06   :  { %9041 = vmatprep.mubr.bf16.mxu1 %v19453_v4 }
 0xa08   :  { %v16764_v9 = vpop.f32.mrb[232].mxu1 }
 0xa09   :  { %19725 = vst [vmem:[#allocation283_spill] sm:$0xff] %v16764_v9  ;;  %9704 = vst [vmem:[#allocation11 + $0xe80] sm:$0xff] %v16764_v9  ;;  %v16768_v1 = vpop.f32.mrb[233].mxu1 }
 0xa0a   :  { %19726 = vst [vmem:[#allocation284_spill] sm:$0xff] %v16768_v1  ;;  %9705 = vst [vmem:[#allocation11 + $0xe88] sm:$0xff] %v16768_v1  ;;  %v16771_v31 = vpop.f32.mrb[234].mxu1 }
 0xa0b   :  { %19727 = vst [vmem:[#allocation285_spill] sm:$0xff] %v16771_v31  ;;  %9706 = vst [vmem:[#allocation11 + $0xea0] sm:$0xff] %v16771_v31  ;;  %v16776_v46 = vpop.f32.mrb[235].mxu1 }
 0xa0c   :  { %9707 = vst [vmem:[#allocation11 + $0xea8] sm:$0xff] %v16776_v46 }
 0xa0d   :  { %9042 = vmatmul.mubr.bf16.gmra.mrb[84].mxu1 %v19728_v8  ;;  %v19734_v8 = vpack.c.bf16 %v15451_v2, %v19733_v26  ;;  %v19739_v26 = vld [vmem:[#allocation21_spill] sm:$0xff] }
 0xa0e   :  { %9051 = vmatprep.mubr.bf16.mxu1 %v19453_v4 }
 0xa10   :  { %v16785_v20 = vpop.f32.mrb[236].mxu1 }
 0xa11   :  { %19729 = vst [vmem:[#allocation286_spill] sm:$0xff] %v16785_v20  ;;  %9708 = vst [vmem:[#allocation11 + $0xec0] sm:$0xff] %v16785_v20  ;;  %v16788_v11 = vpop.f32.mrb[237].mxu1 }
 0xa12   :  { %19730 = vst [vmem:[#allocation287_spill] sm:$0xff] %v16788_v11  ;;  %9709 = vst [vmem:[#allocation11 + $0xec8] sm:$0xff] %v16788_v11  ;;  %v16791_v49 = vpop.f32.mrb[238].mxu1 }
 0xa13   :  { %19731 = vst [vmem:[#allocation288_spill] sm:$0xff] %v16791_v49  ;;  %9710 = vst [vmem:[#allocation11 + $0xee0] sm:$0xff] %v16791_v49  ;;  %v16796_v9 = vpop.f32.mrb[239].mxu1 }
 0xa14   :  { %19732 = vst [vmem:[#allocation289_spill] sm:$0xff] %v16796_v9  ;;  %9711 = vst [vmem:[#allocation11 + $0xee8] sm:$0xff] %v16796_v9 }
 0xa15   :  { %9052 = vmatmul.mubr.bf16.gmra.mrb[88].mxu1 %v19734_v8  ;;  %v19740_v8 = vld [vmem:[#allocation20_spill] sm:$0xff] }
 0xa16   :  { %9061 = vmatprep.mubr.bf16.mxu1 %v19453_v4  ;;  %v19741_v49 = vpack.c.bf16 %v19739_v26, %v19740_v8  ;;  %v19746_v26 = vld [vmem:[#allocation23_spill] sm:$0xff]  ;;  %v19747_v8 = vld [vmem:[#allocation22_spill] sm:$0xff] }
 0xa18   :  { %v16805_v31 = vpop.f32.mrb[240].mxu1 }
 0xa19   :  { %19735 = vst [vmem:[#allocation19_spill] sm:$0xff] %v16805_v31  ;;  %9712 = vst [vmem:[#allocation11 + $0xf00] sm:$0xff] %v16805_v31  ;;  %v16808_v1 = vpop.f32.mrb[241].mxu1 }
 0xa1a   :  { %19736 = vst [vmem:[#allocation290_spill] sm:$0xff] %v16808_v1  ;;  %9713 = vst [vmem:[#allocation11 + $0xf08] sm:$0xff] %v16808_v1  ;;  %v16811_v41 = vpop.f32.mrb[242].mxu1  ;;  %v14966_v1 = vld [vmem:[#allocation9 + $0x50] sm:$0xff]  }
 0xa1b   :  { %19737 = vst [vmem:[#allocation291_spill] sm:$0xff] %v16811_v41  ;;  %9714 = vst [vmem:[#allocation11 + $0xf20] sm:$0xff] %v16811_v41  ;;  %v16816_v20 = vpop.f32.mrb[243].mxu1  ;;  %v19748_v41 = vpack.c.bf16 %v19746_v26, %v19747_v8  ;;  %10261 = vmatpush1.bf16.msra.mxu1 %v14966_v1  ;;  %v19753_v8 = vld [vmem:[#allocation24_spill] sm:$0xff] }
 0xa1c   :  { %19738 = vst [vmem:[#allocation292_spill] sm:$0xff] %v16816_v20  ;;  %9715 = vst [vmem:[#allocation11 + $0xf28] sm:$0xff] %v16816_v20  ;;  %10262 = vmatprep.subr.bf16.mxu1 %v19453_v4 }
 0xa1d   :  { %9062 = vmatmul.mubr.bf16.gmra.mrb[92].mxu1 %v19741_v49  ;;  %v19754_v49 = vpack.c.bf16 %v15472_v54, %v19753_v8  ;;  %v19760_v8 = vld [vmem:[#allocation25_spill] sm:$0xff] }
 0xa1e   :  { %9071 = vmatprep.mubr.bf16.mxu1 %v19453_v4 }
 0xa20   :  { %v16825_v11 = vpop.f32.mrb[244].mxu1 }
 0xa21   :  { %19742 = vst [vmem:[#allocation21_spill] sm:$0xff] %v16825_v11  ;;  %9716 = vst [vmem:[#allocation11 + $0xf40] sm:$0xff] %v16825_v11  ;;  %v16828_v9 = vpop.f32.mrb[245].mxu1 }
 0xa22   :  { %19743 = vst [vmem:[#allocation20_spill] sm:$0xff] %v16828_v9  ;;  %9717 = vst [vmem:[#allocation11 + $0xf48] sm:$0xff] %v16828_v9  ;;  %v16831_v13 = vpop.f32.mrb[246].mxu1 }
 0xa23   :  { %19744 = vst [vmem:[#allocation293_spill] sm:$0xff] %v16831_v13  ;;  %9718 = vst [vmem:[#allocation11 + $0xf60] sm:$0xff] %v16831_v13  ;;  %v16836_v31 = vpop.f32.mrb[247].mxu1 }
 0xa24   :  { %19745 = vst [vmem:[#allocation294_spill] sm:$0xff] %v16836_v31  ;;  %9719 = vst [vmem:[#allocation11 + $0xf68] sm:$0xff] %v16836_v31 }
 0xa25   :  { %9072 = vmatmul.mubr.bf16.gmra.mrb[96].mxu1 %v19748_v41 }
 0xa26   :  { %9081 = vmatprep.mubr.bf16.mxu1 %v19453_v4 }
 0xa28   :  { %v16845_v20 = vpop.f32.mrb[248].mxu1 }
 0xa29   :  { %19749 = vst [vmem:[#allocation23_spill] sm:$0xff] %v16845_v20  ;;  %9720 = vst [vmem:[#allocation11 + $0xf80] sm:$0xff] %v16845_v20  ;;  %v16849_v2 = vpop.f32.mrb[249].mxu1 }
 0xa2a   :  { %19750 = vst [vmem:[#allocation22_spill] sm:$0xff] %v16849_v2  ;;  %9721 = vst [vmem:[#allocation11 + $0xf88] sm:$0xff] %v16849_v2  ;;  %v16852_v11 = vpop.f32.mrb[250].mxu1 }
 0xa2b   :  { %19751 = vst [vmem:[#allocation295_spill] sm:$0xff] %v16852_v11  ;;  %9722 = vst [vmem:[#allocation11 + $0xfa0] sm:$0xff] %v16852_v11  ;;  %v16857_v26 = vpop.f32.mrb[251].mxu1 }
 0xa2c   :  { %19752 = vst [vmem:[#allocation296_spill] sm:$0xff] %v16857_v26  ;;  %9723 = vst [vmem:[#allocation11 + $0xfa8] sm:$0xff] %v16857_v26 }
 0xa2d   :  { %9082 = vmatmul.mubr.bf16.gmra.mrb[100].mxu1 %v19754_v49  ;;  %v19759_v49 = vld [vmem:[#allocation26_spill] sm:$0xff] }
 0xa2e   :  { %9091 = vmatprep.mubr.bf16.mxu1 %v19453_v4  ;;  %v19761_v11 = vpack.c.bf16 %v19759_v49, %v19760_v8  ;;  %v19766_v49 = vld [vmem:[#allocation31_spill] sm:$0xff]  ;;  %v19767_v8 = vld [vmem:[#allocation28_spill] sm:$0xff] }
 0xa30   :  { %v16866_v13 = vpop.f32.mrb[252].mxu1 }
 0xa31   :  { %19755 = vst [vmem:[#allocation24_spill] sm:$0xff] %v16866_v13  ;;  %9724 = vst [vmem:[#allocation11 + $0xfc0] sm:$0xff] %v16866_v13  ;;  %v16869_v9 = vpop.f32.mrb[253].mxu1 }
 0xa32   :  { %19756 = vst [vmem:[#allocation297_spill] sm:$0xff] %v16869_v9  ;;  %9725 = vst [vmem:[#allocation11 + $0xfc8] sm:$0xff] %v16869_v9  ;;  %v16872_v41 = vpop.f32.mrb[254].mxu1 }
 0xa33   :  { %19757 = vst [vmem:[#allocation298_spill] sm:$0xff] %v16872_v41  ;;  %9726 = vst [vmem:[#allocation11 + $0xfe0] sm:$0xff] %v16872_v41  ;;  %v16877_v20 = vpop.f32.mrb[255].mxu1  ;;  %v19768_v41 = vpack.c.bf16 %v19766_v49, %v19767_v8  ;;  %v19773_v49 = vld [vmem:[#allocation37_spill] sm:$0xff]  ;;  %v19774_v8 = vld [vmem:[#allocation34_spill] sm:$0xff] }
 0xa34   :  { %19758 = vst [vmem:[#allocation299_spill] sm:$0xff] %v16877_v20  ;;  %9727 = vst [vmem:[#allocation11 + $0xfe8] sm:$0xff] %v16877_v20 }
 0xa35   :  { %9092 = vmatmul.mubr.bf16.gmra.mrb[104].mxu1 %v19761_v11 }
 0xa36   :  { %9101 = vmatprep.mubr.bf16.mxu1 %v19453_v4 }
 0xa38   :  { %v16886_v2 = vpop.f32.mrb[0].mxu1 }
 0xa39   :  { %19762 = vst [vmem:[#allocation26_spill] sm:$0xff] %v16886_v2  ;;  %9728 = vst [vmem:[#allocation11 + $0x10] sm:$0xff] %v16886_v2  ;;  %v16889_v26 = vpop.f32.mrb[1].mxu1 }
 0xa3a   :  { %19763 = vst [vmem:[#allocation25_spill] sm:$0xff] %v16889_v26  ;;  %9729 = vst [vmem:[#allocation11 + $0x18] sm:$0xff] %v16889_v26  ;;  %v16892_v1 = vpop.f32.mrb[2].mxu1  ;;  %v14967_v26 = vld [vmem:[#allocation9 + $0x58] sm:$0xff]  }
 0xa3b   :  { %19764 = vst [vmem:[#allocation300_spill] sm:$0xff] %v16892_v1  ;;  %9730 = vst [vmem:[#allocation11 + $0x30] sm:$0xff] %v16892_v1  ;;  %v16897_v13 = vpop.f32.mrb[3].mxu1  ;;  %v19775_v1 = vpack.c.bf16 %v19773_v49, %v19774_v8  ;;  %10263 = vmatpush1.bf16.msra.mxu1 %v14967_v26  ;;  %v19780_v8 = vld [vmem:[#allocation43_spill] sm:$0xff] }
 0xa3c   :  { %19765 = vst [vmem:[#allocation301_spill] sm:$0xff] %v16897_v13  ;;  %9731 = vst [vmem:[#allocation11 + $0x38] sm:$0xff] %v16897_v13  ;;  %10264 = vmatprep.subr.bf16.mxu1 %v19453_v4 }
 0xa3d   :  { %9102 = vmatmul.mubr.bf16.gmra.mrb[108].mxu1 %v19768_v41  ;;  %v19781_v41 = vld [vmem:[#allocation40_spill] sm:$0xff] }
 0xa3e   :  { %9111 = vmatprep.mubr.bf16.mxu1 %v19453_v4 }
 0xa40   :  { %v16906_v9 = vpop.f32.mrb[4].mxu1 }
 0xa41   :  { %19769 = vst [vmem:[#allocation31_spill] sm:$0xff] %v16906_v9  ;;  %9732 = vst [vmem:[#allocation11 + $0x50] sm:$0xff] %v16906_v9  ;;  %v16909_v20 = vpop.f32.mrb[5].mxu1 }
 0xa42   :  { %19770 = vst [vmem:[#allocation28_spill] sm:$0xff] %v16909_v20  ;;  %9733 = vst [vmem:[#allocation11 + $0x58] sm:$0xff] %v16909_v20  ;;  %v16912_v54 = vpop.f32.mrb[6].mxu1 }
 0xa43   :  { %19771 = vst [vmem:[#allocation302_spill] sm:$0xff] %v16912_v54  ;;  %9734 = vst [vmem:[#allocation11 + $0x70] sm:$0xff] %v16912_v54  ;;  %v16917_v2 = vpop.f32.mrb[7].mxu1  ;;  %v19782_v54 = vpack.c.bf16 %v19780_v8, %v19781_v41  ;;  %v19787_v41 = vld [vmem:[#allocation49_spill] sm:$0xff]  ;;  %v19788_v8 = vld [vmem:[#allocation46_spill] sm:$0xff] }
 0xa44   :  { %19772 = vst [vmem:[#allocation303_spill] sm:$0xff] %v16917_v2  ;;  %9735 = vst [vmem:[#allocation11 + $0x78] sm:$0xff] %v16917_v2 }
 0xa45   :  { %9112 = vmatmul.mubr.bf16.gmra.mrb[112].mxu1 %v19775_v1 }
 0xa46   :  { %9121 = vmatprep.mubr.bf16.mxu1 %v19453_v4 }
 0xa48   :  { %v16926_v13 = vpop.f32.mrb[8].mxu1 }
 0xa49   :  { %19776 = vst [vmem:[#allocation37_spill] sm:$0xff] %v16926_v13  ;;  %9736 = vst [vmem:[#allocation11 + $0x90] sm:$0xff] %v16926_v13  ;;  %v16930_v11 = vpop.f32.mrb[9].mxu1 }
 0xa4a   :  { %19777 = vst [vmem:[#allocation34_spill] sm:$0xff] %v16930_v11  ;;  %9737 = vst [vmem:[#allocation11 + $0x98] sm:$0xff] %v16930_v11  ;;  %v16933_v9 = vpop.f32.mrb[10].mxu1 }
 0xa4b   :  { %19778 = vst [vmem:[#allocation304_spill] sm:$0xff] %v16933_v9  ;;  %9738 = vst [vmem:[#allocation11 + $0xb0] sm:$0xff] %v16933_v9  ;;  %v16938_v49 = vpop.f32.mrb[11].mxu1  ;;  %v19789_v9 = vpack.c.bf16 %v19787_v41, %v19788_v8  ;;  %v19794_v41 = vld [vmem:[#allocation55_spill] sm:$0xff]  ;;  %v19795_v8 = vld [vmem:[#allocation52_spill] sm:$0xff] }
 0xa4c   :  { %19779 = vst [vmem:[#allocation305_spill] sm:$0xff] %v16938_v49  ;;  %9739 = vst [vmem:[#allocation11 + $0xb8] sm:$0xff] %v16938_v49 }
 0xa4d   :  { %9122 = vmatmul.mubr.bf16.gmra.mrb[116].mxu1 %v19782_v54 }
 0xa4e   :  { %9131 = vmatprep.mubr.bf16.mxu1 %v19453_v4 }
 0xa50   :  { %v16947_v20 = vpop.f32.mrb[12].mxu1 }
 0xa51   :  { %19783 = vst [vmem:[#allocation43_spill] sm:$0xff] %v16947_v20  ;;  %9740 = vst [vmem:[#allocation11 + $0xd0] sm:$0xff] %v16947_v20  ;;  %v16950_v2 = vpop.f32.mrb[13].mxu1 }
 0xa52   :  { %19784 = vst [vmem:[#allocation40_spill] sm:$0xff] %v16950_v2  ;;  %9741 = vst [vmem:[#allocation11 + $0xd8] sm:$0xff] %v16950_v2  ;;  %v16953_v1 = vpop.f32.mrb[14].mxu1 }
 0xa53   :  { %19785 = vst [vmem:[#allocation306_spill] sm:$0xff] %v16953_v1  ;;  %9742 = vst [vmem:[#allocation11 + $0xf0] sm:$0xff] %v16953_v1  ;;  %v16958_v13 = vpop.f32.mrb[15].mxu1  ;;  %v19796_v1 = vpack.c.bf16 %v19794_v41, %v19795_v8  ;;  %v19801_v41 = vld [vmem:[#allocation61_spill] sm:$0xff]  ;;  %v19802_v8 = vld [vmem:[#allocation58_spill] sm:$0xff] }
 0xa54   :  { %19786 = vst [vmem:[#allocation307_spill] sm:$0xff] %v16958_v13  ;;  %9743 = vst [vmem:[#allocation11 + $0xf8] sm:$0xff] %v16958_v13 }
 0xa55   :  { %9132 = vmatmul.mubr.bf16.gmra.mrb[120].mxu1 %v19789_v9 }
 0xa56   :  { %9141 = vmatprep.mubr.bf16.mxu1 %v19453_v4 }
 0xa58   :  { %v16967_v11 = vpop.f32.mrb[16].mxu1 }
 0xa59   :  { %19790 = vst [vmem:[#allocation49_spill] sm:$0xff] %v16967_v11  ;;  %9744 = vst [vmem:[#allocation11 + $0x110] sm:$0xff] %v16967_v11  ;;  %v16970_v49 = vpop.f32.mrb[17].mxu1 }
 0xa5a   :  { %19791 = vst [vmem:[#allocation46_spill] sm:$0xff] %v16970_v49  ;;  %9745 = vst [vmem:[#allocation11 + $0x118] sm:$0xff] %v16970_v49  ;;  %v16973_v26 = vpop.f32.mrb[18].mxu1  ;;  %v17006_v49 = vld [vmem:[#allocation9 + $0x60] sm:$0xff]  }
 0xa5b   :  { %19792 = vst [vmem:[#allocation308_spill] sm:$0xff] %v16973_v26  ;;  %9746 = vst [vmem:[#allocation11 + $0x130] sm:$0xff] %v16973_v26  ;;  %v16978_v20 = vpop.f32.mrb[19].mxu1  ;;  %v19803_v26 = vpack.c.bf16 %v19801_v41, %v19802_v8  ;;  %10265 = vmatpush1.bf16.msra.mxu1 %v17006_v49 }
 0xa5c   :  { %19793 = vst [vmem:[#allocation309_spill] sm:$0xff] %v16978_v20  ;;  %9747 = vst [vmem:[#allocation11 + $0x138] sm:$0xff] %v16978_v20  ;;  %10266 = vmatprep.subr.bf16.mxu1 %v19453_v4 }
 0xa5d   :  { %9142 = vmatmul.mubr.bf16.gmra.mrb[124].mxu1 %v19796_v1 }
 0xa5e   :  { %9151 = vmatprep.mubr.bf16.mxu1 %v19453_v4 }
 0xa60   :  { %v16987_v2 = vpop.f32.mrb[20].mxu1 }
 0xa61   :  { %19797 = vst [vmem:[#allocation55_spill] sm:$0xff] %v16987_v2  ;;  %9748 = vst [vmem:[#allocation11 + $0x150] sm:$0xff] %v16987_v2  ;;  %v16990_v13 = vpop.f32.mrb[21].mxu1  ;;  %v19808_v2 = vld [vmem:[#allocation67_spill] sm:$0xff] }
 0xa62   :  { %19798 = vst [vmem:[#allocation52_spill] sm:$0xff] %v16990_v13  ;;  %9749 = vst [vmem:[#allocation11 + $0x158] sm:$0xff] %v16990_v13  ;;  %v16993_v54 = vpop.f32.mrb[22].mxu1 }
 0xa63   :  { %19799 = vst [vmem:[#allocation310_spill] sm:$0xff] %v16993_v54  ;;  %9750 = vst [vmem:[#allocation11 + $0x170] sm:$0xff] %v16993_v54  ;;  %v16998_v11 = vpop.f32.mrb[23].mxu1  ;;  %v19809_v54 = vld [vmem:[#allocation64_spill] sm:$0xff] }
 0xa64   :  { %19800 = vst [vmem:[#allocation311_spill] sm:$0xff] %v16998_v11  ;;  %9751 = vst [vmem:[#allocation11 + $0x178] sm:$0xff] %v16998_v11  ;;  %v19810_v13 = vpack.c.bf16 %v19808_v2, %v19809_v54  ;;  %v19813_v2 = vld [vmem:[#allocation73_spill] sm:$0xff]  ;;  %v19814_v54 = vld [vmem:[#allocation70_spill] sm:$0xff] }
 0xa65   :  { %9152 = vmatmul.mubr.bf16.gmra.mrb[128].mxu1 %v19803_v26 }
 0xa66   :  { %9161 = vmatprep.mubr.bf16.mxu1 %v19453_v4 }
 0xa68   :  { %v17010_v20 = vpop.f32.mrb[24].mxu1 }
 0xa69   :  { %19804 = vst [vmem:[#allocation61_spill] sm:$0xff] %v17010_v20  ;;  %9752 = vst [vmem:[#allocation11 + $0x190] sm:$0xff] %v17010_v20  ;;  %v17014_v9 = vpop.f32.mrb[25].mxu1 }
 0xa6a   :  { %19805 = vst [vmem:[#allocation58_spill] sm:$0xff] %v17014_v9  ;;  %9753 = vst [vmem:[#allocation11 + $0x198] sm:$0xff] %v17014_v9  ;;  %v17017_v1 = vpop.f32.mrb[26].mxu1 }
 0xa6b   :  { %19806 = vst [vmem:[#allocation312_spill] sm:$0xff] %v17017_v1  ;;  %9754 = vst [vmem:[#allocation11 + $0x1b0] sm:$0xff] %v17017_v1  ;;  %v17022_v41 = vpop.f32.mrb[27].mxu1  ;;  %v19815_v1 = vpack.c.bf16 %v19813_v2, %v19814_v54  ;;  %v19820_v2 = vpack.c.bf16 %v15681_v63, %v15671_v15  ;;  %v19825_v15 = vpack.c.bf16 %v15704_v59, %v15694_v25 }
 0xa6c   :  { %19807 = vst [vmem:[#allocation313_spill] sm:$0xff] %v17022_v41  ;;  %9755 = vst [vmem:[#allocation11 + $0x1b8] sm:$0xff] %v17022_v41 }
 0xa6d   :  { %9162 = vmatmul.mubr.bf16.gmra.mrb[132].mxu1 %v19810_v13 }
 0xa6e   :  { %9171 = vmatprep.mubr.bf16.mxu1 %v19453_v4 }
 0xa70   :  { %v17031_v11 = vpop.f32.mrb[28].mxu1 }
 0xa71   :  { %19811 = vst [vmem:[#allocation67_spill] sm:$0xff] %v17031_v11  ;;  %9756 = vst [vmem:[#allocation11 + $0x1d0] sm:$0xff] %v17031_v11  ;;  %v17034_v31 = vpop.f32.mrb[29].mxu1 }
 0xa72   :  { %9757 = vst [vmem:[#allocation11 + $0x1d8] sm:$0xff] %v17034_v31  ;;  %v17037_v26 = vpop.f32.mrb[30].mxu1 }
 0xa73   :  { %19812 = vst [vmem:[#allocation64_spill] sm:$0xff] %v17037_v26  ;;  %9758 = vst [vmem:[#allocation11 + $0x1f0] sm:$0xff] %v17037_v26  ;;  %v17042_v20 = vpop.f32.mrb[31].mxu1 }
 0xa74   :  { %9759 = vst [vmem:[#allocation11 + $0x1f8] sm:$0xff] %v17042_v20 }
 0xa75   :  { %9172 = vmatmul.mubr.bf16.gmra.mrb[136].mxu1 %v19815_v1 }
 0xa76   :  { %9181 = vmatprep.mubr.bf16.mxu1 %v19453_v4 }
 0xa78   :  { %v17051_v9 = vpop.f32.mrb[32].mxu1 }
 0xa79   :  { %19816 = vst [vmem:[#allocation73_spill] sm:$0xff] %v17051_v9  ;;  %9760 = vst [vmem:[#allocation11 + $0x210] sm:$0xff] %v17051_v9  ;;  %v17054_v41 = vpop.f32.mrb[33].mxu1 }
 0xa7a   :  { %19817 = vst [vmem:[#allocation70_spill] sm:$0xff] %v17054_v41  ;;  %9761 = vst [vmem:[#allocation11 + $0x218] sm:$0xff] %v17054_v41  ;;  %v17057_v8 = vpop.f32.mrb[34].mxu1 }
 0xa7b   :  { %19818 = vst [vmem:[#allocation314_spill] sm:$0xff] %v17057_v8  ;;  %9762 = vst [vmem:[#allocation11 + $0x230] sm:$0xff] %v17057_v8  ;;  %v17062_v11 = vpop.f32.mrb[35].mxu1 }
 0xa7c   :  { %19819 = vst [vmem:[#allocation315_spill] sm:$0xff] %v17062_v11  ;;  %9763 = vst [vmem:[#allocation11 + $0x238] sm:$0xff] %v17062_v11 }
 0xa7d   :  { %9182 = vmatmul.mubr.bf16.gmra.mrb[140].mxu1 %v19820_v2  ;;  %v17090_v2 = vld [vmem:[#allocation9 + $0x68] sm:$0xff]  }
 0xa7e   :  { %9191 = vmatprep.mubr.bf16.mxu1 %v19453_v4  ;;  %10267 = vmatpush1.bf16.msra.mxu1 %v17090_v2 }
 0xa7f   :  { %10268 = vmatprep.subr.bf16.mxu1 %v19453_v4 }
 0xa80   :  { %v17071_v54 = vpop.f32.mrb[36].mxu1 }
 0xa81   :  { %19821 = vst [vmem:[#allocation316_spill] sm:$0xff] %v17071_v54  ;;  %9764 = vst [vmem:[#allocation11 + $0x250] sm:$0xff] %v17071_v54  ;;  %v17074_v26 = vpop.f32.mrb[37].mxu1  ;;  %v19830_v54 = vld [vmem:[#allocation84_spill] sm:$0xff] }
 0xa82   :  { %19822 = vst [vmem:[#allocation317_spill] sm:$0xff] %v17074_v26  ;;  %9765 = vst [vmem:[#allocation11 + $0x258] sm:$0xff] %v17074_v26  ;;  %v17077_v13 = vpop.f32.mrb[38].mxu1 }
 0xa83   :  { %19823 = vst [vmem:[#allocation318_spill] sm:$0xff] %v17077_v13  ;;  %9766 = vst [vmem:[#allocation11 + $0x270] sm:$0xff] %v17077_v13  ;;  %v17082_v9 = vpop.f32.mrb[39].mxu1  ;;  %v19831_v13 = vpack.c.bf16 %v15727_v56, %v19830_v54  ;;  %v19837_v54 = vld [vmem:[#allocation89_spill] sm:$0xff] }
 0xa84   :  { %19824 = vst [vmem:[#allocation319_spill] sm:$0xff] %v17082_v9  ;;  %9767 = vst [vmem:[#allocation11 + $0x278] sm:$0xff] %v17082_v9 }
 0xa85   :  { %9192 = vmatmul.mubr.bf16.gmra.mrb[144].mxu1 %v19825_v15 }
 0xa86   :  { %9201 = vmatprep.mubr.bf16.mxu1 %v19453_v4 }
 0xa88   :  { %v17094_v8 = vpop.f32.mrb[40].mxu1 }
 0xa89   :  { %19826 = vst [vmem:[#allocation320_spill] sm:$0xff] %v17094_v8  ;;  %9768 = vst [vmem:[#allocation11 + $0x290] sm:$0xff] %v17094_v8  ;;  %v17098_v1 = vpop.f32.mrb[41].mxu1 }
 0xa8a   :  { %19827 = vst [vmem:[#allocation321_spill] sm:$0xff] %v17098_v1  ;;  %9769 = vst [vmem:[#allocation11 + $0x298] sm:$0xff] %v17098_v1  ;;  %v17101_v63 = vpop.f32.mrb[42].mxu1 }
 0xa8b   :  { %19828 = vst [vmem:[#allocation322_spill] sm:$0xff] %v17101_v63  ;;  %9770 = vst [vmem:[#allocation11 + $0x2b0] sm:$0xff] %v17101_v63  ;;  %v17106_v59 = vpop.f32.mrb[43].mxu1 }
 0xa8c   :  { %19829 = vst [vmem:[#allocation323_spill] sm:$0xff] %v17106_v59  ;;  %9771 = vst [vmem:[#allocation11 + $0x2b8] sm:$0xff] %v17106_v59 }
 0xa8d   :  { %9202 = vmatmul.mubr.bf16.gmra.mrb[148].mxu1 %v19831_v13  ;;  %v19836_v13 = vld [vmem:[#allocation92_spill] sm:$0xff] }
 0xa8e   :  { %9211 = vmatprep.mubr.bf16.mxu1 %v19453_v4  ;;  %v19838_v63 = vpack.c.bf16 %v19836_v13, %v19837_v54  ;;  %v19843_v13 = vld [vmem:[#allocation98_spill] sm:$0xff]  ;;  %v19844_v54 = vld [vmem:[#allocation95_spill] sm:$0xff] }
 0xa90   :  { %v17115_v26 = vpop.f32.mrb[44].mxu1 }
 0xa91   :  { %19832 = vst [vmem:[#allocation84_spill] sm:$0xff] %v17115_v26  ;;  %9772 = vst [vmem:[#allocation11 + $0x2d0] sm:$0xff] %v17115_v26  ;;  %v17118_v9 = vpop.f32.mrb[45].mxu1 }
 0xa92   :  { %19833 = vst [vmem:[#allocation324_spill] sm:$0xff] %v17118_v9  ;;  %9773 = vst [vmem:[#allocation11 + $0x2d8] sm:$0xff] %v17118_v9  ;;  %v17121_v25 = vpop.f32.mrb[46].mxu1 }
 0xa93   :  { %19834 = vst [vmem:[#allocation325_spill] sm:$0xff] %v17121_v25  ;;  %9774 = vst [vmem:[#allocation11 + $0x2f0] sm:$0xff] %v17121_v25  ;;  %v17126_v8 = vpop.f32.mrb[47].mxu1  ;;  %v19845_v25 = vpack.c.bf16 %v19843_v13, %v19844_v54  ;;  %v19850_v13 = vld [vmem:[#allocation104_spill] sm:$0xff]  ;;  %v19851_v54 = vld [vmem:[#allocation101_spill] sm:$0xff] }
 0xa94   :  { %19835 = vst [vmem:[#allocation326_spill] sm:$0xff] %v17126_v8  ;;  %9775 = vst [vmem:[#allocation11 + $0x2f8] sm:$0xff] %v17126_v8 }
 0xa95   :  { %9212 = vmatmul.mubr.bf16.gmra.mrb[152].mxu1 %v19838_v63 }
 0xa96   :  { %9221 = vmatprep.mubr.bf16.mxu1 %v19453_v4 }
 0xa98   :  { %v17135_v1 = vpop.f32.mrb[48].mxu1 }
 0xa99   :  { %19839 = vst [vmem:[#allocation92_spill] sm:$0xff] %v17135_v1  ;;  %9776 = vst [vmem:[#allocation11 + $0x310] sm:$0xff] %v17135_v1  ;;  %v17138_v59 = vpop.f32.mrb[49].mxu1 }
 0xa9a   :  { %19840 = vst [vmem:[#allocation89_spill] sm:$0xff] %v17138_v59  ;;  %9777 = vst [vmem:[#allocation11 + $0x318] sm:$0xff] %v17138_v59  ;;  %v17141_v15 = vpop.f32.mrb[50].mxu1  ;;  %v17174_v59 = vld [vmem:[#allocation9 + $0x70] sm:$0xff]  }
 0xa9b   :  { %19841 = vst [vmem:[#allocation327_spill] sm:$0xff] %v17141_v15  ;;  %9778 = vst [vmem:[#allocation11 + $0x330] sm:$0xff] %v17141_v15  ;;  %v17146_v26 = vpop.f32.mrb[51].mxu1  ;;  %v19852_v15 = vpack.c.bf16 %v19850_v13, %v19851_v54  ;;  %10269 = vmatpush1.bf16.msra.mxu1 %v17174_v59 }
 0xa9c   :  { %19842 = vst [vmem:[#allocation328_spill] sm:$0xff] %v17146_v26  ;;  %9779 = vst [vmem:[#allocation11 + $0x338] sm:$0xff] %v17146_v26  ;;  %10270 = vmatprep.subr.bf16.mxu1 %v19453_v4 }
 0xa9d   :  { %9222 = vmatmul.mubr.bf16.gmra.mrb[156].mxu1 %v19845_v25 }
 0xa9e   :  { %9231 = vmatprep.mubr.bf16.mxu1 %v19453_v4 }
 0xaa0   :  { %v17155_v9 = vpop.f32.mrb[52].mxu1 }
 0xaa1   :  { %19846 = vst [vmem:[#allocation98_spill] sm:$0xff] %v17155_v9  ;;  %9780 = vst [vmem:[#allocation11 + $0x350] sm:$0xff] %v17155_v9  ;;  %v17158_v8 = vpop.f32.mrb[53].mxu1  ;;  %v19857_v9 = vld [vmem:[#allocation110_spill] sm:$0xff] }
 0xaa2   :  { %19847 = vst [vmem:[#allocation95_spill] sm:$0xff] %v17158_v8  ;;  %9781 = vst [vmem:[#allocation11 + $0x358] sm:$0xff] %v17158_v8  ;;  %v17161_v56 = vpop.f32.mrb[54].mxu1 }
 0xaa3   :  { %19848 = vst [vmem:[#allocation329_spill] sm:$0xff] %v17161_v56  ;;  %9782 = vst [vmem:[#allocation11 + $0x370] sm:$0xff] %v17161_v56  ;;  %v17166_v1 = vpop.f32.mrb[55].mxu1  ;;  %v19858_v56 = vld [vmem:[#allocation107_spill] sm:$0xff] }
 0xaa4   :  { %19849 = vst [vmem:[#allocation330_spill] sm:$0xff] %v17166_v1  ;;  %9783 = vst [vmem:[#allocation11 + $0x378] sm:$0xff] %v17166_v1  ;;  %v19859_v8 = vpack.c.bf16 %v19857_v9, %v19858_v56  ;;  %v19865_v56 = vld [vmem:[#allocation113_spill] sm:$0xff] }
 0xaa5   :  { %9232 = vmatmul.mubr.bf16.gmra.mrb[160].mxu1 %v19852_v15 }
 0xaa6   :  { %9241 = vmatprep.mubr.bf16.mxu1 %v19453_v4 }
 0xaa8   :  { %v17178_v26 = vpop.f32.mrb[56].mxu1 }
 0xaa9   :  { %19853 = vst [vmem:[#allocation104_spill] sm:$0xff] %v17178_v26  ;;  %9784 = vst [vmem:[#allocation11 + $0x390] sm:$0xff] %v17178_v26  ;;  %v17182_v63 = vpop.f32.mrb[57].mxu1 }
 0xaaa   :  { %19854 = vst [vmem:[#allocation101_spill] sm:$0xff] %v17182_v63  ;;  %9785 = vst [vmem:[#allocation11 + $0x398] sm:$0xff] %v17182_v63  ;;  %v17185_v25 = vpop.f32.mrb[58].mxu1 }
 0xaab   :  { %19855 = vst [vmem:[#allocation331_spill] sm:$0xff] %v17185_v25  ;;  %9786 = vst [vmem:[#allocation11 + $0x3b0] sm:$0xff] %v17185_v25  ;;  %v17190_v13 = vpop.f32.mrb[59].mxu1 }
 0xaac   :  { %19856 = vst [vmem:[#allocation332_spill] sm:$0xff] %v17190_v13  ;;  %9787 = vst [vmem:[#allocation11 + $0x3b8] sm:$0xff] %v17190_v13 }
 0xaad   :  { %9242 = vmatmul.mubr.bf16.gmra.mrb[164].mxu1 %v19859_v8  ;;  %v19864_v8 = vld [vmem:[#allocation116_spill] sm:$0xff] }
 0xaae   :  { %9251 = vmatprep.mubr.bf16.mxu1 %v19453_v4  ;;  %v19866_v25 = vpack.c.bf16 %v19864_v8, %v19865_v56  ;;  %v19871_v8 = vld [vmem:[#allocation122_spill] sm:$0xff]  ;;  %v19872_v56 = vld [vmem:[#allocation119_spill] sm:$0xff] }
 0xab0   :  { %v17199_v1 = vpop.f32.mrb[60].mxu1 }
 0xab1   :  { %19860 = vst [vmem:[#allocation110_spill] sm:$0xff] %v17199_v1  ;;  %9788 = vst [vmem:[#allocation11 + $0x3d0] sm:$0xff] %v17199_v1  ;;  %v17202_v41 = vpop.f32.mrb[61].mxu1 }
 0xab2   :  { %19861 = vst [vmem:[#allocation107_spill] sm:$0xff] %v17202_v41  ;;  %9789 = vst [vmem:[#allocation11 + $0x3d8] sm:$0xff] %v17202_v41  ;;  %v17205_v15 = vpop.f32.mrb[62].mxu1 }
 0xab3   :  { %19862 = vst [vmem:[#allocation333_spill] sm:$0xff] %v17205_v15  ;;  %9790 = vst [vmem:[#allocation11 + $0x3f0] sm:$0xff] %v17205_v15  ;;  %v17210_v26 = vpop.f32.mrb[63].mxu1  ;;  %v19873_v15 = vpack.c.bf16 %v19871_v8, %v19872_v56  ;;  %v19878_v8 = vld [vmem:[#allocation128_spill] sm:$0xff]  ;;  %v19879_v56 = vld [vmem:[#allocation125_spill] sm:$0xff] }
 0xab4   :  { %19863 = vst [vmem:[#allocation334_spill] sm:$0xff] %v17210_v26  ;;  %9791 = vst [vmem:[#allocation11 + $0x3f8] sm:$0xff] %v17210_v26 }
 0xab5   :  { %9252 = vmatmul.mubr.bf16.gmra.mrb[168].mxu1 %v19866_v25 }
 0xab6   :  { %9261 = vmatprep.mubr.bf16.mxu1 %v19453_v4 }
 0xab8   :  { %v17219_v63 = vpop.f32.mrb[64].mxu1 }
 0xab9   :  { %19867 = vst [vmem:[#allocation116_spill] sm:$0xff] %v17219_v63  ;;  %9792 = vst [vmem:[#allocation11 + $0x410] sm:$0xff] %v17219_v63  ;;  %v17222_v13 = vpop.f32.mrb[65].mxu1 }
 0xaba   :  { %19868 = vst [vmem:[#allocation113_spill] sm:$0xff] %v17222_v13  ;;  %9793 = vst [vmem:[#allocation11 + $0x418] sm:$0xff] %v17222_v13  ;;  %v17225_v54 = vpop.f32.mrb[66].mxu1  ;;  %v17258_v13 = vld [vmem:[#allocation9 + $0x78] sm:$0xff]  }
 0xabb   :  { %19869 = vst [vmem:[#allocation335_spill] sm:$0xff] %v17225_v54  ;;  %9794 = vst [vmem:[#allocation11 + $0x430] sm:$0xff] %v17225_v54  ;;  %v17230_v1 = vpop.f32.mrb[67].mxu1  ;;  %v19880_v54 = vpack.c.bf16 %v19878_v8, %v19879_v56  ;;  %10271 = vmatpush1.bf16.msra.mxu1 %v17258_v13 }
 0xabc   :  { %19870 = vst [vmem:[#allocation336_spill] sm:$0xff] %v17230_v1  ;;  %9795 = vst [vmem:[#allocation11 + $0x438] sm:$0xff] %v17230_v1  ;;  %10913 = vmatprep.subr.bf16.mxu1 %v19453_v4 }
 0xabd   :  { %9262 = vmatmul.mubr.bf16.gmra.mrb[172].mxu1 %v19873_v15 }
 0xabe   :  { %9271 = vmatprep.mubr.bf16.mxu1 %v19453_v4 }
 0xac0   :  { %v17239_v41 = vpop.f32.mrb[68].mxu1 }
 0xac1   :  { %19874 = vst [vmem:[#allocation122_spill] sm:$0xff] %v17239_v41  ;;  %9796 = vst [vmem:[#allocation11 + $0x450] sm:$0xff] %v17239_v41  ;;  %v17242_v26 = vpop.f32.mrb[69].mxu1  ;;  %v19885_v41 = vld [vmem:[#allocation134_spill] sm:$0xff] }
 0xac2   :  { %19875 = vst [vmem:[#allocation119_spill] sm:$0xff] %v17242_v26  ;;  %9797 = vst [vmem:[#allocation11 + $0x458] sm:$0xff] %v17242_v26  ;;  %v17245_v9 = vpop.f32.mrb[70].mxu1 }
 0xac3   :  { %19876 = vst [vmem:[#allocation337_spill] sm:$0xff] %v17245_v9  ;;  %9798 = vst [vmem:[#allocation11 + $0x470] sm:$0xff] %v17245_v9  ;;  %v17250_v63 = vpop.f32.mrb[71].mxu1  ;;  %v19886_v9 = vld [vmem:[#allocation131_spill] sm:$0xff] }
 0xac4   :  { %19877 = vst [vmem:[#allocation338_spill] sm:$0xff] %v17250_v63  ;;  %9799 = vst [vmem:[#allocation11 + $0x478] sm:$0xff] %v17250_v63  ;;  %v19887_v26 = vpack.c.bf16 %v19885_v41, %v19886_v9  ;;  %v19892_v41 = vld [vmem:[#allocation140_spill] sm:$0xff]  ;;  %v19893_v9 = vld [vmem:[#allocation137_spill] sm:$0xff] }
 0xac5   :  { %9272 = vmatmul.mubr.bf16.gmra.mrb[176].mxu1 %v19880_v54 }
 0xac6   :  { %9281 = vmatprep.mubr.bf16.mxu1 %v19453_v4 }
 0xac8   :  { %v17262_v1 = vpop.f32.mrb[72].mxu1 }
 0xac9   :  { %19881 = vst [vmem:[#allocation128_spill] sm:$0xff] %v17262_v1  ;;  %9800 = vst [vmem:[#allocation11 + $0x490] sm:$0xff] %v17262_v1  ;;  %v17266_v25 = vpop.f32.mrb[73].mxu1 }
 0xaca   :  { %19882 = vst [vmem:[#allocation125_spill] sm:$0xff] %v17266_v25  ;;  %9801 = vst [vmem:[#allocation11 + $0x498] sm:$0xff] %v17266_v25  ;;  %v17269_v15 = vpop.f32.mrb[74].mxu1 }
 0xacb   :  { %19883 = vst [vmem:[#allocation339_spill] sm:$0xff] %v17269_v15  ;;  %9802 = vst [vmem:[#allocation11 + $0x4b0] sm:$0xff] %v17269_v15  ;;  %v17274_v8 = vpop.f32.mrb[75].mxu1  ;;  %v19894_v15 = vpack.c.bf16 %v19892_v41, %v19893_v9  ;;  %v19899_v41 = vld [vmem:[#allocation146_spill] sm:$0xff]  ;;  %v19900_v9 = vld [vmem:[#allocation143_spill] sm:$0xff] }
 0xacc   :  { %19884 = vst [vmem:[#allocation340_spill] sm:$0xff] %v17274_v8  ;;  %9803 = vst [vmem:[#allocation11 + $0x4b8] sm:$0xff] %v17274_v8 }
 0xacd   :  { %9282 = vmatmul.mubr.bf16.gmra.mrb[180].mxu1 %v19887_v26 }
 0xace   :  { %9291 = vmatprep.mubr.bf16.mxu1 %v19453_v4 }
 0xad0   :  { %v17283_v63 = vpop.f32.mrb[76].mxu1 }
 0xad1   :  { %19888 = vst [vmem:[#allocation134_spill] sm:$0xff] %v17283_v63  ;;  %9804 = vst [vmem:[#allocation11 + $0x4d0] sm:$0xff] %v17283_v63  ;;  %v17286_v11 = vpop.f32.mrb[77].mxu1 }
 0xad2   :  { %19889 = vst [vmem:[#allocation131_spill] sm:$0xff] %v17286_v11  ;;  %9805 = vst [vmem:[#allocation11 + $0x4d8] sm:$0xff] %v17286_v11  ;;  %v17289_v54 = vpop.f32.mrb[78].mxu1 }
 0xad3   :  { %19890 = vst [vmem:[#allocation341_spill] sm:$0xff] %v17289_v54  ;;  %9806 = vst [vmem:[#allocation11 + $0x4f0] sm:$0xff] %v17289_v54  ;;  %v17294_v1 = vpop.f32.mrb[79].mxu1  ;;  %v19901_v54 = vpack.c.bf16 %v19899_v41, %v19900_v9  ;;  %v19906_v41 = vld [vmem:[#allocation152_spill] sm:$0xff]  ;;  %v19907_v9 = vld [vmem:[#allocation149_spill] sm:$0xff] }
 0xad4   :  { %19891 = vst [vmem:[#allocation342_spill] sm:$0xff] %v17294_v1  ;;  %9807 = vst [vmem:[#allocation11 + $0x4f8] sm:$0xff] %v17294_v1 }
 0xad5   :  { %9292 = vmatmul.mubr.bf16.gmra.mrb[184].mxu1 %v19894_v15 }
 0xad6   :  { %9301 = vmatprep.mubr.bf16.mxu1 %v19453_v4 }
 0xad8   :  { %v17303_v25 = vpop.f32.mrb[80].mxu1 }
 0xad9   :  { %19895 = vst [vmem:[#allocation140_spill] sm:$0xff] %v17303_v25  ;;  %9808 = vst [vmem:[#allocation11 + $0x510] sm:$0xff] %v17303_v25  ;;  %v17306_v8 = vpop.f32.mrb[81].mxu1 }
 0xada   :  { %19896 = vst [vmem:[#allocation137_spill] sm:$0xff] %v17306_v8  ;;  %9809 = vst [vmem:[#allocation11 + $0x518] sm:$0xff] %v17306_v8  ;;  %v17309_v56 = vpop.f32.mrb[82].mxu1 }
 0xadb   :  { %19897 = vst [vmem:[#allocation343_spill] sm:$0xff] %v17309_v56  ;;  %9810 = vst [vmem:[#allocation11 + $0x530] sm:$0xff] %v17309_v56  ;;  %v17314_v63 = vpop.f32.mrb[83].mxu1  ;;  %v19908_v56 = vpack.c.bf16 %v19906_v41, %v19907_v9  ;;  %v19913_v41 = vld [vmem:[#allocation158_spill] sm:$0xff]  ;;  %v19914_v9 = vld [vmem:[#allocation155_spill] sm:$0xff] }
 0xadc   :  { %19898 = vst [vmem:[#allocation344_spill] sm:$0xff] %v17314_v63  ;;  %9811 = vst [vmem:[#allocation11 + $0x538] sm:$0xff] %v17314_v63 }
 0xadd   :  { %9302 = vmatmul.mubr.bf16.gmra.mrb[188].mxu1 %v19901_v54 }
 0xade   :  { %9311 = vmatprep.mubr.bf16.mxu1 %v19453_v4 }
 0xae0   :  { %v17323_v11 = vpop.f32.mrb[84].mxu1 }
 0xae1   :  { %19902 = vst [vmem:[#allocation146_spill] sm:$0xff] %v17323_v11  ;;  %9812 = vst [vmem:[#allocation11 + $0x550] sm:$0xff] %v17323_v11  ;;  %v17326_v1 = vpop.f32.mrb[85].mxu1 }
 0xae2   :  { %19903 = vst [vmem:[#allocation143_spill] sm:$0xff] %v17326_v1  ;;  %9813 = vst [vmem:[#allocation11 + $0x558] sm:$0xff] %v17326_v1  ;;  %v17329_v26 = vpop.f32.mrb[86].mxu1 }
 0xae3   :  { %19904 = vst [vmem:[#allocation345_spill] sm:$0xff] %v17329_v26  ;;  %9814 = vst [vmem:[#allocation11 + $0x570] sm:$0xff] %v17329_v26  ;;  %v17334_v25 = vpop.f32.mrb[87].mxu1  ;;  %v19915_v26 = vpack.c.bf16 %v19913_v41, %v19914_v9  ;;  %v19920_v41 = vld [vmem:[#allocation164_spill] sm:$0xff]  ;;  %v19921_v9 = vld [vmem:[#allocation161_spill] sm:$0xff] }
 0xae4   :  { %19905 = vst [vmem:[#allocation346_spill] sm:$0xff] %v17334_v25  ;;  %9815 = vst [vmem:[#allocation11 + $0x578] sm:$0xff] %v17334_v25 }
 0xae5   :  { %9312 = vmatmul.mubr.bf16.gmra.mrb[192].mxu1 %v19908_v56 }
 0xae6   :  { %9321 = vmatprep.mubr.bf16.mxu1 %v19453_v4 }
 0xae8   :  { %v17343_v8 = vpop.f32.mrb[88].mxu1 }
 0xae9   :  { %19909 = vst [vmem:[#allocation152_spill] sm:$0xff] %v17343_v8  ;;  %9816 = vst [vmem:[#allocation11 + $0x590] sm:$0xff] %v17343_v8  ;;  %v17346_v63 = vpop.f32.mrb[89].mxu1 }
 0xaea   :  { %19910 = vst [vmem:[#allocation149_spill] sm:$0xff] %v17346_v63  ;;  %9817 = vst [vmem:[#allocation11 + $0x598] sm:$0xff] %v17346_v63  ;;  %v17349_v15 = vpop.f32.mrb[90].mxu1 }
 0xaeb   :  { %19911 = vst [vmem:[#allocation347_spill] sm:$0xff] %v17349_v15  ;;  %9818 = vst [vmem:[#allocation11 + $0x5b0] sm:$0xff] %v17349_v15  ;;  %v17354_v11 = vpop.f32.mrb[91].mxu1  ;;  %v19922_v15 = vpack.c.bf16 %v19920_v41, %v19921_v9  ;;  %v19927_v41 = vld [vmem:[#allocation170_spill] sm:$0xff]  ;;  %v19928_v9 = vld [vmem:[#allocation167_spill] sm:$0xff] }
 0xaec   :  { %19912 = vst [vmem:[#allocation348_spill] sm:$0xff] %v17354_v11  ;;  %9819 = vst [vmem:[#allocation11 + $0x5b8] sm:$0xff] %v17354_v11 }
 0xaed   :  { %9322 = vmatmul.mubr.bf16.gmra.mrb[196].mxu1 %v19915_v26 }
 0xaee   :  { %9331 = vmatprep.mubr.bf16.mxu1 %v19453_v4 }
 0xaf0   :  { %v17363_v1 = vpop.f32.mrb[92].mxu1 }
 0xaf1   :  { %19916 = vst [vmem:[#allocation158_spill] sm:$0xff] %v17363_v1  ;;  %9820 = vst [vmem:[#allocation11 + $0x5d0] sm:$0xff] %v17363_v1  ;;  %v17366_v25 = vpop.f32.mrb[93].mxu1 }
 0xaf2   :  { %19917 = vst [vmem:[#allocation155_spill] sm:$0xff] %v17366_v25  ;;  %9821 = vst [vmem:[#allocation11 + $0x5d8] sm:$0xff] %v17366_v25  ;;  %v17369_v54 = vpop.f32.mrb[94].mxu1 }
 0xaf3   :  { %19918 = vst [vmem:[#allocation349_spill] sm:$0xff] %v17369_v54  ;;  %9822 = vst [vmem:[#allocation11 + $0x5f0] sm:$0xff] %v17369_v54  ;;  %v17374_v8 = vpop.f32.mrb[95].mxu1  ;;  %v19929_v54 = vpack.c.bf16 %v19927_v41, %v19928_v9  ;;  %v19934_v41 = vld [vmem:[#allocation176_spill] sm:$0xff]  ;;  %v19935_v9 = vld [vmem:[#allocation173_spill] sm:$0xff] }
 0xaf4   :  { %19919 = vst [vmem:[#allocation350_spill] sm:$0xff] %v17374_v8  ;;  %9823 = vst [vmem:[#allocation11 + $0x5f8] sm:$0xff] %v17374_v8 }
 0xaf5   :  { %9332 = vmatmul.mubr.bf16.gmra.mrb[200].mxu1 %v19922_v15 }
 0xaf6   :  { %9341 = vmatprep.mubr.bf16.mxu1 %v19453_v4 }
 0xaf8   :  { %v17383_v63 = vpop.f32.mrb[96].mxu1 }
 0xaf9   :  { %19923 = vst [vmem:[#allocation164_spill] sm:$0xff] %v17383_v63  ;;  %9824 = vst [vmem:[#allocation11 + $0x610] sm:$0xff] %v17383_v63  ;;  %v17386_v11 = vpop.f32.mrb[97].mxu1 }
 0xafa   :  { %19924 = vst [vmem:[#allocation161_spill] sm:$0xff] %v17386_v11  ;;  %9825 = vst [vmem:[#allocation11 + $0x618] sm:$0xff] %v17386_v11  ;;  %v17389_v56 = vpop.f32.mrb[98].mxu1 }
 0xafb   :  { %19925 = vst [vmem:[#allocation351_spill] sm:$0xff] %v17389_v56  ;;  %9826 = vst [vmem:[#allocation11 + $0x630] sm:$0xff] %v17389_v56  ;;  %v17394_v1 = vpop.f32.mrb[99].mxu1  ;;  %v19936_v56 = vpack.c.bf16 %v19934_v41, %v19935_v9  ;;  %v19941_v41 = vld [vmem:[#allocation182_spill] sm:$0xff]  ;;  %v19942_v9 = vld [vmem:[#allocation179_spill] sm:$0xff] }
 0xafc   :  { %19926 = vst [vmem:[#allocation352_spill] sm:$0xff] %v17394_v1  ;;  %9827 = vst [vmem:[#allocation11 + $0x638] sm:$0xff] %v17394_v1 }
 0xafd   :  { %9342 = vmatmul.mubr.bf16.gmra.mrb[204].mxu1 %v19929_v54 }
 0xafe   :  { %9351 = vmatprep.mubr.bf16.mxu1 %v19453_v4 }
 0xb00   :  { %v17403_v25 = vpop.f32.mrb[100].mxu1 }
 0xb01   :  { %19930 = vst [vmem:[#allocation170_spill] sm:$0xff] %v17403_v25  ;;  %9828 = vst [vmem:[#allocation11 + $0x650] sm:$0xff] %v17403_v25  ;;  %v17406_v8 = vpop.f32.mrb[101].mxu1 }
 0xb02   :  { %19931 = vst [vmem:[#allocation167_spill] sm:$0xff] %v17406_v8  ;;  %9829 = vst [vmem:[#allocation11 + $0x658] sm:$0xff] %v17406_v8  ;;  %v17409_v26 = vpop.f32.mrb[102].mxu1 }
 0xb03   :  { %19932 = vst [vmem:[#allocation353_spill] sm:$0xff] %v17409_v26  ;;  %9830 = vst [vmem:[#allocation11 + $0x670] sm:$0xff] %v17409_v26  ;;  %v17414_v63 = vpop.f32.mrb[103].mxu1  ;;  %v19943_v26 = vpack.c.bf16 %v19941_v41, %v19942_v9  ;;  %v19948_v41 = vld [vmem:[#allocation188_spill] sm:$0xff]  ;;  %v19949_v9 = vld [vmem:[#allocation185_spill] sm:$0xff] }
 0xb04   :  { %19933 = vst [vmem:[#allocation354_spill] sm:$0xff] %v17414_v63  ;;  %9831 = vst [vmem:[#allocation11 + $0x678] sm:$0xff] %v17414_v63 }
 0xb05   :  { %9352 = vmatmul.mubr.bf16.gmra.mrb[208].mxu1 %v19936_v56 }
 0xb06   :  { %9361 = vmatprep.mubr.bf16.mxu1 %v19453_v4 }
 0xb08   :  { %v17423_v11 = vpop.f32.mrb[104].mxu1 }
 0xb09   :  { %19937 = vst [vmem:[#allocation176_spill] sm:$0xff] %v17423_v11  ;;  %9832 = vst [vmem:[#allocation11 + $0x690] sm:$0xff] %v17423_v11  ;;  %v17426_v1 = vpop.f32.mrb[105].mxu1 }
 0xb0a   :  { %19938 = vst [vmem:[#allocation173_spill] sm:$0xff] %v17426_v1  ;;  %9833 = vst [vmem:[#allocation11 + $0x698] sm:$0xff] %v17426_v1  ;;  %v17429_v15 = vpop.f32.mrb[106].mxu1 }
 0xb0b   :  { %19939 = vst [vmem:[#allocation355_spill] sm:$0xff] %v17429_v15  ;;  %9834 = vst [vmem:[#allocation11 + $0x6b0] sm:$0xff] %v17429_v15  ;;  %v17434_v25 = vpop.f32.mrb[107].mxu1  ;;  %v19950_v15 = vpack.c.bf16 %v19948_v41, %v19949_v9  ;;  %v19955_v41 = vld [vmem:[#allocation194_spill] sm:$0xff]  ;;  %v19956_v9 = vld [vmem:[#allocation191_spill] sm:$0xff] }
 0xb0c   :  { %19940 = vst [vmem:[#allocation356_spill] sm:$0xff] %v17434_v25  ;;  %9835 = vst [vmem:[#allocation11 + $0x6b8] sm:$0xff] %v17434_v25 }
 0xb0d   :  { %9362 = vmatmul.mubr.bf16.gmra.mrb[212].mxu1 %v19943_v26 }
 0xb0e   :  { %9371 = vmatprep.mubr.bf16.mxu1 %v19453_v4 }
 0xb10   :  { %v17443_v8 = vpop.f32.mrb[108].mxu1 }
 0xb11   :  { %19944 = vst [vmem:[#allocation182_spill] sm:$0xff] %v17443_v8  ;;  %9836 = vst [vmem:[#allocation11 + $0x6d0] sm:$0xff] %v17443_v8  ;;  %v17446_v63 = vpop.f32.mrb[109].mxu1 }
 0xb12   :  { %19945 = vst [vmem:[#allocation179_spill] sm:$0xff] %v17446_v63  ;;  %9837 = vst [vmem:[#allocation11 + $0x6d8] sm:$0xff] %v17446_v63  ;;  %v17449_v54 = vpop.f32.mrb[110].mxu1 }
 0xb13   :  { %19946 = vst [vmem:[#allocation357_spill] sm:$0xff] %v17449_v54  ;;  %9838 = vst [vmem:[#allocation11 + $0x6f0] sm:$0xff] %v17449_v54  ;;  %v17454_v11 = vpop.f32.mrb[111].mxu1  ;;  %v19957_v54 = vpack.c.bf16 %v19955_v41, %v19956_v9  ;;  %v19962_v41 = vld [vmem:[#allocation200_spill] sm:$0xff]  ;;  %v19963_v9 = vld [vmem:[#allocation197_spill] sm:$0xff] }
 0xb14   :  { %19947 = vst [vmem:[#allocation358_spill] sm:$0xff] %v17454_v11  ;;  %9839 = vst [vmem:[#allocation11 + $0x6f8] sm:$0xff] %v17454_v11 }
 0xb15   :  { %9372 = vmatmul.mubr.bf16.gmra.mrb[216].mxu1 %v19950_v15 }
 0xb16   :  { %9381 = vmatprep.mubr.bf16.mxu1 %v19453_v4 }
 0xb18   :  { %v17463_v1 = vpop.f32.mrb[112].mxu1 }
 0xb19   :  { %19951 = vst [vmem:[#allocation188_spill] sm:$0xff] %v17463_v1  ;;  %9840 = vst [vmem:[#allocation11 + $0x710] sm:$0xff] %v17463_v1  ;;  %v17466_v25 = vpop.f32.mrb[113].mxu1 }
 0xb1a   :  { %19952 = vst [vmem:[#allocation185_spill] sm:$0xff] %v17466_v25  ;;  %9841 = vst [vmem:[#allocation11 + $0x718] sm:$0xff] %v17466_v25  ;;  %v17469_v56 = vpop.f32.mrb[114].mxu1 }
 0xb1b   :  { %19953 = vst [vmem:[#allocation359_spill] sm:$0xff] %v17469_v56  ;;  %9842 = vst [vmem:[#allocation11 + $0x730] sm:$0xff] %v17469_v56  ;;  %v17474_v8 = vpop.f32.mrb[115].mxu1  ;;  %v19964_v56 = vpack.c.bf16 %v19962_v41, %v19963_v9  ;;  %v19969_v41 = vld [vmem:[#allocation206_spill] sm:$0xff]  ;;  %v19970_v9 = vld [vmem:[#allocation203_spill] sm:$0xff] }
 0xb1c   :  { %19954 = vst [vmem:[#allocation360_spill] sm:$0xff] %v17474_v8  ;;  %9843 = vst [vmem:[#allocation11 + $0x738] sm:$0xff] %v17474_v8 }
 0xb1d   :  { %9382 = vmatmul.mubr.bf16.gmra.mrb[220].mxu1 %v19957_v54 }
 0xb1e   :  { %9391 = vmatprep.mubr.bf16.mxu1 %v19453_v4 }
 0xb20   :  { %v17483_v63 = vpop.f32.mrb[116].mxu1 }
 0xb21   :  { %19958 = vst [vmem:[#allocation194_spill] sm:$0xff] %v17483_v63  ;;  %9844 = vst [vmem:[#allocation11 + $0x750] sm:$0xff] %v17483_v63  ;;  %v17486_v11 = vpop.f32.mrb[117].mxu1 }
 0xb22   :  { %19959 = vst [vmem:[#allocation191_spill] sm:$0xff] %v17486_v11  ;;  %9845 = vst [vmem:[#allocation11 + $0x758] sm:$0xff] %v17486_v11  ;;  %v17489_v26 = vpop.f32.mrb[118].mxu1 }
 0xb23   :  { %19960 = vst [vmem:[#allocation361_spill] sm:$0xff] %v17489_v26  ;;  %9846 = vst [vmem:[#allocation11 + $0x770] sm:$0xff] %v17489_v26  ;;  %v17494_v1 = vpop.f32.mrb[119].mxu1  ;;  %v19971_v26 = vpack.c.bf16 %v19969_v41, %v19970_v9  ;;  %v19976_v41 = vld [vmem:[#allocation212_spill] sm:$0xff]  ;;  %v19977_v9 = vld [vmem:[#allocation209_spill] sm:$0xff] }
 0xb24   :  { %19961 = vst [vmem:[#allocation362_spill] sm:$0xff] %v17494_v1  ;;  %9847 = vst [vmem:[#allocation11 + $0x778] sm:$0xff] %v17494_v1 }
 0xb25   :  { %9392 = vmatmul.mubr.bf16.gmra.mrb[224].mxu1 %v19964_v56 }
 0xb26   :  { %9401 = vmatprep.mubr.bf16.mxu1 %v19453_v4 }
 0xb28   :  { %v17503_v25 = vpop.f32.mrb[120].mxu1 }
 0xb29   :  { %19965 = vst [vmem:[#allocation200_spill] sm:$0xff] %v17503_v25  ;;  %9848 = vst [vmem:[#allocation11 + $0x790] sm:$0xff] %v17503_v25  ;;  %v17506_v8 = vpop.f32.mrb[121].mxu1 }
 0xb2a   :  { %19966 = vst [vmem:[#allocation197_spill] sm:$0xff] %v17506_v8  ;;  %9849 = vst [vmem:[#allocation11 + $0x798] sm:$0xff] %v17506_v8  ;;  %v17509_v15 = vpop.f32.mrb[122].mxu1 }
 0xb2b   :  { %19967 = vst [vmem:[#allocation363_spill] sm:$0xff] %v17509_v15  ;;  %9850 = vst [vmem:[#allocation11 + $0x7b0] sm:$0xff] %v17509_v15  ;;  %v17514_v63 = vpop.f32.mrb[123].mxu1  ;;  %v19978_v15 = vpack.c.bf16 %v19976_v41, %v19977_v9  ;;  %v19983_v41 = vld [vmem:[#allocation218_spill] sm:$0xff]  ;;  %v19984_v9 = vld [vmem:[#allocation215_spill] sm:$0xff] }
 0xb2c   :  { %19968 = vst [vmem:[#allocation364_spill] sm:$0xff] %v17514_v63  ;;  %9851 = vst [vmem:[#allocation11 + $0x7b8] sm:$0xff] %v17514_v63 }
 0xb2d   :  { %9402 = vmatmul.mubr.bf16.gmra.mrb[228].mxu1 %v19971_v26 }
 0xb2e   :  { %9411 = vmatprep.mubr.bf16.mxu1 %v19453_v4 }
 0xb30   :  { %v17523_v11 = vpop.f32.mrb[124].mxu1 }
 0xb31   :  { %19972 = vst [vmem:[#allocation206_spill] sm:$0xff] %v17523_v11  ;;  %9852 = vst [vmem:[#allocation11 + $0x7d0] sm:$0xff] %v17523_v11  ;;  %v17526_v1 = vpop.f32.mrb[125].mxu1 }
 0xb32   :  { %19973 = vst [vmem:[#allocation203_spill] sm:$0xff] %v17526_v1  ;;  %9853 = vst [vmem:[#allocation11 + $0x7d8] sm:$0xff] %v17526_v1  ;;  %v17529_v54 = vpop.f32.mrb[126].mxu1 }
 0xb33   :  { %19974 = vst [vmem:[#allocation365_spill] sm:$0xff] %v17529_v54  ;;  %9854 = vst [vmem:[#allocation11 + $0x7f0] sm:$0xff] %v17529_v54  ;;  %v17534_v25 = vpop.f32.mrb[127].mxu1  ;;  %v19985_v54 = vpack.c.bf16 %v19983_v41, %v19984_v9  ;;  %v19990_v41 = vld [vmem:[#allocation224_spill] sm:$0xff]  ;;  %v19991_v9 = vld [vmem:[#allocation221_spill] sm:$0xff] }
 0xb34   :  { %19975 = vst [vmem:[#allocation366_spill] sm:$0xff] %v17534_v25  ;;  %9855 = vst [vmem:[#allocation11 + $0x7f8] sm:$0xff] %v17534_v25 }
 0xb35   :  { %9412 = vmatmul.mubr.bf16.gmra.mrb[232].mxu1 %v19978_v15 }
 0xb36   :  { %9421 = vmatprep.mubr.bf16.mxu1 %v19453_v4 }
 0xb38   :  { %v17543_v8 = vpop.f32.mrb[128].mxu1 }
 0xb39   :  { %19979 = vst [vmem:[#allocation212_spill] sm:$0xff] %v17543_v8  ;;  %9856 = vst [vmem:[#allocation11 + $0x810] sm:$0xff] %v17543_v8  ;;  %v17546_v63 = vpop.f32.mrb[129].mxu1 }
 0xb3a   :  { %19980 = vst [vmem:[#allocation209_spill] sm:$0xff] %v17546_v63  ;;  %9857 = vst [vmem:[#allocation11 + $0x818] sm:$0xff] %v17546_v63  ;;  %v17549_v56 = vpop.f32.mrb[130].mxu1 }
 0xb3b   :  { %19981 = vst [vmem:[#allocation367_spill] sm:$0xff] %v17549_v56  ;;  %9858 = vst [vmem:[#allocation11 + $0x830] sm:$0xff] %v17549_v56  ;;  %v17554_v11 = vpop.f32.mrb[131].mxu1  ;;  %v19992_v56 = vpack.c.bf16 %v19990_v41, %v19991_v9  ;;  %v19997_v41 = vld [vmem:[#allocation230_spill] sm:$0xff]  ;;  %v19998_v9 = vld [vmem:[#allocation227_spill] sm:$0xff] }
 0xb3c   :  { %19982 = vst [vmem:[#allocation368_spill] sm:$0xff] %v17554_v11  ;;  %9859 = vst [vmem:[#allocation11 + $0x838] sm:$0xff] %v17554_v11 }
 0xb3d   :  { %9422 = vmatmul.mubr.bf16.gmra.mrb[236].mxu1 %v19985_v54 }
 0xb3e   :  { %9431 = vmatprep.mubr.bf16.mxu1 %v19453_v4 }
 0xb40   :  { %v17563_v1 = vpop.f32.mrb[132].mxu1 }
 0xb41   :  { %19986 = vst [vmem:[#allocation218_spill] sm:$0xff] %v17563_v1  ;;  %9860 = vst [vmem:[#allocation11 + $0x850] sm:$0xff] %v17563_v1  ;;  %v17566_v25 = vpop.f32.mrb[133].mxu1 }
 0xb42   :  { %19987 = vst [vmem:[#allocation215_spill] sm:$0xff] %v17566_v25  ;;  %9861 = vst [vmem:[#allocation11 + $0x858] sm:$0xff] %v17566_v25  ;;  %v17569_v26 = vpop.f32.mrb[134].mxu1 }
 0xb43   :  { %19988 = vst [vmem:[#allocation369_spill] sm:$0xff] %v17569_v26  ;;  %9862 = vst [vmem:[#allocation11 + $0x870] sm:$0xff] %v17569_v26  ;;  %v17574_v8 = vpop.f32.mrb[135].mxu1  ;;  %v19999_v26 = vpack.c.bf16 %v19997_v41, %v19998_v9  ;;  %v20004_v41 = vld [vmem:[#allocation236_spill] sm:$0xff]  ;;  %v20005_v9 = vld [vmem:[#allocation233_spill] sm:$0xff] }
 0xb44   :  { %19989 = vst [vmem:[#allocation370_spill] sm:$0xff] %v17574_v8  ;;  %9863 = vst [vmem:[#allocation11 + $0x878] sm:$0xff] %v17574_v8 }
 0xb45   :  { %9432 = vmatmul.mubr.bf16.gmra.mrb[240].mxu1 %v19992_v56 }
 0xb46   :  { %9441 = vmatprep.mubr.bf16.mxu1 %v19453_v4 }
 0xb48   :  { %v17583_v63 = vpop.f32.mrb[136].mxu1 }
 0xb49   :  { %19993 = vst [vmem:[#allocation224_spill] sm:$0xff] %v17583_v63  ;;  %9864 = vst [vmem:[#allocation11 + $0x890] sm:$0xff] %v17583_v63  ;;  %v17586_v11 = vpop.f32.mrb[137].mxu1 }
 0xb4a   :  { %19994 = vst [vmem:[#allocation221_spill] sm:$0xff] %v17586_v11  ;;  %9865 = vst [vmem:[#allocation11 + $0x898] sm:$0xff] %v17586_v11  ;;  %v17589_v15 = vpop.f32.mrb[138].mxu1 }
 0xb4b   :  { %19995 = vst [vmem:[#allocation371_spill] sm:$0xff] %v17589_v15  ;;  %9866 = vst [vmem:[#allocation11 + $0x8b0] sm:$0xff] %v17589_v15  ;;  %v17594_v1 = vpop.f32.mrb[139].mxu1  ;;  %v20006_v15 = vpack.c.bf16 %v20004_v41, %v20005_v9  ;;  %v20011_v41 = vpack.c.bf16 %v16325_v21, %v16315_v36  ;;  %v20012_v9 = vld [vmem:[#allocation32_spill] sm:$0xff] }
 0xb4c   :  { %19996 = vst [vmem:[#allocation372_spill] sm:$0xff] %v17594_v1  ;;  %9867 = vst [vmem:[#allocation11 + $0x8b8] sm:$0xff] %v17594_v1 }
 0xb4d   :  { %9442 = vmatmul.mubr.bf16.gmra.mrb[244].mxu1 %v19999_v26 }
 0xb4e   :  { %9451 = vmatprep.mubr.bf16.mxu1 %v19453_v4 }
 0xb50   :  { %v17603_v25 = vpop.f32.mrb[140].mxu1 }
 0xb51   :  { %20000 = vst [vmem:[#allocation230_spill] sm:$0xff] %v17603_v25  ;;  %9868 = vst [vmem:[#allocation11 + $0x8d0] sm:$0xff] %v17603_v25  ;;  %v17606_v8 = vpop.f32.mrb[141].mxu1 }
 0xb52   :  { %20001 = vst [vmem:[#allocation227_spill] sm:$0xff] %v17606_v8  ;;  %9869 = vst [vmem:[#allocation11 + $0x8d8] sm:$0xff] %v17606_v8  ;;  %v17609_v54 = vpop.f32.mrb[142].mxu1 }
 0xb53   :  { %20002 = vst [vmem:[#allocation373_spill] sm:$0xff] %v17609_v54  ;;  %9870 = vst [vmem:[#allocation11 + $0x8f0] sm:$0xff] %v17609_v54  ;;  %v17614_v63 = vpop.f32.mrb[143].mxu1  ;;  %v20013_v54 = vld [vmem:[#allocation29_spill] sm:$0xff] }
 0xb54   :  { %20003 = vst [vmem:[#allocation374_spill] sm:$0xff] %v17614_v63  ;;  %9871 = vst [vmem:[#allocation11 + $0x8f8] sm:$0xff] %v17614_v63  ;;  %v20014_v8 = vpack.c.bf16 %v20012_v9, %v20013_v54  ;;  %v20019_v54 = vld [vmem:[#allocation30_spill] sm:$0xff] }
 0xb55   :  { %9452 = vmatmul.mubr.bf16.gmra.mrb[248].mxu1 %v20006_v15  ;;  %v20022_v15 = vld [vmem:[#allocation38_spill] sm:$0xff] }
 0xb56   :  { %9461 = vmatprep.mubr.bf16.mxu1 %v19453_v4 }
 0xb58   :  { %v17623_v11 = vpop.f32.mrb[144].mxu1 }
 0xb59   :  { %20007 = vst [vmem:[#allocation236_spill] sm:$0xff] %v17623_v11  ;;  %9872 = vst [vmem:[#allocation11 + $0x910] sm:$0xff] %v17623_v11  ;;  %v17626_v1 = vpop.f32.mrb[145].mxu1 }
 0xb5a   :  { %20008 = vst [vmem:[#allocation233_spill] sm:$0xff] %v17626_v1  ;;  %9873 = vst [vmem:[#allocation11 + $0x918] sm:$0xff] %v17626_v1  ;;  %v17629_v56 = vpop.f32.mrb[146].mxu1 }
 0xb5b   :  { %20009 = vst [vmem:[#allocation375_spill] sm:$0xff] %v17629_v56  ;;  %9874 = vst [vmem:[#allocation11 + $0x930] sm:$0xff] %v17629_v56  ;;  %v17634_v25 = vpop.f32.mrb[147].mxu1  ;;  %v20023_v56 = vld [vmem:[#allocation35_spill] sm:$0xff] }
 0xb5c   :  { %20010 = vst [vmem:[#allocation376_spill] sm:$0xff] %v17634_v25  ;;  %9875 = vst [vmem:[#allocation11 + $0x938] sm:$0xff] %v17634_v25  ;;  %v20024_v1 = vpack.c.bf16 %v20022_v15, %v20023_v56  ;;  %v14972_v25 = vld [vmem:[#allocation9] sm:$0xff]   ;;  %v20029_v15 = vld [vmem:[#allocation36_spill] sm:$0xff] }
 0xb5d   :  { %9462 = vmatmul.mubr.bf16.gmra.mrb[252].mxu1 %v20011_v41  ;;  %v20020_v41 = vld [vmem:[#allocation27_spill] sm:$0xff] }
 0xb5e   :  { %10272 = vmatprep.mubr.bf16.mxu1 %v20014_v8  ;;  %v20021_v9 = vpack.c.bf16 %v20019_v54, %v20020_v41  ;;  %v14973_v54 = vld [vmem:[#allocation9 + $0x8] sm:$0xff]   ;;  %v20030_v41 = vld [vmem:[#allocation33_spill] sm:$0xff] }
 0xb60   :  { %v17645_v63 = vpop.f32.mrb[148].mxu1 }
 0xb61   :  { %20015 = vst [vmem:[#allocation32_spill] sm:$0xff] %v17645_v63  ;;  %9876 = vst [vmem:[#allocation11 + $0x950] sm:$0xff] %v17645_v63  ;;  %v17648_v26 = vpop.f32.mrb[149].mxu1 }
 0xb62   :  { %20016 = vst [vmem:[#allocation29_spill] sm:$0xff] %v17648_v26  ;;  %9877 = vst [vmem:[#allocation11 + $0x958] sm:$0xff] %v17648_v26  ;;  %v17651_v11 = vpop.f32.mrb[150].mxu1 }
 0xb63   :  { %20017 = vst [vmem:[#allocation377_spill] sm:$0xff] %v17651_v11  ;;  %9878 = vst [vmem:[#allocation11 + $0x970] sm:$0xff] %v17651_v11  ;;  %v17656_v36 = vpop.f32.mrb[151].mxu1  ;;  %v20032_v11 = vld [vmem:[#allocation44_spill] sm:$0xff] }
 0xb64   :  { %20018 = vst [vmem:[#allocation378_spill] sm:$0xff] %v17656_v36  ;;  %9879 = vst [vmem:[#allocation11 + $0x978] sm:$0xff] %v17656_v36  ;;  %v14974_v36 = vld [vmem:[#allocation9 + $0x10] sm:$0xff]  }
 0xb65   :  { %10273 = vmatmul.mubr.bf16.vlgmr.msra.gmra.mrb[0].mxu1 %v20021_v9  ;;  %v20031_v9 = vpack.c.bf16 %v20029_v15, %v20030_v41  ;;  %v14975_v15 = vld [vmem:[#allocation9 + $0x18] sm:$0xff]  }
 0xb66   :  { %10280 = vmatprep.mubr.bf16.mxu1 %v20024_v1  ;;  %10914 = vmatpush1.bf16.msra.mxu1 %v14972_v25  ;;  %v20039_v41 = vld [vmem:[#allocation42_spill] sm:$0xff] }
 0xb67   :  { %10915 = vmatprep.subr.bf16.mxu1 %v19453_v4 }
 0xb68   :  { %v17668_v21 = vpop.f32.mrb[152].mxu1 }
 0xb69   :  { %20025 = vst [vmem:[#allocation30_spill] sm:$0xff] %v17668_v21  ;;  %9880 = vst [vmem:[#allocation11 + $0x990] sm:$0xff] %v17668_v21  ;;  %v17671_v63 = vpop.f32.mrb[153].mxu1 }
 0xb6a   :  { %20026 = vst [vmem:[#allocation27_spill] sm:$0xff] %v17671_v63  ;;  %9881 = vst [vmem:[#allocation11 + $0x998] sm:$0xff] %v17671_v63  ;;  %v17674_v8 = vpop.f32.mrb[154].mxu1  ;;  %10916 = vmatpush1.bf16.msra.mxu1 %v14973_v54  ;;  %v20033_v54 = vld [vmem:[#allocation41_spill] sm:$0xff] }
 0xb6b   :  { %20027 = vst [vmem:[#allocation38_spill] sm:$0xff] %v17674_v8  ;;  %9882 = vst [vmem:[#allocation11 + $0x9b0] sm:$0xff] %v17674_v8  ;;  %v17679_v25 = vpop.f32.mrb[155].mxu1  ;;  %10917 = vmatprep.subr.bf16.mxu1 %v19453_v4  ;;  %v20034_v26 = vpack.c.bf16 %v20032_v11, %v20033_v54  ;;  %v20042_v8 = vld [vmem:[#allocation50_spill] sm:$0xff] }
 0xb6c   :  { %20028 = vst [vmem:[#allocation35_spill] sm:$0xff] %v17679_v25  ;;  %9883 = vst [vmem:[#allocation11 + $0x9b8] sm:$0xff] %v17679_v25  ;;  %v14976_v25 = vld [vmem:[#allocation9 + $0x20] sm:$0xff]  }
 0xb6d   :  { %10281 = vmatmul.mubr.bf16.gmra.mrb[4].mxu1 %v20031_v9  ;;  %v20040_v9 = vld [vmem:[#allocation39_spill] sm:$0xff] }
 0xb6e   :  { %10288 = vmatprep.mubr.bf16.mxu1 %v20034_v26  ;;  %10918 = vmatpush1.bf16.msra.mxu1 %v14974_v36  ;;  %v20041_v54 = vpack.c.bf16 %v20039_v41, %v20040_v9  ;;  %v14977_v41 = vld [vmem:[#allocation9 + $0x28] sm:$0xff]  }
 0xb6f   :  { %10919 = vmatprep.subr.bf16.mxu1 %v19453_v4  ;;  %v20049_v9 = vld [vmem:[#allocation48_spill] sm:$0xff] }
 0xb70   :  { %v17692_v1 = vpop.f32.mrb[156].mxu1 }
 0xb71   :  { %20035 = vst [vmem:[#allocation36_spill] sm:$0xff] %v17692_v1  ;;  %9884 = vst [vmem:[#allocation11 + $0x9d0] sm:$0xff] %v17692_v1  ;;  %v17695_v21 = vpop.f32.mrb[157].mxu1 }
 0xb72   :  { %20036 = vst [vmem:[#allocation33_spill] sm:$0xff] %v17695_v21  ;;  %9885 = vst [vmem:[#allocation11 + $0x9d8] sm:$0xff] %v17695_v21  ;;  %v17698_v56 = vpop.f32.mrb[158].mxu1  ;;  %10920 = vmatpush1.bf16.msra.mxu1 %v14975_v15  ;;  %v20043_v15 = vld [vmem:[#allocation47_spill] sm:$0xff] }
 0xb73   :  { %20037 = vst [vmem:[#allocation44_spill] sm:$0xff] %v17698_v56  ;;  %9886 = vst [vmem:[#allocation11 + $0x9f0] sm:$0xff] %v17698_v56  ;;  %v17703_v26 = vpop.f32.mrb[159].mxu1  ;;  %10921 = vmatprep.subr.bf16.mxu1 %v19453_v4  ;;  %v20044_v63 = vpack.c.bf16 %v20042_v8, %v20043_v15  ;;  %v20052_v56 = vld [vmem:[#allocation56_spill] sm:$0xff] }
 0xb74   :  { %20038 = vst [vmem:[#allocation41_spill] sm:$0xff] %v17703_v26  ;;  %9887 = vst [vmem:[#allocation11 + $0x9f8] sm:$0xff] %v17703_v26  ;;  %v14978_v26 = vld [vmem:[#allocation9 + $0x30] sm:$0xff]  }
 0xb75   :  { %10289 = vmatmul.mubr.bf16.gmra.mrb[8].mxu1 %v20041_v54  ;;  %v20050_v54 = vld [vmem:[#allocation45_spill] sm:$0xff] }
 0xb76   :  { %10296 = vmatprep.mubr.bf16.mxu1 %v20044_v63  ;;  %10922 = vmatpush1.bf16.msra.mxu1 %v14976_v25  ;;  %v20051_v15 = vpack.c.bf16 %v20049_v9, %v20050_v54  ;;  %v14979_v9 = vld [vmem:[#allocation9 + $0x38] sm:$0xff]  }
 0xb77   :  { %10923 = vmatprep.subr.bf16.mxu1 %v19453_v4  ;;  %v20059_v54 = vld [vmem:[#allocation54_spill] sm:$0xff] }
 0xb78   :  { %v17716_v11 = vpop.f32.mrb[160].mxu1 }
 0xb79   :  { %20045 = vst [vmem:[#allocation42_spill] sm:$0xff] %v17716_v11  ;;  %9888 = vst [vmem:[#allocation11 + $0xa10] sm:$0xff] %v17716_v11  ;;  %v17719_v1 = vpop.f32.mrb[161].mxu1 }
 0xb7a   :  { %20046 = vst [vmem:[#allocation39_spill] sm:$0xff] %v17719_v1  ;;  %9889 = vst [vmem:[#allocation11 + $0xa18] sm:$0xff] %v17719_v1  ;;  %v17722_v36 = vpop.f32.mrb[162].mxu1  ;;  %10924 = vmatpush1.bf16.msra.mxu1 %v14977_v41  ;;  %v20053_v41 = vld [vmem:[#allocation53_spill] sm:$0xff] }
 0xb7b   :  { %20047 = vst [vmem:[#allocation50_spill] sm:$0xff] %v17722_v36  ;;  %9890 = vst [vmem:[#allocation11 + $0xa30] sm:$0xff] %v17722_v36  ;;  %v17727_v8 = vpop.f32.mrb[163].mxu1  ;;  %10925 = vmatprep.subr.bf16.mxu1 %v19453_v4  ;;  %v20054_v21 = vpack.c.bf16 %v20052_v56, %v20053_v41  ;;  %v20062_v36 = vld [vmem:[#allocation62_spill] sm:$0xff] }
 0xb7c   :  { %20048 = vst [vmem:[#allocation47_spill] sm:$0xff] %v17727_v8  ;;  %9891 = vst [vmem:[#allocation11 + $0xa38] sm:$0xff] %v17727_v8  ;;  %v14980_v8 = vld [vmem:[#allocation9 + $0x40] sm:$0xff]  }
 0xb7d   :  { %10297 = vmatmul.mubr.bf16.gmra.mrb[12].mxu1 %v20051_v15  ;;  %v20060_v15 = vld [vmem:[#allocation51_spill] sm:$0xff] }
 0xb7e   :  { %10304 = vmatprep.mubr.bf16.mxu1 %v20054_v21  ;;  %10926 = vmatpush1.bf16.msra.mxu1 %v14978_v26  ;;  %v20061_v41 = vpack.c.bf16 %v20059_v54, %v20060_v15  ;;  %v14981_v54 = vld [vmem:[#allocation9 + $0x48] sm:$0xff]  }
 0xb7f   :  { %10927 = vmatprep.subr.bf16.mxu1 %v19453_v4  ;;  %v20069_v15 = vld [vmem:[#allocation60_spill] sm:$0xff] }
 0xb80   :  { %v17740_v63 = vpop.f32.mrb[164].mxu1 }
 0xb81   :  { %20055 = vst [vmem:[#allocation48_spill] sm:$0xff] %v17740_v63  ;;  %9892 = vst [vmem:[#allocation11 + $0xa50] sm:$0xff] %v17740_v63  ;;  %v17743_v11 = vpop.f32.mrb[165].mxu1 }
 0xb82   :  { %20056 = vst [vmem:[#allocation45_spill] sm:$0xff] %v17743_v11  ;;  %9893 = vst [vmem:[#allocation11 + $0xa58] sm:$0xff] %v17743_v11  ;;  %v17746_v25 = vpop.f32.mrb[166].mxu1  ;;  %10928 = vmatpush1.bf16.msra.mxu1 %v14979_v9  ;;  %v20063_v9 = vld [vmem:[#allocation59_spill] sm:$0xff] }
 0xb83   :  { %20057 = vst [vmem:[#allocation56_spill] sm:$0xff] %v17746_v25  ;;  %9894 = vst [vmem:[#allocation11 + $0xa70] sm:$0xff] %v17746_v25  ;;  %v17751_v56 = vpop.f32.mrb[167].mxu1  ;;  %10929 = vmatprep.subr.bf16.mxu1 %v19453_v4  ;;  %v20064_v1 = vpack.c.bf16 %v20062_v36, %v20063_v9  ;;  %v20072_v25 = vld [vmem:[#allocation68_spill] sm:$0xff] }
 0xb84   :  { %20058 = vst [vmem:[#allocation53_spill] sm:$0xff] %v17751_v56  ;;  %9895 = vst [vmem:[#allocation11 + $0xa78] sm:$0xff] %v17751_v56  ;;  %v14982_v56 = vld [vmem:[#allocation9 + $0x50] sm:$0xff]  }
 0xb85   :  { %10305 = vmatmul.mubr.bf16.gmra.mrb[16].mxu1 %v20061_v41  ;;  %v20070_v41 = vld [vmem:[#allocation57_spill] sm:$0xff] }
 0xb86   :  { %10312 = vmatprep.mubr.bf16.mxu1 %v20064_v1  ;;  %10930 = vmatpush1.bf16.msra.mxu1 %v14980_v8  ;;  %v20071_v9 = vpack.c.bf16 %v20069_v15, %v20070_v41  ;;  %v14983_v15 = vld [vmem:[#allocation9 + $0x58] sm:$0xff]  }
 0xb87   :  { %10931 = vmatprep.subr.bf16.mxu1 %v19453_v4  ;;  %v20079_v41 = vld [vmem:[#allocation66_spill] sm:$0xff] }
 0xb88   :  { %v17764_v21 = vpop.f32.mrb[168].mxu1 }
 0xb89   :  { %20065 = vst [vmem:[#allocation54_spill] sm:$0xff] %v17764_v21  ;;  %9896 = vst [vmem:[#allocation11 + $0xa90] sm:$0xff] %v17764_v21  ;;  %v17767_v63 = vpop.f32.mrb[169].mxu1 }
 0xb8a   :  { %20066 = vst [vmem:[#allocation51_spill] sm:$0xff] %v17767_v63  ;;  %9897 = vst [vmem:[#allocation11 + $0xa98] sm:$0xff] %v17767_v63  ;;  %v17770_v26 = vpop.f32.mrb[170].mxu1  ;;  %10932 = vmatpush1.bf16.msra.mxu1 %v14981_v54  ;;  %v20073_v54 = vld [vmem:[#allocation65_spill] sm:$0xff] }
 0xb8b   :  { %20067 = vst [vmem:[#allocation62_spill] sm:$0xff] %v17770_v26  ;;  %9898 = vst [vmem:[#allocation11 + $0xab0] sm:$0xff] %v17770_v26  ;;  %v17775_v36 = vpop.f32.mrb[171].mxu1  ;;  %10933 = vmatprep.subr.bf16.mxu1 %v19453_v4  ;;  %v20074_v11 = vpack.c.bf16 %v20072_v25, %v20073_v54  ;;  %v20082_v26 = vld [vmem:[#allocation74_spill] sm:$0xff] }
 0xb8c   :  { %20068 = vst [vmem:[#allocation59_spill] sm:$0xff] %v17775_v36  ;;  %9899 = vst [vmem:[#allocation11 + $0xab8] sm:$0xff] %v17775_v36 }
 0xb8d   :  { %10313 = vmatmul.mubr.bf16.gmra.mrb[20].mxu1 %v20071_v9  ;;  %v20080_v9 = vld [vmem:[#allocation63_spill] sm:$0xff] }
 0xb8e   :  { %10320 = vmatprep.mubr.bf16.mxu1 %v20074_v11  ;;  %10934 = vmatpush1.bf16.msra.mxu1 %v14982_v56  ;;  %v20081_v54 = vpack.c.bf16 %v20079_v41, %v20080_v9  ;;  %v20089_v41 = vld [vmem:[#allocation72_spill] sm:$0xff]  ;;  %v20090_v9 = vld [vmem:[#allocation69_spill] sm:$0xff] }
 0xb8f   :  { %10935 = vmatprep.subr.bf16.mxu1 %v19453_v4 }
 0xb90   :  { %v17788_v1 = vpop.f32.mrb[172].mxu1 }
 0xb91   :  { %20075 = vst [vmem:[#allocation60_spill] sm:$0xff] %v17788_v1  ;;  %9900 = vst [vmem:[#allocation11 + $0xad0] sm:$0xff] %v17788_v1  ;;  %v17791_v21 = vpop.f32.mrb[173].mxu1 }
 0xb92   :  { %20076 = vst [vmem:[#allocation57_spill] sm:$0xff] %v17791_v21  ;;  %9901 = vst [vmem:[#allocation11 + $0xad8] sm:$0xff] %v17791_v21  ;;  %v17794_v8 = vpop.f32.mrb[174].mxu1  ;;  %10936 = vmatpush1.bf16.msra.mxu1 %v14983_v15  ;;  %v20083_v15 = vld [vmem:[#allocation71_spill] sm:$0xff] }
 0xb93   :  { %20077 = vst [vmem:[#allocation68_spill] sm:$0xff] %v17794_v8  ;;  %9902 = vst [vmem:[#allocation11 + $0xaf0] sm:$0xff] %v17794_v8  ;;  %v17799_v25 = vpop.f32.mrb[175].mxu1  ;;  %10937 = vmatprep.subr.bf16.mxu1 %v19453_v4  ;;  %v20084_v63 = vpack.c.bf16 %v20082_v26, %v20083_v15  ;;  %v20092_v15 = vld [vmem:[#allocation78_spill] sm:$0xff] }
 0xb94   :  { %20078 = vst [vmem:[#allocation65_spill] sm:$0xff] %v17799_v25  ;;  %9903 = vst [vmem:[#allocation11 + $0xaf8] sm:$0xff] %v17799_v25  ;;  %v20285_v25 = vld [vmem:[#allocation184_spill] sm:$0xff] }
 0xb95   :  { %10321 = vmatmul.mubr.bf16.gmra.mrb[24].mxu1 %v20081_v54  ;;  %v20091_v54 = vpack.c.bf16 %v20089_v41, %v20090_v9  ;;  %v20099_v41 = vld [vmem:[#allocation77_spill] sm:$0xff]  ;;  %v20100_v9 = vld [vmem:[#allocation75_spill] sm:$0xff] }
 0xb96   :  { %10328 = vmatprep.mubr.bf16.mxu1 %v20084_v63  ;;  %10938 = vmatpush1.bf16.msra.mxu1 %v17006_v49 }
 0xb97   :  { %10939 = vmatprep.subr.bf16.mxu1 %v19453_v4 }
 0xb98   :  { %v17813_v11 = vpop.f32.mrb[176].mxu1 }
 0xb99   :  { %20085 = vst [vmem:[#allocation66_spill] sm:$0xff] %v17813_v11  ;;  %9904 = vst [vmem:[#allocation11 + $0xb10] sm:$0xff] %v17813_v11  ;;  %v17816_v1 = vpop.f32.mrb[177].mxu1 }
 0xb9a   :  { %20086 = vst [vmem:[#allocation63_spill] sm:$0xff] %v17816_v1  ;;  %9905 = vst [vmem:[#allocation11 + $0xb18] sm:$0xff] %v17816_v1  ;;  %v17819_v56 = vpop.f32.mrb[178].mxu1  ;;  %10940 = vmatpush1.bf16.msra.mxu1 %v17090_v2  ;;  %v20093_v2 = vld [vmem:[#allocation76_spill] sm:$0xff] }
 0xb9b   :  { %20087 = vst [vmem:[#allocation74_spill] sm:$0xff] %v17819_v56  ;;  %9906 = vst [vmem:[#allocation11 + $0xb30] sm:$0xff] %v17819_v56  ;;  %v17825_v49 = vpop.f32.mrb[179].mxu1  ;;  %10941 = vmatprep.subr.bf16.mxu1 %v19453_v4  ;;  %v20094_v8 = vpack.c.bf16 %v20092_v15, %v20093_v2  ;;  %v20102_v15 = vld [vmem:[#allocation82_spill] sm:$0xff]  ;;  %v20103_v2 = vld [vmem:[#allocation80_spill] sm:$0xff] }
 0xb9c   :  { %20088 = vst [vmem:[#allocation71_spill] sm:$0xff] %v17825_v49  ;;  %9907 = vst [vmem:[#allocation11 + $0xb38] sm:$0xff] %v17825_v49  ;;  %v20104_v56 = vpack.c.bf16 %v20102_v15, %v20103_v2  ;;  %v20110_v15 = vld [vmem:[#allocation79_spill] sm:$0xff] }
 0xb9d   :  { %10329 = vmatmul.mubr.bf16.gmra.mrb[28].mxu1 %v20091_v54  ;;  %v20101_v54 = vpack.c.bf16 %v20099_v41, %v20100_v9 }
 0xb9e   :  { %10336 = vmatprep.mubr.bf16.mxu1 %v20094_v8  ;;  %10942 = vmatpush1.bf16.msra.mxu1 %v17174_v59 }
 0xb9f   :  { %10943 = vmatprep.subr.bf16.mxu1 %v19453_v4  ;;  %v20112_v4 = vld [vmem:[#allocation87_spill] sm:$0xff] }
 0xba0   :  { %v17839_v63 = vpop.f32.mrb[180].mxu1 }
 0xba1   :  { %20095 = vst [vmem:[#allocation72_spill] sm:$0xff] %v17839_v63  ;;  %9908 = vst [vmem:[#allocation11 + $0xb50] sm:$0xff] %v17839_v63  ;;  %v17842_v11 = vpop.f32.mrb[181].mxu1 }
 0xba2   :  { %20096 = vst [vmem:[#allocation69_spill] sm:$0xff] %v17842_v11  ;;  %9909 = vst [vmem:[#allocation11 + $0xb58] sm:$0xff] %v17842_v11  ;;  %v17845_v26 = vpop.f32.mrb[182].mxu1  ;;  %10944 = vmatpush1.bf16.msra.mxu1 %v17258_v13 }
 0xba3   :  { %20097 = vst [vmem:[#allocation78_spill] sm:$0xff] %v17845_v26  ;;  %9910 = vst [vmem:[#allocation11 + $0xb70] sm:$0xff] %v17845_v26  ;;  %v17851_v59 = vpop.f32.mrb[183].mxu1  ;;  %v20113_v26 = vld [vmem:[#allocation85_spill] sm:$0xff] }
 0xba4   :  { %20098 = vst [vmem:[#allocation76_spill] sm:$0xff] %v17851_v59  ;;  %9911 = vst [vmem:[#allocation11 + $0xb78] sm:$0xff] %v17851_v59  ;;  %v20114_v11 = vpack.c.bf16 %v20112_v4, %v20113_v26  ;;  %v20119_v26 = vld [vmem:[#allocation86_spill] sm:$0xff]  ;;  %v20120_v4 = vld [vmem:[#allocation83_spill] sm:$0xff] }
 0xba5   :  { %10337 = vmatmul.mubr.bf16.gmra.mrb[32].mxu1 %v20101_v54  ;;  %v20109_v54 = vld [vmem:[#allocation81_spill] sm:$0xff] }
 0xba6   :  { %10344 = vmatprep.mubr.bf16.mxu1 %v20104_v56  ;;  %v20111_v2 = vpack.c.bf16 %v20109_v54, %v20110_v15  ;;  %v20122_v56 = vld [vmem:[#allocation93_spill] sm:$0xff] }
 0xba8   :  { %v17862_v13 = vpop.f32.mrb[184].mxu1 }
 0xba9   :  { %20105 = vst [vmem:[#allocation77_spill] sm:$0xff] %v17862_v13  ;;  %9912 = vst [vmem:[#allocation11 + $0xb90] sm:$0xff] %v17862_v13  ;;  %v17865_v8 = vpop.f32.mrb[185].mxu1 }
 0xbaa   :  { %20106 = vst [vmem:[#allocation75_spill] sm:$0xff] %v17865_v8  ;;  %9913 = vst [vmem:[#allocation11 + $0xb98] sm:$0xff] %v17865_v8  ;;  %v17868_v63 = vpop.f32.mrb[186].mxu1 }
 0xbab   :  { %20107 = vst [vmem:[#allocation82_spill] sm:$0xff] %v17868_v63  ;;  %9914 = vst [vmem:[#allocation11 + $0xbb0] sm:$0xff] %v17868_v63  ;;  %v17873_v9 = vpop.f32.mrb[187].mxu1  ;;  %v20123_v63 = vld [vmem:[#allocation90_spill] sm:$0xff] }
 0xbac   :  { %20108 = vst [vmem:[#allocation80_spill] sm:$0xff] %v17873_v9  ;;  %9915 = vst [vmem:[#allocation11 + $0xbb8] sm:$0xff] %v17873_v9  ;;  %v20124_v8 = vpack.c.bf16 %v20122_v56, %v20123_v63  ;;  %v20130_v56 = vld [vmem:[#allocation88_spill] sm:$0xff]  ;;  %v20142_v63 = vld [vmem:[#allocation105_spill] sm:$0xff] }
 0xbad   :  { %10345 = vmatmul.mubr.bf16.gmra.mrb[36].mxu1 %v20111_v2  ;;  %v20121_v2 = vpack.c.bf16 %v20119_v26, %v20120_v4 }
 0xbae   :  { %10352 = vmatprep.mubr.bf16.mxu1 %v20114_v11  ;;  %v20132_v11 = vld [vmem:[#allocation99_spill] sm:$0xff] }
 0xbb0   :  { %v17884_v59 = vpop.f32.mrb[188].mxu1 }
 0xbb1   :  { %20115 = vst [vmem:[#allocation81_spill] sm:$0xff] %v17884_v59  ;;  %9916 = vst [vmem:[#allocation11 + $0xbd0] sm:$0xff] %v17884_v59  ;;  %v17887_v41 = vpop.f32.mrb[189].mxu1 }
 0xbb2   :  { %20116 = vst [vmem:[#allocation79_spill] sm:$0xff] %v17887_v41  ;;  %9917 = vst [vmem:[#allocation11 + $0xbd8] sm:$0xff] %v17887_v41  ;;  %v17890_v13 = vpop.f32.mrb[190].mxu1 }
 0xbb3   :  { %20117 = vst [vmem:[#allocation87_spill] sm:$0xff] %v17890_v13  ;;  %9918 = vst [vmem:[#allocation11 + $0xbf0] sm:$0xff] %v17890_v13  ;;  %v17895_v15 = vpop.f32.mrb[191].mxu1  ;;  %v20133_v13 = vld [vmem:[#allocation96_spill] sm:$0xff] }
 0xbb4   :  { %20118 = vst [vmem:[#allocation85_spill] sm:$0xff] %v17895_v15  ;;  %9919 = vst [vmem:[#allocation11 + $0xbf8] sm:$0xff] %v17895_v15  ;;  %v20134_v41 = vpack.c.bf16 %v20132_v11, %v20133_v13  ;;  %v20140_v11 = vld [vmem:[#allocation94_spill] sm:$0xff]  ;;  %v20152_v13 = vld [vmem:[#allocation111_spill] sm:$0xff] }
 0xbb5   :  { %10353 = vmatmul.mubr.bf16.gmra.mrb[40].mxu1 %v20121_v2 }
 0xbb6   :  { %10360 = vmatprep.mubr.bf16.mxu1 %v20124_v8  ;;  %v20129_v8 = vld [vmem:[#allocation91_spill] sm:$0xff] }
 0xbb7   :  { %v20131_v2 = vpack.c.bf16 %v20129_v8, %v20130_v56 }
 0xbb8   :  { %v17906_v9 = vpop.f32.mrb[192].mxu1 }
 0xbb9   :  { %20125 = vst [vmem:[#allocation86_spill] sm:$0xff] %v17906_v9  ;;  %9920 = vst [vmem:[#allocation11 + $0xc10] sm:$0xff] %v17906_v9  ;;  %v17909_v54 = vpop.f32.mrb[193].mxu1 }
 0xbba   :  { %20126 = vst [vmem:[#allocation83_spill] sm:$0xff] %v17909_v54  ;;  %9921 = vst [vmem:[#allocation11 + $0xc18] sm:$0xff] %v17909_v54  ;;  %v17912_v59 = vpop.f32.mrb[194].mxu1 }
 0xbbb   :  { %20127 = vst [vmem:[#allocation93_spill] sm:$0xff] %v17912_v59  ;;  %9922 = vst [vmem:[#allocation11 + $0xc30] sm:$0xff] %v17912_v59  ;;  %v17917_v4 = vpop.f32.mrb[195].mxu1  ;;  %v20143_v59 = vld [vmem:[#allocation102_spill] sm:$0xff] }
 0xbbc   :  { %20128 = vst [vmem:[#allocation90_spill] sm:$0xff] %v17917_v4  ;;  %9923 = vst [vmem:[#allocation11 + $0xc38] sm:$0xff] %v17917_v4  ;;  %v20144_v54 = vpack.c.bf16 %v20142_v63, %v20143_v59  ;;  %v20150_v63 = vld [vmem:[#allocation100_spill] sm:$0xff]  ;;  %v20162_v59 = vld [vmem:[#allocation117_spill] sm:$0xff] }
 0xbbd   :  { %10361 = vmatmul.mubr.bf16.gmra.mrb[44].mxu1 %v20131_v2 }
 0xbbe   :  { %10368 = vmatprep.mubr.bf16.mxu1 %v20134_v41  ;;  %v20139_v41 = vld [vmem:[#allocation97_spill] sm:$0xff] }
 0xbbf   :  { %v20141_v2 = vpack.c.bf16 %v20139_v41, %v20140_v11 }
 0xbc0   :  { %v17928_v15 = vpop.f32.mrb[196].mxu1 }
 0xbc1   :  { %20135 = vst [vmem:[#allocation91_spill] sm:$0xff] %v17928_v15  ;;  %9924 = vst [vmem:[#allocation11 + $0xc50] sm:$0xff] %v17928_v15  ;;  %v17931_v26 = vpop.f32.mrb[197].mxu1 }
 0xbc2   :  { %20136 = vst [vmem:[#allocation88_spill] sm:$0xff] %v17931_v26  ;;  %9925 = vst [vmem:[#allocation11 + $0xc58] sm:$0xff] %v17931_v26  ;;  %v17934_v9 = vpop.f32.mrb[198].mxu1 }
 0xbc3   :  { %20137 = vst [vmem:[#allocation99_spill] sm:$0xff] %v17934_v9  ;;  %9926 = vst [vmem:[#allocation11 + $0xc70] sm:$0xff] %v17934_v9  ;;  %v17939_v56 = vpop.f32.mrb[199].mxu1  ;;  %v20153_v9 = vld [vmem:[#allocation108_spill] sm:$0xff] }
 0xbc4   :  { %20138 = vst [vmem:[#allocation96_spill] sm:$0xff] %v17939_v56  ;;  %9927 = vst [vmem:[#allocation11 + $0xc78] sm:$0xff] %v17939_v56  ;;  %v20154_v26 = vpack.c.bf16 %v20152_v13, %v20153_v9  ;;  %v20160_v13 = vld [vmem:[#allocation106_spill] sm:$0xff]  ;;  %v20172_v9 = vld [vmem:[#allocation123_spill] sm:$0xff] }
 0xbc5   :  { %10369 = vmatmul.mubr.bf16.gmra.mrb[48].mxu1 %v20141_v2 }
 0xbc6   :  { %10376 = vmatprep.mubr.bf16.mxu1 %v20144_v54  ;;  %v20149_v54 = vld [vmem:[#allocation103_spill] sm:$0xff] }
 0xbc7   :  { %v20151_v2 = vpack.c.bf16 %v20149_v54, %v20150_v63 }
 0xbc8   :  { %v17950_v4 = vpop.f32.mrb[200].mxu1 }
 0xbc9   :  { %20145 = vst [vmem:[#allocation97_spill] sm:$0xff] %v17950_v4  ;;  %9928 = vst [vmem:[#allocation11 + $0xc90] sm:$0xff] %v17950_v4  ;;  %v17953_v8 = vpop.f32.mrb[201].mxu1 }
 0xbca   :  { %20146 = vst [vmem:[#allocation94_spill] sm:$0xff] %v17953_v8  ;;  %9929 = vst [vmem:[#allocation11 + $0xc98] sm:$0xff] %v17953_v8  ;;  %v17956_v15 = vpop.f32.mrb[202].mxu1 }
 0xbcb   :  { %20147 = vst [vmem:[#allocation105_spill] sm:$0xff] %v17956_v15  ;;  %9930 = vst [vmem:[#allocation11 + $0xcb0] sm:$0xff] %v17956_v15  ;;  %v17961_v11 = vpop.f32.mrb[203].mxu1  ;;  %v20163_v15 = vld [vmem:[#allocation114_spill] sm:$0xff] }
 0xbcc   :  { %20148 = vst [vmem:[#allocation102_spill] sm:$0xff] %v17961_v11  ;;  %9931 = vst [vmem:[#allocation11 + $0xcb8] sm:$0xff] %v17961_v11  ;;  %v20164_v8 = vpack.c.bf16 %v20162_v59, %v20163_v15  ;;  %v20170_v59 = vld [vmem:[#allocation112_spill] sm:$0xff]  ;;  %v20182_v15 = vld [vmem:[#allocation129_spill] sm:$0xff] }
 0xbcd   :  { %10377 = vmatmul.mubr.bf16.gmra.mrb[52].mxu1 %v20151_v2 }
 0xbce   :  { %10384 = vmatprep.mubr.bf16.mxu1 %v20154_v26  ;;  %v20159_v26 = vld [vmem:[#allocation109_spill] sm:$0xff] }
 0xbcf   :  { %v20161_v2 = vpack.c.bf16 %v20159_v26, %v20160_v13 }
 0xbd0   :  { %v17972_v56 = vpop.f32.mrb[204].mxu1 }
 0xbd1   :  { %20155 = vst [vmem:[#allocation103_spill] sm:$0xff] %v17972_v56  ;;  %9932 = vst [vmem:[#allocation11 + $0xcd0] sm:$0xff] %v17972_v56  ;;  %v17975_v41 = vpop.f32.mrb[205].mxu1 }
 0xbd2   :  { %20156 = vst [vmem:[#allocation100_spill] sm:$0xff] %v17975_v41  ;;  %9933 = vst [vmem:[#allocation11 + $0xcd8] sm:$0xff] %v17975_v41  ;;  %v17978_v4 = vpop.f32.mrb[206].mxu1 }
 0xbd3   :  { %20157 = vst [vmem:[#allocation111_spill] sm:$0xff] %v17978_v4  ;;  %9934 = vst [vmem:[#allocation11 + $0xcf0] sm:$0xff] %v17978_v4  ;;  %v17983_v63 = vpop.f32.mrb[207].mxu1  ;;  %v20173_v4 = vld [vmem:[#allocation120_spill] sm:$0xff] }
 0xbd4   :  { %20158 = vst [vmem:[#allocation108_spill] sm:$0xff] %v17983_v63  ;;  %9935 = vst [vmem:[#allocation11 + $0xcf8] sm:$0xff] %v17983_v63  ;;  %v20174_v41 = vpack.c.bf16 %v20172_v9, %v20173_v4  ;;  %v20180_v9 = vld [vmem:[#allocation118_spill] sm:$0xff]  ;;  %v20192_v4 = vld [vmem:[#allocation135_spill] sm:$0xff] }
 0xbd5   :  { %10385 = vmatmul.mubr.bf16.gmra.mrb[56].mxu1 %v20161_v2 }
 0xbd6   :  { %10392 = vmatprep.mubr.bf16.mxu1 %v20164_v8  ;;  %v20169_v8 = vld [vmem:[#allocation115_spill] sm:$0xff] }
 0xbd7   :  { %v20171_v2 = vpack.c.bf16 %v20169_v8, %v20170_v59 }
 0xbd8   :  { %v17994_v11 = vpop.f32.mrb[208].mxu1 }
 0xbd9   :  { %20165 = vst [vmem:[#allocation109_spill] sm:$0xff] %v17994_v11  ;;  %9936 = vst [vmem:[#allocation11 + $0xd10] sm:$0xff] %v17994_v11  ;;  %v17997_v54 = vpop.f32.mrb[209].mxu1 }
 0xbda   :  { %20166 = vst [vmem:[#allocation106_spill] sm:$0xff] %v17997_v54  ;;  %9937 = vst [vmem:[#allocation11 + $0xd18] sm:$0xff] %v17997_v54  ;;  %v18000_v56 = vpop.f32.mrb[210].mxu1 }
 0xbdb   :  { %20167 = vst [vmem:[#allocation117_spill] sm:$0xff] %v18000_v56  ;;  %9938 = vst [vmem:[#allocation11 + $0xd30] sm:$0xff] %v18000_v56  ;;  %v18005_v13 = vpop.f32.mrb[211].mxu1  ;;  %v20183_v56 = vld [vmem:[#allocation126_spill] sm:$0xff] }
 0xbdc   :  { %20168 = vst [vmem:[#allocation114_spill] sm:$0xff] %v18005_v13  ;;  %9939 = vst [vmem:[#allocation11 + $0xd38] sm:$0xff] %v18005_v13  ;;  %v20184_v54 = vpack.c.bf16 %v20182_v15, %v20183_v56  ;;  %v20190_v15 = vld [vmem:[#allocation124_spill] sm:$0xff]  ;;  %v20202_v56 = vld [vmem:[#allocation141_spill] sm:$0xff] }
 0xbdd   :  { %10393 = vmatmul.mubr.bf16.gmra.mrb[60].mxu1 %v20171_v2 }
 0xbde   :  { %10400 = vmatprep.mubr.bf16.mxu1 %v20174_v41  ;;  %v20179_v41 = vld [vmem:[#allocation121_spill] sm:$0xff] }
 0xbdf   :  { %v20181_v2 = vpack.c.bf16 %v20179_v41, %v20180_v9 }
 0xbe0   :  { %v18016_v63 = vpop.f32.mrb[212].mxu1 }
 0xbe1   :  { %20175 = vst [vmem:[#allocation115_spill] sm:$0xff] %v18016_v63  ;;  %9940 = vst [vmem:[#allocation11 + $0xd50] sm:$0xff] %v18016_v63  ;;  %v18019_v26 = vpop.f32.mrb[213].mxu1 }
 0xbe2   :  { %20176 = vst [vmem:[#allocation112_spill] sm:$0xff] %v18019_v26  ;;  %9941 = vst [vmem:[#allocation11 + $0xd58] sm:$0xff] %v18019_v26  ;;  %v18022_v11 = vpop.f32.mrb[214].mxu1 }
 0xbe3   :  { %20177 = vst [vmem:[#allocation123_spill] sm:$0xff] %v18022_v11  ;;  %9942 = vst [vmem:[#allocation11 + $0xd70] sm:$0xff] %v18022_v11  ;;  %v18027_v59 = vpop.f32.mrb[215].mxu1  ;;  %v20193_v11 = vld [vmem:[#allocation132_spill] sm:$0xff] }
 0xbe4   :  { %20178 = vst [vmem:[#allocation120_spill] sm:$0xff] %v18027_v59  ;;  %9943 = vst [vmem:[#allocation11 + $0xd78] sm:$0xff] %v18027_v59  ;;  %v20194_v26 = vpack.c.bf16 %v20192_v4, %v20193_v11  ;;  %v20200_v4 = vld [vmem:[#allocation130_spill] sm:$0xff]  ;;  %v20212_v11 = vld [vmem:[#allocation147_spill] sm:$0xff] }
 0xbe5   :  { %10401 = vmatmul.mubr.bf16.gmra.mrb[64].mxu1 %v20181_v2 }
 0xbe6   :  { %10408 = vmatprep.mubr.bf16.mxu1 %v20184_v54  ;;  %v20189_v54 = vld [vmem:[#allocation127_spill] sm:$0xff] }
 0xbe7   :  { %v20191_v2 = vpack.c.bf16 %v20189_v54, %v20190_v15 }
 0xbe8   :  { %v18038_v13 = vpop.f32.mrb[216].mxu1 }
 0xbe9   :  { %20185 = vst [vmem:[#allocation121_spill] sm:$0xff] %v18038_v13  ;;  %9944 = vst [vmem:[#allocation11 + $0xd90] sm:$0xff] %v18038_v13  ;;  %v18041_v8 = vpop.f32.mrb[217].mxu1 }
 0xbea   :  { %20186 = vst [vmem:[#allocation118_spill] sm:$0xff] %v18041_v8  ;;  %9945 = vst [vmem:[#allocation11 + $0xd98] sm:$0xff] %v18041_v8  ;;  %v18044_v63 = vpop.f32.mrb[218].mxu1 }
 0xbeb   :  { %20187 = vst [vmem:[#allocation129_spill] sm:$0xff] %v18044_v63  ;;  %9946 = vst [vmem:[#allocation11 + $0xdb0] sm:$0xff] %v18044_v63  ;;  %v18049_v9 = vpop.f32.mrb[219].mxu1  ;;  %v20203_v63 = vld [vmem:[#allocation138_spill] sm:$0xff] }
 0xbec   :  { %20188 = vst [vmem:[#allocation126_spill] sm:$0xff] %v18049_v9  ;;  %9947 = vst [vmem:[#allocation11 + $0xdb8] sm:$0xff] %v18049_v9  ;;  %v20204_v8 = vpack.c.bf16 %v20202_v56, %v20203_v63  ;;  %v20210_v56 = vld [vmem:[#allocation136_spill] sm:$0xff]  ;;  %v20222_v63 = vld [vmem:[#allocation153_spill] sm:$0xff] }
 0xbed   :  { %10409 = vmatmul.mubr.bf16.gmra.mrb[68].mxu1 %v20191_v2 }
 0xbee   :  { %10416 = vmatprep.mubr.bf16.mxu1 %v20194_v26  ;;  %v20199_v26 = vld [vmem:[#allocation133_spill] sm:$0xff] }
 0xbef   :  { %v20201_v2 = vpack.c.bf16 %v20199_v26, %v20200_v4 }
 0xbf0   :  { %v18060_v59 = vpop.f32.mrb[220].mxu1 }
 0xbf1   :  { %20195 = vst [vmem:[#allocation127_spill] sm:$0xff] %v18060_v59  ;;  %9948 = vst [vmem:[#allocation11 + $0xdd0] sm:$0xff] %v18060_v59  ;;  %v18063_v41 = vpop.f32.mrb[221].mxu1 }
 0xbf2   :  { %20196 = vst [vmem:[#allocation124_spill] sm:$0xff] %v18063_v41  ;;  %9949 = vst [vmem:[#allocation11 + $0xdd8] sm:$0xff] %v18063_v41  ;;  %v18066_v13 = vpop.f32.mrb[222].mxu1 }
 0xbf3   :  { %20197 = vst [vmem:[#allocation135_spill] sm:$0xff] %v18066_v13  ;;  %9950 = vst [vmem:[#allocation11 + $0xdf0] sm:$0xff] %v18066_v13  ;;  %v18071_v15 = vpop.f32.mrb[223].mxu1  ;;  %v20213_v13 = vld [vmem:[#allocation144_spill] sm:$0xff] }
 0xbf4   :  { %20198 = vst [vmem:[#allocation132_spill] sm:$0xff] %v18071_v15  ;;  %9951 = vst [vmem:[#allocation11 + $0xdf8] sm:$0xff] %v18071_v15  ;;  %v20214_v41 = vpack.c.bf16 %v20212_v11, %v20213_v13  ;;  %v20220_v11 = vld [vmem:[#allocation142_spill] sm:$0xff]  ;;  %v20232_v13 = vld [vmem:[#allocation159_spill] sm:$0xff] }
 0xbf5   :  { %10417 = vmatmul.mubr.bf16.gmra.mrb[72].mxu1 %v20201_v2 }
 0xbf6   :  { %10424 = vmatprep.mubr.bf16.mxu1 %v20204_v8  ;;  %v20209_v8 = vld [vmem:[#allocation139_spill] sm:$0xff] }
 0xbf7   :  { %v20211_v2 = vpack.c.bf16 %v20209_v8, %v20210_v56 }
 0xbf8   :  { %v18082_v9 = vpop.f32.mrb[224].mxu1 }
 0xbf9   :  { %20205 = vst [vmem:[#allocation133_spill] sm:$0xff] %v18082_v9  ;;  %9952 = vst [vmem:[#allocation11 + $0xe10] sm:$0xff] %v18082_v9  ;;  %v18085_v54 = vpop.f32.mrb[225].mxu1 }
 0xbfa   :  { %20206 = vst [vmem:[#allocation130_spill] sm:$0xff] %v18085_v54  ;;  %9953 = vst [vmem:[#allocation11 + $0xe18] sm:$0xff] %v18085_v54  ;;  %v18088_v59 = vpop.f32.mrb[226].mxu1 }
 0xbfb   :  { %20207 = vst [vmem:[#allocation141_spill] sm:$0xff] %v18088_v59  ;;  %9954 = vst [vmem:[#allocation11 + $0xe30] sm:$0xff] %v18088_v59  ;;  %v18093_v4 = vpop.f32.mrb[227].mxu1  ;;  %v20223_v59 = vld [vmem:[#allocation150_spill] sm:$0xff] }
 0xbfc   :  { %20208 = vst [vmem:[#allocation138_spill] sm:$0xff] %v18093_v4  ;;  %9955 = vst [vmem:[#allocation11 + $0xe38] sm:$0xff] %v18093_v4  ;;  %v20224_v54 = vpack.c.bf16 %v20222_v63, %v20223_v59  ;;  %v20230_v63 = vld [vmem:[#allocation148_spill] sm:$0xff]  ;;  %v20242_v59 = vld [vmem:[#allocation165_spill] sm:$0xff] }
 0xbfd   :  { %10425 = vmatmul.mubr.bf16.gmra.mrb[76].mxu1 %v20211_v2 }
 0xbfe   :  { %10432 = vmatprep.mubr.bf16.mxu1 %v20214_v41  ;;  %v20219_v41 = vld [vmem:[#allocation145_spill] sm:$0xff] }
 0xbff   :  { %v20221_v2 = vpack.c.bf16 %v20219_v41, %v20220_v11 }
 0xc00   :  { %v18104_v15 = vpop.f32.mrb[228].mxu1 }
 0xc01   :  { %20215 = vst [vmem:[#allocation139_spill] sm:$0xff] %v18104_v15  ;;  %9956 = vst [vmem:[#allocation11 + $0xe50] sm:$0xff] %v18104_v15  ;;  %v18107_v26 = vpop.f32.mrb[229].mxu1 }
 0xc02   :  { %20216 = vst [vmem:[#allocation136_spill] sm:$0xff] %v18107_v26  ;;  %9957 = vst [vmem:[#allocation11 + $0xe58] sm:$0xff] %v18107_v26  ;;  %v18110_v9 = vpop.f32.mrb[230].mxu1 }
 0xc03   :  { %20217 = vst [vmem:[#allocation147_spill] sm:$0xff] %v18110_v9  ;;  %9958 = vst [vmem:[#allocation11 + $0xe70] sm:$0xff] %v18110_v9  ;;  %v18115_v56 = vpop.f32.mrb[231].mxu1  ;;  %v20233_v9 = vld [vmem:[#allocation156_spill] sm:$0xff] }
 0xc04   :  { %20218 = vst [vmem:[#allocation144_spill] sm:$0xff] %v18115_v56  ;;  %9959 = vst [vmem:[#allocation11 + $0xe78] sm:$0xff] %v18115_v56  ;;  %v20234_v26 = vpack.c.bf16 %v20232_v13, %v20233_v9  ;;  %v20240_v13 = vld [vmem:[#allocation154_spill] sm:$0xff]  ;;  %v20252_v9 = vld [vmem:[#allocation171_spill] sm:$0xff] }
 0xc05   :  { %10433 = vmatmul.mubr.bf16.gmra.mrb[80].mxu1 %v20221_v2 }
 0xc06   :  { %10440 = vmatprep.mubr.bf16.mxu1 %v20224_v54  ;;  %v20229_v54 = vld [vmem:[#allocation151_spill] sm:$0xff] }
 0xc07   :  { %v20231_v2 = vpack.c.bf16 %v20229_v54, %v20230_v63 }
 0xc08   :  { %v18126_v4 = vpop.f32.mrb[232].mxu1 }
 0xc09   :  { %20225 = vst [vmem:[#allocation145_spill] sm:$0xff] %v18126_v4  ;;  %9960 = vst [vmem:[#allocation11 + $0xe90] sm:$0xff] %v18126_v4  ;;  %v18129_v8 = vpop.f32.mrb[233].mxu1 }
 0xc0a   :  { %20226 = vst [vmem:[#allocation142_spill] sm:$0xff] %v18129_v8  ;;  %9961 = vst [vmem:[#allocation11 + $0xe98] sm:$0xff] %v18129_v8  ;;  %v18132_v15 = vpop.f32.mrb[234].mxu1 }
 0xc0b   :  { %20227 = vst [vmem:[#allocation153_spill] sm:$0xff] %v18132_v15  ;;  %9962 = vst [vmem:[#allocation11 + $0xeb0] sm:$0xff] %v18132_v15  ;;  %v18137_v11 = vpop.f32.mrb[235].mxu1  ;;  %v20243_v15 = vld [vmem:[#allocation162_spill] sm:$0xff] }
 0xc0c   :  { %20228 = vst [vmem:[#allocation150_spill] sm:$0xff] %v18137_v11  ;;  %9963 = vst [vmem:[#allocation11 + $0xeb8] sm:$0xff] %v18137_v11  ;;  %v20244_v8 = vpack.c.bf16 %v20242_v59, %v20243_v15  ;;  %v20250_v59 = vld [vmem:[#allocation160_spill] sm:$0xff]  ;;  %v20262_v15 = vld [vmem:[#allocation177_spill] sm:$0xff] }
 0xc0d   :  { %10441 = vmatmul.mubr.bf16.gmra.mrb[84].mxu1 %v20231_v2 }
 0xc0e   :  { %10448 = vmatprep.mubr.bf16.mxu1 %v20234_v26  ;;  %v20239_v26 = vld [vmem:[#allocation157_spill] sm:$0xff] }
 0xc0f   :  { %v20241_v2 = vpack.c.bf16 %v20239_v26, %v20240_v13 }
 0xc10   :  { %v18148_v56 = vpop.f32.mrb[236].mxu1 }
 0xc11   :  { %20235 = vst [vmem:[#allocation151_spill] sm:$0xff] %v18148_v56  ;;  %9964 = vst [vmem:[#allocation11 + $0xed0] sm:$0xff] %v18148_v56  ;;  %v18151_v41 = vpop.f32.mrb[237].mxu1 }
 0xc12   :  { %20236 = vst [vmem:[#allocation148_spill] sm:$0xff] %v18151_v41  ;;  %9965 = vst [vmem:[#allocation11 + $0xed8] sm:$0xff] %v18151_v41  ;;  %v18154_v4 = vpop.f32.mrb[238].mxu1 }
 0xc13   :  { %20237 = vst [vmem:[#allocation159_spill] sm:$0xff] %v18154_v4  ;;  %9966 = vst [vmem:[#allocation11 + $0xef0] sm:$0xff] %v18154_v4  ;;  %v18159_v63 = vpop.f32.mrb[239].mxu1  ;;  %v20253_v4 = vld [vmem:[#allocation168_spill] sm:$0xff] }
 0xc14   :  { %20238 = vst [vmem:[#allocation156_spill] sm:$0xff] %v18159_v63  ;;  %9967 = vst [vmem:[#allocation11 + $0xef8] sm:$0xff] %v18159_v63  ;;  %v20254_v41 = vpack.c.bf16 %v20252_v9, %v20253_v4  ;;  %v20260_v9 = vld [vmem:[#allocation166_spill] sm:$0xff]  ;;  %v20272_v4 = vld [vmem:[#allocation183_spill] sm:$0xff] }
 0xc15   :  { %10449 = vmatmul.mubr.bf16.gmra.mrb[88].mxu1 %v20241_v2 }
 0xc16   :  { %10456 = vmatprep.mubr.bf16.mxu1 %v20244_v8  ;;  %v20249_v8 = vld [vmem:[#allocation163_spill] sm:$0xff] }
 0xc17   :  { %v20251_v2 = vpack.c.bf16 %v20249_v8, %v20250_v59 }
 0xc18   :  { %v18170_v11 = vpop.f32.mrb[240].mxu1 }
 0xc19   :  { %20245 = vst [vmem:[#allocation157_spill] sm:$0xff] %v18170_v11  ;;  %9968 = vst [vmem:[#allocation11 + $0xf10] sm:$0xff] %v18170_v11  ;;  %v18173_v54 = vpop.f32.mrb[241].mxu1 }
 0xc1a   :  { %20246 = vst [vmem:[#allocation154_spill] sm:$0xff] %v18173_v54  ;;  %9969 = vst [vmem:[#allocation11 + $0xf18] sm:$0xff] %v18173_v54  ;;  %v18176_v56 = vpop.f32.mrb[242].mxu1 }
 0xc1b   :  { %20247 = vst [vmem:[#allocation165_spill] sm:$0xff] %v18176_v56  ;;  %9970 = vst [vmem:[#allocation11 + $0xf30] sm:$0xff] %v18176_v56  ;;  %v18181_v13 = vpop.f32.mrb[243].mxu1  ;;  %v20263_v56 = vld [vmem:[#allocation174_spill] sm:$0xff] }
 0xc1c   :  { %20248 = vst [vmem:[#allocation162_spill] sm:$0xff] %v18181_v13  ;;  %9971 = vst [vmem:[#allocation11 + $0xf38] sm:$0xff] %v18181_v13  ;;  %v20264_v54 = vpack.c.bf16 %v20262_v15, %v20263_v56  ;;  %v20270_v15 = vld [vmem:[#allocation172_spill] sm:$0xff]  ;;  %v20281_v56 = vld [vmem:[#allocation189_spill] sm:$0xff] }
 0xc1d   :  { %10457 = vmatmul.mubr.bf16.gmra.mrb[92].mxu1 %v20251_v2 }
 0xc1e   :  { %10464 = vmatprep.mubr.bf16.mxu1 %v20254_v41  ;;  %v20259_v41 = vld [vmem:[#allocation169_spill] sm:$0xff] }
 0xc1f   :  { %v20261_v2 = vpack.c.bf16 %v20259_v41, %v20260_v9 }
 0xc20   :  { %v18192_v63 = vpop.f32.mrb[244].mxu1 }
 0xc21   :  { %20255 = vst [vmem:[#allocation163_spill] sm:$0xff] %v18192_v63  ;;  %9972 = vst [vmem:[#allocation11 + $0xf50] sm:$0xff] %v18192_v63  ;;  %v18195_v26 = vpop.f32.mrb[245].mxu1 }
 0xc22   :  { %20256 = vst [vmem:[#allocation160_spill] sm:$0xff] %v18195_v26  ;;  %9973 = vst [vmem:[#allocation11 + $0xf58] sm:$0xff] %v18195_v26  ;;  %v18198_v11 = vpop.f32.mrb[246].mxu1 }
 0xc23   :  { %20257 = vst [vmem:[#allocation171_spill] sm:$0xff] %v18198_v11  ;;  %9974 = vst [vmem:[#allocation11 + $0xf70] sm:$0xff] %v18198_v11  ;;  %v18203_v59 = vpop.f32.mrb[247].mxu1  ;;  %v20273_v11 = vld [vmem:[#allocation180_spill] sm:$0xff] }
 0xc24   :  { %20258 = vst [vmem:[#allocation168_spill] sm:$0xff] %v18203_v59  ;;  %9975 = vst [vmem:[#allocation11 + $0xf78] sm:$0xff] %v18203_v59  ;;  %v20274_v26 = vpack.c.bf16 %v20272_v4, %v20273_v11  ;;  %v20279_v4 = vld [vmem:[#allocation178_spill] sm:$0xff]  ;;  %v20287_v11 = vld [vmem:[#allocation195_spill] sm:$0xff] }
 0xc25   :  { %10465 = vmatmul.mubr.bf16.gmra.mrb[96].mxu1 %v20261_v2 }
 0xc26   :  { %10472 = vmatprep.mubr.bf16.mxu1 %v20264_v54  ;;  %v20269_v54 = vld [vmem:[#allocation175_spill] sm:$0xff] }
 0xc27   :  { %v20271_v2 = vpack.c.bf16 %v20269_v54, %v20270_v15 }
 0xc28   :  { %v18214_v13 = vpop.f32.mrb[248].mxu1 }
 0xc29   :  { %20265 = vst [vmem:[#allocation169_spill] sm:$0xff] %v18214_v13  ;;  %9976 = vst [vmem:[#allocation11 + $0xf90] sm:$0xff] %v18214_v13  ;;  %v18217_v8 = vpop.f32.mrb[249].mxu1 }
 0xc2a   :  { %20266 = vst [vmem:[#allocation166_spill] sm:$0xff] %v18217_v8  ;;  %9977 = vst [vmem:[#allocation11 + $0xf98] sm:$0xff] %v18217_v8  ;;  %v18220_v63 = vpop.f32.mrb[250].mxu1 }
 0xc2b   :  { %20267 = vst [vmem:[#allocation177_spill] sm:$0xff] %v18220_v63  ;;  %9978 = vst [vmem:[#allocation11 + $0xfb0] sm:$0xff] %v18220_v63  ;;  %v18225_v9 = vpop.f32.mrb[251].mxu1  ;;  %v20282_v63 = vld [vmem:[#allocation186_spill] sm:$0xff] }
 0xc2c   :  { %20268 = vst [vmem:[#allocation174_spill] sm:$0xff] %v18225_v9  ;;  %9979 = vst [vmem:[#allocation11 + $0xfb8] sm:$0xff] %v18225_v9  ;;  %v20283_v8 = vpack.c.bf16 %v20281_v56, %v20282_v63  ;;  %v20293_v56 = vld [vmem:[#allocation201_spill] sm:$0xff] }
 0xc2d   :  { %10473 = vmatmul.mubr.bf16.gmra.mrb[100].mxu1 %v20271_v2 }
 0xc2e   :  { %10480 = vmatprep.mubr.bf16.mxu1 %v20274_v26  ;;  %v20278_v26 = vld [vmem:[#allocation181_spill] sm:$0xff] }
 0xc2f   :  { %v20280_v2 = vpack.c.bf16 %v20278_v26, %v20279_v4 }
 0xc30   :  { %v18236_v59 = vpop.f32.mrb[252].mxu1 }
 0xc31   :  { %20275 = vst [vmem:[#allocation175_spill] sm:$0xff] %v18236_v59  ;;  %9980 = vst [vmem:[#allocation11 + $0xfd0] sm:$0xff] %v18236_v59  ;;  %v18239_v41 = vpop.f32.mrb[253].mxu1 }
 0xc32   :  { %20276 = vst [vmem:[#allocation172_spill] sm:$0xff] %v18239_v41  ;;  %9981 = vst [vmem:[#allocation11 + $0xfd8] sm:$0xff] %v18239_v41  ;;  %v18242_v13 = vpop.f32.mrb[254].mxu1  ;;  %v20288_v41 = vld [vmem:[#allocation192_spill] sm:$0xff] }
 0xc33   :  { %20277 = vst [vmem:[#allocation183_spill] sm:$0xff] %v18242_v13  ;;  %9982 = vst [vmem:[#allocation11 + $0xff0] sm:$0xff] %v18242_v13  ;;  %v18247_v15 = vpop.f32.mrb[255].mxu1  ;;  %v20284_v13 = vld [vmem:[#allocation187_spill] sm:$0xff]  ;;  %v20289_v26 = vpack.c.bf16 %v20287_v11, %v20288_v41 }
 0xc34   :  { %9983 = vst [vmem:[#allocation11 + $0xff8] sm:$0xff] %v18247_v15  ;;  %v20286_v36 = vpack.c.bf16 %v20284_v13, %v20285_v25 }
 0xc35   :  { %10481 = vmatmul.mubr.bf16.gmra.mrb[104].mxu1 %v20280_v2 }
 0xc36   :  { %10488 = vmatprep.mubr.bf16.mxu1 %v20283_v8 }
 0xc38   :  { %v10274_v9 = vpop.f32.mrb[0].mxu1 }
 0xc39   :  { %v13703_v1 = vpack.c.bf16 %v10274_v9, %v10274_v9  ;;  %v10276_v49 = vpop.f32.mrb[1].mxu1 }
 0xc3a   :  { %v10277_v21 = vpop.f32.mrb[2].mxu1 }
 0xc3b   :  { %11970 = vst [vmem:[#allocation12] sm:$0xf] %v13703_v1  ;;  %v13704_v54 = vpack.c.bf16 %v10277_v21, %v10277_v21  ;;  %v10279_v59 = vpop.f32.mrb[3].mxu1  ;;  %v20290_v1 = vld [vmem:[#allocation193_spill] sm:$0xff]  ;;  %v20291_v21 = vld [vmem:[#allocation190_spill] sm:$0xff] }
 0xc3c   :  { %v20292_v59 = vpack.c.bf16 %v20290_v1, %v20291_v21 }
 0xc3d   :  { %11971 = vst [vmem:[#allocation12 + $0x8] sm:$0xf] %v13704_v54  ;;  %10489 = vmatmul.mubr.bf16.gmra.mrb[108].mxu1 %v20286_v36  ;;  %v20294_v54 = vld [vmem:[#allocation198_spill] sm:$0xff] }
 0xc3e   :  { %10496 = vmatprep.mubr.bf16.mxu1 %v20289_v26  ;;  %v20295_v25 = vpack.c.bf16 %v20293_v56, %v20294_v54 }
 0xc40   :  { %v10282_v4 = vpop.f32.mrb[4].mxu1 }
 0xc41   :  { %v13705_v2 = vpack.c.bf16 %v10282_v4, %v10282_v4  ;;  %v10284_v63 = vpop.f32.mrb[5].mxu1 }
 0xc42   :  { %v10285_v8 = vpop.f32.mrb[6].mxu1  ;;  %v20297_v63 = vld [vmem:[#allocation196_spill] sm:$0xff] }
 0xc43   :  { %11972 = vst [vmem:[#allocation12 + $0x10] sm:$0xf] %v13705_v2  ;;  %v13706_v9 = vpack.c.bf16 %v10285_v8, %v10285_v8  ;;  %v10287_v49 = vpop.f32.mrb[7].mxu1  ;;  %v20296_v2 = vld [vmem:[#allocation199_spill] sm:$0xff] }
 0xc44   :  { %v20298_v8 = vpack.c.bf16 %v20296_v2, %v20297_v63  ;;  %v20300_v49 = vld [vmem:[#allocation204_spill] sm:$0xff] }
 0xc45   :  { %11973 = vst [vmem:[#allocation12 + $0x18] sm:$0xf] %v13706_v9  ;;  %10497 = vmatmul.mubr.bf16.gmra.mrb[112].mxu1 %v20292_v59  ;;  %v20299_v9 = vld [vmem:[#allocation207_spill] sm:$0xff] }
 0xc46   :  { %10504 = vmatprep.mubr.bf16.mxu1 %v20295_v25  ;;  %v20301_v1 = vpack.c.bf16 %v20299_v9, %v20300_v49 }
 0xc48   :  { %v10290_v36 = vpop.f32.mrb[8].mxu1 }
 0xc49   :  { %v13707_v13 = vpack.c.bf16 %v10290_v36, %v10290_v36  ;;  %v10292_v41 = vpop.f32.mrb[9].mxu1 }
 0xc4a   :  { %v10293_v11 = vpop.f32.mrb[10].mxu1  ;;  %v20303_v41 = vld [vmem:[#allocation202_spill] sm:$0xff] }
 0xc4b   :  { %11974 = vst [vmem:[#allocation12 + $0x20] sm:$0xf] %v13707_v13  ;;  %v13708_v26 = vpack.c.bf16 %v10293_v11, %v10293_v11  ;;  %v10295_v4 = vpop.f32.mrb[11].mxu1  ;;  %v20302_v13 = vld [vmem:[#allocation205_spill] sm:$0xff] }
 0xc4c   :  { %v20304_v11 = vpack.c.bf16 %v20302_v13, %v20303_v41  ;;  %v20306_v4 = vld [vmem:[#allocation210_spill] sm:$0xff] }
 0xc4d   :  { %11975 = vst [vmem:[#allocation12 + $0x28] sm:$0xf] %v13708_v26  ;;  %10505 = vmatmul.mubr.bf16.gmra.mrb[116].mxu1 %v20298_v8  ;;  %v20305_v26 = vld [vmem:[#allocation213_spill] sm:$0xff] }
 0xc4e   :  { %10512 = vmatprep.mubr.bf16.mxu1 %v20301_v1  ;;  %v20307_v2 = vpack.c.bf16 %v20305_v26, %v20306_v4 }
 0xc50   :  { %v10298_v21 = vpop.f32.mrb[12].mxu1 }
 0xc51   :  { %v13709_v59 = vpack.c.bf16 %v10298_v21, %v10298_v21  ;;  %v10300_v56 = vpop.f32.mrb[13].mxu1 }
 0xc52   :  { %v10301_v54 = vpop.f32.mrb[14].mxu1  ;;  %v20309_v56 = vld [vmem:[#allocation208_spill] sm:$0xff] }
 0xc53   :  { %11976 = vst [vmem:[#allocation12 + $0x30] sm:$0xf] %v13709_v59  ;;  %v13710_v25 = vpack.c.bf16 %v10301_v54, %v10301_v54  ;;  %v10303_v36 = vpop.f32.mrb[15].mxu1  ;;  %v20308_v59 = vld [vmem:[#allocation211_spill] sm:$0xff] }
 0xc54   :  { %v20310_v54 = vpack.c.bf16 %v20308_v59, %v20309_v56  ;;  %v20312_v36 = vld [vmem:[#allocation216_spill] sm:$0xff] }
 0xc55   :  { %11977 = vst [vmem:[#allocation12 + $0x38] sm:$0xf] %v13710_v25  ;;  %10513 = vmatmul.mubr.bf16.gmra.mrb[120].mxu1 %v20304_v11  ;;  %v20311_v25 = vld [vmem:[#allocation219_spill] sm:$0xff] }
 0xc56   :  { %10520 = vmatprep.mubr.bf16.mxu1 %v20307_v2  ;;  %v20313_v13 = vpack.c.bf16 %v20311_v25, %v20312_v36 }
 0xc58   :  { %v10306_v63 = vpop.f32.mrb[16].mxu1 }
 0xc59   :  { %v13711_v8 = vpack.c.bf16 %v10306_v63, %v10306_v63  ;;  %v10308_v9 = vpop.f32.mrb[17].mxu1 }
 0xc5a   :  { %v10309_v49 = vpop.f32.mrb[18].mxu1  ;;  %v20315_v9 = vld [vmem:[#allocation214_spill] sm:$0xff] }
 0xc5b   :  { %11978 = vst [vmem:[#allocation12 + $0x40] sm:$0xf] %v13711_v8  ;;  %v13712_v1 = vpack.c.bf16 %v10309_v49, %v10309_v49  ;;  %v10311_v21 = vpop.f32.mrb[19].mxu1  ;;  %v20314_v8 = vld [vmem:[#allocation217_spill] sm:$0xff] }
 0xc5c   :  { %v20316_v49 = vpack.c.bf16 %v20314_v8, %v20315_v9  ;;  %v20318_v21 = vld [vmem:[#allocation222_spill] sm:$0xff] }
 0xc5d   :  { %11979 = vst [vmem:[#allocation12 + $0x48] sm:$0xf] %v13712_v1  ;;  %10521 = vmatmul.mubr.bf16.gmra.mrb[124].mxu1 %v20310_v54  ;;  %v20317_v1 = vld [vmem:[#allocation225_spill] sm:$0xff] }
 0xc5e   :  { %10528 = vmatprep.mubr.bf16.mxu1 %v20313_v13  ;;  %v20319_v59 = vpack.c.bf16 %v20317_v1, %v20318_v21 }
 0xc60   :  { %v10314_v41 = vpop.f32.mrb[20].mxu1 }
 0xc61   :  { %v13713_v11 = vpack.c.bf16 %v10314_v41, %v10314_v41  ;;  %v10316_v26 = vpop.f32.mrb[21].mxu1 }
 0xc62   :  { %v10317_v4 = vpop.f32.mrb[22].mxu1  ;;  %v20321_v26 = vld [vmem:[#allocation220_spill] sm:$0xff] }
 0xc63   :  { %11980 = vst [vmem:[#allocation12 + $0x50] sm:$0xf] %v13713_v11  ;;  %v13714_v2 = vpack.c.bf16 %v10317_v4, %v10317_v4  ;;  %v10319_v63 = vpop.f32.mrb[23].mxu1  ;;  %v20320_v11 = vld [vmem:[#allocation223_spill] sm:$0xff] }
 0xc64   :  { %v20322_v4 = vpack.c.bf16 %v20320_v11, %v20321_v26  ;;  %v20324_v63 = vld [vmem:[#allocation228_spill] sm:$0xff] }
 0xc65   :  { %11981 = vst [vmem:[#allocation12 + $0x58] sm:$0xf] %v13714_v2  ;;  %10529 = vmatmul.mubr.bf16.gmra.mrb[128].mxu1 %v20316_v49  ;;  %v20323_v2 = vld [vmem:[#allocation231_spill] sm:$0xff] }
 0xc66   :  { %10536 = vmatprep.mubr.bf16.mxu1 %v20319_v59  ;;  %v20325_v8 = vpack.c.bf16 %v20323_v2, %v20324_v63 }
 0xc68   :  { %v10322_v56 = vpop.f32.mrb[24].mxu1 }
 0xc69   :  { %v13715_v54 = vpack.c.bf16 %v10322_v56, %v10322_v56  ;;  %v10324_v25 = vpop.f32.mrb[25].mxu1 }
 0xc6a   :  { %v10325_v36 = vpop.f32.mrb[26].mxu1  ;;  %v20327_v25 = vld [vmem:[#allocation226_spill] sm:$0xff] }
 0xc6b   :  { %11982 = vst [vmem:[#allocation12 + $0x60] sm:$0xf] %v13715_v54  ;;  %v13716_v13 = vpack.c.bf16 %v10325_v36, %v10325_v36  ;;  %v10327_v41 = vpop.f32.mrb[27].mxu1  ;;  %v20326_v54 = vld [vmem:[#allocation229_spill] sm:$0xff] }
 0xc6c   :  { %v20328_v36 = vpack.c.bf16 %v20326_v54, %v20327_v25  ;;  %v20330_v41 = vld [vmem:[#allocation234_spill] sm:$0xff] }
 0xc6d   :  { %11983 = vst [vmem:[#allocation12 + $0x68] sm:$0xf] %v13716_v13  ;;  %10537 = vmatmul.mubr.bf16.gmra.mrb[132].mxu1 %v20322_v4  ;;  %v20329_v13 = vld [vmem:[#allocation237_spill] sm:$0xff] }
 0xc6e   :  { %10544 = vmatprep.mubr.bf16.mxu1 %v20325_v8  ;;  %v20331_v11 = vpack.c.bf16 %v20329_v13, %v20330_v41 }
 0xc70   :  { %v10330_v9 = vpop.f32.mrb[28].mxu1 }
 0xc71   :  { %v13717_v49 = vpack.c.bf16 %v10330_v9, %v10330_v9  ;;  %v10332_v1 = vpop.f32.mrb[29].mxu1 }
 0xc72   :  { %v10333_v21 = vpop.f32.mrb[30].mxu1  ;;  %v20333_v1 = vld [vmem:[#allocation232_spill] sm:$0xff] }
 0xc73   :  { %11984 = vst [vmem:[#allocation12 + $0x70] sm:$0xf] %v13717_v49  ;;  %v13718_v59 = vpack.c.bf16 %v10333_v21, %v10333_v21  ;;  %v10335_v56 = vpop.f32.mrb[31].mxu1  ;;  %v20332_v49 = vld [vmem:[#allocation235_spill] sm:$0xff] }
 0xc74   :  { %v20334_v21 = vpack.c.bf16 %v20332_v49, %v20333_v1  ;;  %v20336_v56 = vld [vmem:[#allocation239_spill] sm:$0xff] }
 0xc75   :  { %11985 = vst [vmem:[#allocation12 + $0x78] sm:$0xf] %v13718_v59  ;;  %10545 = vmatmul.mubr.bf16.gmra.mrb[136].mxu1 %v20328_v36  ;;  %v20335_v59 = vld [vmem:[#allocation241_spill] sm:$0xff] }
 0xc76   :  { %10552 = vmatprep.mubr.bf16.mxu1 %v20331_v11  ;;  %v20337_v54 = vpack.c.bf16 %v20335_v59, %v20336_v56 }
 0xc78   :  { %v10338_v26 = vpop.f32.mrb[32].mxu1 }
 0xc79   :  { %v13719_v4 = vpack.c.bf16 %v10338_v26, %v10338_v26  ;;  %v10340_v2 = vpop.f32.mrb[33].mxu1 }
 0xc7a   :  { %v10341_v63 = vpop.f32.mrb[34].mxu1  ;;  %v20339_v2 = vld [vmem:[#allocation238_spill] sm:$0xff] }
 0xc7b   :  { %11986 = vst [vmem:[#allocation12 + $0x80] sm:$0xf] %v13719_v4  ;;  %v13720_v8 = vpack.c.bf16 %v10341_v63, %v10341_v63  ;;  %v10343_v9 = vpop.f32.mrb[35].mxu1  ;;  %v20338_v4 = vld [vmem:[#allocation240_spill] sm:$0xff] }
 0xc7c   :  { %v20340_v63 = vpack.c.bf16 %v20338_v4, %v20339_v2  ;;  %v20345_v4 = vld [vmem:[#allocation244_spill] sm:$0xff]  ;;  %v20346_v2 = vld [vmem:[#allocation243_spill] sm:$0xff] }
 0xc7d   :  { %11987 = vst [vmem:[#allocation12 + $0x88] sm:$0xf] %v13720_v8  ;;  %10553 = vmatmul.mubr.bf16.gmra.mrb[140].mxu1 %v20334_v21  ;;  %v20341_v8 = vpack.c.bf16 %v16346_v12, %v16338_v48 }
 0xc7e   :  { %10560 = vmatprep.mubr.bf16.mxu1 %v20337_v54  ;;  %v20342_v54 = vld [vmem:[#allocation242_spill] sm:$0xff] }
 0xc80   :  { %v10346_v25 = vpop.f32.mrb[36].mxu1 }
 0xc81   :  { %v13721_v36 = vpack.c.bf16 %v10346_v25, %v10346_v25  ;;  %v10348_v13 = vpop.f32.mrb[37].mxu1  ;;  %v20343_v25 = vpack.c.bf16 %v16341_v3, %v20342_v54  ;;  %v20348_v3 = vpack.c.bf16 %v16389_v34, %v16381_v33  ;;  %v20352_v54 = vpack.c.bf16 %v16411_v47, %v16403_v29 }
 0xc82   :  { %v10349_v41 = vpop.f32.mrb[38].mxu1 }
 0xc83   :  { %11988 = vst [vmem:[#allocation12 + $0x90] sm:$0xf] %v13721_v36  ;;  %v13722_v11 = vpack.c.bf16 %v10349_v41, %v10349_v41  ;;  %v10351_v26 = vpop.f32.mrb[39].mxu1  ;;  %v20344_v36 = vpack.c.bf16 %v16367_v24, %v16359_v44 }
 0xc85   :  { %11989 = vst [vmem:[#allocation12 + $0x98] sm:$0xf] %v13722_v11  ;;  %10561 = vmatmul.mubr.bf16.gmra.mrb[144].mxu1 %v20340_v63  ;;  %v20347_v63 = vpack.c.bf16 %v20345_v4, %v20346_v2 }
 0xc86   :  { %10568 = vmatprep.mubr.bf16.mxu1 %v20341_v8 }
 0xc88   :  { %v10354_v9 = vpop.f32.mrb[40].mxu1 }
 0xc89   :  { %v13723_v49 = vpack.c.bf16 %v10354_v9, %v10354_v9  ;;  %v10356_v1 = vpop.f32.mrb[41].mxu1 }
 0xc8a   :  { %v10357_v21 = vpop.f32.mrb[42].mxu1 }
 0xc8b   :  { %11990 = vst [vmem:[#allocation12 + $0xa0] sm:$0xf] %v13723_v49  ;;  %v13724_v59 = vpack.c.bf16 %v10357_v21, %v10357_v21  ;;  %v10359_v56 = vpop.f32.mrb[43].mxu1  ;;  %v20349_v21 = vld [vmem:[#allocation246_spill] sm:$0xff] }
 0xc8d   :  { %11991 = vst [vmem:[#allocation12 + $0xa8] sm:$0xf] %v13724_v59  ;;  %10569 = vmatmul.mubr.bf16.gmra.mrb[148].mxu1 %v20343_v25  ;;  %v20350_v59 = vld [vmem:[#allocation245_spill] sm:$0xff] }
 0xc8e   :  { %10576 = vmatprep.mubr.bf16.mxu1 %v20344_v36  ;;  %v20351_v56 = vpack.c.bf16 %v20349_v21, %v20350_v59 }
 0xc90   :  { %v10362_v13 = vpop.f32.mrb[44].mxu1 }
 0xc91   :  { %v13725_v41 = vpack.c.bf16 %v10362_v13, %v10362_v13  ;;  %v10364_v12 = vpop.f32.mrb[45].mxu1 }
 0xc92   :  { %v10365_v48 = vpop.f32.mrb[46].mxu1  ;;  %v20353_v12 = vld [vmem:[#allocation248_spill] sm:$0xff] }
 0xc93   :  { %11992 = vst [vmem:[#allocation12 + $0xb0] sm:$0xf] %v13725_v41  ;;  %v13726_v11 = vpack.c.bf16 %v10365_v48, %v10365_v48  ;;  %v10367_v26 = vpop.f32.mrb[47].mxu1  ;;  %v20354_v48 = vld [vmem:[#allocation247_spill] sm:$0xff] }
 0xc94   :  { %v20356_v26 = vpack.c.bf16 %v16431_v39, %v16423_v51 }
 0xc95   :  { %11993 = vst [vmem:[#allocation12 + $0xb8] sm:$0xf] %v13726_v11  ;;  %10577 = vmatmul.mubr.bf16.gmra.mrb[152].mxu1 %v20347_v63  ;;  %v20355_v11 = vpack.c.bf16 %v20353_v12, %v20354_v48  ;;  %v20365_v12 = vld [vmem:[#allocation254_spill] sm:$0xff]  ;;  %v20366_v48 = vld [vmem:[#allocation253_spill] sm:$0xff] }
 0xc96   :  { %10584 = vmatprep.mubr.bf16.mxu1 %v20348_v3 }
 0xc98   :  { %v10370_v8 = vpop.f32.mrb[48].mxu1 }
 0xc99   :  { %v13727_v9 = vpack.c.bf16 %v10370_v8, %v10370_v8  ;;  %v10372_v44 = vpop.f32.mrb[49].mxu1  ;;  %v20357_v8 = vld [vmem:[#allocation250_spill] sm:$0xff] }
 0xc9a   :  { %v10373_v24 = vpop.f32.mrb[50].mxu1 }
 0xc9b   :  { %11994 = vst [vmem:[#allocation12 + $0xc0] sm:$0xf] %v13727_v9  ;;  %v13728_v49 = vpack.c.bf16 %v10373_v24, %v10373_v24  ;;  %v10375_v1 = vpop.f32.mrb[51].mxu1  ;;  %v20358_v9 = vld [vmem:[#allocation249_spill] sm:$0xff]  ;;  %v20360_v24 = vpack.c.bf16 %v16452_v5, %v16444_v23 }
 0xc9c   :  { %v20359_v44 = vpack.c.bf16 %v20357_v8, %v20358_v9  ;;  %v20372_v9 = vpack.c.bf16 %v16512_v18, %v16504_v62 }
 0xc9d   :  { %11995 = vst [vmem:[#allocation12 + $0xc8] sm:$0xf] %v13728_v49  ;;  %10585 = vmatmul.mubr.bf16.gmra.mrb[156].mxu1 %v20351_v56  ;;  %v20361_v56 = vld [vmem:[#allocation252_spill] sm:$0xff] }
 0xc9e   :  { %10592 = vmatprep.mubr.bf16.mxu1 %v20352_v54  ;;  %v20362_v54 = vld [vmem:[#allocation251_spill] sm:$0xff] }
 0xca0   :  { %v10378_v25 = vpop.f32.mrb[52].mxu1 }
 0xca1   :  { %v13729_v36 = vpack.c.bf16 %v10378_v25, %v10378_v25  ;;  %v10380_v33 = vpop.f32.mrb[53].mxu1  ;;  %v20363_v25 = vpack.c.bf16 %v20361_v56, %v20362_v54 }
 0xca2   :  { %v10381_v34 = vpop.f32.mrb[54].mxu1 }
 0xca3   :  { %11996 = vst [vmem:[#allocation12 + $0xd0] sm:$0xf] %v13729_v36  ;;  %v13730_v13 = vpack.c.bf16 %v10381_v34, %v10381_v34  ;;  %v10383_v41 = vpop.f32.mrb[55].mxu1  ;;  %v20364_v36 = vpack.c.bf16 %v16472_v19, %v16464_v38 }
 0xca5   :  { %11997 = vst [vmem:[#allocation12 + $0xd8] sm:$0xf] %v13730_v13  ;;  %10593 = vmatmul.mubr.bf16.gmra.mrb[160].mxu1 %v20355_v11  ;;  %v20367_v11 = vpack.c.bf16 %v20365_v12, %v20366_v48 }
 0xca6   :  { %10600 = vmatprep.mubr.bf16.mxu1 %v20356_v26  ;;  %v20368_v26 = vpack.c.bf16 %v16492_v50, %v16484_v40 }
 0xca8   :  { %v10386_v4 = vpop.f32.mrb[56].mxu1 }
 0xca9   :  { %v13731_v2 = vpack.c.bf16 %v10386_v4, %v10386_v4  ;;  %v10388_v29 = vpop.f32.mrb[57].mxu1 }
 0xcaa   :  { %v10389_v47 = vpop.f32.mrb[58].mxu1 }
 0xcab   :  { %11998 = vst [vmem:[#allocation12 + $0xe0] sm:$0xf] %v13731_v2  ;;  %v13732_v63 = vpack.c.bf16 %v10389_v47, %v10389_v47  ;;  %v10391_v3 = vpop.f32.mrb[59].mxu1 }
 0xcac   :  { %v20370_v3 = vld [vmem:[#allocation255_spill] sm:$0xff] }
 0xcad   :  { %11999 = vst [vmem:[#allocation12 + $0xe8] sm:$0xf] %v13732_v63  ;;  %10601 = vmatmul.mubr.bf16.gmra.mrb[164].mxu1 %v20359_v44  ;;  %v20369_v63 = vld [vmem:[#allocation256_spill] sm:$0xff] }
 0xcae   :  { %10608 = vmatprep.mubr.bf16.mxu1 %v20360_v24  ;;  %v20371_v8 = vpack.c.bf16 %v20369_v63, %v20370_v3  ;;  %v20385_v63 = vld [vmem:[#allocation264_spill] sm:$0xff]  ;;  %v20386_v3 = vld [vmem:[#allocation263_spill] sm:$0xff] }
 0xcb0   :  { %v10394_v49 = vpop.f32.mrb[60].mxu1 }
 0xcb1   :  { %v13733_v1 = vpack.c.bf16 %v10394_v49, %v10394_v49  ;;  %v10396_v51 = vpop.f32.mrb[61].mxu1 }
 0xcb2   :  { %v10397_v39 = vpop.f32.mrb[62].mxu1  ;;  %v20373_v51 = vld [vmem:[#allocation258_spill] sm:$0xff] }
 0xcb3   :  { %12000 = vst [vmem:[#allocation12 + $0xf0] sm:$0xf] %v13733_v1  ;;  %v13734_v21 = vpack.c.bf16 %v10397_v39, %v10397_v39  ;;  %v10399_v59 = vpop.f32.mrb[63].mxu1  ;;  %v20374_v39 = vld [vmem:[#allocation257_spill] sm:$0xff] }
 0xcb4   :  { %v20376_v59 = vpack.c.bf16 %v16533_v55, %v16525_v16 }
 0xcb5   :  { %12001 = vst [vmem:[#allocation12 + $0xf8] sm:$0xf] %v13734_v21  ;;  %10609 = vmatmul.mubr.bf16.gmra.mrb[168].mxu1 %v20363_v25  ;;  %v20375_v21 = vpack.c.bf16 %v20373_v51, %v20374_v39  ;;  %v20392_v39 = vpack.c.bf16 %v16614_v53, %v16606_v10 }
 0xcb6   :  { %10616 = vmatprep.mubr.bf16.mxu1 %v20364_v36 }
 0xcb8   :  { %v10402_v33 = vpop.f32.mrb[64].mxu1 }
 0xcb9   :  { %v13735_v34 = vpack.c.bf16 %v10402_v33, %v10402_v33  ;;  %v10404_v23 = vpop.f32.mrb[65].mxu1  ;;  %v20377_v33 = vld [vmem:[#allocation260_spill] sm:$0xff] }
 0xcba   :  { %v10405_v5 = vpop.f32.mrb[66].mxu1 }
 0xcbb   :  { %12002 = vst [vmem:[#allocation12 + $0x100] sm:$0xf] %v13735_v34  ;;  %v13736_v13 = vpack.c.bf16 %v10405_v5, %v10405_v5  ;;  %v10407_v41 = vpop.f32.mrb[67].mxu1  ;;  %v20378_v34 = vld [vmem:[#allocation259_spill] sm:$0xff]  ;;  %v20380_v5 = vpack.c.bf16 %v16553_v58, %v16545_v7 }
 0xcbc   :  { %v20379_v23 = vpack.c.bf16 %v20377_v33, %v20378_v34 }
 0xcbd   :  { %12003 = vst [vmem:[#allocation12 + $0x108] sm:$0xf] %v13736_v13  ;;  %10617 = vmatmul.mubr.bf16.gmra.mrb[172].mxu1 %v20367_v11  ;;  %v20381_v11 = vld [vmem:[#allocation262_spill] sm:$0xff] }
 0xcbe   :  { %10624 = vmatprep.mubr.bf16.mxu1 %v20368_v26  ;;  %v20382_v26 = vld [vmem:[#allocation261_spill] sm:$0xff] }
 0xcc0   :  { %v10410_v4 = vpop.f32.mrb[68].mxu1 }
 0xcc1   :  { %v13737_v2 = vpack.c.bf16 %v10410_v4, %v10410_v4  ;;  %v10412_v19 = vpop.f32.mrb[69].mxu1  ;;  %v20383_v4 = vpack.c.bf16 %v20381_v11, %v20382_v26 }
 0xcc2   :  { %v10413_v38 = vpop.f32.mrb[70].mxu1 }
 0xcc3   :  { %12004 = vst [vmem:[#allocation12 + $0x110] sm:$0xf] %v13737_v2  ;;  %v13738_v29 = vpack.c.bf16 %v10413_v38, %v10413_v38  ;;  %v10415_v47 = vpop.f32.mrb[71].mxu1  ;;  %v20384_v2 = vpack.c.bf16 %v16573_v30, %v16565_v0 }
 0xcc5   :  { %12005 = vst [vmem:[#allocation12 + $0x118] sm:$0xf] %v13738_v29  ;;  %10625 = vmatmul.mubr.bf16.gmra.mrb[176].mxu1 %v20371_v8  ;;  %v20387_v8 = vpack.c.bf16 %v20385_v63, %v20386_v3  ;;  %v20405_v63 = vld [vmem:[#allocation274_spill] sm:$0xff]  ;;  %v20406_v3 = vld [vmem:[#allocation273_spill] sm:$0xff] }
 0xcc6   :  { %10632 = vmatprep.mubr.bf16.mxu1 %v20372_v9  ;;  %v20388_v9 = vpack.c.bf16 %v16593_v22, %v16585_v42 }
 0xcc8   :  { %v10418_v44 = vpop.f32.mrb[72].mxu1 }
 0xcc9   :  { %v13739_v24 = vpack.c.bf16 %v10418_v44, %v10418_v44  ;;  %v10420_v40 = vpop.f32.mrb[73].mxu1 }
 0xcca   :  { %v10421_v50 = vpop.f32.mrb[74].mxu1 }
 0xccb   :  { %12006 = vst [vmem:[#allocation12 + $0x120] sm:$0xf] %v13739_v24  ;;  %v13740_v49 = vpack.c.bf16 %v10421_v50, %v10421_v50  ;;  %v10423_v1 = vpop.f32.mrb[75].mxu1 }
 0xccc   :  { %v20390_v1 = vld [vmem:[#allocation265_spill] sm:$0xff] }
 0xccd   :  { %12007 = vst [vmem:[#allocation12 + $0x128] sm:$0xf] %v13740_v49  ;;  %10633 = vmatmul.mubr.bf16.gmra.mrb[180].mxu1 %v20375_v21  ;;  %v20389_v49 = vld [vmem:[#allocation266_spill] sm:$0xff] }
 0xcce   :  { %10640 = vmatprep.mubr.bf16.mxu1 %v20376_v59  ;;  %v20391_v51 = vpack.c.bf16 %v20389_v49, %v20390_v1  ;;  %v20412_v1 = vpack.c.bf16 %v16715_v37, %v16707_v6 }
 0xcd0   :  { %v10426_v56 = vpop.f32.mrb[76].mxu1 }
 0xcd1   :  { %v13741_v54 = vpack.c.bf16 %v10426_v56, %v10426_v56  ;;  %v10428_v62 = vpop.f32.mrb[77].mxu1 }
 0xcd2   :  { %v10429_v18 = vpop.f32.mrb[78].mxu1  ;;  %v20393_v62 = vld [vmem:[#allocation268_spill] sm:$0xff] }
 0xcd3   :  { %12008 = vst [vmem:[#allocation12 + $0x130] sm:$0xf] %v13741_v54  ;;  %v13742_v25 = vpack.c.bf16 %v10429_v18, %v10429_v18  ;;  %v10431_v36 = vpop.f32.mrb[79].mxu1  ;;  %v20394_v18 = vld [vmem:[#allocation267_spill] sm:$0xff] }
 0xcd4   :  { %v20396_v36 = vpack.c.bf16 %v16634_v35, %v16626_v61 }
 0xcd5   :  { %12009 = vst [vmem:[#allocation12 + $0x138] sm:$0xf] %v13742_v25  ;;  %10641 = vmatmul.mubr.bf16.gmra.mrb[184].mxu1 %v20379_v23  ;;  %v20395_v25 = vpack.c.bf16 %v20393_v62, %v20394_v18 }
 0xcd6   :  { %10648 = vmatprep.mubr.bf16.mxu1 %v20380_v5 }
 0xcd8   :  { %v10434_v13 = vpop.f32.mrb[80].mxu1 }
 0xcd9   :  { %v13743_v41 = vpack.c.bf16 %v10434_v13, %v10434_v13  ;;  %v10436_v16 = vpop.f32.mrb[81].mxu1  ;;  %v20397_v13 = vld [vmem:[#allocation270_spill] sm:$0xff] }
 0xcda   :  { %v10437_v55 = vpop.f32.mrb[82].mxu1 }
 0xcdb   :  { %12010 = vst [vmem:[#allocation12 + $0x140] sm:$0xf] %v13743_v41  ;;  %v13744_v12 = vpack.c.bf16 %v10437_v55, %v10437_v55  ;;  %v10439_v48 = vpop.f32.mrb[83].mxu1  ;;  %v20398_v41 = vld [vmem:[#allocation269_spill] sm:$0xff]  ;;  %v20400_v55 = vpack.c.bf16 %v16654_v27, %v16646_v60 }
 0xcdc   :  { %v20399_v16 = vpack.c.bf16 %v20397_v13, %v20398_v41 }
 0xcdd   :  { %12011 = vst [vmem:[#allocation12 + $0x148] sm:$0xf] %v13744_v12  ;;  %10649 = vmatmul.mubr.bf16.gmra.mrb[188].mxu1 %v20383_v4  ;;  %v20401_v4 = vld [vmem:[#allocation272_spill] sm:$0xff] }
 0xcde   :  { %10656 = vmatprep.mubr.bf16.mxu1 %v20384_v2  ;;  %v20402_v2 = vld [vmem:[#allocation271_spill] sm:$0xff] }
 0xce0   :  { %v10442_v19 = vpop.f32.mrb[84].mxu1 }
 0xce1   :  { %v13745_v38 = vpack.c.bf16 %v10442_v19, %v10442_v19  ;;  %v10444_v58 = vpop.f32.mrb[85].mxu1  ;;  %v20403_v19 = vpack.c.bf16 %v20401_v4, %v20402_v2  ;;  %v20426_v2 = vld [vmem:[#allocation285_spill] sm:$0xff] }
 0xce2   :  { %v10445_v7 = vpop.f32.mrb[86].mxu1 }
 0xce3   :  { %12012 = vst [vmem:[#allocation12 + $0x150] sm:$0xf] %v13745_v38  ;;  %v13746_v29 = vpack.c.bf16 %v10445_v7, %v10445_v7  ;;  %v10447_v47 = vpop.f32.mrb[87].mxu1  ;;  %v20404_v38 = vpack.c.bf16 %v16674_v17, %v16666_v45 }
 0xce5   :  { %12013 = vst [vmem:[#allocation12 + $0x158] sm:$0xf] %v13746_v29  ;;  %10657 = vmatmul.mubr.bf16.gmra.mrb[192].mxu1 %v20387_v8  ;;  %v20407_v8 = vpack.c.bf16 %v20405_v63, %v20406_v3 }
 0xce6   :  { %10664 = vmatprep.mubr.bf16.mxu1 %v20388_v9  ;;  %v20408_v9 = vpack.c.bf16 %v16695_v57, %v16687_v28 }
 0xce8   :  { %v10450_v44 = vpop.f32.mrb[88].mxu1 }
 0xce9   :  { %v13747_v24 = vpack.c.bf16 %v10450_v44, %v10450_v44  ;;  %v10452_v0 = vpop.f32.mrb[89].mxu1 }
 0xcea   :  { %v10453_v30 = vpop.f32.mrb[90].mxu1 }
 0xceb   :  { %12014 = vst [vmem:[#allocation12 + $0x160] sm:$0xf] %v13747_v24  ;;  %v13748_v40 = vpack.c.bf16 %v10453_v30, %v10453_v30  ;;  %v10455_v50 = vpop.f32.mrb[91].mxu1 }
 0xcec   :  { %v20410_v50 = vld [vmem:[#allocation275_spill] sm:$0xff] }
 0xced   :  { %12015 = vst [vmem:[#allocation12 + $0x168] sm:$0xf] %v13748_v40  ;;  %10665 = vmatmul.mubr.bf16.gmra.mrb[196].mxu1 %v20391_v51  ;;  %v20409_v40 = vld [vmem:[#allocation276_spill] sm:$0xff] }
 0xcee   :  { %10672 = vmatprep.mubr.bf16.mxu1 %v20392_v39  ;;  %v20411_v49 = vpack.c.bf16 %v20409_v40, %v20410_v50 }
 0xcf0   :  { %v10458_v21 = vpop.f32.mrb[92].mxu1 }
 0xcf1   :  { %v13749_v59 = vpack.c.bf16 %v10458_v21, %v10458_v21  ;;  %v10460_v42 = vpop.f32.mrb[93].mxu1 }
 0xcf2   :  { %v10461_v22 = vpop.f32.mrb[94].mxu1  ;;  %v20413_v42 = vld [vmem:[#allocation278_spill] sm:$0xff] }
 0xcf3   :  { %12016 = vst [vmem:[#allocation12 + $0x170] sm:$0xf] %v13749_v59  ;;  %v13750_v56 = vpack.c.bf16 %v10461_v22, %v10461_v22  ;;  %v10463_v54 = vpop.f32.mrb[95].mxu1  ;;  %v20414_v22 = vld [vmem:[#allocation277_spill] sm:$0xff] }
 0xcf4   :  { %v20416_v54 = vpack.c.bf16 %v16735_v52, %v16727_v14 }
 0xcf5   :  { %12017 = vst [vmem:[#allocation12 + $0x178] sm:$0xf] %v13750_v56  ;;  %10673 = vmatmul.mubr.bf16.gmra.mrb[200].mxu1 %v20395_v25  ;;  %v20415_v56 = vpack.c.bf16 %v20413_v42, %v20414_v22 }
 0xcf6   :  { %10680 = vmatprep.mubr.bf16.mxu1 %v20396_v36 }
 0xcf8   :  { %v10466_v33 = vpop.f32.mrb[96].mxu1 }
 0xcf9   :  { %v13751_v34 = vpack.c.bf16 %v10466_v33, %v10466_v33  ;;  %v10468_v10 = vpop.f32.mrb[97].mxu1  ;;  %v20417_v33 = vld [vmem:[#allocation280_spill] sm:$0xff] }
 0xcfa   :  { %v10469_v53 = vpop.f32.mrb[98].mxu1 }
 0xcfb   :  { %12018 = vst [vmem:[#allocation12 + $0x180] sm:$0xf] %v13751_v34  ;;  %v13752_v23 = vpack.c.bf16 %v10469_v53, %v10469_v53  ;;  %v10471_v5 = vpop.f32.mrb[99].mxu1  ;;  %v20418_v34 = vld [vmem:[#allocation279_spill] sm:$0xff]  ;;  %v20420_v53 = vpack.c.bf16 %v16755_v43, %v16747_v32 }
 0xcfc   :  { %v20419_v10 = vpack.c.bf16 %v20417_v33, %v20418_v34  ;;  %v20448_v33 = vld [vmem:[#allocation22_spill] sm:$0xff] }
 0xcfd   :  { %12019 = vst [vmem:[#allocation12 + $0x188] sm:$0xf] %v13752_v23  ;;  %10681 = vmatmul.mubr.bf16.gmra.mrb[204].mxu1 %v20399_v16  ;;  %v20421_v16 = vld [vmem:[#allocation282_spill] sm:$0xff] }
 0xcfe   :  { %10688 = vmatprep.mubr.bf16.mxu1 %v20400_v55  ;;  %v20422_v55 = vld [vmem:[#allocation281_spill] sm:$0xff] }
 0xd00   :  { %v10474_v12 = vpop.f32.mrb[100].mxu1 }
 0xd01   :  { %v13753_v48 = vpack.c.bf16 %v10474_v12, %v10474_v12  ;;  %v10476_v35 = vpop.f32.mrb[101].mxu1  ;;  %v20423_v12 = vpack.c.bf16 %v20421_v16, %v20422_v55  ;;  %v20453_v55 = vld [vmem:[#allocation299_spill] sm:$0xff] }
 0xd02   :  { %v10477_v61 = vpop.f32.mrb[102].mxu1 }
 0xd03   :  { %12020 = vst [vmem:[#allocation12 + $0x190] sm:$0xf] %v13753_v48  ;;  %v13754_v11 = vpack.c.bf16 %v10477_v61, %v10477_v61  ;;  %v10479_v26 = vpop.f32.mrb[103].mxu1  ;;  %v20424_v48 = vld [vmem:[#allocation284_spill] sm:$0xff] }
 0xd04   :  { %v20425_v35 = vpack.c.bf16 %v16776_v46, %v20424_v48 }
 0xd05   :  { %12021 = vst [vmem:[#allocation12 + $0x198] sm:$0xf] %v13754_v11  ;;  %10689 = vmatmul.mubr.bf16.gmra.mrb[208].mxu1 %v20403_v19  ;;  %v20427_v19 = vld [vmem:[#allocation283_spill] sm:$0xff] }
 0xd06   :  { %10696 = vmatprep.mubr.bf16.mxu1 %v20404_v38  ;;  %v20428_v38 = vpack.c.bf16 %v20426_v2, %v20427_v19  ;;  %v20457_v2 = vld [vmem:[#allocation24_spill] sm:$0xff] }
 0xd08   :  { %v10482_v58 = vpop.f32.mrb[104].mxu1 }
 0xd09   :  { %v13755_v7 = vpack.c.bf16 %v10482_v58, %v10482_v58  ;;  %v10484_v60 = vpop.f32.mrb[105].mxu1  ;;  %v20429_v58 = vld [vmem:[#allocation289_spill] sm:$0xff] }
 0xd0a   :  { %v10485_v27 = vpop.f32.mrb[106].mxu1 }
 0xd0b   :  { %12022 = vst [vmem:[#allocation12 + $0x1a0] sm:$0xf] %v13755_v7  ;;  %v13756_v29 = vpack.c.bf16 %v10485_v27, %v10485_v27  ;;  %v10487_v47 = vpop.f32.mrb[107].mxu1  ;;  %v20430_v7 = vld [vmem:[#allocation287_spill] sm:$0xff] }
 0xd0c   :  { %v20431_v60 = vpack.c.bf16 %v20429_v58, %v20430_v7  ;;  %v20460_v58 = vld [vmem:[#allocation25_spill] sm:$0xff] }
 0xd0d   :  { %12023 = vst [vmem:[#allocation12 + $0x1a8] sm:$0xf] %v13756_v29  ;;  %10697 = vmatmul.mubr.bf16.gmra.mrb[212].mxu1 %v20407_v8  ;;  %v20432_v8 = vld [vmem:[#allocation288_spill] sm:$0xff] }
 0xd0e   :  { %10704 = vmatprep.mubr.bf16.mxu1 %v20408_v9  ;;  %v20433_v9 = vld [vmem:[#allocation286_spill] sm:$0xff] }
 0xd10   :  { %v10490_v44 = vpop.f32.mrb[108].mxu1 }
 0xd11   :  { %v13757_v24 = vpack.c.bf16 %v10490_v44, %v10490_v44  ;;  %v10492_v45 = vpop.f32.mrb[109].mxu1  ;;  %v20434_v44 = vpack.c.bf16 %v20432_v8, %v20433_v9  ;;  %v20463_v8 = vld [vmem:[#allocation26_spill] sm:$0xff] }
 0xd12   :  { %v10493_v17 = vpop.f32.mrb[110].mxu1  ;;  %v20436_v45 = vld [vmem:[#allocation290_spill] sm:$0xff] }
 0xd13   :  { %12024 = vst [vmem:[#allocation12 + $0x1b0] sm:$0xf] %v13757_v24  ;;  %v13758_v0 = vpack.c.bf16 %v10493_v17, %v10493_v17  ;;  %v10495_v30 = vpop.f32.mrb[111].mxu1  ;;  %v20435_v24 = vld [vmem:[#allocation292_spill] sm:$0xff] }
 0xd14   :  { %v20437_v17 = vpack.c.bf16 %v20435_v24, %v20436_v45  ;;  %v20466_v24 = vld [vmem:[#allocation28_spill] sm:$0xff] }
 0xd15   :  { %12025 = vst [vmem:[#allocation12 + $0x1b8] sm:$0xf] %v13758_v0  ;;  %10705 = vmatmul.mubr.bf16.gmra.mrb[216].mxu1 %v20411_v49 }
 0xd16   :  { %10712 = vmatprep.mubr.bf16.mxu1 %v20412_v1 }
 0xd18   :  { %v10498_v51 = vpop.f32.mrb[112].mxu1 }
 0xd19   :  { %v13759_v39 = vpack.c.bf16 %v10498_v51, %v10498_v51  ;;  %v10500_v28 = vpop.f32.mrb[113].mxu1  ;;  %v20438_v51 = vld [vmem:[#allocation291_spill] sm:$0xff] }
 0xd1a   :  { %v10501_v57 = vpop.f32.mrb[114].mxu1 }
 0xd1b   :  { %12026 = vst [vmem:[#allocation12 + $0x1c0] sm:$0xf] %v13759_v39  ;;  %v13760_v21 = vpack.c.bf16 %v10501_v57, %v10501_v57  ;;  %v10503_v59 = vpop.f32.mrb[115].mxu1  ;;  %v20439_v39 = vld [vmem:[#allocation19_spill] sm:$0xff]  ;;  %v20441_v57 = vld [vmem:[#allocation294_spill] sm:$0xff] }
 0xd1c   :  { %v20440_v28 = vpack.c.bf16 %v20438_v51, %v20439_v39  ;;  %v20469_v51 = vld [vmem:[#allocation31_spill] sm:$0xff] }
 0xd1d   :  { %12027 = vst [vmem:[#allocation12 + $0x1c8] sm:$0xf] %v13760_v21  ;;  %10713 = vmatmul.mubr.bf16.gmra.mrb[220].mxu1 %v20415_v56  ;;  %v20442_v21 = vld [vmem:[#allocation20_spill] sm:$0xff] }
 0xd1e   :  { %10720 = vmatprep.mubr.bf16.mxu1 %v20416_v54  ;;  %v20443_v59 = vpack.c.bf16 %v20441_v57, %v20442_v21  ;;  %v20472_v57 = vld [vmem:[#allocation34_spill] sm:$0xff] }
 0xd20   :  { %v10506_v62 = vpop.f32.mrb[116].mxu1 }
 0xd21   :  { %v13761_v18 = vpack.c.bf16 %v10506_v62, %v10506_v62  ;;  %v10508_v37 = vpop.f32.mrb[117].mxu1 }
 0xd22   :  { %v10509_v6 = vpop.f32.mrb[118].mxu1  ;;  %v20444_v37 = vld [vmem:[#allocation293_spill] sm:$0xff] }
 0xd23   :  { %12028 = vst [vmem:[#allocation12 + $0x1d0] sm:$0xf] %v13761_v18  ;;  %v13762_v25 = vpack.c.bf16 %v10509_v6, %v10509_v6  ;;  %v10511_v36 = vpop.f32.mrb[119].mxu1  ;;  %v20445_v6 = vld [vmem:[#allocation21_spill] sm:$0xff] }
 0xd24   :  { %v20447_v36 = vld [vmem:[#allocation296_spill] sm:$0xff] }
 0xd25   :  { %12029 = vst [vmem:[#allocation12 + $0x1d8] sm:$0xf] %v13762_v25  ;;  %10721 = vmatmul.mubr.bf16.gmra.mrb[224].mxu1 %v20419_v10  ;;  %v20446_v25 = vpack.c.bf16 %v20444_v37, %v20445_v6  ;;  %v20449_v34 = vpack.c.bf16 %v20447_v36, %v20448_v33  ;;  %v20475_v37 = vld [vmem:[#allocation37_spill] sm:$0xff]  ;;  %v20478_v36 = vld [vmem:[#allocation40_spill] sm:$0xff] }
 0xd26   :  { %10728 = vmatprep.mubr.bf16.mxu1 %v20420_v53 }
 0xd28   :  { %v10514_v23 = vpop.f32.mrb[120].mxu1 }
 0xd29   :  { %v13763_v5 = vpack.c.bf16 %v10514_v23, %v10514_v23  ;;  %v10516_v14 = vpop.f32.mrb[121].mxu1 }
 0xd2a   :  { %v10517_v52 = vpop.f32.mrb[122].mxu1 }
 0xd2b   :  { %12030 = vst [vmem:[#allocation12 + $0x1e0] sm:$0xf] %v13763_v5  ;;  %v13764_v13 = vpack.c.bf16 %v10517_v52, %v10517_v52  ;;  %v10519_v41 = vpop.f32.mrb[123].mxu1 }
 0xd2c   :  { %v20451_v41 = vld [vmem:[#allocation23_spill] sm:$0xff] }
 0xd2d   :  { %12031 = vst [vmem:[#allocation12 + $0x1e8] sm:$0xf] %v13764_v13  ;;  %10729 = vmatmul.mubr.bf16.gmra.mrb[228].mxu1 %v20423_v12  ;;  %v20450_v13 = vld [vmem:[#allocation295_spill] sm:$0xff]  ;;  %v20454_v12 = vld [vmem:[#allocation297_spill] sm:$0xff] }
 0xd2e   :  { %10736 = vmatprep.mubr.bf16.mxu1 %v20425_v35  ;;  %v20452_v16 = vpack.c.bf16 %v20450_v13, %v20451_v41  ;;  %v20455_v48 = vpack.c.bf16 %v20453_v55, %v20454_v12  ;;  %v20481_v13 = vld [vmem:[#allocation43_spill] sm:$0xff]  ;;  %v20484_v55 = vld [vmem:[#allocation46_spill] sm:$0xff] }
 0xd30   :  { %v10522_v61 = vpop.f32.mrb[124].mxu1 }
 0xd31   :  { %v13765_v11 = vpack.c.bf16 %v10522_v61, %v10522_v61  ;;  %v10524_v32 = vpop.f32.mrb[125].mxu1 }
 0xd32   :  { %v10525_v43 = vpop.f32.mrb[126].mxu1 }
 0xd33   :  { %12032 = vst [vmem:[#allocation12 + $0x1f0] sm:$0xf] %v13765_v11  ;;  %v13766_v26 = vpack.c.bf16 %v10525_v43, %v10525_v43  ;;  %v10527_v4 = vpop.f32.mrb[127].mxu1 }
 0xd34   :  { %v20456_v4 = vld [vmem:[#allocation298_spill] sm:$0xff] }
 0xd35   :  { %12033 = vst [vmem:[#allocation12 + $0x1f8] sm:$0xf] %v13766_v26  ;;  %10737 = vmatmul.mubr.bf16.gmra.mrb[232].mxu1 %v20428_v38  ;;  %v20458_v19 = vpack.c.bf16 %v20456_v4, %v20457_v2  ;;  %v20459_v38 = vld [vmem:[#allocation301_spill] sm:$0xff] }
 0xd36   :  { %10744 = vmatprep.mubr.bf16.mxu1 %v20431_v60  ;;  %v20461_v7 = vpack.c.bf16 %v20459_v38, %v20460_v58  ;;  %v20487_v4 = vld [vmem:[#allocation49_spill] sm:$0xff]  ;;  %v20490_v38 = vld [vmem:[#allocation52_spill] sm:$0xff] }
 0xd38   :  { %v10530_v27 = vpop.f32.mrb[128].mxu1 }
 0xd39   :  { %v13767_v29 = vpack.c.bf16 %v10530_v27, %v10530_v27  ;;  %v10532_v46 = vpop.f32.mrb[129].mxu1 }
 0xd3a   :  { %v10533_v47 = vpop.f32.mrb[130].mxu1 }
 0xd3b   :  { %12034 = vst [vmem:[#allocation12 + $0x200] sm:$0xf] %v13767_v29  ;;  %v13768_v63 = vpack.c.bf16 %v10533_v47, %v10533_v47  ;;  %v10535_v3 = vpop.f32.mrb[131].mxu1 }
 0xd3c   :  { %v20462_v3 = vld [vmem:[#allocation300_spill] sm:$0xff] }
 0xd3d   :  { %12035 = vst [vmem:[#allocation12 + $0x208] sm:$0xf] %v13768_v63  ;;  %10745 = vmatmul.mubr.bf16.gmra.mrb[236].mxu1 %v20434_v44  ;;  %v20464_v9 = vpack.c.bf16 %v20462_v3, %v20463_v8  ;;  %v20465_v44 = vld [vmem:[#allocation303_spill] sm:$0xff] }
 0xd3e   :  { %10752 = vmatprep.mubr.bf16.mxu1 %v20437_v17  ;;  %v20467_v45 = vpack.c.bf16 %v20465_v44, %v20466_v24  ;;  %v20493_v3 = vld [vmem:[#allocation55_spill] sm:$0xff]  ;;  %v20496_v44 = vld [vmem:[#allocation58_spill] sm:$0xff] }
 0xd40   :  { %v10538_v0 = vpop.f32.mrb[132].mxu1 }
 0xd41   :  { %v13769_v30 = vpack.c.bf16 %v10538_v0, %v10538_v0  ;;  %v10540_v40 = vpop.f32.mrb[133].mxu1 }
 0xd42   :  { %v10541_v50 = vpop.f32.mrb[134].mxu1 }
 0xd43   :  { %12036 = vst [vmem:[#allocation12 + $0x210] sm:$0xf] %v13769_v30  ;;  %v13770_v49 = vpack.c.bf16 %v10541_v50, %v10541_v50  ;;  %v10543_v1 = vpop.f32.mrb[135].mxu1 }
 0xd44   :  { %v20468_v1 = vld [vmem:[#allocation302_spill] sm:$0xff] }
 0xd45   :  { %12037 = vst [vmem:[#allocation12 + $0x218] sm:$0xf] %v13770_v49  ;;  %10753 = vmatmul.mubr.bf16.gmra.mrb[240].mxu1 %v20440_v28  ;;  %v20470_v39 = vpack.c.bf16 %v20468_v1, %v20469_v51  ;;  %v20471_v28 = vld [vmem:[#allocation305_spill] sm:$0xff] }
 0xd46   :  { %10760 = vmatprep.mubr.bf16.mxu1 %v20443_v59  ;;  %v20473_v21 = vpack.c.bf16 %v20471_v28, %v20472_v57  ;;  %v20499_v1 = vld [vmem:[#allocation61_spill] sm:$0xff] }
 0xd48   :  { %v10546_v42 = vpop.f32.mrb[136].mxu1 }
 0xd49   :  { %v13771_v22 = vpack.c.bf16 %v10546_v42, %v10546_v42  ;;  %v10548_v56 = vpop.f32.mrb[137].mxu1 }
 0xd4a   :  { %v10549_v54 = vpop.f32.mrb[138].mxu1 }
 0xd4b   :  { %12038 = vst [vmem:[#allocation12 + $0x220] sm:$0xf] %v13771_v22  ;;  %v13772_v62 = vpack.c.bf16 %v10549_v54, %v10549_v54  ;;  %v10551_v18 = vpop.f32.mrb[139].mxu1 }
 0xd4c   :  { %v20474_v18 = vld [vmem:[#allocation304_spill] sm:$0xff] }
 0xd4d   :  { %12039 = vst [vmem:[#allocation12 + $0x228] sm:$0xf] %v13772_v62  ;;  %10761 = vmatmul.mubr.bf16.gmra.mrb[244].mxu1 %v20446_v25  ;;  %v20476_v6 = vpack.c.bf16 %v20474_v18, %v20475_v37  ;;  %v20477_v25 = vld [vmem:[#allocation307_spill] sm:$0xff]  ;;  %v20506_v37 = vld [vmem:[#allocation70_spill] sm:$0xff] }
 0xd4e   :  { %10768 = vmatprep.mubr.bf16.mxu1 %v20449_v34  ;;  %v20479_v33 = vpack.c.bf16 %v20477_v25, %v20478_v36  ;;  %v20505_v18 = vld [vmem:[#allocation315_spill] sm:$0xff] }
 0xd50   :  { %v10554_v10 = vpop.f32.mrb[140].mxu1 }
 0xd51   :  { %v13773_v53 = vpack.c.bf16 %v10554_v10, %v10554_v10  ;;  %v10556_v23 = vpop.f32.mrb[141].mxu1 }
 0xd52   :  { %v10557_v5 = vpop.f32.mrb[142].mxu1 }
 0xd53   :  { %12040 = vst [vmem:[#allocation12 + $0x230] sm:$0xf] %v13773_v53  ;;  %v13774_v14 = vpack.c.bf16 %v10557_v5, %v10557_v5  ;;  %v10559_v52 = vpop.f32.mrb[143].mxu1 }
 0xd54   :  { %v20480_v52 = vld [vmem:[#allocation306_spill] sm:$0xff] }
 0xd55   :  { %12041 = vst [vmem:[#allocation12 + $0x238] sm:$0xf] %v13774_v14  ;;  %10769 = vmatmul.mubr.bf16.gmra.mrb[248].mxu1 %v20452_v16  ;;  %v20482_v41 = vpack.c.bf16 %v20480_v52, %v20481_v13  ;;  %v20483_v16 = vld [vmem:[#allocation309_spill] sm:$0xff] }
 0xd56   :  { %10776 = vmatprep.mubr.bf16.mxu1 %v20455_v48  ;;  %v20485_v12 = vpack.c.bf16 %v20483_v16, %v20484_v55 }
 0xd58   :  { %v10562_v35 = vpop.f32.mrb[144].mxu1 }
 0xd59   :  { %v13775_v61 = vpack.c.bf16 %v10562_v35, %v10562_v35  ;;  %v10564_v11 = vpop.f32.mrb[145].mxu1 }
 0xd5a   :  { %v10565_v32 = vpop.f32.mrb[146].mxu1 }
 0xd5b   :  { %12042 = vst [vmem:[#allocation12 + $0x240] sm:$0xf] %v13775_v61  ;;  %v13776_v43 = vpack.c.bf16 %v10565_v32, %v10565_v32  ;;  %v10567_v26 = vpop.f32.mrb[147].mxu1 }
 0xd5c   :  { %v20486_v26 = vld [vmem:[#allocation308_spill] sm:$0xff] }
 0xd5d   :  { %12043 = vst [vmem:[#allocation12 + $0x248] sm:$0xf] %v13776_v43  ;;  %10777 = vmatmul.mubr.bf16.gmra.mrb[252].mxu1 %v20458_v19  ;;  %v20488_v2 = vpack.c.bf16 %v20486_v26, %v20487_v4  ;;  %v20489_v19 = vld [vmem:[#allocation311_spill] sm:$0xff] }
 0xd5e   :  { %10945 = vmatprep.mubr.bf16.mxu1 %v20461_v7  ;;  %v20491_v58 = vpack.c.bf16 %v20489_v19, %v20490_v38 }
 0xd60   :  { %v10570_v60 = vpop.f32.mrb[148].mxu1 }
 0xd61   :  { %v13777_v27 = vpack.c.bf16 %v10570_v60, %v10570_v60  ;;  %v10572_v29 = vpop.f32.mrb[149].mxu1 }
 0xd62   :  { %v10573_v46 = vpop.f32.mrb[150].mxu1 }
 0xd63   :  { %12044 = vst [vmem:[#allocation12 + $0x250] sm:$0xf] %v13777_v27  ;;  %v13778_v47 = vpack.c.bf16 %v10573_v46, %v10573_v46  ;;  %v10575_v63 = vpop.f32.mrb[151].mxu1 }
 0xd64   :  { %v20492_v63 = vld [vmem:[#allocation310_spill] sm:$0xff] }
 0xd65   :  { %12045 = vst [vmem:[#allocation12 + $0x258] sm:$0xf] %v13778_v47  ;;  %10946 = vmatmul.mubr.bf16.vlgmr.msra.gmra.mrb[0].mxu1 %v20464_v9  ;;  %v20494_v8 = vpack.c.bf16 %v20492_v63, %v20493_v3  ;;  %v20495_v9 = vld [vmem:[#allocation313_spill] sm:$0xff] }
 0xd66   :  { %10953 = vmatprep.mubr.bf16.mxu1 %v20467_v45  ;;  %v20497_v24 = vpack.c.bf16 %v20495_v9, %v20496_v44 }
 0xd68   :  { %v10578_v17 = vpop.f32.mrb[152].mxu1 }
 0xd69   :  { %v13779_v0 = vpack.c.bf16 %v10578_v17, %v10578_v17  ;;  %v10580_v30 = vpop.f32.mrb[153].mxu1 }
 0xd6a   :  { %v10581_v40 = vpop.f32.mrb[154].mxu1 }
 0xd6b   :  { %12046 = vst [vmem:[#allocation12 + $0x260] sm:$0xf] %v13779_v0  ;;  %v13780_v50 = vpack.c.bf16 %v10581_v40, %v10581_v40  ;;  %v10583_v49 = vpop.f32.mrb[155].mxu1 }
 0xd6c   :  { %v20498_v49 = vld [vmem:[#allocation312_spill] sm:$0xff] }
 0xd6d   :  { %12047 = vst [vmem:[#allocation12 + $0x268] sm:$0xf] %v13780_v50  ;;  %10954 = vmatmul.mubr.bf16.gmra.mrb[4].mxu1 %v20470_v39  ;;  %v20500_v51 = vpack.c.bf16 %v20498_v49, %v20499_v1  ;;  %v20501_v39 = vpack.c.bf16 %v17042_v20, %v17034_v31 }
 0xd6e   :  { %10961 = vmatprep.mubr.bf16.mxu1 %v20473_v21 }
 0xd70   :  { %v10586_v59 = vpop.f32.mrb[156].mxu1 }
 0xd71   :  { %v13781_v42 = vpack.c.bf16 %v10586_v59, %v10586_v59  ;;  %v10588_v22 = vpop.f32.mrb[157].mxu1 }
 0xd72   :  { %v10589_v56 = vpop.f32.mrb[158].mxu1 }
 0xd73   :  { %12048 = vst [vmem:[#allocation12 + $0x270] sm:$0xf] %v13781_v42  ;;  %v13782_v54 = vpack.c.bf16 %v10589_v56, %v10589_v56  ;;  %v10591_v62 = vpop.f32.mrb[159].mxu1  ;;  %v20502_v56 = vld [vmem:[#allocation64_spill] sm:$0xff] }
 0xd75   :  { %12049 = vst [vmem:[#allocation12 + $0x278] sm:$0xf] %v13782_v54  ;;  %10962 = vmatmul.mubr.bf16.gmra.mrb[8].mxu1 %v20476_v6  ;;  %v20503_v54 = vld [vmem:[#allocation67_spill] sm:$0xff]  ;;  %v20507_v6 = vpack.c.bf16 %v20505_v18, %v20506_v37 }
 0xd76   :  { %10969 = vmatprep.mubr.bf16.mxu1 %v20479_v33  ;;  %v20504_v62 = vpack.c.bf16 %v20502_v56, %v20503_v54  ;;  %v20535_v56 = vld [vmem:[#allocation330_spill] sm:$0xff]  ;;  %v20536_v54 = vld [vmem:[#allocation95_spill] sm:$0xff] }
 0xd78   :  { %v10594_v34 = vpop.f32.mrb[160].mxu1 }
 0xd79   :  { %v13783_v10 = vpack.c.bf16 %v10594_v34, %v10594_v34  ;;  %v10596_v53 = vpop.f32.mrb[161].mxu1 }
 0xd7a   :  { %v10597_v23 = vpop.f32.mrb[162].mxu1  ;;  %v20509_v53 = vld [vmem:[#allocation73_spill] sm:$0xff] }
 0xd7b   :  { %12050 = vst [vmem:[#allocation12 + $0x280] sm:$0xf] %v13783_v10  ;;  %v13784_v5 = vpack.c.bf16 %v10597_v23, %v10597_v23  ;;  %v10599_v14 = vpop.f32.mrb[163].mxu1  ;;  %v20508_v10 = vld [vmem:[#allocation314_spill] sm:$0xff] }
 0xd7c   :  { %v20510_v23 = vpack.c.bf16 %v20508_v10, %v20509_v53  ;;  %v20512_v14 = vld [vmem:[#allocation317_spill] sm:$0xff]  ;;  %v20541_v10 = vld [vmem:[#allocation332_spill] sm:$0xff] }
 0xd7d   :  { %12051 = vst [vmem:[#allocation12 + $0x288] sm:$0xf] %v13784_v5  ;;  %10970 = vmatmul.mubr.bf16.gmra.mrb[12].mxu1 %v20482_v41  ;;  %v20511_v5 = vld [vmem:[#allocation319_spill] sm:$0xff]  ;;  %v20542_v53 = vld [vmem:[#allocation101_spill] sm:$0xff] }
 0xd7e   :  { %10977 = vmatprep.mubr.bf16.mxu1 %v20485_v12  ;;  %v20513_v52 = vpack.c.bf16 %v20511_v5, %v20512_v14 }
 0xd80   :  { %v10602_v48 = vpop.f32.mrb[164].mxu1 }
 0xd81   :  { %v13785_v35 = vpack.c.bf16 %v10602_v48, %v10602_v48  ;;  %v10604_v61 = vpop.f32.mrb[165].mxu1 }
 0xd82   :  { %v10605_v11 = vpop.f32.mrb[166].mxu1  ;;  %v20515_v61 = vld [vmem:[#allocation316_spill] sm:$0xff] }
 0xd83   :  { %12052 = vst [vmem:[#allocation12 + $0x290] sm:$0xf] %v13785_v35  ;;  %v13786_v32 = vpack.c.bf16 %v10605_v11, %v10605_v11  ;;  %v10607_v43 = vpop.f32.mrb[167].mxu1  ;;  %v20514_v35 = vld [vmem:[#allocation318_spill] sm:$0xff] }
 0xd84   :  { %v20516_v11 = vpack.c.bf16 %v20514_v35, %v20515_v61  ;;  %v20518_v43 = vld [vmem:[#allocation321_spill] sm:$0xff]  ;;  %v20547_v35 = vld [vmem:[#allocation334_spill] sm:$0xff]  ;;  %v20548_v61 = vld [vmem:[#allocation107_spill] sm:$0xff] }
 0xd85   :  { %12053 = vst [vmem:[#allocation12 + $0x298] sm:$0xf] %v13786_v32  ;;  %10978 = vmatmul.mubr.bf16.gmra.mrb[16].mxu1 %v20488_v2  ;;  %v20517_v32 = vld [vmem:[#allocation323_spill] sm:$0xff] }
 0xd86   :  { %10985 = vmatprep.mubr.bf16.mxu1 %v20491_v58  ;;  %v20519_v26 = vpack.c.bf16 %v20517_v32, %v20518_v43 }
 0xd88   :  { %v10610_v7 = vpop.f32.mrb[168].mxu1 }
 0xd89   :  { %v13787_v60 = vpack.c.bf16 %v10610_v7, %v10610_v7  ;;  %v10612_v27 = vpop.f32.mrb[169].mxu1 }
 0xd8a   :  { %v10613_v29 = vpop.f32.mrb[170].mxu1  ;;  %v20521_v27 = vld [vmem:[#allocation320_spill] sm:$0xff] }
 0xd8b   :  { %12054 = vst [vmem:[#allocation12 + $0x2a0] sm:$0xf] %v13787_v60  ;;  %v13788_v46 = vpack.c.bf16 %v10613_v29, %v10613_v29  ;;  %v10615_v47 = vpop.f32.mrb[171].mxu1  ;;  %v20520_v60 = vld [vmem:[#allocation322_spill] sm:$0xff] }
 0xd8c   :  { %v20522_v29 = vpack.c.bf16 %v20520_v60, %v20521_v27  ;;  %v20524_v47 = vld [vmem:[#allocation324_spill] sm:$0xff]  ;;  %v20554_v27 = vld [vmem:[#allocation113_spill] sm:$0xff] }
 0xd8d   :  { %12055 = vst [vmem:[#allocation12 + $0x2a8] sm:$0xf] %v13788_v46  ;;  %10986 = vmatmul.mubr.bf16.gmra.mrb[20].mxu1 %v20494_v8  ;;  %v20523_v46 = vld [vmem:[#allocation326_spill] sm:$0xff]  ;;  %v20553_v60 = vld [vmem:[#allocation336_spill] sm:$0xff] }
 0xd8e   :  { %10993 = vmatprep.mubr.bf16.mxu1 %v20497_v24  ;;  %v20525_v63 = vpack.c.bf16 %v20523_v46, %v20524_v47 }
 0xd90   :  { %v10618_v45 = vpop.f32.mrb[172].mxu1 }
 0xd91   :  { %v13789_v17 = vpack.c.bf16 %v10618_v45, %v10618_v45  ;;  %v10620_v0 = vpop.f32.mrb[173].mxu1 }
 0xd92   :  { %v10621_v30 = vpop.f32.mrb[174].mxu1  ;;  %v20527_v0 = vld [vmem:[#allocation84_spill] sm:$0xff] }
 0xd93   :  { %12056 = vst [vmem:[#allocation12 + $0x2b0] sm:$0xf] %v13789_v17  ;;  %v13790_v40 = vpack.c.bf16 %v10621_v30, %v10621_v30  ;;  %v10623_v50 = vpop.f32.mrb[175].mxu1  ;;  %v20526_v17 = vld [vmem:[#allocation325_spill] sm:$0xff] }
 0xd94   :  { %v20528_v30 = vpack.c.bf16 %v20526_v17, %v20527_v0  ;;  %v20530_v50 = vld [vmem:[#allocation89_spill] sm:$0xff]  ;;  %v20559_v17 = vld [vmem:[#allocation338_spill] sm:$0xff]  ;;  %v20560_v0 = vld [vmem:[#allocation119_spill] sm:$0xff] }
 0xd95   :  { %12057 = vst [vmem:[#allocation12 + $0x2b8] sm:$0xf] %v13790_v40  ;;  %10994 = vmatmul.mubr.bf16.gmra.mrb[24].mxu1 %v20500_v51  ;;  %v20529_v40 = vld [vmem:[#allocation328_spill] sm:$0xff] }
 0xd96   :  { %11001 = vmatprep.mubr.bf16.mxu1 %v20501_v39  ;;  %v20531_v49 = vpack.c.bf16 %v20529_v40, %v20530_v50 }
 0xd98   :  { %v10626_v28 = vpop.f32.mrb[176].mxu1 }
 0xd99   :  { %v13791_v57 = vpack.c.bf16 %v10626_v28, %v10626_v28  ;;  %v10628_v21 = vpop.f32.mrb[177].mxu1 }
 0xd9a   :  { %v10629_v59 = vpop.f32.mrb[178].mxu1 }
 0xd9b   :  { %12058 = vst [vmem:[#allocation12 + $0x2c0] sm:$0xf] %v13791_v57  ;;  %v13792_v42 = vpack.c.bf16 %v10629_v59, %v10629_v59  ;;  %v10631_v22 = vpop.f32.mrb[179].mxu1  ;;  %v20532_v59 = vld [vmem:[#allocation327_spill] sm:$0xff] }
 0xd9d   :  { %12059 = vst [vmem:[#allocation12 + $0x2c8] sm:$0xf] %v13792_v42  ;;  %11002 = vmatmul.mubr.bf16.gmra.mrb[28].mxu1 %v20504_v62  ;;  %v20533_v42 = vld [vmem:[#allocation92_spill] sm:$0xff]  ;;  %v20537_v62 = vpack.c.bf16 %v20535_v56, %v20536_v54 }
 0xd9e   :  { %11009 = vmatprep.mubr.bf16.mxu1 %v20507_v6  ;;  %v20534_v22 = vpack.c.bf16 %v20532_v59, %v20533_v42  ;;  %v20565_v59 = vld [vmem:[#allocation340_spill] sm:$0xff]  ;;  %v20566_v42 = vld [vmem:[#allocation125_spill] sm:$0xff] }
 0xda0   :  { %v10634_v25 = vpop.f32.mrb[180].mxu1 }
 0xda1   :  { %v13793_v36 = vpack.c.bf16 %v10634_v25, %v10634_v25  ;;  %v10636_v31 = vpop.f32.mrb[181].mxu1 }
 0xda2   :  { %v10637_v20 = vpop.f32.mrb[182].mxu1 }
 0xda3   :  { %12060 = vst [vmem:[#allocation12 + $0x2d0] sm:$0xf] %v13793_v36  ;;  %v13794_v33 = vpack.c.bf16 %v10637_v20, %v10637_v20  ;;  %v10639_v34 = vpop.f32.mrb[183].mxu1  ;;  %v20538_v20 = vld [vmem:[#allocation329_spill] sm:$0xff] }
 0xda5   :  { %12061 = vst [vmem:[#allocation12 + $0x2d8] sm:$0xf] %v13794_v33  ;;  %11010 = vmatmul.mubr.bf16.gmra.mrb[32].mxu1 %v20510_v23  ;;  %v20539_v33 = vld [vmem:[#allocation98_spill] sm:$0xff]  ;;  %v20543_v23 = vpack.c.bf16 %v20541_v10, %v20542_v53 }
 0xda6   :  { %11017 = vmatprep.mubr.bf16.mxu1 %v20513_v52  ;;  %v20540_v34 = vpack.c.bf16 %v20538_v20, %v20539_v33  ;;  %v20571_v20 = vld [vmem:[#allocation342_spill] sm:$0xff]  ;;  %v20572_v33 = vld [vmem:[#allocation131_spill] sm:$0xff] }
 0xda8   :  { %v10642_v13 = vpop.f32.mrb[184].mxu1 }
 0xda9   :  { %v13795_v41 = vpack.c.bf16 %v10642_v13, %v10642_v13  ;;  %v10644_v16 = vpop.f32.mrb[185].mxu1 }
 0xdaa   :  { %v10645_v55 = vpop.f32.mrb[186].mxu1 }
 0xdab   :  { %12062 = vst [vmem:[#allocation12 + $0x2e0] sm:$0xf] %v13795_v41  ;;  %v13796_v12 = vpack.c.bf16 %v10645_v55, %v10645_v55  ;;  %v10647_v48 = vpop.f32.mrb[187].mxu1  ;;  %v20544_v55 = vld [vmem:[#allocation331_spill] sm:$0xff] }
 0xdad   :  { %12063 = vst [vmem:[#allocation12 + $0x2e8] sm:$0xf] %v13796_v12  ;;  %11018 = vmatmul.mubr.bf16.gmra.mrb[36].mxu1 %v20516_v11  ;;  %v20545_v12 = vld [vmem:[#allocation104_spill] sm:$0xff]  ;;  %v20549_v11 = vpack.c.bf16 %v20547_v35, %v20548_v61 }
 0xdae   :  { %11025 = vmatprep.mubr.bf16.mxu1 %v20519_v26  ;;  %v20546_v48 = vpack.c.bf16 %v20544_v55, %v20545_v12  ;;  %v20577_v55 = vld [vmem:[#allocation344_spill] sm:$0xff]  ;;  %v20578_v12 = vld [vmem:[#allocation137_spill] sm:$0xff] }
 0xdb0   :  { %v10650_v4 = vpop.f32.mrb[188].mxu1 }
 0xdb1   :  { %v13797_v2 = vpack.c.bf16 %v10650_v4, %v10650_v4  ;;  %v10652_v19 = vpop.f32.mrb[189].mxu1 }
 0xdb2   :  { %v10653_v38 = vpop.f32.mrb[190].mxu1 }
 0xdb3   :  { %12064 = vst [vmem:[#allocation12 + $0x2f0] sm:$0xf] %v13797_v2  ;;  %v13798_v58 = vpack.c.bf16 %v10653_v38, %v10653_v38  ;;  %v10655_v7 = vpop.f32.mrb[191].mxu1  ;;  %v20550_v38 = vld [vmem:[#allocation333_spill] sm:$0xff] }
 0xdb5   :  { %12065 = vst [vmem:[#allocation12 + $0x2f8] sm:$0xf] %v13798_v58  ;;  %11026 = vmatmul.mubr.bf16.gmra.mrb[40].mxu1 %v20522_v29  ;;  %v20551_v58 = vld [vmem:[#allocation110_spill] sm:$0xff]  ;;  %v20555_v29 = vpack.c.bf16 %v20553_v60, %v20554_v27 }
 0xdb6   :  { %11033 = vmatprep.mubr.bf16.mxu1 %v20525_v63  ;;  %v20552_v7 = vpack.c.bf16 %v20550_v38, %v20551_v58  ;;  %v20583_v38 = vld [vmem:[#allocation346_spill] sm:$0xff]  ;;  %v20584_v58 = vld [vmem:[#allocation143_spill] sm:$0xff] }
 0xdb8   :  { %v10658_v3 = vpop.f32.mrb[192].mxu1 }
 0xdb9   :  { %v13799_v8 = vpack.c.bf16 %v10658_v3, %v10658_v3  ;;  %v10660_v9 = vpop.f32.mrb[193].mxu1 }
 0xdba   :  { %v10661_v44 = vpop.f32.mrb[194].mxu1 }
 0xdbb   :  { %12066 = vst [vmem:[#allocation12 + $0x300] sm:$0xf] %v13799_v8  ;;  %v13800_v24 = vpack.c.bf16 %v10661_v44, %v10661_v44  ;;  %v10663_v45 = vpop.f32.mrb[195].mxu1  ;;  %v20556_v44 = vld [vmem:[#allocation335_spill] sm:$0xff] }
 0xdbd   :  { %12067 = vst [vmem:[#allocation12 + $0x308] sm:$0xf] %v13800_v24  ;;  %11034 = vmatmul.mubr.bf16.gmra.mrb[44].mxu1 %v20528_v30  ;;  %v20557_v24 = vld [vmem:[#allocation116_spill] sm:$0xff]  ;;  %v20561_v30 = vpack.c.bf16 %v20559_v17, %v20560_v0 }
 0xdbe   :  { %11041 = vmatprep.mubr.bf16.mxu1 %v20531_v49  ;;  %v20558_v45 = vpack.c.bf16 %v20556_v44, %v20557_v24  ;;  %v20589_v44 = vld [vmem:[#allocation348_spill] sm:$0xff]  ;;  %v20590_v24 = vld [vmem:[#allocation149_spill] sm:$0xff] }
 0xdc0   :  { %v10666_v1 = vpop.f32.mrb[196].mxu1 }
 0xdc1   :  { %v13801_v51 = vpack.c.bf16 %v10666_v1, %v10666_v1  ;;  %v10668_v39 = vpop.f32.mrb[197].mxu1 }
 0xdc2   :  { %v10669_v28 = vpop.f32.mrb[198].mxu1 }
 0xdc3   :  { %12068 = vst [vmem:[#allocation12 + $0x310] sm:$0xf] %v13801_v51  ;;  %v13802_v57 = vpack.c.bf16 %v10669_v28, %v10669_v28  ;;  %v10671_v21 = vpop.f32.mrb[199].mxu1  ;;  %v20562_v28 = vld [vmem:[#allocation337_spill] sm:$0xff] }
 0xdc5   :  { %12069 = vst [vmem:[#allocation12 + $0x318] sm:$0xf] %v13802_v57  ;;  %11042 = vmatmul.mubr.bf16.gmra.mrb[48].mxu1 %v20534_v22  ;;  %v20563_v57 = vld [vmem:[#allocation122_spill] sm:$0xff]  ;;  %v20567_v22 = vpack.c.bf16 %v20565_v59, %v20566_v42 }
 0xdc6   :  { %11049 = vmatprep.mubr.bf16.mxu1 %v20537_v62  ;;  %v20564_v21 = vpack.c.bf16 %v20562_v28, %v20563_v57  ;;  %v20595_v28 = vld [vmem:[#allocation350_spill] sm:$0xff]  ;;  %v20596_v57 = vld [vmem:[#allocation155_spill] sm:$0xff] }
 0xdc8   :  { %v10674_v18 = vpop.f32.mrb[200].mxu1 }
 0xdc9   :  { %v13803_v37 = vpack.c.bf16 %v10674_v18, %v10674_v18  ;;  %v10676_v6 = vpop.f32.mrb[201].mxu1 }
 0xdca   :  { %v10677_v25 = vpop.f32.mrb[202].mxu1 }
 0xdcb   :  { %12070 = vst [vmem:[#allocation12 + $0x320] sm:$0xf] %v13803_v37  ;;  %v13804_v36 = vpack.c.bf16 %v10677_v25, %v10677_v25  ;;  %v10679_v31 = vpop.f32.mrb[203].mxu1  ;;  %v20568_v25 = vld [vmem:[#allocation339_spill] sm:$0xff] }
 0xdcd   :  { %12071 = vst [vmem:[#allocation12 + $0x328] sm:$0xf] %v13804_v36  ;;  %11050 = vmatmul.mubr.bf16.gmra.mrb[52].mxu1 %v20540_v34  ;;  %v20569_v36 = vld [vmem:[#allocation128_spill] sm:$0xff]  ;;  %v20573_v34 = vpack.c.bf16 %v20571_v20, %v20572_v33 }
 0xdce   :  { %11057 = vmatprep.mubr.bf16.mxu1 %v20543_v23  ;;  %v20570_v31 = vpack.c.bf16 %v20568_v25, %v20569_v36  ;;  %v20601_v25 = vld [vmem:[#allocation352_spill] sm:$0xff]  ;;  %v20602_v36 = vld [vmem:[#allocation161_spill] sm:$0xff] }
 0xdd0   :  { %v10682_v5 = vpop.f32.mrb[204].mxu1 }
 0xdd1   :  { %v13805_v14 = vpack.c.bf16 %v10682_v5, %v10682_v5  ;;  %v10684_v52 = vpop.f32.mrb[205].mxu1 }
 0xdd2   :  { %v10685_v13 = vpop.f32.mrb[206].mxu1 }
 0xdd3   :  { %12072 = vst [vmem:[#allocation12 + $0x330] sm:$0xf] %v13805_v14  ;;  %v13806_v41 = vpack.c.bf16 %v10685_v13, %v10685_v13  ;;  %v10687_v16 = vpop.f32.mrb[207].mxu1  ;;  %v20574_v13 = vld [vmem:[#allocation341_spill] sm:$0xff] }
 0xdd5   :  { %12073 = vst [vmem:[#allocation12 + $0x338] sm:$0xf] %v13806_v41  ;;  %11058 = vmatmul.mubr.bf16.gmra.mrb[56].mxu1 %v20546_v48  ;;  %v20575_v41 = vld [vmem:[#allocation134_spill] sm:$0xff]  ;;  %v20579_v48 = vpack.c.bf16 %v20577_v55, %v20578_v12 }
 0xdd6   :  { %11065 = vmatprep.mubr.bf16.mxu1 %v20549_v11  ;;  %v20576_v16 = vpack.c.bf16 %v20574_v13, %v20575_v41  ;;  %v20607_v13 = vld [vmem:[#allocation354_spill] sm:$0xff]  ;;  %v20608_v41 = vld [vmem:[#allocation167_spill] sm:$0xff] }
 0xdd8   :  { %v10690_v32 = vpop.f32.mrb[208].mxu1 }
 0xdd9   :  { %v13807_v43 = vpack.c.bf16 %v10690_v32, %v10690_v32  ;;  %v10692_v26 = vpop.f32.mrb[209].mxu1 }
 0xdda   :  { %v10693_v4 = vpop.f32.mrb[210].mxu1 }
 0xddb   :  { %12074 = vst [vmem:[#allocation12 + $0x340] sm:$0xf] %v13807_v43  ;;  %v13808_v2 = vpack.c.bf16 %v10693_v4, %v10693_v4  ;;  %v10695_v19 = vpop.f32.mrb[211].mxu1  ;;  %v20580_v4 = vld [vmem:[#allocation343_spill] sm:$0xff] }
 0xddd   :  { %12075 = vst [vmem:[#allocation12 + $0x348] sm:$0xf] %v13808_v2  ;;  %11066 = vmatmul.mubr.bf16.gmra.mrb[60].mxu1 %v20552_v7  ;;  %v20581_v2 = vld [vmem:[#allocation140_spill] sm:$0xff]  ;;  %v20585_v7 = vpack.c.bf16 %v20583_v38, %v20584_v58 }
 0xdde   :  { %11073 = vmatprep.mubr.bf16.mxu1 %v20555_v29  ;;  %v20582_v19 = vpack.c.bf16 %v20580_v4, %v20581_v2  ;;  %v20613_v4 = vld [vmem:[#allocation356_spill] sm:$0xff]  ;;  %v20614_v2 = vld [vmem:[#allocation173_spill] sm:$0xff] }
 0xde0   :  { %v10698_v46 = vpop.f32.mrb[212].mxu1 }
 0xde1   :  { %v13809_v47 = vpack.c.bf16 %v10698_v46, %v10698_v46  ;;  %v10700_v63 = vpop.f32.mrb[213].mxu1 }
 0xde2   :  { %v10701_v3 = vpop.f32.mrb[214].mxu1 }
 0xde3   :  { %12076 = vst [vmem:[#allocation12 + $0x350] sm:$0xf] %v13809_v47  ;;  %v13810_v8 = vpack.c.bf16 %v10701_v3, %v10701_v3  ;;  %v10703_v9 = vpop.f32.mrb[215].mxu1  ;;  %v20586_v3 = vld [vmem:[#allocation345_spill] sm:$0xff] }
 0xde5   :  { %12077 = vst [vmem:[#allocation12 + $0x358] sm:$0xf] %v13810_v8  ;;  %11074 = vmatmul.mubr.bf16.gmra.mrb[64].mxu1 %v20558_v45  ;;  %v20587_v8 = vld [vmem:[#allocation146_spill] sm:$0xff]  ;;  %v20591_v45 = vpack.c.bf16 %v20589_v44, %v20590_v24 }
 0xde6   :  { %11081 = vmatprep.mubr.bf16.mxu1 %v20561_v30  ;;  %v20588_v9 = vpack.c.bf16 %v20586_v3, %v20587_v8  ;;  %v20619_v3 = vld [vmem:[#allocation358_spill] sm:$0xff]  ;;  %v20620_v8 = vld [vmem:[#allocation179_spill] sm:$0xff] }
 0xde8   :  { %v10706_v40 = vpop.f32.mrb[216].mxu1 }
 0xde9   :  { %v13811_v50 = vpack.c.bf16 %v10706_v40, %v10706_v40  ;;  %v10708_v49 = vpop.f32.mrb[217].mxu1 }
 0xdea   :  { %v10709_v1 = vpop.f32.mrb[218].mxu1 }
 0xdeb   :  { %12078 = vst [vmem:[#allocation12 + $0x360] sm:$0xf] %v13811_v50  ;;  %v13812_v51 = vpack.c.bf16 %v10709_v1, %v10709_v1  ;;  %v10711_v39 = vpop.f32.mrb[219].mxu1  ;;  %v20592_v1 = vld [vmem:[#allocation347_spill] sm:$0xff] }
 0xded   :  { %12079 = vst [vmem:[#allocation12 + $0x368] sm:$0xf] %v13812_v51  ;;  %11082 = vmatmul.mubr.bf16.gmra.mrb[68].mxu1 %v20564_v21  ;;  %v20593_v51 = vld [vmem:[#allocation152_spill] sm:$0xff]  ;;  %v20597_v21 = vpack.c.bf16 %v20595_v28, %v20596_v57 }
 0xdee   :  { %11089 = vmatprep.mubr.bf16.mxu1 %v20567_v22  ;;  %v20594_v39 = vpack.c.bf16 %v20592_v1, %v20593_v51  ;;  %v20625_v1 = vld [vmem:[#allocation360_spill] sm:$0xff]  ;;  %v20626_v51 = vld [vmem:[#allocation185_spill] sm:$0xff] }
 0xdf0   :  { %v10714_v56 = vpop.f32.mrb[220].mxu1 }
 0xdf1   :  { %v13813_v54 = vpack.c.bf16 %v10714_v56, %v10714_v56  ;;  %v10716_v62 = vpop.f32.mrb[221].mxu1 }
 0xdf2   :  { %v10717_v18 = vpop.f32.mrb[222].mxu1 }
 0xdf3   :  { %12080 = vst [vmem:[#allocation12 + $0x370] sm:$0xf] %v13813_v54  ;;  %v13814_v37 = vpack.c.bf16 %v10717_v18, %v10717_v18  ;;  %v10719_v6 = vpop.f32.mrb[223].mxu1  ;;  %v20598_v18 = vld [vmem:[#allocation349_spill] sm:$0xff] }
 0xdf5   :  { %12081 = vst [vmem:[#allocation12 + $0x378] sm:$0xf] %v13814_v37  ;;  %11090 = vmatmul.mubr.bf16.gmra.mrb[72].mxu1 %v20570_v31  ;;  %v20599_v37 = vld [vmem:[#allocation158_spill] sm:$0xff]  ;;  %v20603_v31 = vpack.c.bf16 %v20601_v25, %v20602_v36 }
 0xdf6   :  { %11097 = vmatprep.mubr.bf16.mxu1 %v20573_v34  ;;  %v20600_v6 = vpack.c.bf16 %v20598_v18, %v20599_v37  ;;  %v20631_v18 = vld [vmem:[#allocation362_spill] sm:$0xff]  ;;  %v20632_v37 = vld [vmem:[#allocation191_spill] sm:$0xff] }
 0xdf8   :  { %v10722_v10 = vpop.f32.mrb[224].mxu1 }
 0xdf9   :  { %v13815_v53 = vpack.c.bf16 %v10722_v10, %v10722_v10  ;;  %v10724_v23 = vpop.f32.mrb[225].mxu1 }
 0xdfa   :  { %v10725_v5 = vpop.f32.mrb[226].mxu1 }
 0xdfb   :  { %12082 = vst [vmem:[#allocation12 + $0x380] sm:$0xf] %v13815_v53  ;;  %v13816_v14 = vpack.c.bf16 %v10725_v5, %v10725_v5  ;;  %v10727_v52 = vpop.f32.mrb[227].mxu1  ;;  %v20604_v5 = vld [vmem:[#allocation351_spill] sm:$0xff] }
 0xdfd   :  { %12083 = vst [vmem:[#allocation12 + $0x388] sm:$0xf] %v13816_v14  ;;  %11098 = vmatmul.mubr.bf16.gmra.mrb[76].mxu1 %v20576_v16  ;;  %v20605_v14 = vld [vmem:[#allocation164_spill] sm:$0xff]  ;;  %v20609_v16 = vpack.c.bf16 %v20607_v13, %v20608_v41 }
 0xdfe   :  { %11105 = vmatprep.mubr.bf16.mxu1 %v20579_v48  ;;  %v20606_v52 = vpack.c.bf16 %v20604_v5, %v20605_v14  ;;  %v20637_v5 = vld [vmem:[#allocation364_spill] sm:$0xff]  ;;  %v20638_v14 = vld [vmem:[#allocation197_spill] sm:$0xff] }
 0xe00   :  { %v10730_v35 = vpop.f32.mrb[228].mxu1 }
 0xe01   :  { %v13817_v61 = vpack.c.bf16 %v10730_v35, %v10730_v35  ;;  %v10732_v11 = vpop.f32.mrb[229].mxu1 }
 0xe02   :  { %v10733_v32 = vpop.f32.mrb[230].mxu1 }
 0xe03   :  { %12084 = vst [vmem:[#allocation12 + $0x390] sm:$0xf] %v13817_v61  ;;  %v13818_v43 = vpack.c.bf16 %v10733_v32, %v10733_v32  ;;  %v10735_v26 = vpop.f32.mrb[231].mxu1  ;;  %v20610_v32 = vld [vmem:[#allocation353_spill] sm:$0xff] }
 0xe05   :  { %12085 = vst [vmem:[#allocation12 + $0x398] sm:$0xf] %v13818_v43  ;;  %11106 = vmatmul.mubr.bf16.gmra.mrb[80].mxu1 %v20582_v19  ;;  %v20611_v43 = vld [vmem:[#allocation170_spill] sm:$0xff]  ;;  %v20615_v19 = vpack.c.bf16 %v20613_v4, %v20614_v2 }
 0xe06   :  { %11113 = vmatprep.mubr.bf16.mxu1 %v20585_v7  ;;  %v20612_v26 = vpack.c.bf16 %v20610_v32, %v20611_v43  ;;  %v20643_v32 = vld [vmem:[#allocation366_spill] sm:$0xff]  ;;  %v20644_v43 = vld [vmem:[#allocation203_spill] sm:$0xff] }
 0xe08   :  { %v10738_v60 = vpop.f32.mrb[232].mxu1 }
 0xe09   :  { %v13819_v27 = vpack.c.bf16 %v10738_v60, %v10738_v60  ;;  %v10740_v29 = vpop.f32.mrb[233].mxu1 }
 0xe0a   :  { %v10741_v46 = vpop.f32.mrb[234].mxu1 }
 0xe0b   :  { %12086 = vst [vmem:[#allocation12 + $0x3a0] sm:$0xf] %v13819_v27  ;;  %v13820_v47 = vpack.c.bf16 %v10741_v46, %v10741_v46  ;;  %v10743_v63 = vpop.f32.mrb[235].mxu1  ;;  %v20616_v46 = vld [vmem:[#allocation355_spill] sm:$0xff] }
 0xe0d   :  { %12087 = vst [vmem:[#allocation12 + $0x3a8] sm:$0xf] %v13820_v47  ;;  %11114 = vmatmul.mubr.bf16.gmra.mrb[84].mxu1 %v20588_v9  ;;  %v20617_v47 = vld [vmem:[#allocation176_spill] sm:$0xff]  ;;  %v20621_v9 = vpack.c.bf16 %v20619_v3, %v20620_v8 }
 0xe0e   :  { %11121 = vmatprep.mubr.bf16.mxu1 %v20591_v45  ;;  %v20618_v63 = vpack.c.bf16 %v20616_v46, %v20617_v47  ;;  %v20649_v46 = vld [vmem:[#allocation368_spill] sm:$0xff]  ;;  %v20650_v47 = vld [vmem:[#allocation209_spill] sm:$0xff] }
 0xe10   :  { %v10746_v17 = vpop.f32.mrb[236].mxu1 }
 0xe11   :  { %v13821_v0 = vpack.c.bf16 %v10746_v17, %v10746_v17  ;;  %v10748_v30 = vpop.f32.mrb[237].mxu1 }
 0xe12   :  { %v10749_v40 = vpop.f32.mrb[238].mxu1 }
 0xe13   :  { %12088 = vst [vmem:[#allocation12 + $0x3b0] sm:$0xf] %v13821_v0  ;;  %v13822_v50 = vpack.c.bf16 %v10749_v40, %v10749_v40  ;;  %v10751_v49 = vpop.f32.mrb[239].mxu1  ;;  %v20622_v40 = vld [vmem:[#allocation357_spill] sm:$0xff] }
 0xe15   :  { %12089 = vst [vmem:[#allocation12 + $0x3b8] sm:$0xf] %v13822_v50  ;;  %11122 = vmatmul.mubr.bf16.gmra.mrb[88].mxu1 %v20594_v39  ;;  %v20623_v50 = vld [vmem:[#allocation182_spill] sm:$0xff]  ;;  %v20627_v39 = vpack.c.bf16 %v20625_v1, %v20626_v51 }
 0xe16   :  { %11129 = vmatprep.mubr.bf16.mxu1 %v20597_v21  ;;  %v20624_v49 = vpack.c.bf16 %v20622_v40, %v20623_v50  ;;  %v20655_v40 = vld [vmem:[#allocation370_spill] sm:$0xff]  ;;  %v20656_v50 = vld [vmem:[#allocation215_spill] sm:$0xff] }
 0xe18   :  { %v10754_v59 = vpop.f32.mrb[240].mxu1 }
 0xe19   :  { %v13823_v42 = vpack.c.bf16 %v10754_v59, %v10754_v59  ;;  %v10756_v22 = vpop.f32.mrb[241].mxu1 }
 0xe1a   :  { %v10757_v56 = vpop.f32.mrb[242].mxu1 }
 0xe1b   :  { %12090 = vst [vmem:[#allocation12 + $0x3c0] sm:$0xf] %v13823_v42  ;;  %v13824_v54 = vpack.c.bf16 %v10757_v56, %v10757_v56  ;;  %v10759_v62 = vpop.f32.mrb[243].mxu1  ;;  %v20628_v56 = vld [vmem:[#allocation359_spill] sm:$0xff] }
 0xe1d   :  { %12091 = vst [vmem:[#allocation12 + $0x3c8] sm:$0xf] %v13824_v54  ;;  %11130 = vmatmul.mubr.bf16.gmra.mrb[92].mxu1 %v20600_v6  ;;  %v20629_v54 = vld [vmem:[#allocation188_spill] sm:$0xff]  ;;  %v20633_v6 = vpack.c.bf16 %v20631_v18, %v20632_v37 }
 0xe1e   :  { %11137 = vmatprep.mubr.bf16.mxu1 %v20603_v31  ;;  %v20630_v62 = vpack.c.bf16 %v20628_v56, %v20629_v54  ;;  %v20661_v56 = vld [vmem:[#allocation372_spill] sm:$0xff]  ;;  %v20662_v54 = vld [vmem:[#allocation221_spill] sm:$0xff] }
 0xe20   :  { %v10762_v20 = vpop.f32.mrb[244].mxu1 }
 0xe21   :  { %v13825_v33 = vpack.c.bf16 %v10762_v20, %v10762_v20  ;;  %v10764_v34 = vpop.f32.mrb[245].mxu1 }
 0xe22   :  { %v10765_v10 = vpop.f32.mrb[246].mxu1 }
 0xe23   :  { %12092 = vst [vmem:[#allocation12 + $0x3d0] sm:$0xf] %v13825_v33  ;;  %v13826_v53 = vpack.c.bf16 %v10765_v10, %v10765_v10  ;;  %v10767_v23 = vpop.f32.mrb[247].mxu1  ;;  %v20634_v10 = vld [vmem:[#allocation361_spill] sm:$0xff] }
 0xe25   :  { %12093 = vst [vmem:[#allocation12 + $0x3d8] sm:$0xf] %v13826_v53  ;;  %11138 = vmatmul.mubr.bf16.gmra.mrb[96].mxu1 %v20606_v52  ;;  %v20635_v53 = vld [vmem:[#allocation194_spill] sm:$0xff]  ;;  %v20639_v52 = vpack.c.bf16 %v20637_v5, %v20638_v14 }
 0xe26   :  { %11145 = vmatprep.mubr.bf16.mxu1 %v20609_v16  ;;  %v20636_v23 = vpack.c.bf16 %v20634_v10, %v20635_v53  ;;  %v20667_v10 = vld [vmem:[#allocation374_spill] sm:$0xff]  ;;  %v20668_v53 = vld [vmem:[#allocation227_spill] sm:$0xff] }
 0xe28   :  { %v10770_v55 = vpop.f32.mrb[248].mxu1 }
 0xe29   :  { %v13827_v12 = vpack.c.bf16 %v10770_v55, %v10770_v55  ;;  %v10772_v48 = vpop.f32.mrb[249].mxu1 }
 0xe2a   :  { %v10773_v35 = vpop.f32.mrb[250].mxu1 }
 0xe2b   :  { %12094 = vst [vmem:[#allocation12 + $0x3e0] sm:$0xf] %v13827_v12  ;;  %v13828_v61 = vpack.c.bf16 %v10773_v35, %v10773_v35  ;;  %v10775_v11 = vpop.f32.mrb[251].mxu1  ;;  %v20640_v35 = vld [vmem:[#allocation363_spill] sm:$0xff] }
 0xe2d   :  { %12095 = vst [vmem:[#allocation12 + $0x3e8] sm:$0xf] %v13828_v61  ;;  %11146 = vmatmul.mubr.bf16.gmra.mrb[100].mxu1 %v20612_v26  ;;  %v20641_v61 = vld [vmem:[#allocation200_spill] sm:$0xff]  ;;  %v20645_v26 = vpack.c.bf16 %v20643_v32, %v20644_v43 }
 0xe2e   :  { %11153 = vmatprep.mubr.bf16.mxu1 %v20615_v19  ;;  %v20642_v11 = vpack.c.bf16 %v20640_v35, %v20641_v61  ;;  %v20673_v35 = vld [vmem:[#allocation376_spill] sm:$0xff]  ;;  %v20674_v61 = vld [vmem:[#allocation233_spill] sm:$0xff] }
 0xe30   :  { %v10778_v38 = vpop.f32.mrb[252].mxu1 }
 0xe31   :  { %v13829_v58 = vpack.c.bf16 %v10778_v38, %v10778_v38  ;;  %v10780_v7 = vpop.f32.mrb[253].mxu1 }
 0xe32   :  { %v10781_v60 = vpop.f32.mrb[254].mxu1 }
 0xe33   :  { %12096 = vst [vmem:[#allocation12 + $0x3f0] sm:$0xf] %v13829_v58  ;;  %v13830_v27 = vpack.c.bf16 %v10781_v60, %v10781_v60  ;;  %v10783_v29 = vpop.f32.mrb[255].mxu1  ;;  %v20646_v60 = vld [vmem:[#allocation365_spill] sm:$0xff] }
 0xe35   :  { %12097 = vst [vmem:[#allocation12 + $0x3f8] sm:$0xf] %v13830_v27  ;;  %11154 = vmatmul.mubr.bf16.gmra.mrb[104].mxu1 %v20618_v63  ;;  %v20647_v27 = vld [vmem:[#allocation206_spill] sm:$0xff]  ;;  %v20651_v63 = vpack.c.bf16 %v20649_v46, %v20650_v47 }
 0xe36   :  { %11161 = vmatprep.mubr.bf16.mxu1 %v20621_v9  ;;  %v20648_v29 = vpack.c.bf16 %v20646_v60, %v20647_v27  ;;  %v20679_v60 = vld [vmem:[#allocation378_spill] sm:$0xff]  ;;  %v20680_v27 = vld [vmem:[#allocation29_spill] sm:$0xff] }
 0xe38   :  { %v10947_v44 = vpop.f32.mrb[0].mxu1 }
 0xe39   :  { %v13831_v24 = vpack.c.bf16 %v10947_v44, %v10947_v44  ;;  %v10949_v45 = vpop.f32.mrb[1].mxu1 }
 0xe3a   :  { %v10950_v17 = vpop.f32.mrb[2].mxu1 }
 0xe3b   :  { %12610 = vst [vmem:[#allocation12 + $0x4] sm:$0xf] %v13831_v24  ;;  %v13832_v0 = vpack.c.bf16 %v10950_v17, %v10950_v17  ;;  %v10952_v30 = vpop.f32.mrb[3].mxu1  ;;  %v20652_v17 = vld [vmem:[#allocation367_spill] sm:$0xff] }
 0xe3d   :  { %12611 = vst [vmem:[#allocation12 + $0xc] sm:$0xf] %v13832_v0  ;;  %11162 = vmatmul.mubr.bf16.gmra.mrb[108].mxu1 %v20624_v49  ;;  %v20653_v0 = vld [vmem:[#allocation212_spill] sm:$0xff]  ;;  %v20657_v49 = vpack.c.bf16 %v20655_v40, %v20656_v50 }
 0xe3e   :  { %11169 = vmatprep.mubr.bf16.mxu1 %v20627_v39  ;;  %v20654_v30 = vpack.c.bf16 %v20652_v17, %v20653_v0  ;;  %v20685_v17 = vld [vmem:[#allocation35_spill] sm:$0xff] }
 0xe3f   :  { %v20686_v0 = vld [vmem:[#allocation27_spill] sm:$0xff] }
 0xe40   :  { %v10955_v28 = vpop.f32.mrb[4].mxu1 }
 0xe41   :  { %v13833_v57 = vpack.c.bf16 %v10955_v28, %v10955_v28  ;;  %v10957_v21 = vpop.f32.mrb[5].mxu1 }
 0xe42   :  { %v10958_v59 = vpop.f32.mrb[6].mxu1 }
 0xe43   :  { %12612 = vst [vmem:[#allocation12 + $0x14] sm:$0xf] %v13833_v57  ;;  %v13834_v42 = vpack.c.bf16 %v10958_v59, %v10958_v59  ;;  %v10960_v22 = vpop.f32.mrb[7].mxu1  ;;  %v20658_v59 = vld [vmem:[#allocation369_spill] sm:$0xff] }
 0xe45   :  { %12613 = vst [vmem:[#allocation12 + $0x1c] sm:$0xf] %v13834_v42  ;;  %11170 = vmatmul.mubr.bf16.gmra.mrb[112].mxu1 %v20630_v62  ;;  %v20659_v42 = vld [vmem:[#allocation218_spill] sm:$0xff]  ;;  %v20663_v62 = vpack.c.bf16 %v20661_v56, %v20662_v54 }
 0xe46   :  { %11177 = vmatprep.mubr.bf16.mxu1 %v20633_v6  ;;  %v20660_v22 = vpack.c.bf16 %v20658_v59, %v20659_v42  ;;  %v20691_v59 = vld [vmem:[#allocation41_spill] sm:$0xff] }
 0xe47   :  { %v20692_v42 = vld [vmem:[#allocation33_spill] sm:$0xff] }
 0xe48   :  { %v10963_v25 = vpop.f32.mrb[8].mxu1 }
 0xe49   :  { %v13835_v36 = vpack.c.bf16 %v10963_v25, %v10963_v25  ;;  %v10965_v31 = vpop.f32.mrb[9].mxu1 }
 0xe4a   :  { %v10966_v20 = vpop.f32.mrb[10].mxu1 }
 0xe4b   :  { %12614 = vst [vmem:[#allocation12 + $0x24] sm:$0xf] %v13835_v36  ;;  %v13836_v33 = vpack.c.bf16 %v10966_v20, %v10966_v20  ;;  %v10968_v34 = vpop.f32.mrb[11].mxu1  ;;  %v20664_v20 = vld [vmem:[#allocation371_spill] sm:$0xff] }
 0xe4d   :  { %12615 = vst [vmem:[#allocation12 + $0x2c] sm:$0xf] %v13836_v33  ;;  %11178 = vmatmul.mubr.bf16.gmra.mrb[116].mxu1 %v20636_v23  ;;  %v20665_v33 = vld [vmem:[#allocation224_spill] sm:$0xff]  ;;  %v20669_v23 = vpack.c.bf16 %v20667_v10, %v20668_v53 }
 0xe4e   :  { %11185 = vmatprep.mubr.bf16.mxu1 %v20639_v52  ;;  %v20666_v34 = vpack.c.bf16 %v20664_v20, %v20665_v33  ;;  %v20697_v20 = vld [vmem:[#allocation47_spill] sm:$0xff] }
 0xe4f   :  { %v20698_v33 = vld [vmem:[#allocation39_spill] sm:$0xff] }
 0xe50   :  { %v10971_v13 = vpop.f32.mrb[12].mxu1 }
 0xe51   :  { %v13837_v41 = vpack.c.bf16 %v10971_v13, %v10971_v13  ;;  %v10973_v16 = vpop.f32.mrb[13].mxu1 }
 0xe52   :  { %v10974_v55 = vpop.f32.mrb[14].mxu1 }
 0xe53   :  { %12616 = vst [vmem:[#allocation12 + $0x34] sm:$0xf] %v13837_v41  ;;  %v13838_v12 = vpack.c.bf16 %v10974_v55, %v10974_v55  ;;  %v10976_v48 = vpop.f32.mrb[15].mxu1  ;;  %v20670_v55 = vld [vmem:[#allocation373_spill] sm:$0xff] }
 0xe55   :  { %12617 = vst [vmem:[#allocation12 + $0x3c] sm:$0xf] %v13838_v12  ;;  %11186 = vmatmul.mubr.bf16.gmra.mrb[120].mxu1 %v20642_v11  ;;  %v20671_v12 = vld [vmem:[#allocation230_spill] sm:$0xff]  ;;  %v20675_v11 = vpack.c.bf16 %v20673_v35, %v20674_v61 }
 0xe56   :  { %11193 = vmatprep.mubr.bf16.mxu1 %v20645_v26  ;;  %v20672_v48 = vpack.c.bf16 %v20670_v55, %v20671_v12  ;;  %v20703_v55 = vld [vmem:[#allocation53_spill] sm:$0xff] }
 0xe57   :  { %v20704_v12 = vld [vmem:[#allocation45_spill] sm:$0xff] }
 0xe58   :  { %v10979_v4 = vpop.f32.mrb[16].mxu1 }
 0xe59   :  { %v13839_v2 = vpack.c.bf16 %v10979_v4, %v10979_v4  ;;  %v10981_v19 = vpop.f32.mrb[17].mxu1 }
 0xe5a   :  { %v10982_v38 = vpop.f32.mrb[18].mxu1 }
 0xe5b   :  { %12618 = vst [vmem:[#allocation12 + $0x44] sm:$0xf] %v13839_v2  ;;  %v13840_v58 = vpack.c.bf16 %v10982_v38, %v10982_v38  ;;  %v10984_v7 = vpop.f32.mrb[19].mxu1  ;;  %v20676_v38 = vld [vmem:[#allocation375_spill] sm:$0xff] }
 0xe5d   :  { %12619 = vst [vmem:[#allocation12 + $0x4c] sm:$0xf] %v13840_v58  ;;  %11194 = vmatmul.mubr.bf16.gmra.mrb[124].mxu1 %v20648_v29  ;;  %v20677_v58 = vld [vmem:[#allocation236_spill] sm:$0xff]  ;;  %v20681_v29 = vpack.c.bf16 %v20679_v60, %v20680_v27 }
 0xe5e   :  { %11201 = vmatprep.mubr.bf16.mxu1 %v20651_v63  ;;  %v20678_v7 = vpack.c.bf16 %v20676_v38, %v20677_v58  ;;  %v20709_v38 = vld [vmem:[#allocation59_spill] sm:$0xff] }
 0xe5f   :  { %v20710_v58 = vld [vmem:[#allocation51_spill] sm:$0xff] }
 0xe60   :  { %v10987_v3 = vpop.f32.mrb[20].mxu1 }
 0xe61   :  { %v13841_v8 = vpack.c.bf16 %v10987_v3, %v10987_v3  ;;  %v10989_v9 = vpop.f32.mrb[21].mxu1 }
 0xe62   :  { %v10990_v44 = vpop.f32.mrb[22].mxu1 }
 0xe63   :  { %12620 = vst [vmem:[#allocation12 + $0x54] sm:$0xf] %v13841_v8  ;;  %v13842_v24 = vpack.c.bf16 %v10990_v44, %v10990_v44  ;;  %v10992_v45 = vpop.f32.mrb[23].mxu1  ;;  %v20682_v44 = vld [vmem:[#allocation377_spill] sm:$0xff] }
 0xe65   :  { %12621 = vst [vmem:[#allocation12 + $0x5c] sm:$0xf] %v13842_v24  ;;  %11202 = vmatmul.mubr.bf16.gmra.mrb[128].mxu1 %v20654_v30  ;;  %v20683_v24 = vld [vmem:[#allocation32_spill] sm:$0xff]  ;;  %v20687_v30 = vpack.c.bf16 %v20685_v17, %v20686_v0 }
 0xe66   :  { %11209 = vmatprep.mubr.bf16.mxu1 %v20657_v49  ;;  %v20684_v45 = vpack.c.bf16 %v20682_v44, %v20683_v24  ;;  %v20715_v44 = vld [vmem:[#allocation65_spill] sm:$0xff] }
 0xe67   :  { %v20716_v24 = vld [vmem:[#allocation57_spill] sm:$0xff] }
 0xe68   :  { %v10995_v1 = vpop.f32.mrb[24].mxu1 }
 0xe69   :  { %v13843_v51 = vpack.c.bf16 %v10995_v1, %v10995_v1  ;;  %v10997_v39 = vpop.f32.mrb[25].mxu1 }
 0xe6a   :  { %v10998_v28 = vpop.f32.mrb[26].mxu1 }
 0xe6b   :  { %12622 = vst [vmem:[#allocation12 + $0x64] sm:$0xf] %v13843_v51  ;;  %v13844_v57 = vpack.c.bf16 %v10998_v28, %v10998_v28  ;;  %v11000_v21 = vpop.f32.mrb[27].mxu1  ;;  %v20688_v28 = vld [vmem:[#allocation38_spill] sm:$0xff] }
 0xe6d   :  { %12623 = vst [vmem:[#allocation12 + $0x6c] sm:$0xf] %v13844_v57  ;;  %11210 = vmatmul.mubr.bf16.gmra.mrb[132].mxu1 %v20660_v22  ;;  %v20689_v57 = vld [vmem:[#allocation30_spill] sm:$0xff]  ;;  %v20693_v22 = vpack.c.bf16 %v20691_v59, %v20692_v42 }
 0xe6e   :  { %11217 = vmatprep.mubr.bf16.mxu1 %v20663_v62  ;;  %v20690_v21 = vpack.c.bf16 %v20688_v28, %v20689_v57  ;;  %v20721_v28 = vld [vmem:[#allocation71_spill] sm:$0xff] }
 0xe6f   :  { %v20722_v57 = vld [vmem:[#allocation63_spill] sm:$0xff] }
 0xe70   :  { %v11003_v18 = vpop.f32.mrb[28].mxu1 }
 0xe71   :  { %v13845_v37 = vpack.c.bf16 %v11003_v18, %v11003_v18  ;;  %v11005_v6 = vpop.f32.mrb[29].mxu1 }
 0xe72   :  { %v11006_v25 = vpop.f32.mrb[30].mxu1 }
 0xe73   :  { %12624 = vst [vmem:[#allocation12 + $0x74] sm:$0xf] %v13845_v37  ;;  %v13846_v36 = vpack.c.bf16 %v11006_v25, %v11006_v25  ;;  %v11008_v31 = vpop.f32.mrb[31].mxu1  ;;  %v20694_v25 = vld [vmem:[#allocation44_spill] sm:$0xff] }
 0xe75   :  { %12625 = vst [vmem:[#allocation12 + $0x7c] sm:$0xf] %v13846_v36  ;;  %11218 = vmatmul.mubr.bf16.gmra.mrb[136].mxu1 %v20666_v34  ;;  %v20695_v36 = vld [vmem:[#allocation36_spill] sm:$0xff]  ;;  %v20699_v34 = vpack.c.bf16 %v20697_v20, %v20698_v33 }
 0xe76   :  { %11225 = vmatprep.mubr.bf16.mxu1 %v20669_v23  ;;  %v20696_v31 = vpack.c.bf16 %v20694_v25, %v20695_v36  ;;  %v20727_v25 = vld [vmem:[#allocation76_spill] sm:$0xff]  ;;  %v20728_v36 = vld [vmem:[#allocation69_spill] sm:$0xff] }
 0xe78   :  { %v11011_v5 = vpop.f32.mrb[32].mxu1 }
 0xe79   :  { %v13847_v14 = vpack.c.bf16 %v11011_v5, %v11011_v5  ;;  %v11013_v52 = vpop.f32.mrb[33].mxu1 }
 0xe7a   :  { %v11014_v13 = vpop.f32.mrb[34].mxu1 }
 0xe7b   :  { %12626 = vst [vmem:[#allocation12 + $0x84] sm:$0xf] %v13847_v14  ;;  %v13848_v41 = vpack.c.bf16 %v11014_v13, %v11014_v13  ;;  %v11016_v16 = vpop.f32.mrb[35].mxu1  ;;  %v20700_v13 = vld [vmem:[#allocation50_spill] sm:$0xff] }
 0xe7d   :  { %12627 = vst [vmem:[#allocation12 + $0x8c] sm:$0xf] %v13848_v41  ;;  %11226 = vmatmul.mubr.bf16.gmra.mrb[140].mxu1 %v20672_v48  ;;  %v20701_v41 = vld [vmem:[#allocation42_spill] sm:$0xff]  ;;  %v20705_v48 = vpack.c.bf16 %v20703_v55, %v20704_v12 }
 0xe7e   :  { %11233 = vmatprep.mubr.bf16.mxu1 %v20675_v11  ;;  %v20702_v16 = vpack.c.bf16 %v20700_v13, %v20701_v41  ;;  %v20733_v13 = vld [vmem:[#allocation80_spill] sm:$0xff]  ;;  %v20734_v41 = vld [vmem:[#allocation75_spill] sm:$0xff] }
 0xe80   :  { %v11019_v32 = vpop.f32.mrb[36].mxu1 }
 0xe81   :  { %v13849_v43 = vpack.c.bf16 %v11019_v32, %v11019_v32  ;;  %v11021_v26 = vpop.f32.mrb[37].mxu1 }
 0xe82   :  { %v11022_v4 = vpop.f32.mrb[38].mxu1 }
 0xe83   :  { %12628 = vst [vmem:[#allocation12 + $0x94] sm:$0xf] %v13849_v43  ;;  %v13850_v2 = vpack.c.bf16 %v11022_v4, %v11022_v4  ;;  %v11024_v19 = vpop.f32.mrb[39].mxu1  ;;  %v20706_v4 = vld [vmem:[#allocation56_spill] sm:$0xff] }
 0xe85   :  { %12629 = vst [vmem:[#allocation12 + $0x9c] sm:$0xf] %v13850_v2  ;;  %11234 = vmatmul.mubr.bf16.gmra.mrb[144].mxu1 %v20678_v7  ;;  %v20707_v2 = vld [vmem:[#allocation48_spill] sm:$0xff]  ;;  %v20711_v7 = vpack.c.bf16 %v20709_v38, %v20710_v58 }
 0xe86   :  { %11241 = vmatprep.mubr.bf16.mxu1 %v20681_v29  ;;  %v20708_v19 = vpack.c.bf16 %v20706_v4, %v20707_v2  ;;  %v20739_v4 = vld [vmem:[#allocation85_spill] sm:$0xff]  ;;  %v20740_v2 = vld [vmem:[#allocation79_spill] sm:$0xff] }
 0xe88   :  { %v11027_v46 = vpop.f32.mrb[40].mxu1 }
 0xe89   :  { %v13851_v47 = vpack.c.bf16 %v11027_v46, %v11027_v46  ;;  %v11029_v63 = vpop.f32.mrb[41].mxu1 }
 0xe8a   :  { %v11030_v3 = vpop.f32.mrb[42].mxu1 }
 0xe8b   :  { %12630 = vst [vmem:[#allocation12 + $0xa4] sm:$0xf] %v13851_v47  ;;  %v13852_v8 = vpack.c.bf16 %v11030_v3, %v11030_v3  ;;  %v11032_v9 = vpop.f32.mrb[43].mxu1  ;;  %v20712_v3 = vld [vmem:[#allocation62_spill] sm:$0xff] }
 0xe8d   :  { %12631 = vst [vmem:[#allocation12 + $0xac] sm:$0xf] %v13852_v8  ;;  %11242 = vmatmul.mubr.bf16.gmra.mrb[148].mxu1 %v20684_v45  ;;  %v20713_v8 = vld [vmem:[#allocation54_spill] sm:$0xff]  ;;  %v20717_v45 = vpack.c.bf16 %v20715_v44, %v20716_v24 }
 0xe8e   :  { %11249 = vmatprep.mubr.bf16.mxu1 %v20687_v30  ;;  %v20714_v9 = vpack.c.bf16 %v20712_v3, %v20713_v8  ;;  %v20745_v3 = vld [vmem:[#allocation90_spill] sm:$0xff]  ;;  %v20746_v8 = vld [vmem:[#allocation83_spill] sm:$0xff] }
 0xe90   :  { %v11035_v40 = vpop.f32.mrb[44].mxu1 }
 0xe91   :  { %v13853_v50 = vpack.c.bf16 %v11035_v40, %v11035_v40  ;;  %v11037_v49 = vpop.f32.mrb[45].mxu1 }
 0xe92   :  { %v11038_v1 = vpop.f32.mrb[46].mxu1 }
 0xe93   :  { %12632 = vst [vmem:[#allocation12 + $0xb4] sm:$0xf] %v13853_v50  ;;  %v13854_v51 = vpack.c.bf16 %v11038_v1, %v11038_v1  ;;  %v11040_v39 = vpop.f32.mrb[47].mxu1  ;;  %v20718_v1 = vld [vmem:[#allocation68_spill] sm:$0xff] }
 0xe95   :  { %12633 = vst [vmem:[#allocation12 + $0xbc] sm:$0xf] %v13854_v51  ;;  %11250 = vmatmul.mubr.bf16.gmra.mrb[152].mxu1 %v20690_v21  ;;  %v20719_v51 = vld [vmem:[#allocation60_spill] sm:$0xff]  ;;  %v20723_v21 = vpack.c.bf16 %v20721_v28, %v20722_v57 }
 0xe96   :  { %11257 = vmatprep.mubr.bf16.mxu1 %v20693_v22  ;;  %v20720_v39 = vpack.c.bf16 %v20718_v1, %v20719_v51  ;;  %v20751_v1 = vld [vmem:[#allocation96_spill] sm:$0xff] }
 0xe97   :  { %v20752_v51 = vld [vmem:[#allocation88_spill] sm:$0xff] }
 0xe98   :  { %v11043_v56 = vpop.f32.mrb[48].mxu1 }
 0xe99   :  { %v13855_v54 = vpack.c.bf16 %v11043_v56, %v11043_v56  ;;  %v11045_v62 = vpop.f32.mrb[49].mxu1 }
 0xe9a   :  { %v11046_v18 = vpop.f32.mrb[50].mxu1 }
 0xe9b   :  { %12634 = vst [vmem:[#allocation12 + $0xc4] sm:$0xf] %v13855_v54  ;;  %v13856_v37 = vpack.c.bf16 %v11046_v18, %v11046_v18  ;;  %v11048_v6 = vpop.f32.mrb[51].mxu1  ;;  %v20724_v18 = vld [vmem:[#allocation74_spill] sm:$0xff] }
 0xe9d   :  { %12635 = vst [vmem:[#allocation12 + $0xcc] sm:$0xf] %v13856_v37  ;;  %11258 = vmatmul.mubr.bf16.gmra.mrb[156].mxu1 %v20696_v31  ;;  %v20725_v37 = vld [vmem:[#allocation66_spill] sm:$0xff]  ;;  %v20729_v31 = vpack.c.bf16 %v20727_v25, %v20728_v36 }
 0xe9e   :  { %11265 = vmatprep.mubr.bf16.mxu1 %v20699_v34  ;;  %v20726_v6 = vpack.c.bf16 %v20724_v18, %v20725_v37  ;;  %v20757_v18 = vld [vmem:[#allocation102_spill] sm:$0xff] }
 0xe9f   :  { %v20758_v37 = vld [vmem:[#allocation94_spill] sm:$0xff] }
 0xea0   :  { %v11051_v10 = vpop.f32.mrb[52].mxu1 }
 0xea1   :  { %v13857_v53 = vpack.c.bf16 %v11051_v10, %v11051_v10  ;;  %v11053_v23 = vpop.f32.mrb[53].mxu1 }
 0xea2   :  { %v11054_v5 = vpop.f32.mrb[54].mxu1 }
 0xea3   :  { %12636 = vst [vmem:[#allocation12 + $0xd4] sm:$0xf] %v13857_v53  ;;  %v13858_v14 = vpack.c.bf16 %v11054_v5, %v11054_v5  ;;  %v11056_v52 = vpop.f32.mrb[55].mxu1  ;;  %v20730_v5 = vld [vmem:[#allocation78_spill] sm:$0xff] }
 0xea5   :  { %12637 = vst [vmem:[#allocation12 + $0xdc] sm:$0xf] %v13858_v14  ;;  %11266 = vmatmul.mubr.bf16.gmra.mrb[160].mxu1 %v20702_v16  ;;  %v20731_v14 = vld [vmem:[#allocation72_spill] sm:$0xff]  ;;  %v20735_v16 = vpack.c.bf16 %v20733_v13, %v20734_v41 }
 0xea6   :  { %11273 = vmatprep.mubr.bf16.mxu1 %v20705_v48  ;;  %v20732_v52 = vpack.c.bf16 %v20730_v5, %v20731_v14  ;;  %v20763_v5 = vld [vmem:[#allocation108_spill] sm:$0xff] }
 0xea7   :  { %v20764_v14 = vld [vmem:[#allocation100_spill] sm:$0xff] }
 0xea8   :  { %v11059_v35 = vpop.f32.mrb[56].mxu1 }
 0xea9   :  { %v13859_v61 = vpack.c.bf16 %v11059_v35, %v11059_v35  ;;  %v11061_v11 = vpop.f32.mrb[57].mxu1 }
 0xeaa   :  { %v11062_v32 = vpop.f32.mrb[58].mxu1 }
 0xeab   :  { %12638 = vst [vmem:[#allocation12 + $0xe4] sm:$0xf] %v13859_v61  ;;  %v13860_v43 = vpack.c.bf16 %v11062_v32, %v11062_v32  ;;  %v11064_v26 = vpop.f32.mrb[59].mxu1  ;;  %v20736_v32 = vld [vmem:[#allocation82_spill] sm:$0xff] }
 0xead   :  { %12639 = vst [vmem:[#allocation12 + $0xec] sm:$0xf] %v13860_v43  ;;  %11274 = vmatmul.mubr.bf16.gmra.mrb[164].mxu1 %v20708_v19  ;;  %v20737_v43 = vld [vmem:[#allocation77_spill] sm:$0xff]  ;;  %v20741_v19 = vpack.c.bf16 %v20739_v4, %v20740_v2 }
 0xeae   :  { %11281 = vmatprep.mubr.bf16.mxu1 %v20711_v7  ;;  %v20738_v26 = vpack.c.bf16 %v20736_v32, %v20737_v43  ;;  %v20769_v32 = vld [vmem:[#allocation114_spill] sm:$0xff] }
 0xeaf   :  { %v20770_v43 = vld [vmem:[#allocation106_spill] sm:$0xff] }
 0xeb0   :  { %v11067_v60 = vpop.f32.mrb[60].mxu1 }
 0xeb1   :  { %v13861_v27 = vpack.c.bf16 %v11067_v60, %v11067_v60  ;;  %v11069_v29 = vpop.f32.mrb[61].mxu1 }
 0xeb2   :  { %v11070_v46 = vpop.f32.mrb[62].mxu1 }
 0xeb3   :  { %12640 = vst [vmem:[#allocation12 + $0xf4] sm:$0xf] %v13861_v27  ;;  %v13862_v47 = vpack.c.bf16 %v11070_v46, %v11070_v46  ;;  %v11072_v63 = vpop.f32.mrb[63].mxu1  ;;  %v20742_v46 = vld [vmem:[#allocation87_spill] sm:$0xff] }
 0xeb5   :  { %12641 = vst [vmem:[#allocation12 + $0xfc] sm:$0xf] %v13862_v47  ;;  %11282 = vmatmul.mubr.bf16.gmra.mrb[168].mxu1 %v20714_v9  ;;  %v20743_v47 = vld [vmem:[#allocation81_spill] sm:$0xff]  ;;  %v20747_v9 = vpack.c.bf16 %v20745_v3, %v20746_v8 }
 0xeb6   :  { %11289 = vmatprep.mubr.bf16.mxu1 %v20717_v45  ;;  %v20744_v63 = vpack.c.bf16 %v20742_v46, %v20743_v47  ;;  %v20775_v46 = vld [vmem:[#allocation120_spill] sm:$0xff] }
 0xeb7   :  { %v20776_v47 = vld [vmem:[#allocation112_spill] sm:$0xff] }
 0xeb8   :  { %v11075_v17 = vpop.f32.mrb[64].mxu1 }
 0xeb9   :  { %v13863_v0 = vpack.c.bf16 %v11075_v17, %v11075_v17  ;;  %v11077_v30 = vpop.f32.mrb[65].mxu1 }
 0xeba   :  { %v11078_v40 = vpop.f32.mrb[66].mxu1 }
 0xebb   :  { %12642 = vst [vmem:[#allocation12 + $0x104] sm:$0xf] %v13863_v0  ;;  %v13864_v50 = vpack.c.bf16 %v11078_v40, %v11078_v40  ;;  %v11080_v49 = vpop.f32.mrb[67].mxu1  ;;  %v20748_v40 = vld [vmem:[#allocation93_spill] sm:$0xff] }
 0xebd   :  { %12643 = vst [vmem:[#allocation12 + $0x10c] sm:$0xf] %v13864_v50  ;;  %11290 = vmatmul.mubr.bf16.gmra.mrb[172].mxu1 %v20720_v39  ;;  %v20749_v50 = vld [vmem:[#allocation86_spill] sm:$0xff]  ;;  %v20753_v39 = vpack.c.bf16 %v20751_v1, %v20752_v51 }
 0xebe   :  { %11297 = vmatprep.mubr.bf16.mxu1 %v20723_v21  ;;  %v20750_v49 = vpack.c.bf16 %v20748_v40, %v20749_v50  ;;  %v20781_v40 = vld [vmem:[#allocation126_spill] sm:$0xff] }
 0xebf   :  { %v20782_v50 = vld [vmem:[#allocation118_spill] sm:$0xff] }
 0xec0   :  { %v11083_v59 = vpop.f32.mrb[68].mxu1 }
 0xec1   :  { %v13865_v42 = vpack.c.bf16 %v11083_v59, %v11083_v59  ;;  %v11085_v22 = vpop.f32.mrb[69].mxu1 }
 0xec2   :  { %v11086_v56 = vpop.f32.mrb[70].mxu1 }
 0xec3   :  { %12644 = vst [vmem:[#allocation12 + $0x114] sm:$0xf] %v13865_v42  ;;  %v13866_v54 = vpack.c.bf16 %v11086_v56, %v11086_v56  ;;  %v11088_v62 = vpop.f32.mrb[71].mxu1  ;;  %v20754_v56 = vld [vmem:[#allocation99_spill] sm:$0xff] }
 0xec5   :  { %12645 = vst [vmem:[#allocation12 + $0x11c] sm:$0xf] %v13866_v54  ;;  %11298 = vmatmul.mubr.bf16.gmra.mrb[176].mxu1 %v20726_v6  ;;  %v20755_v54 = vld [vmem:[#allocation91_spill] sm:$0xff]  ;;  %v20759_v6 = vpack.c.bf16 %v20757_v18, %v20758_v37 }
 0xec6   :  { %11305 = vmatprep.mubr.bf16.mxu1 %v20729_v31  ;;  %v20756_v62 = vpack.c.bf16 %v20754_v56, %v20755_v54  ;;  %v20787_v56 = vld [vmem:[#allocation132_spill] sm:$0xff] }
 0xec7   :  { %v20788_v54 = vld [vmem:[#allocation124_spill] sm:$0xff] }
 0xec8   :  { %v11091_v20 = vpop.f32.mrb[72].mxu1 }
 0xec9   :  { %v13867_v33 = vpack.c.bf16 %v11091_v20, %v11091_v20  ;;  %v11093_v34 = vpop.f32.mrb[73].mxu1 }
 0xeca   :  { %v11094_v10 = vpop.f32.mrb[74].mxu1 }
 0xecb   :  { %12646 = vst [vmem:[#allocation12 + $0x124] sm:$0xf] %v13867_v33  ;;  %v13868_v53 = vpack.c.bf16 %v11094_v10, %v11094_v10  ;;  %v11096_v23 = vpop.f32.mrb[75].mxu1  ;;  %v20760_v10 = vld [vmem:[#allocation105_spill] sm:$0xff] }
 0xecd   :  { %12647 = vst [vmem:[#allocation12 + $0x12c] sm:$0xf] %v13868_v53  ;;  %11306 = vmatmul.mubr.bf16.gmra.mrb[180].mxu1 %v20732_v52  ;;  %v20761_v53 = vld [vmem:[#allocation97_spill] sm:$0xff]  ;;  %v20765_v52 = vpack.c.bf16 %v20763_v5, %v20764_v14 }
 0xece   :  { %11313 = vmatprep.mubr.bf16.mxu1 %v20735_v16  ;;  %v20762_v23 = vpack.c.bf16 %v20760_v10, %v20761_v53  ;;  %v20793_v10 = vld [vmem:[#allocation138_spill] sm:$0xff] }
 0xecf   :  { %v20794_v53 = vld [vmem:[#allocation130_spill] sm:$0xff] }
 0xed0   :  { %v11099_v55 = vpop.f32.mrb[76].mxu1 }
 0xed1   :  { %v13869_v12 = vpack.c.bf16 %v11099_v55, %v11099_v55  ;;  %v11101_v48 = vpop.f32.mrb[77].mxu1 }
 0xed2   :  { %v11102_v35 = vpop.f32.mrb[78].mxu1 }
 0xed3   :  { %12648 = vst [vmem:[#allocation12 + $0x134] sm:$0xf] %v13869_v12  ;;  %v13870_v61 = vpack.c.bf16 %v11102_v35, %v11102_v35  ;;  %v11104_v11 = vpop.f32.mrb[79].mxu1  ;;  %v20766_v35 = vld [vmem:[#allocation111_spill] sm:$0xff] }
 0xed5   :  { %12649 = vst [vmem:[#allocation12 + $0x13c] sm:$0xf] %v13870_v61  ;;  %11314 = vmatmul.mubr.bf16.gmra.mrb[184].mxu1 %v20738_v26  ;;  %v20767_v61 = vld [vmem:[#allocation103_spill] sm:$0xff]  ;;  %v20771_v26 = vpack.c.bf16 %v20769_v32, %v20770_v43 }
 0xed6   :  { %11321 = vmatprep.mubr.bf16.mxu1 %v20741_v19  ;;  %v20768_v11 = vpack.c.bf16 %v20766_v35, %v20767_v61  ;;  %v20799_v35 = vld [vmem:[#allocation144_spill] sm:$0xff] }
 0xed7   :  { %v20800_v61 = vld [vmem:[#allocation136_spill] sm:$0xff] }
 0xed8   :  { %v11107_v38 = vpop.f32.mrb[80].mxu1 }
 0xed9   :  { %v13871_v58 = vpack.c.bf16 %v11107_v38, %v11107_v38  ;;  %v11109_v7 = vpop.f32.mrb[81].mxu1 }
 0xeda   :  { %v11110_v60 = vpop.f32.mrb[82].mxu1 }
 0xedb   :  { %12650 = vst [vmem:[#allocation12 + $0x144] sm:$0xf] %v13871_v58  ;;  %v13872_v27 = vpack.c.bf16 %v11110_v60, %v11110_v60  ;;  %v11112_v29 = vpop.f32.mrb[83].mxu1  ;;  %v20772_v60 = vld [vmem:[#allocation117_spill] sm:$0xff] }
 0xedd   :  { %12651 = vst [vmem:[#allocation12 + $0x14c] sm:$0xf] %v13872_v27  ;;  %11322 = vmatmul.mubr.bf16.gmra.mrb[188].mxu1 %v20744_v63  ;;  %v20773_v27 = vld [vmem:[#allocation109_spill] sm:$0xff]  ;;  %v20777_v63 = vpack.c.bf16 %v20775_v46, %v20776_v47 }
 0xede   :  { %11329 = vmatprep.mubr.bf16.mxu1 %v20747_v9  ;;  %v20774_v29 = vpack.c.bf16 %v20772_v60, %v20773_v27  ;;  %v20805_v60 = vld [vmem:[#allocation150_spill] sm:$0xff] }
 0xedf   :  { %v20806_v27 = vld [vmem:[#allocation142_spill] sm:$0xff] }
 0xee0   :  { %v11115_v44 = vpop.f32.mrb[84].mxu1 }
 0xee1   :  { %v13873_v24 = vpack.c.bf16 %v11115_v44, %v11115_v44  ;;  %v11117_v45 = vpop.f32.mrb[85].mxu1 }
 0xee2   :  { %v11118_v17 = vpop.f32.mrb[86].mxu1 }
 0xee3   :  { %12652 = vst [vmem:[#allocation12 + $0x154] sm:$0xf] %v13873_v24  ;;  %v13874_v0 = vpack.c.bf16 %v11118_v17, %v11118_v17  ;;  %v11120_v30 = vpop.f32.mrb[87].mxu1  ;;  %v20778_v17 = vld [vmem:[#allocation123_spill] sm:$0xff] }
 0xee5   :  { %12653 = vst [vmem:[#allocation12 + $0x15c] sm:$0xf] %v13874_v0  ;;  %11330 = vmatmul.mubr.bf16.gmra.mrb[192].mxu1 %v20750_v49  ;;  %v20779_v0 = vld [vmem:[#allocation115_spill] sm:$0xff]  ;;  %v20783_v49 = vpack.c.bf16 %v20781_v40, %v20782_v50 }
 0xee6   :  { %11337 = vmatprep.mubr.bf16.mxu1 %v20753_v39  ;;  %v20780_v30 = vpack.c.bf16 %v20778_v17, %v20779_v0  ;;  %v20811_v17 = vld [vmem:[#allocation156_spill] sm:$0xff] }
 0xee7   :  { %v20812_v0 = vld [vmem:[#allocation148_spill] sm:$0xff] }
 0xee8   :  { %v11123_v28 = vpop.f32.mrb[88].mxu1 }
 0xee9   :  { %v13875_v57 = vpack.c.bf16 %v11123_v28, %v11123_v28  ;;  %v11125_v21 = vpop.f32.mrb[89].mxu1 }
 0xeea   :  { %v11126_v59 = vpop.f32.mrb[90].mxu1 }
 0xeeb   :  { %12654 = vst [vmem:[#allocation12 + $0x164] sm:$0xf] %v13875_v57  ;;  %v13876_v42 = vpack.c.bf16 %v11126_v59, %v11126_v59  ;;  %v11128_v22 = vpop.f32.mrb[91].mxu1  ;;  %v20784_v59 = vld [vmem:[#allocation129_spill] sm:$0xff] }
 0xeed   :  { %12655 = vst [vmem:[#allocation12 + $0x16c] sm:$0xf] %v13876_v42  ;;  %11338 = vmatmul.mubr.bf16.gmra.mrb[196].mxu1 %v20756_v62  ;;  %v20785_v42 = vld [vmem:[#allocation121_spill] sm:$0xff]  ;;  %v20789_v62 = vpack.c.bf16 %v20787_v56, %v20788_v54 }
 0xeee   :  { %11345 = vmatprep.mubr.bf16.mxu1 %v20759_v6  ;;  %v20786_v22 = vpack.c.bf16 %v20784_v59, %v20785_v42  ;;  %v20817_v59 = vld [vmem:[#allocation162_spill] sm:$0xff] }
 0xeef   :  { %v20818_v42 = vld [vmem:[#allocation154_spill] sm:$0xff] }
 0xef0   :  { %v11131_v25 = vpop.f32.mrb[92].mxu1 }
 0xef1   :  { %v13877_v36 = vpack.c.bf16 %v11131_v25, %v11131_v25  ;;  %v11133_v31 = vpop.f32.mrb[93].mxu1 }
 0xef2   :  { %v11134_v20 = vpop.f32.mrb[94].mxu1 }
 0xef3   :  { %12656 = vst [vmem:[#allocation12 + $0x174] sm:$0xf] %v13877_v36  ;;  %v13878_v33 = vpack.c.bf16 %v11134_v20, %v11134_v20  ;;  %v11136_v34 = vpop.f32.mrb[95].mxu1  ;;  %v20790_v20 = vld [vmem:[#allocation135_spill] sm:$0xff] }
 0xef5   :  { %12657 = vst [vmem:[#allocation12 + $0x17c] sm:$0xf] %v13878_v33  ;;  %11346 = vmatmul.mubr.bf16.gmra.mrb[200].mxu1 %v20762_v23  ;;  %v20791_v33 = vld [vmem:[#allocation127_spill] sm:$0xff]  ;;  %v20795_v23 = vpack.c.bf16 %v20793_v10, %v20794_v53 }
 0xef6   :  { %11353 = vmatprep.mubr.bf16.mxu1 %v20765_v52  ;;  %v20792_v34 = vpack.c.bf16 %v20790_v20, %v20791_v33  ;;  %v20823_v20 = vld [vmem:[#allocation168_spill] sm:$0xff] }
 0xef7   :  { %v20824_v33 = vld [vmem:[#allocation160_spill] sm:$0xff] }
 0xef8   :  { %v11139_v13 = vpop.f32.mrb[96].mxu1 }
 0xef9   :  { %v13879_v41 = vpack.c.bf16 %v11139_v13, %v11139_v13  ;;  %v11141_v16 = vpop.f32.mrb[97].mxu1 }
 0xefa   :  { %v11142_v55 = vpop.f32.mrb[98].mxu1 }
 0xefb   :  { %12658 = vst [vmem:[#allocation12 + $0x184] sm:$0xf] %v13879_v41  ;;  %v13880_v12 = vpack.c.bf16 %v11142_v55, %v11142_v55  ;;  %v11144_v48 = vpop.f32.mrb[99].mxu1  ;;  %v20796_v55 = vld [vmem:[#allocation141_spill] sm:$0xff] }
 0xefd   :  { %12659 = vst [vmem:[#allocation12 + $0x18c] sm:$0xf] %v13880_v12  ;;  %11354 = vmatmul.mubr.bf16.gmra.mrb[204].mxu1 %v20768_v11  ;;  %v20797_v12 = vld [vmem:[#allocation133_spill] sm:$0xff]  ;;  %v20801_v11 = vpack.c.bf16 %v20799_v35, %v20800_v61 }
 0xefe   :  { %11361 = vmatprep.mubr.bf16.mxu1 %v20771_v26  ;;  %v20798_v48 = vpack.c.bf16 %v20796_v55, %v20797_v12  ;;  %v20829_v55 = vld [vmem:[#allocation174_spill] sm:$0xff] }
 0xeff   :  { %v20830_v12 = vld [vmem:[#allocation166_spill] sm:$0xff] }
 0xf00   :  { %v11147_v4 = vpop.f32.mrb[100].mxu1 }
 0xf01   :  { %v13881_v2 = vpack.c.bf16 %v11147_v4, %v11147_v4  ;;  %v11149_v19 = vpop.f32.mrb[101].mxu1 }
 0xf02   :  { %v11150_v38 = vpop.f32.mrb[102].mxu1 }
 0xf03   :  { %12660 = vst [vmem:[#allocation12 + $0x194] sm:$0xf] %v13881_v2  ;;  %v13882_v58 = vpack.c.bf16 %v11150_v38, %v11150_v38  ;;  %v11152_v7 = vpop.f32.mrb[103].mxu1  ;;  %v20802_v38 = vld [vmem:[#allocation147_spill] sm:$0xff] }
 0xf05   :  { %12661 = vst [vmem:[#allocation12 + $0x19c] sm:$0xf] %v13882_v58  ;;  %11362 = vmatmul.mubr.bf16.gmra.mrb[208].mxu1 %v20774_v29  ;;  %v20803_v58 = vld [vmem:[#allocation139_spill] sm:$0xff]  ;;  %v20807_v29 = vpack.c.bf16 %v20805_v60, %v20806_v27 }
 0xf06   :  { %11369 = vmatprep.mubr.bf16.mxu1 %v20777_v63  ;;  %v20804_v7 = vpack.c.bf16 %v20802_v38, %v20803_v58  ;;  %v20835_v38 = vld [vmem:[#allocation172_spill] sm:$0xff] }
 0xf07   :  { %v20836_v58 = vpack.c.bf16 %v18247_v15, %v20835_v38 }
 0xf08   :  { %v11155_v3 = vpop.f32.mrb[104].mxu1 }
 0xf09   :  { %v13883_v8 = vpack.c.bf16 %v11155_v3, %v11155_v3  ;;  %v11157_v9 = vpop.f32.mrb[105].mxu1 }
 0xf0a   :  { %v11158_v44 = vpop.f32.mrb[106].mxu1 }
 0xf0b   :  { %12662 = vst [vmem:[#allocation12 + $0x1a4] sm:$0xf] %v13883_v8  ;;  %v13884_v24 = vpack.c.bf16 %v11158_v44, %v11158_v44  ;;  %v11160_v45 = vpop.f32.mrb[107].mxu1  ;;  %v20808_v44 = vld [vmem:[#allocation153_spill] sm:$0xff] }
 0xf0d   :  { %12663 = vst [vmem:[#allocation12 + $0x1ac] sm:$0xf] %v13884_v24  ;;  %11370 = vmatmul.mubr.bf16.gmra.mrb[212].mxu1 %v20780_v30  ;;  %v20809_v24 = vld [vmem:[#allocation145_spill] sm:$0xff]  ;;  %v20813_v30 = vpack.c.bf16 %v20811_v17, %v20812_v0 }
 0xf0e   :  { %11377 = vmatprep.mubr.bf16.mxu1 %v20783_v49  ;;  %v20810_v45 = vpack.c.bf16 %v20808_v44, %v20809_v24 }
 0xf10   :  { %v11163_v1 = vpop.f32.mrb[108].mxu1 }
 0xf11   :  { %v13885_v51 = vpack.c.bf16 %v11163_v1, %v11163_v1  ;;  %v11165_v39 = vpop.f32.mrb[109].mxu1 }
 0xf12   :  { %v11166_v28 = vpop.f32.mrb[110].mxu1 }
 0xf13   :  { %12664 = vst [vmem:[#allocation12 + $0x1b4] sm:$0xf] %v13885_v51  ;;  %v13886_v57 = vpack.c.bf16 %v11166_v28, %v11166_v28  ;;  %v11168_v21 = vpop.f32.mrb[111].mxu1  ;;  %v20814_v28 = vld [vmem:[#allocation159_spill] sm:$0xff] }
 0xf15   :  { %12665 = vst [vmem:[#allocation12 + $0x1bc] sm:$0xf] %v13886_v57  ;;  %11378 = vmatmul.mubr.bf16.gmra.mrb[216].mxu1 %v20786_v22  ;;  %v20815_v57 = vld [vmem:[#allocation151_spill] sm:$0xff]  ;;  %v20819_v22 = vpack.c.bf16 %v20817_v59, %v20818_v42 }
 0xf16   :  { %11385 = vmatprep.mubr.bf16.mxu1 %v20789_v62  ;;  %v20816_v21 = vpack.c.bf16 %v20814_v28, %v20815_v57 }
 0xf18   :  { %v11171_v18 = vpop.f32.mrb[112].mxu1 }
 0xf19   :  { %v13887_v37 = vpack.c.bf16 %v11171_v18, %v11171_v18  ;;  %v11173_v6 = vpop.f32.mrb[113].mxu1 }
 0xf1a   :  { %v11174_v25 = vpop.f32.mrb[114].mxu1 }
 0xf1b   :  { %12666 = vst [vmem:[#allocation12 + $0x1c4] sm:$0xf] %v13887_v37  ;;  %v13888_v36 = vpack.c.bf16 %v11174_v25, %v11174_v25  ;;  %v11176_v31 = vpop.f32.mrb[115].mxu1  ;;  %v20820_v25 = vld [vmem:[#allocation165_spill] sm:$0xff] }
 0xf1d   :  { %12667 = vst [vmem:[#allocation12 + $0x1cc] sm:$0xf] %v13888_v36  ;;  %11386 = vmatmul.mubr.bf16.gmra.mrb[220].mxu1 %v20792_v34  ;;  %v20821_v36 = vld [vmem:[#allocation157_spill] sm:$0xff]  ;;  %v20825_v34 = vpack.c.bf16 %v20823_v20, %v20824_v33 }
 0xf1e   :  { %11393 = vmatprep.mubr.bf16.mxu1 %v20795_v23  ;;  %v20822_v31 = vpack.c.bf16 %v20820_v25, %v20821_v36 }
 0xf20   :  { %v11179_v5 = vpop.f32.mrb[116].mxu1 }
 0xf21   :  { %v13889_v14 = vpack.c.bf16 %v11179_v5, %v11179_v5  ;;  %v11181_v52 = vpop.f32.mrb[117].mxu1 }
 0xf22   :  { %v11182_v13 = vpop.f32.mrb[118].mxu1 }
 0xf23   :  { %12668 = vst [vmem:[#allocation12 + $0x1d4] sm:$0xf] %v13889_v14  ;;  %v13890_v41 = vpack.c.bf16 %v11182_v13, %v11182_v13  ;;  %v11184_v16 = vpop.f32.mrb[119].mxu1  ;;  %v20826_v13 = vld [vmem:[#allocation171_spill] sm:$0xff] }
 0xf25   :  { %12669 = vst [vmem:[#allocation12 + $0x1dc] sm:$0xf] %v13890_v41  ;;  %11394 = vmatmul.mubr.bf16.gmra.mrb[224].mxu1 %v20798_v48  ;;  %v20827_v41 = vld [vmem:[#allocation163_spill] sm:$0xff]  ;;  %v20831_v48 = vpack.c.bf16 %v20829_v55, %v20830_v12 }
 0xf26   :  { %11401 = vmatprep.mubr.bf16.mxu1 %v20801_v11  ;;  %v20828_v16 = vpack.c.bf16 %v20826_v13, %v20827_v41 }
 0xf28   :  { %v11187_v32 = vpop.f32.mrb[120].mxu1 }
 0xf29   :  { %v13891_v43 = vpack.c.bf16 %v11187_v32, %v11187_v32  ;;  %v11189_v26 = vpop.f32.mrb[121].mxu1 }
 0xf2a   :  { %v11190_v4 = vpop.f32.mrb[122].mxu1 }
 0xf2b   :  { %12670 = vst [vmem:[#allocation12 + $0x1e4] sm:$0xf] %v13891_v43  ;;  %v13892_v2 = vpack.c.bf16 %v11190_v4, %v11190_v4  ;;  %v11192_v19 = vpop.f32.mrb[123].mxu1  ;;  %v20832_v4 = vld [vmem:[#allocation177_spill] sm:$0xff] }
 0xf2d   :  { %12671 = vst [vmem:[#allocation12 + $0x1ec] sm:$0xf] %v13892_v2  ;;  %11402 = vmatmul.mubr.bf16.gmra.mrb[228].mxu1 %v20804_v7  ;;  %v20833_v2 = vld [vmem:[#allocation169_spill] sm:$0xff] }
 0xf2e   :  { %11409 = vmatprep.mubr.bf16.mxu1 %v20807_v29  ;;  %v20834_v19 = vpack.c.bf16 %v20832_v4, %v20833_v2 }
 0xf30   :  { %v11195_v46 = vpop.f32.mrb[124].mxu1 }
 0xf31   :  { %v13893_v47 = vpack.c.bf16 %v11195_v46, %v11195_v46  ;;  %v11197_v63 = vpop.f32.mrb[125].mxu1 }
 0xf32   :  { %v11198_v3 = vpop.f32.mrb[126].mxu1  ;;  %v20837_v63 = vld [vmem:[#allocation183_spill] sm:$0xff] }
 0xf33   :  { %12672 = vst [vmem:[#allocation12 + $0x1f4] sm:$0xf] %v13893_v47  ;;  %v13894_v8 = vpack.c.bf16 %v11198_v3, %v11198_v3  ;;  %v11200_v9 = vpop.f32.mrb[127].mxu1  ;;  %v20838_v3 = vld [vmem:[#allocation175_spill] sm:$0xff] }
 0xf35   :  { %12673 = vst [vmem:[#allocation12 + $0x1fc] sm:$0xf] %v13894_v8  ;;  %11410 = vmatmul.mubr.bf16.gmra.mrb[232].mxu1 %v20810_v45  ;;  %v20839_v8 = vpack.c.bf16 %v20837_v63, %v20838_v3 }
 0xf36   :  { %11417 = vmatprep.mubr.bf16.mxu1 %v20813_v30 }
 0xf38   :  { %v11203_v40 = vpop.f32.mrb[128].mxu1 }
 0xf39   :  { %v13895_v50 = vpack.c.bf16 %v11203_v40, %v11203_v40  ;;  %v11205_v49 = vpop.f32.mrb[129].mxu1 }
 0xf3a   :  { %v11206_v1 = vpop.f32.mrb[130].mxu1 }
 0xf3b   :  { %12674 = vst [vmem:[#allocation12 + $0x204] sm:$0xf] %v13895_v50  ;;  %v13896_v51 = vpack.c.bf16 %v11206_v1, %v11206_v1  ;;  %v11208_v39 = vpop.f32.mrb[131].mxu1 }
 0xf3d   :  { %12675 = vst [vmem:[#allocation12 + $0x20c] sm:$0xf] %v13896_v51  ;;  %11418 = vmatmul.mubr.bf16.gmra.mrb[236].mxu1 %v20816_v21 }
 0xf3e   :  { %11425 = vmatprep.mubr.bf16.mxu1 %v20819_v22 }
 0xf40   :  { %v11211_v56 = vpop.f32.mrb[132].mxu1 }
 0xf41   :  { %v13897_v54 = vpack.c.bf16 %v11211_v56, %v11211_v56  ;;  %v11213_v62 = vpop.f32.mrb[133].mxu1 }
 0xf42   :  { %v11214_v18 = vpop.f32.mrb[134].mxu1 }
 0xf43   :  { %12676 = vst [vmem:[#allocation12 + $0x214] sm:$0xf] %v13897_v54  ;;  %v13898_v37 = vpack.c.bf16 %v11214_v18, %v11214_v18  ;;  %v11216_v6 = vpop.f32.mrb[135].mxu1 }
 0xf45   :  { %12677 = vst [vmem:[#allocation12 + $0x21c] sm:$0xf] %v13898_v37  ;;  %11426 = vmatmul.mubr.bf16.gmra.mrb[240].mxu1 %v20822_v31 }
 0xf46   :  { %11433 = vmatprep.mubr.bf16.mxu1 %v20825_v34 }
 0xf48   :  { %v11219_v10 = vpop.f32.mrb[136].mxu1 }
 0xf49   :  { %v13899_v53 = vpack.c.bf16 %v11219_v10, %v11219_v10  ;;  %v11221_v23 = vpop.f32.mrb[137].mxu1 }
 0xf4a   :  { %v11222_v5 = vpop.f32.mrb[138].mxu1 }
 0xf4b   :  { %12678 = vst [vmem:[#allocation12 + $0x224] sm:$0xf] %v13899_v53  ;;  %v13900_v14 = vpack.c.bf16 %v11222_v5, %v11222_v5  ;;  %v11224_v52 = vpop.f32.mrb[139].mxu1 }
 0xf4d   :  { %12679 = vst [vmem:[#allocation12 + $0x22c] sm:$0xf] %v13900_v14  ;;  %11434 = vmatmul.mubr.bf16.gmra.mrb[244].mxu1 %v20828_v16 }
 0xf4e   :  { %11441 = vmatprep.mubr.bf16.mxu1 %v20831_v48 }
 0xf50   :  { %v11227_v35 = vpop.f32.mrb[140].mxu1 }
 0xf51   :  { %v13901_v61 = vpack.c.bf16 %v11227_v35, %v11227_v35  ;;  %v11229_v11 = vpop.f32.mrb[141].mxu1 }
 0xf52   :  { %v11230_v32 = vpop.f32.mrb[142].mxu1 }
 0xf53   :  { %12680 = vst [vmem:[#allocation12 + $0x234] sm:$0xf] %v13901_v61  ;;  %v13902_v43 = vpack.c.bf16 %v11230_v32, %v11230_v32  ;;  %v11232_v26 = vpop.f32.mrb[143].mxu1 }
 0xf55   :  { %12681 = vst [vmem:[#allocation12 + $0x23c] sm:$0xf] %v13902_v43  ;;  %11442 = vmatmul.mubr.bf16.gmra.mrb[248].mxu1 %v20834_v19 }
 0xf56   :  { %11449 = vmatprep.mubr.bf16.mxu1 %v20836_v58 }
 0xf58   :  { %v11235_v7 = vpop.f32.mrb[144].mxu1 }
 0xf59   :  { %v13903_v60 = vpack.c.bf16 %v11235_v7, %v11235_v7  ;;  %v11237_v27 = vpop.f32.mrb[145].mxu1 }
 0xf5a   :  { %v11238_v29 = vpop.f32.mrb[146].mxu1 }
 0xf5b   :  { %12682 = vst [vmem:[#allocation12 + $0x244] sm:$0xf] %v13903_v60  ;;  %v13904_v46 = vpack.c.bf16 %v11238_v29, %v11238_v29  ;;  %v11240_v47 = vpop.f32.mrb[147].mxu1 }
 0xf5d   :  { %12683 = vst [vmem:[#allocation12 + $0x24c] sm:$0xf] %v13904_v46  ;;  %11450 = vmatmul.mubr.bf16.gmra.mrb[252].mxu1 %v20839_v8 }
 0xf60   :  { %v11243_v9 = vpop.f32.mrb[148].mxu1 }
 0xf61   :  { %v13905_v44 = vpack.c.bf16 %v11243_v9, %v11243_v9  ;;  %v11245_v24 = vpop.f32.mrb[149].mxu1 }
 0xf62   :  { %v11246_v45 = vpop.f32.mrb[150].mxu1 }
 0xf63   :  { %12684 = vst [vmem:[#allocation12 + $0x254] sm:$0xf] %v13905_v44  ;;  %v13906_v17 = vpack.c.bf16 %v11246_v45, %v11246_v45  ;;  %v11248_v15 = vpop.f32.mrb[151].mxu1 }
 0xf65   :  { %12685 = vst [vmem:[#allocation12 + $0x25c] sm:$0xf] %v13906_v17 }
 0xf68   :  { %v11251_v0 = vpop.f32.mrb[152].mxu1 }
 0xf69   :  { %v13907_v30 = vpack.c.bf16 %v11251_v0, %v11251_v0  ;;  %v11253_v40 = vpop.f32.mrb[153].mxu1 }
 0xf6a   :  { %v11254_v50 = vpop.f32.mrb[154].mxu1 }
 0xf6b   :  { %12686 = vst [vmem:[#allocation12 + $0x264] sm:$0xf] %v13907_v30  ;;  %v13908_v49 = vpack.c.bf16 %v11254_v50, %v11254_v50  ;;  %v11256_v1 = vpop.f32.mrb[155].mxu1 }
 0xf6d   :  { %12687 = vst [vmem:[#allocation12 + $0x26c] sm:$0xf] %v13908_v49 }
 0xf70   :  { %v11259_v51 = vpop.f32.mrb[156].mxu1 }
 0xf71   :  { %v13909_v39 = vpack.c.bf16 %v11259_v51, %v11259_v51  ;;  %v11261_v28 = vpop.f32.mrb[157].mxu1 }
 0xf72   :  { %v11262_v57 = vpop.f32.mrb[158].mxu1 }
 0xf73   :  { %12688 = vst [vmem:[#allocation12 + $0x274] sm:$0xf] %v13909_v39  ;;  %v13910_v21 = vpack.c.bf16 %v11262_v57, %v11262_v57  ;;  %v11264_v59 = vpop.f32.mrb[159].mxu1 }
 0xf75   :  { %12689 = vst [vmem:[#allocation12 + $0x27c] sm:$0xf] %v13910_v21 }
 0xf78   :  { %v11267_v42 = vpop.f32.mrb[160].mxu1 }
 0xf79   :  { %v13911_v22 = vpack.c.bf16 %v11267_v42, %v11267_v42  ;;  %v11269_v56 = vpop.f32.mrb[161].mxu1 }
 0xf7a   :  { %v11270_v54 = vpop.f32.mrb[162].mxu1 }
 0xf7b   :  { %12690 = vst [vmem:[#allocation12 + $0x284] sm:$0xf] %v13911_v22  ;;  %v13912_v62 = vpack.c.bf16 %v11270_v54, %v11270_v54  ;;  %v11272_v18 = vpop.f32.mrb[163].mxu1 }
 0xf7d   :  { %12691 = vst [vmem:[#allocation12 + $0x28c] sm:$0xf] %v13912_v62 }
 0xf80   :  { %v11275_v37 = vpop.f32.mrb[164].mxu1 }
 0xf81   :  { %v13913_v6 = vpack.c.bf16 %v11275_v37, %v11275_v37  ;;  %v11277_v25 = vpop.f32.mrb[165].mxu1 }
 0xf82   :  { %v11278_v36 = vpop.f32.mrb[166].mxu1 }
 0xf83   :  { %12692 = vst [vmem:[#allocation12 + $0x294] sm:$0xf] %v13913_v6  ;;  %v13914_v31 = vpack.c.bf16 %v11278_v36, %v11278_v36  ;;  %v11280_v20 = vpop.f32.mrb[167].mxu1 }
 0xf85   :  { %12693 = vst [vmem:[#allocation12 + $0x29c] sm:$0xf] %v13914_v31 }
 0xf88   :  { %v11283_v33 = vpop.f32.mrb[168].mxu1 }
 0xf89   :  { %v13915_v34 = vpack.c.bf16 %v11283_v33, %v11283_v33  ;;  %v11285_v10 = vpop.f32.mrb[169].mxu1 }
 0xf8a   :  { %v11286_v53 = vpop.f32.mrb[170].mxu1 }
 0xf8b   :  { %12694 = vst [vmem:[#allocation12 + $0x2a4] sm:$0xf] %v13915_v34  ;;  %v13916_v23 = vpack.c.bf16 %v11286_v53, %v11286_v53  ;;  %v11288_v5 = vpop.f32.mrb[171].mxu1 }
 0xf8d   :  { %12695 = vst [vmem:[#allocation12 + $0x2ac] sm:$0xf] %v13916_v23 }
 0xf90   :  { %v11291_v14 = vpop.f32.mrb[172].mxu1 }
 0xf91   :  { %v13917_v52 = vpack.c.bf16 %v11291_v14, %v11291_v14  ;;  %v11293_v13 = vpop.f32.mrb[173].mxu1 }
 0xf92   :  { %v11294_v41 = vpop.f32.mrb[174].mxu1 }
 0xf93   :  { %12696 = vst [vmem:[#allocation12 + $0x2b4] sm:$0xf] %v13917_v52  ;;  %v13918_v16 = vpack.c.bf16 %v11294_v41, %v11294_v41  ;;  %v11296_v55 = vpop.f32.mrb[175].mxu1 }
 0xf95   :  { %12697 = vst [vmem:[#allocation12 + $0x2bc] sm:$0xf] %v13918_v16 }
 0xf98   :  { %v11299_v12 = vpop.f32.mrb[176].mxu1 }
 0xf99   :  { %v13919_v48 = vpack.c.bf16 %v11299_v12, %v11299_v12  ;;  %v11301_v35 = vpop.f32.mrb[177].mxu1 }
 0xf9a   :  { %v11302_v61 = vpop.f32.mrb[178].mxu1 }
 0xf9b   :  { %12698 = vst [vmem:[#allocation12 + $0x2c4] sm:$0xf] %v13919_v48  ;;  %v13920_v11 = vpack.c.bf16 %v11302_v61, %v11302_v61  ;;  %v11304_v32 = vpop.f32.mrb[179].mxu1 }
 0xf9d   :  { %12699 = vst [vmem:[#allocation12 + $0x2cc] sm:$0xf] %v13920_v11 }
 0xfa0   :  { %v11307_v43 = vpop.f32.mrb[180].mxu1 }
 0xfa1   :  { %v13921_v26 = vpack.c.bf16 %v11307_v43, %v11307_v43  ;;  %v11309_v4 = vpop.f32.mrb[181].mxu1 }
 0xfa2   :  { %v11310_v2 = vpop.f32.mrb[182].mxu1 }
 0xfa3   :  { %12700 = vst [vmem:[#allocation12 + $0x2d4] sm:$0xf] %v13921_v26  ;;  %v13922_v19 = vpack.c.bf16 %v11310_v2, %v11310_v2  ;;  %v11312_v38 = vpop.f32.mrb[183].mxu1 }
 0xfa5   :  { %12701 = vst [vmem:[#allocation12 + $0x2dc] sm:$0xf] %v13922_v19 }
 0xfa8   :  { %v11315_v58 = vpop.f32.mrb[184].mxu1 }
 0xfa9   :  { %v13923_v7 = vpack.c.bf16 %v11315_v58, %v11315_v58  ;;  %v11317_v60 = vpop.f32.mrb[185].mxu1 }
 0xfaa   :  { %v11318_v27 = vpop.f32.mrb[186].mxu1 }
 0xfab   :  { %12702 = vst [vmem:[#allocation12 + $0x2e4] sm:$0xf] %v13923_v7  ;;  %v13924_v29 = vpack.c.bf16 %v11318_v27, %v11318_v27  ;;  %v11320_v46 = vpop.f32.mrb[187].mxu1 }
 0xfad   :  { %12703 = vst [vmem:[#allocation12 + $0x2ec] sm:$0xf] %v13924_v29 }
 0xfb0   :  { %v11323_v47 = vpop.f32.mrb[188].mxu1 }
 0xfb1   :  { %v13925_v63 = vpack.c.bf16 %v11323_v47, %v11323_v47  ;;  %v11325_v3 = vpop.f32.mrb[189].mxu1 }
 0xfb2   :  { %v11326_v8 = vpop.f32.mrb[190].mxu1 }
 0xfb3   :  { %12704 = vst [vmem:[#allocation12 + $0x2f4] sm:$0xf] %v13925_v63  ;;  %v13926_v9 = vpack.c.bf16 %v11326_v8, %v11326_v8  ;;  %v11328_v44 = vpop.f32.mrb[191].mxu1 }
 0xfb5   :  { %12705 = vst [vmem:[#allocation12 + $0x2fc] sm:$0xf] %v13926_v9 }
 0xfb6   :  { %15083 = shalt.err (!%p15080_p8)
}
 0xfb7   :  { %s15084_s26 = scalar_lea.hbm %s18895_s4, 65536 }
 0xfb8   :  { %p15085_p9 = scmp.ne.s32.totalorder %s18895_s4, %s15084_s26  ;;  %p15088_p10 = scmp.lt.u32.totalorder %s15084_s26, %s18895_s4 }
 0xfba   :  { %p15090_p11 = pnand %p15088_p10, %p15085_p9 }
 0xfbc   :  { %15093 = shalt.err (!%p15090_p11)
}
 0xfbd   :  { %12749 = dma.vmem_to_hbm [thread:$0]  %s12744_s22, 65536, %s18895_s4, [#allocation5], %s15130_s1, %s15130_s1, %s15131_s17   ;;  %v11331_v24 = vpop.f32.mrb[192].mxu1 }
 0xfbe   :  { %v13927_v45 = vpack.c.bf16 %v11331_v24, %v11331_v24  ;;  %v11333_v17 = vpop.f32.mrb[193].mxu1  ;;  %s15138_s4 = smov [#allocation12]  }
 0xfbf   :  { %v11334_v15 = vpop.f32.mrb[194].mxu1  ;;  %s12755_s1 = sshll.u32 %s15138_s4, 4  ;;  %s12756_s1 = int_to_ptr.vmem [resolvable:$true] %s12755_s1 }
 0xfc0   :  { %12706 = vst [vmem:[#allocation12 + $0x304] sm:$0xf] %v13927_v45  ;;  %v13928_v0 = vpack.c.bf16 %v11334_v15, %v11334_v15  ;;  %v11336_v30 = vpop.f32.mrb[195].mxu1  ;;  %s15094_s17 = scalar_lea.vmem %s12756_s1, 16384  ;;  %p15099_p13 = scmp.lt.s32.totalorder %s12756_s1, %s12756_s1 }
 0xfc1   :  { %v11339_v40 = vpop.f32.mrb[196].mxu1  ;;  %p15095_p12 = scmp.ne.s32.totalorder %s12756_s1, %s15094_s17  ;;  %p15100_p0 = scmp.lt.s32.totalorder %s15094_s17, %s15094_s17 }
 0xfc2   :  { %12707 = vst [vmem:[#allocation12 + $0x30c] sm:$0xf] %v13928_v0  ;;  %v13929_v50 = vpack.c.bf16 %v11339_v40, %v11339_v40  ;;  %v11341_v49 = vpop.f32.mrb[197].mxu1 }
 0xfc3   :  { %v11342_v1 = vpop.f32.mrb[198].mxu1  ;;  %p15101_p1 = por %p15100_p0, %p15099_p13 }
 0xfc4   :  { %12708 = vst [vmem:[#allocation12 + $0x314] sm:$0xf] %v13929_v50  ;;  %v13930_v51 = vpack.c.bf16 %v11342_v1, %v11342_v1  ;;  %v11344_v39 = vpop.f32.mrb[199].mxu1 }
 0xfc5   :  { %p15102_p2 = pnand %p15101_p1, %p15095_p12 }
 0xfc6   :  { %12709 = vst [vmem:[#allocation12 + $0x31c] sm:$0xf] %v13930_v51 }
 0xfc8   :  { %v11347_v28 = vpop.f32.mrb[200].mxu1 }
 0xfc9   :  { %v13931_v57 = vpack.c.bf16 %v11347_v28, %v11347_v28  ;;  %v11349_v21 = vpop.f32.mrb[201].mxu1 }
 0xfca   :  { %v11350_v59 = vpop.f32.mrb[202].mxu1 }
 0xfcb   :  { %12710 = vst [vmem:[#allocation12 + $0x324] sm:$0xf] %v13931_v57  ;;  %v13932_v42 = vpack.c.bf16 %v11350_v59, %v11350_v59  ;;  %v11352_v22 = vpop.f32.mrb[203].mxu1 }
 0xfcd   :  { %12711 = vst [vmem:[#allocation12 + $0x32c] sm:$0xf] %v13932_v42 }
 0xfd0   :  { %v11355_v56 = vpop.f32.mrb[204].mxu1 }
 0xfd1   :  { %v13933_v54 = vpack.c.bf16 %v11355_v56, %v11355_v56  ;;  %v11357_v62 = vpop.f32.mrb[205].mxu1 }
 0xfd2   :  { %v11358_v18 = vpop.f32.mrb[206].mxu1 }
 0xfd3   :  { %12712 = vst [vmem:[#allocation12 + $0x334] sm:$0xf] %v13933_v54  ;;  %v13934_v37 = vpack.c.bf16 %v11358_v18, %v11358_v18  ;;  %v11360_v6 = vpop.f32.mrb[207].mxu1 }
 0xfd5   :  { %12713 = vst [vmem:[#allocation12 + $0x33c] sm:$0xf] %v13934_v37 }
 0xfd8   :  { %v11363_v25 = vpop.f32.mrb[208].mxu1 }
 0xfd9   :  { %v13935_v36 = vpack.c.bf16 %v11363_v25, %v11363_v25  ;;  %v11365_v31 = vpop.f32.mrb[209].mxu1 }
 0xfda   :  { %v11366_v20 = vpop.f32.mrb[210].mxu1 }
 0xfdb   :  { %12714 = vst [vmem:[#allocation12 + $0x344] sm:$0xf] %v13935_v36  ;;  %v13936_v33 = vpack.c.bf16 %v11366_v20, %v11366_v20  ;;  %v11368_v34 = vpop.f32.mrb[211].mxu1 }
 0xfdd   :  { %12715 = vst [vmem:[#allocation12 + $0x34c] sm:$0xf] %v13936_v33 }
 0xfe0   :  { %v11371_v10 = vpop.f32.mrb[212].mxu1 }
 0xfe1   :  { %v13937_v53 = vpack.c.bf16 %v11371_v10, %v11371_v10  ;;  %v11373_v23 = vpop.f32.mrb[213].mxu1 }
 0xfe2   :  { %v11374_v5 = vpop.f32.mrb[214].mxu1 }
 0xfe3   :  { %12716 = vst [vmem:[#allocation12 + $0x354] sm:$0xf] %v13937_v53  ;;  %v13938_v14 = vpack.c.bf16 %v11374_v5, %v11374_v5  ;;  %v11376_v52 = vpop.f32.mrb[215].mxu1 }
 0xfe5   :  { %12717 = vst [vmem:[#allocation12 + $0x35c] sm:$0xf] %v13938_v14 }
 0xfe8   :  { %v11379_v13 = vpop.f32.mrb[216].mxu1 }
 0xfe9   :  { %v13939_v41 = vpack.c.bf16 %v11379_v13, %v11379_v13  ;;  %v11381_v16 = vpop.f32.mrb[217].mxu1 }
 0xfea   :  { %v11382_v55 = vpop.f32.mrb[218].mxu1 }
 0xfeb   :  { %12718 = vst [vmem:[#allocation12 + $0x364] sm:$0xf] %v13939_v41  ;;  %v13940_v12 = vpack.c.bf16 %v11382_v55, %v11382_v55  ;;  %v11384_v48 = vpop.f32.mrb[219].mxu1 }
 0xfed   :  { %12719 = vst [vmem:[#allocation12 + $0x36c] sm:$0xf] %v13940_v12 }
 0xff0   :  { %v11387_v35 = vpop.f32.mrb[220].mxu1 }
 0xff1   :  { %v13941_v61 = vpack.c.bf16 %v11387_v35, %v11387_v35  ;;  %v11389_v11 = vpop.f32.mrb[221].mxu1 }
 0xff2   :  { %v11390_v32 = vpop.f32.mrb[222].mxu1 }
 0xff3   :  { %12720 = vst [vmem:[#allocation12 + $0x374] sm:$0xf] %v13941_v61  ;;  %v13942_v43 = vpack.c.bf16 %v11390_v32, %v11390_v32  ;;  %v11392_v26 = vpop.f32.mrb[223].mxu1 }
 0xff5   :  { %12721 = vst [vmem:[#allocation12 + $0x37c] sm:$0xf] %v13942_v43 }
 0xff8   :  { %v11395_v4 = vpop.f32.mrb[224].mxu1 }
 0xff9   :  { %v13943_v2 = vpack.c.bf16 %v11395_v4, %v11395_v4  ;;  %v11397_v19 = vpop.f32.mrb[225].mxu1 }
 0xffa   :  { %v11398_v38 = vpop.f32.mrb[226].mxu1 }
 0xffb   :  { %12722 = vst [vmem:[#allocation12 + $0x384] sm:$0xf] %v13943_v2  ;;  %v13944_v58 = vpack.c.bf16 %v11398_v38, %v11398_v38  ;;  %v11400_v7 = vpop.f32.mrb[227].mxu1 }
 0xffd   :  { %12723 = vst [vmem:[#allocation12 + $0x38c] sm:$0xf] %v13944_v58 }
0x1000   :  { %v11403_v60 = vpop.f32.mrb[228].mxu1 }
0x1001   :  { %v13945_v27 = vpack.c.bf16 %v11403_v60, %v11403_v60  ;;  %v11405_v29 = vpop.f32.mrb[229].mxu1 }
0x1002   :  { %v11406_v46 = vpop.f32.mrb[230].mxu1 }
0x1003   :  { %12724 = vst [vmem:[#allocation12 + $0x394] sm:$0xf] %v13945_v27  ;;  %v13946_v47 = vpack.c.bf16 %v11406_v46, %v11406_v46  ;;  %v11408_v63 = vpop.f32.mrb[231].mxu1 }
0x1005   :  { %12725 = vst [vmem:[#allocation12 + $0x39c] sm:$0xf] %v13946_v47 }
0x1008   :  { %v11411_v3 = vpop.f32.mrb[232].mxu1 }
0x1009   :  { %v13947_v8 = vpack.c.bf16 %v11411_v3, %v11411_v3  ;;  %v11413_v9 = vpop.f32.mrb[233].mxu1 }
0x100a   :  { %v11414_v44 = vpop.f32.mrb[234].mxu1 }
0x100b   :  { %12726 = vst [vmem:[#allocation12 + $0x3a4] sm:$0xf] %v13947_v8  ;;  %v13948_v24 = vpack.c.bf16 %v11414_v44, %v11414_v44  ;;  %v11416_v45 = vpop.f32.mrb[235].mxu1 }
0x100d   :  { %12727 = vst [vmem:[#allocation12 + $0x3ac] sm:$0xf] %v13948_v24 }
0x1010   :  { %v11419_v17 = vpop.f32.mrb[236].mxu1 }
0x1011   :  { %v13949_v15 = vpack.c.bf16 %v11419_v17, %v11419_v17  ;;  %v11421_v0 = vpop.f32.mrb[237].mxu1 }
0x1012   :  { %v11422_v30 = vpop.f32.mrb[238].mxu1 }
0x1013   :  { %12728 = vst [vmem:[#allocation12 + $0x3b4] sm:$0xf] %v13949_v15  ;;  %v13950_v40 = vpack.c.bf16 %v11422_v30, %v11422_v30  ;;  %v11424_v50 = vpop.f32.mrb[239].mxu1 }
0x1015   :  { %12729 = vst [vmem:[#allocation12 + $0x3bc] sm:$0xf] %v13950_v40 }
0x1018   :  { %v11427_v49 = vpop.f32.mrb[240].mxu1 }
0x1019   :  { %v13951_v1 = vpack.c.bf16 %v11427_v49, %v11427_v49  ;;  %v11429_v51 = vpop.f32.mrb[241].mxu1 }
0x101a   :  { %v11430_v39 = vpop.f32.mrb[242].mxu1 }
0x101b   :  { %12730 = vst [vmem:[#allocation12 + $0x3c4] sm:$0xf] %v13951_v1  ;;  %v13952_v28 = vpack.c.bf16 %v11430_v39, %v11430_v39  ;;  %v11432_v57 = vpop.f32.mrb[243].mxu1 }
0x101d   :  { %12731 = vst [vmem:[#allocation12 + $0x3cc] sm:$0xf] %v13952_v28 }
0x1020   :  { %v11435_v21 = vpop.f32.mrb[244].mxu1 }
0x1021   :  { %v13953_v59 = vpack.c.bf16 %v11435_v21, %v11435_v21  ;;  %v11437_v42 = vpop.f32.mrb[245].mxu1 }
0x1022   :  { %v11438_v22 = vpop.f32.mrb[246].mxu1 }
0x1023   :  { %12732 = vst [vmem:[#allocation12 + $0x3d4] sm:$0xf] %v13953_v59  ;;  %v13954_v56 = vpack.c.bf16 %v11438_v22, %v11438_v22  ;;  %v11440_v54 = vpop.f32.mrb[247].mxu1 }
0x1025   :  { %12733 = vst [vmem:[#allocation12 + $0x3dc] sm:$0xf] %v13954_v56 }
0x1028   :  { %v11443_v62 = vpop.f32.mrb[248].mxu1 }
0x1029   :  { %v13955_v18 = vpack.c.bf16 %v11443_v62, %v11443_v62  ;;  %v11445_v37 = vpop.f32.mrb[249].mxu1 }
0x102a   :  { %v11446_v6 = vpop.f32.mrb[250].mxu1 }
0x102b   :  { %12734 = vst [vmem:[#allocation12 + $0x3e4] sm:$0xf] %v13955_v18  ;;  %v13956_v25 = vpack.c.bf16 %v11446_v6, %v11446_v6  ;;  %v11448_v36 = vpop.f32.mrb[251].mxu1 }
0x102d   :  { %12735 = vst [vmem:[#allocation12 + $0x3ec] sm:$0xf] %v13956_v25 }
0x1030   :  { %v11451_v31 = vpop.f32.mrb[252].mxu1 }
0x1031   :  { %v13957_v20 = vpack.c.bf16 %v11451_v31, %v11451_v31  ;;  %v11453_v33 = vpop.f32.mrb[253].mxu1 }
0x1032   :  { %v11454_v34 = vpop.f32.mrb[254].mxu1 }
0x1033   :  { %12736 = vst [vmem:[#allocation12 + $0x3f4] sm:$0xf] %v13957_v20  ;;  %v13958_v10 = vpack.c.bf16 %v11454_v34, %v11454_v34  ;;  %v11456_v53 = vpop.f32.mrb[255].mxu1 }
0x1035   :  { %12737 = vst [vmem:[#allocation12 + $0x3fc] sm:$0xf] %v13958_v10 }
0x1036   :  { %15105 = shalt.err (!%p15102_p2)
}
0x1037   :  { %s15106_s11 = scalar_lea.hbm %s18896_s5, 16384 }
0x1038   :  { %p15107_p3 = scmp.ne.s32.totalorder %s18896_s5, %s15106_s11  ;;  %p15110_p4 = scmp.lt.u32.totalorder %s15106_s11, %s18896_s5 }
0x103a   :  { %p15112_p5 = pnand %p15110_p4, %p15107_p3 }
0x103c   :  { %15115 = shalt.err (!%p15112_p5)
}
0x103d   :  { %12761 = dma.vmem_to_hbm [thread:$0]  %s12756_s1, 16384, %s18896_s5, [#allocation13], %s15127_s28, %s15127_s28, %s15128_s29  }
0x103e   :  { %15122 = dma.done.wait [#allocation5], 65536  }
0x103f   :  { %15123 = vsyncadd [#allocation5], 4294901760 }
0x1040   :  { %15124 = dma.done.wait [#allocation13], 16384  }
0x1041   :  { %15125 = vsyncadd [#allocation13], 4294950912 }
0x1042   :  { %12768 = vsyncpa [#allocation4], 1 }
0x1043   :  { %12769 = vsyncpa [#allocation7], 1 }
0x1044   :  { %12770 = vsyncpa [#allocation10], 1 }
0x1045   :  { %12771 = vsyncpa [#allocation5], 1 }
0x1046   :  { %12772 = vsyncpa [#allocation13], 1 }

</bundles_post_ra>
